<compile_context>
chip_gen: v7x
topology: tpu7x:2x2x1
jax: 0.10.0
libtpu: 0.0.40
codegen_flags: <defaults>
</compile_context>

<pallas_src>
import functools
import math

import jax
import jax.numpy as jnp
from jax import lax
from jax.experimental import pallas as pl
from jax.experimental.pallas import tpu as pltpu


def _layernorm(x, gamma, beta, eps=1e-5):
    # x: (rows, D); gamma, beta: (1, D)
    mean = jnp.mean(x, axis=-1, keepdims=True)
    var = jnp.mean((x - mean) ** 2, axis=-1, keepdims=True)
    inv = lax.rsqrt(var + eps)
    return (x - mean) * inv * gamma + beta


def _mha_res_ln(q2d, kv2d, bt, nq, nk, k_valid,
                wq_ref, wk_ref, wv_ref, wo_ref, g_ref, b_ref,
                *, n_heads, d_k, d_v, mm_dtype):
    """Multi-head attention + residual + LayerNorm.

    q2d : (bt*nq, D) f32   queries (also the residual input)
    kv2d: (bt*nk, D) f32   keys / values source
    wq_ref/wk_ref: (H, D, d_k), wv_ref: (H, D, d_v), wo_ref: (H, d_v, D)
    Returns (bt*nq, D) f32.
    """
    D = q2d.shape[-1]
    scale = 1.0 / math.sqrt(d_k)
    q_mm = q2d.astype(mm_dtype)
    kv_mm = kv2d.astype(mm_dtype)

    need_mask = k_valid < nk          # static python bool
    if need_mask:
        key_idx = lax.broadcasted_iota(jnp.int32, (1, nq, nk), 2)
        key_mask = key_idx < k_valid  # (1, nq, nk)

    attn_out = jnp.zeros((bt * nq, D), jnp.float32)
    for h in range(n_heads):          # small static unroll; head = batch dim below
        qh = jnp.dot(q_mm, wq_ref[h].astype(mm_dtype),
                     preferred_element_type=jnp.float32).reshape(bt, nq, d_k)
        kh = jnp.dot(kv_mm, wk_ref[h].astype(mm_dtype),
                     preferred_element_type=jnp.float32).reshape(bt, nk, d_k)
        vh = jnp.dot(kv_mm, wv_ref[h].astype(mm_dtype),
                     preferred_element_type=jnp.float32).reshape(bt, nk, d_v)

        # batched scores; contraction on the last dim of both (no .T materialized)
        s = jnp.einsum('bqd,bkd->bqk', qh.astype(mm_dtype), kh.astype(mm_dtype),
                       preferred_element_type=jnp.float32) * scale
        if need_mask:
            s = jnp.where(key_mask, s, -1e30)
        s = s - jnp.max(s, axis=-1, keepdims=True)
        p = jnp.exp(s)                                     # f32 on the VPU/EUP
        p = p * pl.reciprocal(jnp.sum(p, axis=-1, keepdims=True), approx=True)

        ctx = jnp.einsum('bqk,bkd->bqd', p.astype(mm_dtype), vh.astype(mm_dtype),
                         preferred_element_type=jnp.float32)   # (bt, nq, d_v)
        attn_out = attn_out + jnp.dot(
            ctx.reshape(bt * nq, d_v).astype(mm_dtype),
            wo_ref[h].astype(mm_dtype),
            preferred_element_type=jnp.float32)

    return _layernorm(attn_out + q2d, g_ref[...], b_ref[...])


def _decoder_layer_kernel(
    dec_ref,    # (bt, Ndp, D)
    enc_ref,    # (bt, Nep, D)
    sa_wq_ref, sa_wk_ref, sa_wv_ref, sa_wo_ref, sa_g_ref, sa_b_ref,
    ca_wq_ref, ca_wk_ref, ca_wv_ref, ca_wo_ref, ca_g_ref, ca_b_ref,
    w1_ref, b1_ref, w2_ref, b2_ref, f_g_ref, f_b_ref,
    out_ref,    # (bt, Ndp, D)
    *, n_heads, d_k, d_v, dec_valid, enc_valid, mm_dtype,
):
    bt, nq, D = dec_ref.shape
    nk = enc_ref.shape[1]

    x2d = dec_ref[...].reshape(bt * nq, D)       # fold rows -> fill MXU/sublanes
    enc2d = enc_ref[...].reshape(bt * nk, D)

    # --- self-attention + residual + LayerNorm ---
    y1 = _mha_res_ln(x2d, x2d, bt, nq, nq, dec_valid,
                     sa_wq_ref, sa_wk_ref, sa_wv_ref, sa_wo_ref, sa_g_ref, sa_b_ref,
                     n_heads=n_heads, d_k=d_k, d_v=d_v, mm_dtype=mm_dtype)

    # --- cross-attention (queries = y1, keys/values = encoder) + residual + LN ---
    y2 = _mha_res_ln(y1, enc2d, bt, nq, nk, enc_valid,
                     ca_wq_ref, ca_wk_ref, ca_wv_ref, ca_wo_ref, ca_g_ref, ca_b_ref,
                     n_heads=n_heads, d_k=d_k, d_v=d_v, mm_dtype=mm_dtype)

    # --- position-wise FFN + residual + LayerNorm ---
    h1 = jnp.dot(y2.astype(mm_dtype), w1_ref[...].astype(mm_dtype),
                 preferred_element_type=jnp.float32) + b1_ref[...]
    h1 = jnp.maximum(h1, 0.0)
    h2 = jnp.dot(h1.astype(mm_dtype), w2_ref[...].astype(mm_dtype),
                 preferred_element_type=jnp.float32) + b2_ref[...]
    z = _layernorm(h2 + y2, f_g_ref[...], f_b_ref[...])

    out_ref[...] = z.reshape(bt, nq, D).astype(out_ref.dtype)


def decoder_layer_forward(dec, enc, params, *, n_heads, d_k, d_v,
                          block_b=8, matmul_dtype=jnp.float32,
                          vmem_limit_bytes=32 * 1024 * 1024):
    """dec: (B, Nd, D), enc: (B, Ne, D) float32.  Returns (B, Nd, D)."""
    B, Nd, D = dec.shape
    _, Ne, _ = enc.shape
    (sa_wq, sa_wk, sa_wv, sa_wo, sa_g, sa_b,
     ca_wq, ca_wk, ca_wv, ca_wo, ca_g, ca_b,
     w1, b1, w2, b2, f_g, f_b) = params

    # Head-major 3D weight layout (done once on host): avoids per-head lane
    # slicing of Q/K/V inside the kernel.
    def qkv3(w, dh):   # (D, H*dh) -> (H, D, dh)
        return w.reshape(D, n_heads, dh).transpose(1, 0, 2)

    def out3(w, dh):   # (H*dh, D) -> (H, dh, D)
        return w.reshape(n_heads, dh, D)

    weights = (
        qkv3(sa_wq, d_k), qkv3(sa_wk, d_k), qkv3(sa_wv, d_v), out3(sa_wo, d_v),
        sa_g, sa_b,
        qkv3(ca_wq, d_k), qkv3(ca_wk, d_k), qkv3(ca_wv, d_v), out3(ca_wo, d_v),
        ca_g, ca_b,
        w1, b1, w2, b2, f_g, f_b,
    )

    def rup(v, m):
        return (v + m - 1) // m * m

    # Pad seq dims to multiples of 8 (sublane tiling) and batch to block_b.
    Ndp, Nep = rup(Nd, 8), rup(Ne, 8)
    Bp = rup(B, block_b)
    dec_p = jnp.pad(dec, ((0, Bp - B), (0, Ndp - Nd), (0, 0)))
    enc_p = jnp.pad(enc, ((0, Bp - B), (0, Nep - Ne), (0, 0)))

    kernel = functools.partial(
        _decoder_layer_kernel, n_heads=n_heads, d_k=d_k, d_v=d_v,
        dec_valid=Nd, enc_valid=Ne, mm_dtype=matmul_dtype)

    def full_spec(a):
        zeros = (0,) * a.ndim
        return pl.BlockSpec(a.shape, lambda i: zeros)

    out = pl.pallas_call(
        kernel,
        out_shape=jax.ShapeDtypeStruct((Bp, Ndp, D), dec.dtype),
        grid=(Bp // block_b,),
        in_specs=[pl.BlockSpec((block_b, Ndp, D), lambda i: (i, 0, 0)),
                  pl.BlockSpec((block_b, Nep, D), lambda i: (i, 0, 0))]
                 + [full_spec(w) for w in weights],
        out_specs=pl.BlockSpec((block_b, Ndp, D), lambda i: (i, 0, 0)),
        compiler_params=pltpu.CompilerParams(
            dimension_semantics=("parallel",),
            vmem_limit_bytes=vmem_limit_bytes),
    )(dec_p, enc_p, *weights)

    return out[:B, :Nd, :]


def _reference(dec, enc, params, *, n_heads, d_k, d_v):
    """Pure-JAX reference of the PyTorch DecoderLayer forward."""
    (sa_wq, sa_wk, sa_wv, sa_wo, sa_g, sa_b,
     ca_wq, ca_wk, ca_wv, ca_wo, ca_g, ca_b,
     w1, b1, w2, b2, f_g, f_b) = params

    def ln(v, g, b, eps=1e-5):
        m = jnp.mean(v, -1, keepdims=True)
        var = jnp.mean((v - m) ** 2, -1, keepdims=True)
        return (v - m) / jnp.sqrt(var + eps) * g + b

    def mha(q_in, kv_in, wq, wk, wv, wo):
        B, Nq, D = q_in.shape
        Nk = kv_in.shape[1]
        Q = (q_in @ wq).reshape(B, Nq, n_heads, d_k).transpose(0, 2, 1, 3)
        K = (kv_in @ wk).reshape(B, Nk, n_heads, d_k).transpose(0, 2, 1, 3)
        V = (kv_in @ wv).reshape(B, Nk, n_heads, d_v).transpose(0, 2, 1, 3)
        s = Q @ K.transpose(0, 1, 3, 2) / math.sqrt(d_k)
        a = jax.nn.softmax(s, axis=-1)
        ctx = (a @ V).transpose(0, 2, 1, 3).reshape(B, Nq, n_heads * d_v)
        return ctx @ wo

    y1 = ln(mha(dec, dec, sa_wq, sa_wk, sa_wv, sa_wo) + dec, sa_g, sa_b)
    y2 = ln(mha(y1, enc, ca_wq, ca_wk, ca_wv, ca_wo) + y1, ca_g, ca_b)
    f = jnp.maximum(y2 @ w1 + b1, 0.0) @ w2 + b2
    return ln(f + y2, f_g, f_b)


if __name__ == "__main__":
    # small shapes consistent with the module: decoder n = 8, encoder n + 1 = 9
    B, Nd, D = 16, 8, 32
    Ne = Nd + 1
    n_heads, d_k, d_v, d_ff = 4, 8, 8, 64

    key = jax.random.PRNGKey(0)
    ks = jax.random.split(key, 20)
    sc = 0.1
    dec = jax.random.normal(ks[0], (B, Nd, D), jnp.float32)
    enc = jax.random.normal(ks[1], (B, Ne, D), jnp.float32)

    def lin(k, i, o):
        return sc * jax.random.normal(k, (i, o), jnp.float32)

    # weights stored as (in, out) == PyTorch W.T
    sa_wq = lin(ks[2], D, n_heads * d_k)
    sa_wk = lin(ks[3], D, n_heads * d_k)
    sa_wv = lin(ks[4], D, n_heads * d_v)
    sa_wo = lin(ks[5], n_heads * d_v, D)
    sa_g = 1.0 + sc * jax.random.normal(ks[6], (1, D), jnp.float32)
    sa_b = sc * jax.random.normal(ks[7], (1, D), jnp.float32)
    ca_wq = lin(ks[8], D, n_heads * d_k)
    ca_wk = lin(ks[9], D, n_heads * d_k)
    ca_wv = lin(ks[10], D, n_heads * d_v)
    ca_wo = lin(ks[11], n_heads * d_v, D)
    ca_g = 1.0 + sc * jax.random.normal(ks[12], (1, D), jnp.float32)
    ca_b = sc * jax.random.normal(ks[13], (1, D), jnp.float32)
    w1 = lin(ks[14], D, d_ff)
    b1 = sc * jax.random.normal(ks[15], (1, d_ff), jnp.float32)
    w2 = lin(ks[16], d_ff, D)
    b2 = sc * jax.random.normal(ks[17], (1, D), jnp.float32)
    f_g = 1.0 + sc * jax.random.normal(ks[18], (1, D), jnp.float32)
    f_b = sc * jax.random.normal(ks[19], (1, D), jnp.float32)

    params = (sa_wq, sa_wk, sa_wv, sa_wo, sa_g, sa_b,
              ca_wq, ca_wk, ca_wv, ca_wo, ca_g, ca_b,
              w1, b1, w2, b2, f_g, f_b)

    ref = _reference(dec, enc, params, n_heads=n_heads, d_k=d_k, d_v=d_v)

    # f32 matmul inputs (exact path; right choice for v5e vector units too)
    out = decoder_layer_forward(dec, enc, params, n_heads=n_heads, d_k=d_k,
                                d_v=d_v, block_b=8, matmul_dtype=jnp.float32)
    out = jax.block_until_ready(out)
    assert out.shape == (B, Nd, D), out.shape
    assert jnp.allclose(out, ref, atol=1e-2, rtol=1e-2), \
        float(jnp.max(jnp.abs(out - ref)))

    # bf16 MXU inputs (recommended on v6e/v7x); f32 accumulation + f32 LN/softmax
    out_bf16 = decoder_layer_forward(dec, enc, params, n_heads=n_heads, d_k=d_k,
                                     d_v=d_v, block_b=8,
                                     matmul_dtype=jnp.bfloat16)
    out_bf16 = jax.block_until_ready(out_bf16)
    assert jnp.allclose(out_bf16, ref, atol=1e-1, rtol=1e-1)

    print("KERNEL_OK")
</pallas_src>

<mosaic_0001>
module attributes {stable_mosaic.version = 11 : i64} {
  func.func @_decoder_layer_kernel(%arg0: i32, %arg1: memref<8x8x32xf32, #tpu.memory_space<vmem>>, %arg2: memref<8x16x32xf32, #tpu.memory_space<vmem>>, %arg3: memref<4x32x8xf32, #tpu.memory_space<vmem>>, %arg4: memref<4x32x8xf32, #tpu.memory_space<vmem>>, %arg5: memref<4x32x8xf32, #tpu.memory_space<vmem>>, %arg6: memref<4x8x32xf32, #tpu.memory_space<vmem>>, %arg7: memref<1x32xf32, #tpu.memory_space<vmem>>, %arg8: memref<1x32xf32, #tpu.memory_space<vmem>>, %arg9: memref<4x32x8xf32, #tpu.memory_space<vmem>>, %arg10: memref<4x32x8xf32, #tpu.memory_space<vmem>>, %arg11: memref<4x32x8xf32, #tpu.memory_space<vmem>>, %arg12: memref<4x8x32xf32, #tpu.memory_space<vmem>>, %arg13: memref<1x32xf32, #tpu.memory_space<vmem>>, %arg14: memref<1x32xf32, #tpu.memory_space<vmem>>, %arg15: memref<32x64xf32, #tpu.memory_space<vmem>>, %arg16: memref<1x64xf32, #tpu.memory_space<vmem>>, %arg17: memref<64x32xf32, #tpu.memory_space<vmem>>, %arg18: memref<1x32xf32, #tpu.memory_space<vmem>>, %arg19: memref<1x32xf32, #tpu.memory_space<vmem>>, %arg20: memref<1x32xf32, #tpu.memory_space<vmem>>, %arg21: memref<8x8x32xf32, #tpu.memory_space<vmem>>) attributes {dimension_semantics = [#tpu.dimension_semantics<parallel>], iteration_bounds = array<i64: 2>, scalar_prefetch = 0 : i64, scratch_operands = 0 : i64, tpu.core_type = #tpu.core_type<tc>, window_params = [{transform_indices = @transform_0, window_bounds = array<i64: 8, 8, 32>}, {transform_indices = @transform_1, window_bounds = array<i64: 8, 16, 32>}, {pipeline_mode = #tpu.pipeline_mode<synchronous>, transform_indices = @transform_2, window_bounds = array<i64: 4, 32, 8>}, {pipeline_mode = #tpu.pipeline_mode<synchronous>, transform_indices = @transform_3, window_bounds = array<i64: 4, 32, 8>}, {pipeline_mode = #tpu.pipeline_mode<synchronous>, transform_indices = @transform_4, window_bounds = array<i64: 4, 32, 8>}, {pipeline_mode = #tpu.pipeline_mode<synchronous>, transform_indices = @transform_5, window_bounds = array<i64: 4, 8, 32>}, {pipeline_mode = #tpu.pipeline_mode<synchronous>, transform_indices = @transform_6, window_bounds = array<i64: 1, 32>}, {pipeline_mode = #tpu.pipeline_mode<synchronous>, transform_indices = @transform_7, window_bounds = array<i64: 1, 32>}, {pipeline_mode = #tpu.pipeline_mode<synchronous>, transform_indices = @transform_8, window_bounds = array<i64: 4, 32, 8>}, {pipeline_mode = #tpu.pipeline_mode<synchronous>, transform_indices = @transform_9, window_bounds = array<i64: 4, 32, 8>}, {pipeline_mode = #tpu.pipeline_mode<synchronous>, transform_indices = @transform_10, window_bounds = array<i64: 4, 32, 8>}, {pipeline_mode = #tpu.pipeline_mode<synchronous>, transform_indices = @transform_11, window_bounds = array<i64: 4, 8, 32>}, {pipeline_mode = #tpu.pipeline_mode<synchronous>, transform_indices = @transform_12, window_bounds = array<i64: 1, 32>}, {pipeline_mode = #tpu.pipeline_mode<synchronous>, transform_indices = @transform_13, window_bounds = array<i64: 1, 32>}, {pipeline_mode = #tpu.pipeline_mode<synchronous>, transform_indices = @transform_14, window_bounds = array<i64: 32, 64>}, {pipeline_mode = #tpu.pipeline_mode<synchronous>, transform_indices = @transform_15, window_bounds = array<i64: 1, 64>}, {pipeline_mode = #tpu.pipeline_mode<synchronous>, transform_indices = @transform_16, window_bounds = array<i64: 64, 32>}, {pipeline_mode = #tpu.pipeline_mode<synchronous>, transform_indices = @transform_17, window_bounds = array<i64: 1, 32>}, {pipeline_mode = #tpu.pipeline_mode<synchronous>, transform_indices = @transform_18, window_bounds = array<i64: 1, 32>}, {pipeline_mode = #tpu.pipeline_mode<synchronous>, transform_indices = @transform_19, window_bounds = array<i64: 1, 32>}, {transform_indices = @transform_20, window_bounds = array<i64: 8, 8, 32>}]} {
    %c0 = arith.constant 0 : index
    %c0_0 = arith.constant 0 : index
    %c0_1 = arith.constant 0 : index
    %0 = vector.load %arg1[%c0, %c0_0, %c0_1] : memref<8x8x32xf32, #tpu.memory_space<vmem>>, vector<8x8x32xf32>
    %1 = vector.shape_cast %0 : vector<8x8x32xf32> to vector<64x32xf32>
    %c0_2 = arith.constant 0 : index
    %c0_3 = arith.constant 0 : index
    %c0_4 = arith.constant 0 : index
    %2 = vector.load %arg2[%c0_2, %c0_3, %c0_4] : memref<8x16x32xf32, #tpu.memory_space<vmem>>, vector<8x16x32xf32>
    %3 = vector.shape_cast %2 : vector<8x16x32xf32> to vector<128x32xf32>
    %cst = arith.constant 0.000000e+00 : f32
    %4 = vector.broadcast %cst : f32 to vector<64x32xf32>
    %c0_5 = arith.constant 0 : index
    %c0_6 = arith.constant 0 : index
    %c0_7 = arith.constant 0 : index
    %5 = vector.load %arg3[%c0_5, %c0_6, %c0_7] : memref<4x32x8xf32, #tpu.memory_space<vmem>>, vector<1x32x8xf32>
    %6 = vector.shape_cast %5 : vector<1x32x8xf32> to vector<32x8xf32>
    %cst_8 = arith.constant dense<0.000000e+00> : vector<64x8xf32>
    %7 = tpu.matmul %1, %6, %cst_8 {dimension_numbers = #tpu.dot_dimension_numbers<[1], [0], [0], [1], [0, 0, 1, 1], [], []>} : vector<64x32xf32>, vector<32x8xf32>, vector<64x8xf32> -> vector<64x8xf32>
    %8 = vector.shape_cast %7 : vector<64x8xf32> to vector<8x8x8xf32>
    %c0_9 = arith.constant 0 : index
    %c0_10 = arith.constant 0 : index
    %c0_11 = arith.constant 0 : index
    %9 = vector.load %arg4[%c0_9, %c0_10, %c0_11] : memref<4x32x8xf32, #tpu.memory_space<vmem>>, vector<1x32x8xf32>
    %10 = vector.shape_cast %9 : vector<1x32x8xf32> to vector<32x8xf32>
    %cst_12 = arith.constant dense<0.000000e+00> : vector<64x8xf32>
    %11 = tpu.matmul %1, %10, %cst_12 {dimension_numbers = #tpu.dot_dimension_numbers<[1], [0], [0], [1], [0, 0, 1, 1], [], []>} : vector<64x32xf32>, vector<32x8xf32>, vector<64x8xf32> -> vector<64x8xf32>
    %12 = vector.shape_cast %11 : vector<64x8xf32> to vector<8x8x8xf32>
    %c0_13 = arith.constant 0 : index
    %c0_14 = arith.constant 0 : index
    %c0_15 = arith.constant 0 : index
    %13 = vector.load %arg5[%c0_13, %c0_14, %c0_15] : memref<4x32x8xf32, #tpu.memory_space<vmem>>, vector<1x32x8xf32>
    %14 = vector.shape_cast %13 : vector<1x32x8xf32> to vector<32x8xf32>
    %cst_16 = arith.constant dense<0.000000e+00> : vector<64x8xf32>
    %15 = tpu.matmul %1, %14, %cst_16 {dimension_numbers = #tpu.dot_dimension_numbers<[1], [0], [0], [1], [0, 0, 1, 1], [], []>} : vector<64x32xf32>, vector<32x8xf32>, vector<64x8xf32> -> vector<64x8xf32>
    %16 = vector.shape_cast %15 : vector<64x8xf32> to vector<8x8x8xf32>
    "tpu.trace_start"() <{level = 10 : i32, message = "bqd,bkd->bqk"}> : () -> ()
    %cst_17 = arith.constant dense<0.000000e+00> : vector<8x8x8xf32>
    %17 = tpu.matmul %8, %12, %cst_17 {dimension_numbers = #tpu.dot_dimension_numbers<[2], [2], [1], [1], [0, 0, 0, 1, 1, 1], [0], [0]>} : vector<8x8x8xf32>, vector<8x8x8xf32>, vector<8x8x8xf32> -> vector<8x8x8xf32>
    "tpu.trace_stop"() : () -> ()
    %cst_18 = arith.constant 0.353553385 : f32
    %18 = vector.broadcast %cst_18 : f32 to vector<8x8x8xf32>
    %19 = arith.mulf %17, %18 : vector<8x8x8xf32>
    %cst_19 = arith.constant dense<0xFF800000> : vector<8x8xf32>
    %20 = vector.multi_reduction <maximumf>, %19, %cst_19 [2] : vector<8x8x8xf32> to vector<8x8xf32>
    %21 = vector.shape_cast %20 : vector<8x8xf32> to vector<8x8x1xf32>
    %22 = vector.broadcast %21 : vector<8x8x1xf32> to vector<8x8x8xf32>
    %23 = arith.subf %19, %22 : vector<8x8x8xf32>
    %24 = math.exp %23 : vector<8x8x8xf32>
    %cst_20 = arith.constant dense<0.000000e+00> : vector<8x8xf32>
    %25 = vector.multi_reduction <add>, %24, %cst_20 [2] : vector<8x8x8xf32> to vector<8x8xf32>
    %26 = vector.shape_cast %25 : vector<8x8xf32> to vector<8x8x1xf32>
    %27 = tpu.reciprocal %26 {approx = true} : vector<8x8x1xf32> -> vector<8x8x1xf32>
    %28 = vector.broadcast %27 : vector<8x8x1xf32> to vector<8x8x8xf32>
    %29 = arith.mulf %24, %28 : vector<8x8x8xf32>
    "tpu.trace_start"() <{level = 10 : i32, message = "bqk,bkd->bqd"}> : () -> ()
    %cst_21 = arith.constant dense<0.000000e+00> : vector<8x8x8xf32>
    %30 = tpu.matmul %29, %16, %cst_21 {dimension_numbers = #tpu.dot_dimension_numbers<[2], [1], [1], [2], [0, 0, 0, 1, 1, 2], [0], [0]>} : vector<8x8x8xf32>, vector<8x8x8xf32>, vector<8x8x8xf32> -> vector<8x8x8xf32>
    "tpu.trace_stop"() : () -> ()
    %31 = vector.shape_cast %30 : vector<8x8x8xf32> to vector<64x8xf32>
    %c0_22 = arith.constant 0 : index
    %c0_23 = arith.constant 0 : index
    %c0_24 = arith.constant 0 : index
    %32 = vector.load %arg6[%c0_22, %c0_23, %c0_24] : memref<4x8x32xf32, #tpu.memory_space<vmem>>, vector<1x8x32xf32>
    %33 = vector.shape_cast %32 : vector<1x8x32xf32> to vector<8x32xf32>
    %cst_25 = arith.constant dense<0.000000e+00> : vector<64x32xf32>
    %34 = tpu.matmul %31, %33, %cst_25 {dimension_numbers = #tpu.dot_dimension_numbers<[1], [0], [0], [1], [0, 0, 1, 1], [], []>} : vector<64x8xf32>, vector<8x32xf32>, vector<64x32xf32> -> vector<64x32xf32>
    %35 = arith.addf %4, %34 : vector<64x32xf32>
    %c1 = arith.constant 1 : index
    %c0_26 = arith.constant 0 : index
    %c0_27 = arith.constant 0 : index
    %36 = vector.load %arg3[%c1, %c0_26, %c0_27] : memref<4x32x8xf32, #tpu.memory_space<vmem>>, vector<1x32x8xf32>
    %37 = vector.shape_cast %36 : vector<1x32x8xf32> to vector<32x8xf32>
    %cst_28 = arith.constant dense<0.000000e+00> : vector<64x8xf32>
    %38 = tpu.matmul %1, %37, %cst_28 {dimension_numbers = #tpu.dot_dimension_numbers<[1], [0], [0], [1], [0, 0, 1, 1], [], []>} : vector<64x32xf32>, vector<32x8xf32>, vector<64x8xf32> -> vector<64x8xf32>
    %39 = vector.shape_cast %38 : vector<64x8xf32> to vector<8x8x8xf32>
    %c1_29 = arith.constant 1 : index
    %c0_30 = arith.constant 0 : index
    %c0_31 = arith.constant 0 : index
    %40 = vector.load %arg4[%c1_29, %c0_30, %c0_31] : memref<4x32x8xf32, #tpu.memory_space<vmem>>, vector<1x32x8xf32>
    %41 = vector.shape_cast %40 : vector<1x32x8xf32> to vector<32x8xf32>
    %cst_32 = arith.constant dense<0.000000e+00> : vector<64x8xf32>
    %42 = tpu.matmul %1, %41, %cst_32 {dimension_numbers = #tpu.dot_dimension_numbers<[1], [0], [0], [1], [0, 0, 1, 1], [], []>} : vector<64x32xf32>, vector<32x8xf32>, vector<64x8xf32> -> vector<64x8xf32>
    %43 = vector.shape_cast %42 : vector<64x8xf32> to vector<8x8x8xf32>
    %c1_33 = arith.constant 1 : index
    %c0_34 = arith.constant 0 : index
    %c0_35 = arith.constant 0 : index
    %44 = vector.load %arg5[%c1_33, %c0_34, %c0_35] : memref<4x32x8xf32, #tpu.memory_space<vmem>>, vector<1x32x8xf32>
    %45 = vector.shape_cast %44 : vector<1x32x8xf32> to vector<32x8xf32>
    %cst_36 = arith.constant dense<0.000000e+00> : vector<64x8xf32>
    %46 = tpu.matmul %1, %45, %cst_36 {dimension_numbers = #tpu.dot_dimension_numbers<[1], [0], [0], [1], [0, 0, 1, 1], [], []>} : vector<64x32xf32>, vector<32x8xf32>, vector<64x8xf32> -> vector<64x8xf32>
    %47 = vector.shape_cast %46 : vector<64x8xf32> to vector<8x8x8xf32>
    "tpu.trace_start"() <{level = 10 : i32, message = "bqd,bkd->bqk"}> : () -> ()
    %cst_37 = arith.constant dense<0.000000e+00> : vector<8x8x8xf32>
    %48 = tpu.matmul %39, %43, %cst_37 {dimension_numbers = #tpu.dot_dimension_numbers<[2], [2], [1], [1], [0, 0, 0, 1, 1, 1], [0], [0]>} : vector<8x8x8xf32>, vector<8x8x8xf32>, vector<8x8x8xf32> -> vector<8x8x8xf32>
    "tpu.trace_stop"() : () -> ()
    %cst_38 = arith.constant 0.353553385 : f32
    %49 = vector.broadcast %cst_38 : f32 to vector<8x8x8xf32>
    %50 = arith.mulf %48, %49 : vector<8x8x8xf32>
    %cst_39 = arith.constant dense<0xFF800000> : vector<8x8xf32>
    %51 = vector.multi_reduction <maximumf>, %50, %cst_39 [2] : vector<8x8x8xf32> to vector<8x8xf32>
    %52 = vector.shape_cast %51 : vector<8x8xf32> to vector<8x8x1xf32>
    %53 = vector.broadcast %52 : vector<8x8x1xf32> to vector<8x8x8xf32>
    %54 = arith.subf %50, %53 : vector<8x8x8xf32>
    %55 = math.exp %54 : vector<8x8x8xf32>
    %cst_40 = arith.constant dense<0.000000e+00> : vector<8x8xf32>
    %56 = vector.multi_reduction <add>, %55, %cst_40 [2] : vector<8x8x8xf32> to vector<8x8xf32>
    %57 = vector.shape_cast %56 : vector<8x8xf32> to vector<8x8x1xf32>
    %58 = tpu.reciprocal %57 {approx = true} : vector<8x8x1xf32> -> vector<8x8x1xf32>
    %59 = vector.broadcast %58 : vector<8x8x1xf32> to vector<8x8x8xf32>
    %60 = arith.mulf %55, %59 : vector<8x8x8xf32>
    "tpu.trace_start"() <{level = 10 : i32, message = "bqk,bkd->bqd"}> : () -> ()
    %cst_41 = arith.constant dense<0.000000e+00> : vector<8x8x8xf32>
    %61 = tpu.matmul %60, %47, %cst_41 {dimension_numbers = #tpu.dot_dimension_numbers<[2], [1], [1], [2], [0, 0, 0, 1, 1, 2], [0], [0]>} : vector<8x8x8xf32>, vector<8x8x8xf32>, vector<8x8x8xf32> -> vector<8x8x8xf32>
    "tpu.trace_stop"() : () -> ()
    %62 = vector.shape_cast %61 : vector<8x8x8xf32> to vector<64x8xf32>
    %c1_42 = arith.constant 1 : index
    %c0_43 = arith.constant 0 : index
    %c0_44 = arith.constant 0 : index
    %63 = vector.load %arg6[%c1_42, %c0_43, %c0_44] : memref<4x8x32xf32, #tpu.memory_space<vmem>>, vector<1x8x32xf32>
    %64 = vector.shape_cast %63 : vector<1x8x32xf32> to vector<8x32xf32>
    %cst_45 = arith.constant dense<0.000000e+00> : vector<64x32xf32>
    %65 = tpu.matmul %62, %64, %cst_45 {dimension_numbers = #tpu.dot_dimension_numbers<[1], [0], [0], [1], [0, 0, 1, 1], [], []>} : vector<64x8xf32>, vector<8x32xf32>, vector<64x32xf32> -> vector<64x32xf32>
    %66 = arith.addf %35, %65 : vector<64x32xf32>
    %c2 = arith.constant 2 : index
    %c0_46 = arith.constant 0 : index
    %c0_47 = arith.constant 0 : index
    %67 = vector.load %arg3[%c2, %c0_46, %c0_47] : memref<4x32x8xf32, #tpu.memory_space<vmem>>, vector<1x32x8xf32>
    %68 = vector.shape_cast %67 : vector<1x32x8xf32> to vector<32x8xf32>
    %cst_48 = arith.constant dense<0.000000e+00> : vector<64x8xf32>
    %69 = tpu.matmul %1, %68, %cst_48 {dimension_numbers = #tpu.dot_dimension_numbers<[1], [0], [0], [1], [0, 0, 1, 1], [], []>} : vector<64x32xf32>, vector<32x8xf32>, vector<64x8xf32> -> vector<64x8xf32>
    %70 = vector.shape_cast %69 : vector<64x8xf32> to vector<8x8x8xf32>
    %c2_49 = arith.constant 2 : index
    %c0_50 = arith.constant 0 : index
    %c0_51 = arith.constant 0 : index
    %71 = vector.load %arg4[%c2_49, %c0_50, %c0_51] : memref<4x32x8xf32, #tpu.memory_space<vmem>>, vector<1x32x8xf32>
    %72 = vector.shape_cast %71 : vector<1x32x8xf32> to vector<32x8xf32>
    %cst_52 = arith.constant dense<0.000000e+00> : vector<64x8xf32>
    %73 = tpu.matmul %1, %72, %cst_52 {dimension_numbers = #tpu.dot_dimension_numbers<[1], [0], [0], [1], [0, 0, 1, 1], [], []>} : vector<64x32xf32>, vector<32x8xf32>, vector<64x8xf32> -> vector<64x8xf32>
    %74 = vector.shape_cast %73 : vector<64x8xf32> to vector<8x8x8xf32>
    %c2_53 = arith.constant 2 : index
    %c0_54 = arith.constant 0 : index
    %c0_55 = arith.constant 0 : index
    %75 = vector.load %arg5[%c2_53, %c0_54, %c0_55] : memref<4x32x8xf32, #tpu.memory_space<vmem>>, vector<1x32x8xf32>
    %76 = vector.shape_cast %75 : vector<1x32x8xf32> to vector<32x8xf32>
    %cst_56 = arith.constant dense<0.000000e+00> : vector<64x8xf32>
    %77 = tpu.matmul %1, %76, %cst_56 {dimension_numbers = #tpu.dot_dimension_numbers<[1], [0], [0], [1], [0, 0, 1, 1], [], []>} : vector<64x32xf32>, vector<32x8xf32>, vector<64x8xf32> -> vector<64x8xf32>
    %78 = vector.shape_cast %77 : vector<64x8xf32> to vector<8x8x8xf32>
    "tpu.trace_start"() <{level = 10 : i32, message = "bqd,bkd->bqk"}> : () -> ()
    %cst_57 = arith.constant dense<0.000000e+00> : vector<8x8x8xf32>
    %79 = tpu.matmul %70, %74, %cst_57 {dimension_numbers = #tpu.dot_dimension_numbers<[2], [2], [1], [1], [0, 0, 0, 1, 1, 1], [0], [0]>} : vector<8x8x8xf32>, vector<8x8x8xf32>, vector<8x8x8xf32> -> vector<8x8x8xf32>
    "tpu.trace_stop"() : () -> ()
    %cst_58 = arith.constant 0.353553385 : f32
    %80 = vector.broadcast %cst_58 : f32 to vector<8x8x8xf32>
    %81 = arith.mulf %79, %80 : vector<8x8x8xf32>
    %cst_59 = arith.constant dense<0xFF800000> : vector<8x8xf32>
    %82 = vector.multi_reduction <maximumf>, %81, %cst_59 [2] : vector<8x8x8xf32> to vector<8x8xf32>
    %83 = vector.shape_cast %82 : vector<8x8xf32> to vector<8x8x1xf32>
    %84 = vector.broadcast %83 : vector<8x8x1xf32> to vector<8x8x8xf32>
    %85 = arith.subf %81, %84 : vector<8x8x8xf32>
    %86 = math.exp %85 : vector<8x8x8xf32>
    %cst_60 = arith.constant dense<0.000000e+00> : vector<8x8xf32>
    %87 = vector.multi_reduction <add>, %86, %cst_60 [2] : vector<8x8x8xf32> to vector<8x8xf32>
    %88 = vector.shape_cast %87 : vector<8x8xf32> to vector<8x8x1xf32>
    %89 = tpu.reciprocal %88 {approx = true} : vector<8x8x1xf32> -> vector<8x8x1xf32>
    %90 = vector.broadcast %89 : vector<8x8x1xf32> to vector<8x8x8xf32>
    %91 = arith.mulf %86, %90 : vector<8x8x8xf32>
    "tpu.trace_start"() <{level = 10 : i32, message = "bqk,bkd->bqd"}> : () -> ()
    %cst_61 = arith.constant dense<0.000000e+00> : vector<8x8x8xf32>
    %92 = tpu.matmul %91, %78, %cst_61 {dimension_numbers = #tpu.dot_dimension_numbers<[2], [1], [1], [2], [0, 0, 0, 1, 1, 2], [0], [0]>} : vector<8x8x8xf32>, vector<8x8x8xf32>, vector<8x8x8xf32> -> vector<8x8x8xf32>
    "tpu.trace_stop"() : () -> ()
    %93 = vector.shape_cast %92 : vector<8x8x8xf32> to vector<64x8xf32>
    %c2_62 = arith.constant 2 : index
    %c0_63 = arith.constant 0 : index
    %c0_64 = arith.constant 0 : index
    %94 = vector.load %arg6[%c2_62, %c0_63, %c0_64] : memref<4x8x32xf32, #tpu.memory_space<vmem>>, vector<1x8x32xf32>
    %95 = vector.shape_cast %94 : vector<1x8x32xf32> to vector<8x32xf32>
    %cst_65 = arith.constant dense<0.000000e+00> : vector<64x32xf32>
    %96 = tpu.matmul %93, %95, %cst_65 {dimension_numbers = #tpu.dot_dimension_numbers<[1], [0], [0], [1], [0, 0, 1, 1], [], []>} : vector<64x8xf32>, vector<8x32xf32>, vector<64x32xf32> -> vector<64x32xf32>
    %97 = arith.addf %66, %96 : vector<64x32xf32>
    %c3 = arith.constant 3 : index
    %c0_66 = arith.constant 0 : index
    %c0_67 = arith.constant 0 : index
    %98 = vector.load %arg3[%c3, %c0_66, %c0_67] : memref<4x32x8xf32, #tpu.memory_space<vmem>>, vector<1x32x8xf32>
    %99 = vector.shape_cast %98 : vector<1x32x8xf32> to vector<32x8xf32>
    %cst_68 = arith.constant dense<0.000000e+00> : vector<64x8xf32>
    %100 = tpu.matmul %1, %99, %cst_68 {dimension_numbers = #tpu.dot_dimension_numbers<[1], [0], [0], [1], [0, 0, 1, 1], [], []>} : vector<64x32xf32>, vector<32x8xf32>, vector<64x8xf32> -> vector<64x8xf32>
    %101 = vector.shape_cast %100 : vector<64x8xf32> to vector<8x8x8xf32>
    %c3_69 = arith.constant 3 : index
    %c0_70 = arith.constant 0 : index
    %c0_71 = arith.constant 0 : index
    %102 = vector.load %arg4[%c3_69, %c0_70, %c0_71] : memref<4x32x8xf32, #tpu.memory_space<vmem>>, vector<1x32x8xf32>
    %103 = vector.shape_cast %102 : vector<1x32x8xf32> to vector<32x8xf32>
    %cst_72 = arith.constant dense<0.000000e+00> : vector<64x8xf32>
    %104 = tpu.matmul %1, %103, %cst_72 {dimension_numbers = #tpu.dot_dimension_numbers<[1], [0], [0], [1], [0, 0, 1, 1], [], []>} : vector<64x32xf32>, vector<32x8xf32>, vector<64x8xf32> -> vector<64x8xf32>
    %105 = vector.shape_cast %104 : vector<64x8xf32> to vector<8x8x8xf32>
    %c3_73 = arith.constant 3 : index
    %c0_74 = arith.constant 0 : index
    %c0_75 = arith.constant 0 : index
    %106 = vector.load %arg5[%c3_73, %c0_74, %c0_75] : memref<4x32x8xf32, #tpu.memory_space<vmem>>, vector<1x32x8xf32>
    %107 = vector.shape_cast %106 : vector<1x32x8xf32> to vector<32x8xf32>
    %cst_76 = arith.constant dense<0.000000e+00> : vector<64x8xf32>
    %108 = tpu.matmul %1, %107, %cst_76 {dimension_numbers = #tpu.dot_dimension_numbers<[1], [0], [0], [1], [0, 0, 1, 1], [], []>} : vector<64x32xf32>, vector<32x8xf32>, vector<64x8xf32> -> vector<64x8xf32>
    %109 = vector.shape_cast %108 : vector<64x8xf32> to vector<8x8x8xf32>
    "tpu.trace_start"() <{level = 10 : i32, message = "bqd,bkd->bqk"}> : () -> ()
    %cst_77 = arith.constant dense<0.000000e+00> : vector<8x8x8xf32>
    %110 = tpu.matmul %101, %105, %cst_77 {dimension_numbers = #tpu.dot_dimension_numbers<[2], [2], [1], [1], [0, 0, 0, 1, 1, 1], [0], [0]>} : vector<8x8x8xf32>, vector<8x8x8xf32>, vector<8x8x8xf32> -> vector<8x8x8xf32>
    "tpu.trace_stop"() : () -> ()
    %cst_78 = arith.constant 0.353553385 : f32
    %111 = vector.broadcast %cst_78 : f32 to vector<8x8x8xf32>
    %112 = arith.mulf %110, %111 : vector<8x8x8xf32>
    %cst_79 = arith.constant dense<0xFF800000> : vector<8x8xf32>
    %113 = vector.multi_reduction <maximumf>, %112, %cst_79 [2] : vector<8x8x8xf32> to vector<8x8xf32>
    %114 = vector.shape_cast %113 : vector<8x8xf32> to vector<8x8x1xf32>
    %115 = vector.broadcast %114 : vector<8x8x1xf32> to vector<8x8x8xf32>
    %116 = arith.subf %112, %115 : vector<8x8x8xf32>
    %117 = math.exp %116 : vector<8x8x8xf32>
    %cst_80 = arith.constant dense<0.000000e+00> : vector<8x8xf32>
    %118 = vector.multi_reduction <add>, %117, %cst_80 [2] : vector<8x8x8xf32> to vector<8x8xf32>
    %119 = vector.shape_cast %118 : vector<8x8xf32> to vector<8x8x1xf32>
    %120 = tpu.reciprocal %119 {approx = true} : vector<8x8x1xf32> -> vector<8x8x1xf32>
    %121 = vector.broadcast %120 : vector<8x8x1xf32> to vector<8x8x8xf32>
    %122 = arith.mulf %117, %121 : vector<8x8x8xf32>
    "tpu.trace_start"() <{level = 10 : i32, message = "bqk,bkd->bqd"}> : () -> ()
    %cst_81 = arith.constant dense<0.000000e+00> : vector<8x8x8xf32>
    %123 = tpu.matmul %122, %109, %cst_81 {dimension_numbers = #tpu.dot_dimension_numbers<[2], [1], [1], [2], [0, 0, 0, 1, 1, 2], [0], [0]>} : vector<8x8x8xf32>, vector<8x8x8xf32>, vector<8x8x8xf32> -> vector<8x8x8xf32>
    "tpu.trace_stop"() : () -> ()
    %124 = vector.shape_cast %123 : vector<8x8x8xf32> to vector<64x8xf32>
    %c3_82 = arith.constant 3 : index
    %c0_83 = arith.constant 0 : index
    %c0_84 = arith.constant 0 : index
    %125 = vector.load %arg6[%c3_82, %c0_83, %c0_84] : memref<4x8x32xf32, #tpu.memory_space<vmem>>, vector<1x8x32xf32>
    %126 = vector.shape_cast %125 : vector<1x8x32xf32> to vector<8x32xf32>
    %cst_85 = arith.constant dense<0.000000e+00> : vector<64x32xf32>
    %127 = tpu.matmul %124, %126, %cst_85 {dimension_numbers = #tpu.dot_dimension_numbers<[1], [0], [0], [1], [0, 0, 1, 1], [], []>} : vector<64x8xf32>, vector<8x32xf32>, vector<64x32xf32> -> vector<64x32xf32>
    %128 = arith.addf %97, %127 : vector<64x32xf32>
    %129 = arith.addf %128, %1 : vector<64x32xf32>
    %c0_86 = arith.constant 0 : index
    %c0_87 = arith.constant 0 : index
    %130 = vector.load %arg7[%c0_86, %c0_87] : memref<1x32xf32, #tpu.memory_space<vmem>>, vector<1x32xf32>
    %c0_88 = arith.constant 0 : index
    %c0_89 = arith.constant 0 : index
    %131 = vector.load %arg8[%c0_88, %c0_89] : memref<1x32xf32, #tpu.memory_space<vmem>>, vector<1x32xf32>
    %cst_90 = arith.constant dense<0.000000e+00> : vector<64xf32>
    %132 = vector.multi_reduction <add>, %129, %cst_90 [1] : vector<64x32xf32> to vector<64xf32>
    %133 = vector.shape_cast %132 : vector<64xf32> to vector<64x1xf32>
    %cst_91 = arith.constant 3.200000e+01 : f32
    %134 = vector.broadcast %cst_91 : f32 to vector<64x1xf32>
    %135 = arith.divf %133, %134 : vector<64x1xf32>
    %136 = vector.broadcast %135 : vector<64x1xf32> to vector<64x32xf32>
    %137 = arith.subf %129, %136 : vector<64x32xf32>
    %138 = arith.mulf %137, %137 : vector<64x32xf32>
    %cst_92 = arith.constant dense<0.000000e+00> : vector<64xf32>
    %139 = vector.multi_reduction <add>, %138, %cst_92 [1] : vector<64x32xf32> to vector<64xf32>
    %140 = vector.shape_cast %139 : vector<64xf32> to vector<64x1xf32>
    %cst_93 = arith.constant 3.200000e+01 : f32
    %141 = vector.broadcast %cst_93 : f32 to vector<64x1xf32>
    %142 = arith.divf %140, %141 : vector<64x1xf32>
    %cst_94 = arith.constant 9.99999974E-6 : f32
    %143 = vector.broadcast %cst_94 : f32 to vector<64x1xf32>
    %144 = arith.addf %142, %143 : vector<64x1xf32>
    %145 = math.rsqrt %144 : vector<64x1xf32>
    %146 = vector.broadcast %135 : vector<64x1xf32> to vector<64x32xf32>
    %147 = arith.subf %129, %146 : vector<64x32xf32>
    %148 = vector.broadcast %145 : vector<64x1xf32> to vector<64x32xf32>
    %149 = arith.mulf %147, %148 : vector<64x32xf32>
    %150 = vector.broadcast %130 : vector<1x32xf32> to vector<64x32xf32>
    %151 = arith.mulf %149, %150 : vector<64x32xf32>
    %152 = vector.broadcast %131 : vector<1x32xf32> to vector<64x32xf32>
    %153 = arith.addf %151, %152 : vector<64x32xf32>
    %154 = tpu.iota {dimensions = array<i32: 2>} : vector<1x8x16xi32>
    %c9_i32 = arith.constant 9 : i32
    %155 = vector.broadcast %c9_i32 : i32 to vector<1x8x16xi32>
    %156 = arith.cmpi slt, %154, %155 : vector<1x8x16xi32>
    %cst_95 = arith.constant 0.000000e+00 : f32
    %157 = vector.broadcast %cst_95 : f32 to vector<64x32xf32>
    %c0_96 = arith.constant 0 : index
    %c0_97 = arith.constant 0 : index
    %c0_98 = arith.constant 0 : index
    %158 = vector.load %arg9[%c0_96, %c0_97, %c0_98] : memref<4x32x8xf32, #tpu.memory_space<vmem>>, vector<1x32x8xf32>
    %159 = vector.shape_cast %158 : vector<1x32x8xf32> to vector<32x8xf32>
    %cst_99 = arith.constant dense<0.000000e+00> : vector<64x8xf32>
    %160 = tpu.matmul %153, %159, %cst_99 {dimension_numbers = #tpu.dot_dimension_numbers<[1], [0], [0], [1], [0, 0, 1, 1], [], []>} : vector<64x32xf32>, vector<32x8xf32>, vector<64x8xf32> -> vector<64x8xf32>
    %161 = vector.shape_cast %160 : vector<64x8xf32> to vector<8x8x8xf32>
    %c0_100 = arith.constant 0 : index
    %c0_101 = arith.constant 0 : index
    %c0_102 = arith.constant 0 : index
    %162 = vector.load %arg10[%c0_100, %c0_101, %c0_102] : memref<4x32x8xf32, #tpu.memory_space<vmem>>, vector<1x32x8xf32>
    %163 = vector.shape_cast %162 : vector<1x32x8xf32> to vector<32x8xf32>
    %cst_103 = arith.constant dense<0.000000e+00> : vector<128x8xf32>
    %164 = tpu.matmul %3, %163, %cst_103 {dimension_numbers = #tpu.dot_dimension_numbers<[1], [0], [0], [1], [0, 0, 1, 1], [], []>} : vector<128x32xf32>, vector<32x8xf32>, vector<128x8xf32> -> vector<128x8xf32>
    %165 = vector.shape_cast %164 : vector<128x8xf32> to vector<8x16x8xf32>
    %c0_104 = arith.constant 0 : index
    %c0_105 = arith.constant 0 : index
    %c0_106 = arith.constant 0 : index
    %166 = vector.load %arg11[%c0_104, %c0_105, %c0_106] : memref<4x32x8xf32, #tpu.memory_space<vmem>>, vector<1x32x8xf32>
    %167 = vector.shape_cast %166 : vector<1x32x8xf32> to vector<32x8xf32>
    %cst_107 = arith.constant dense<0.000000e+00> : vector<128x8xf32>
    %168 = tpu.matmul %3, %167, %cst_107 {dimension_numbers = #tpu.dot_dimension_numbers<[1], [0], [0], [1], [0, 0, 1, 1], [], []>} : vector<128x32xf32>, vector<32x8xf32>, vector<128x8xf32> -> vector<128x8xf32>
    %169 = vector.shape_cast %168 : vector<128x8xf32> to vector<8x16x8xf32>
    "tpu.trace_start"() <{level = 10 : i32, message = "bqd,bkd->bqk"}> : () -> ()
    %cst_108 = arith.constant dense<0.000000e+00> : vector<8x8x16xf32>
    %170 = tpu.matmul %161, %165, %cst_108 {dimension_numbers = #tpu.dot_dimension_numbers<[2], [2], [1], [1], [0, 0, 0, 1, 1, 1], [0], [0]>} : vector<8x8x8xf32>, vector<8x16x8xf32>, vector<8x8x16xf32> -> vector<8x8x16xf32>
    "tpu.trace_stop"() : () -> ()
    %cst_109 = arith.constant 0.353553385 : f32
    %171 = vector.broadcast %cst_109 : f32 to vector<8x8x16xf32>
    %172 = arith.mulf %170, %171 : vector<8x8x16xf32>
    %cst_110 = arith.constant -1.000000e+30 : f32
    %173 = vector.shape_cast %156 : vector<1x8x16xi1> to vector<1x8x16xi1>
    %174 = vector.broadcast %173 : vector<1x8x16xi1> to vector<8x8x16xi1>
    %175 = vector.broadcast %cst_110 : f32 to vector<8x8x16xf32>
    %176 = arith.select %174, %172, %175 : vector<8x8x16xi1>, vector<8x8x16xf32>
    %cst_111 = arith.constant dense<0xFF800000> : vector<8x8xf32>
    %177 = vector.multi_reduction <maximumf>, %176, %cst_111 [2] : vector<8x8x16xf32> to vector<8x8xf32>
    %178 = vector.shape_cast %177 : vector<8x8xf32> to vector<8x8x1xf32>
    %179 = vector.broadcast %178 : vector<8x8x1xf32> to vector<8x8x16xf32>
    %180 = arith.subf %176, %179 : vector<8x8x16xf32>
    %181 = math.exp %180 : vector<8x8x16xf32>
    %cst_112 = arith.constant dense<0.000000e+00> : vector<8x8xf32>
    %182 = vector.multi_reduction <add>, %181, %cst_112 [2] : vector<8x8x16xf32> to vector<8x8xf32>
    %183 = vector.shape_cast %182 : vector<8x8xf32> to vector<8x8x1xf32>
    %184 = tpu.reciprocal %183 {approx = true} : vector<8x8x1xf32> -> vector<8x8x1xf32>
    %185 = vector.broadcast %184 : vector<8x8x1xf32> to vector<8x8x16xf32>
    %186 = arith.mulf %181, %185 : vector<8x8x16xf32>
    "tpu.trace_start"() <{level = 10 : i32, message = "bqk,bkd->bqd"}> : () -> ()
    %cst_113 = arith.constant dense<0.000000e+00> : vector<8x8x8xf32>
    %187 = tpu.matmul %186, %169, %cst_113 {dimension_numbers = #tpu.dot_dimension_numbers<[2], [1], [1], [2], [0, 0, 0, 1, 1, 2], [0], [0]>} : vector<8x8x16xf32>, vector<8x16x8xf32>, vector<8x8x8xf32> -> vector<8x8x8xf32>
    "tpu.trace_stop"() : () -> ()
    %188 = vector.shape_cast %187 : vector<8x8x8xf32> to vector<64x8xf32>
    %c0_114 = arith.constant 0 : index
    %c0_115 = arith.constant 0 : index
    %c0_116 = arith.constant 0 : index
    %189 = vector.load %arg12[%c0_114, %c0_115, %c0_116] : memref<4x8x32xf32, #tpu.memory_space<vmem>>, vector<1x8x32xf32>
    %190 = vector.shape_cast %189 : vector<1x8x32xf32> to vector<8x32xf32>
    %cst_117 = arith.constant dense<0.000000e+00> : vector<64x32xf32>
    %191 = tpu.matmul %188, %190, %cst_117 {dimension_numbers = #tpu.dot_dimension_numbers<[1], [0], [0], [1], [0, 0, 1, 1], [], []>} : vector<64x8xf32>, vector<8x32xf32>, vector<64x32xf32> -> vector<64x32xf32>
    %192 = arith.addf %157, %191 : vector<64x32xf32>
    %c1_118 = arith.constant 1 : index
    %c0_119 = arith.constant 0 : index
    %c0_120 = arith.constant 0 : index
    %193 = vector.load %arg9[%c1_118, %c0_119, %c0_120] : memref<4x32x8xf32, #tpu.memory_space<vmem>>, vector<1x32x8xf32>
    %194 = vector.shape_cast %193 : vector<1x32x8xf32> to vector<32x8xf32>
    %cst_121 = arith.constant dense<0.000000e+00> : vector<64x8xf32>
    %195 = tpu.matmul %153, %194, %cst_121 {dimension_numbers = #tpu.dot_dimension_numbers<[1], [0], [0], [1], [0, 0, 1, 1], [], []>} : vector<64x32xf32>, vector<32x8xf32>, vector<64x8xf32> -> vector<64x8xf32>
    %196 = vector.shape_cast %195 : vector<64x8xf32> to vector<8x8x8xf32>
    %c1_122 = arith.constant 1 : index
    %c0_123 = arith.constant 0 : index
    %c0_124 = arith.constant 0 : index
    %197 = vector.load %arg10[%c1_122, %c0_123, %c0_124] : memref<4x32x8xf32, #tpu.memory_space<vmem>>, vector<1x32x8xf32>
    %198 = vector.shape_cast %197 : vector<1x32x8xf32> to vector<32x8xf32>
    %cst_125 = arith.constant dense<0.000000e+00> : vector<128x8xf32>
    %199 = tpu.matmul %3, %198, %cst_125 {dimension_numbers = #tpu.dot_dimension_numbers<[1], [0], [0], [1], [0, 0, 1, 1], [], []>} : vector<128x32xf32>, vector<32x8xf32>, vector<128x8xf32> -> vector<128x8xf32>
    %200 = vector.shape_cast %199 : vector<128x8xf32> to vector<8x16x8xf32>
    %c1_126 = arith.constant 1 : index
    %c0_127 = arith.constant 0 : index
    %c0_128 = arith.constant 0 : index
    %201 = vector.load %arg11[%c1_126, %c0_127, %c0_128] : memref<4x32x8xf32, #tpu.memory_space<vmem>>, vector<1x32x8xf32>
    %202 = vector.shape_cast %201 : vector<1x32x8xf32> to vector<32x8xf32>
    %cst_129 = arith.constant dense<0.000000e+00> : vector<128x8xf32>
    %203 = tpu.matmul %3, %202, %cst_129 {dimension_numbers = #tpu.dot_dimension_numbers<[1], [0], [0], [1], [0, 0, 1, 1], [], []>} : vector<128x32xf32>, vector<32x8xf32>, vector<128x8xf32> -> vector<128x8xf32>
    %204 = vector.shape_cast %203 : vector<128x8xf32> to vector<8x16x8xf32>
    "tpu.trace_start"() <{level = 10 : i32, message = "bqd,bkd->bqk"}> : () -> ()
    %cst_130 = arith.constant dense<0.000000e+00> : vector<8x8x16xf32>
    %205 = tpu.matmul %196, %200, %cst_130 {dimension_numbers = #tpu.dot_dimension_numbers<[2], [2], [1], [1], [0, 0, 0, 1, 1, 1], [0], [0]>} : vector<8x8x8xf32>, vector<8x16x8xf32>, vector<8x8x16xf32> -> vector<8x8x16xf32>
    "tpu.trace_stop"() : () -> ()
    %cst_131 = arith.constant 0.353553385 : f32
    %206 = vector.broadcast %cst_131 : f32 to vector<8x8x16xf32>
    %207 = arith.mulf %205, %206 : vector<8x8x16xf32>
    %cst_132 = arith.constant -1.000000e+30 : f32
    %208 = vector.shape_cast %156 : vector<1x8x16xi1> to vector<1x8x16xi1>
    %209 = vector.broadcast %208 : vector<1x8x16xi1> to vector<8x8x16xi1>
    %210 = vector.broadcast %cst_132 : f32 to vector<8x8x16xf32>
    %211 = arith.select %209, %207, %210 : vector<8x8x16xi1>, vector<8x8x16xf32>
    %cst_133 = arith.constant dense<0xFF800000> : vector<8x8xf32>
    %212 = vector.multi_reduction <maximumf>, %211, %cst_133 [2] : vector<8x8x16xf32> to vector<8x8xf32>
    %213 = vector.shape_cast %212 : vector<8x8xf32> to vector<8x8x1xf32>
    %214 = vector.broadcast %213 : vector<8x8x1xf32> to vector<8x8x16xf32>
    %215 = arith.subf %211, %214 : vector<8x8x16xf32>
    %216 = math.exp %215 : vector<8x8x16xf32>
    %cst_134 = arith.constant dense<0.000000e+00> : vector<8x8xf32>
    %217 = vector.multi_reduction <add>, %216, %cst_134 [2] : vector<8x8x16xf32> to vector<8x8xf32>
    %218 = vector.shape_cast %217 : vector<8x8xf32> to vector<8x8x1xf32>
    %219 = tpu.reciprocal %218 {approx = true} : vector<8x8x1xf32> -> vector<8x8x1xf32>
    %220 = vector.broadcast %219 : vector<8x8x1xf32> to vector<8x8x16xf32>
    %221 = arith.mulf %216, %220 : vector<8x8x16xf32>
    "tpu.trace_start"() <{level = 10 : i32, message = "bqk,bkd->bqd"}> : () -> ()
    %cst_135 = arith.constant dense<0.000000e+00> : vector<8x8x8xf32>
    %222 = tpu.matmul %221, %204, %cst_135 {dimension_numbers = #tpu.dot_dimension_numbers<[2], [1], [1], [2], [0, 0, 0, 1, 1, 2], [0], [0]>} : vector<8x8x16xf32>, vector<8x16x8xf32>, vector<8x8x8xf32> -> vector<8x8x8xf32>
    "tpu.trace_stop"() : () -> ()
    %223 = vector.shape_cast %222 : vector<8x8x8xf32> to vector<64x8xf32>
    %c1_136 = arith.constant 1 : index
    %c0_137 = arith.constant 0 : index
    %c0_138 = arith.constant 0 : index
    %224 = vector.load %arg12[%c1_136, %c0_137, %c0_138] : memref<4x8x32xf32, #tpu.memory_space<vmem>>, vector<1x8x32xf32>
    %225 = vector.shape_cast %224 : vector<1x8x32xf32> to vector<8x32xf32>
    %cst_139 = arith.constant dense<0.000000e+00> : vector<64x32xf32>
    %226 = tpu.matmul %223, %225, %cst_139 {dimension_numbers = #tpu.dot_dimension_numbers<[1], [0], [0], [1], [0, 0, 1, 1], [], []>} : vector<64x8xf32>, vector<8x32xf32>, vector<64x32xf32> -> vector<64x32xf32>
    %227 = arith.addf %192, %226 : vector<64x32xf32>
    %c2_140 = arith.constant 2 : index
    %c0_141 = arith.constant 0 : index
    %c0_142 = arith.constant 0 : index
    %228 = vector.load %arg9[%c2_140, %c0_141, %c0_142] : memref<4x32x8xf32, #tpu.memory_space<vmem>>, vector<1x32x8xf32>
    %229 = vector.shape_cast %228 : vector<1x32x8xf32> to vector<32x8xf32>
    %cst_143 = arith.constant dense<0.000000e+00> : vector<64x8xf32>
    %230 = tpu.matmul %153, %229, %cst_143 {dimension_numbers = #tpu.dot_dimension_numbers<[1], [0], [0], [1], [0, 0, 1, 1], [], []>} : vector<64x32xf32>, vector<32x8xf32>, vector<64x8xf32> -> vector<64x8xf32>
    %231 = vector.shape_cast %230 : vector<64x8xf32> to vector<8x8x8xf32>
    %c2_144 = arith.constant 2 : index
    %c0_145 = arith.constant 0 : index
    %c0_146 = arith.constant 0 : index
    %232 = vector.load %arg10[%c2_144, %c0_145, %c0_146] : memref<4x32x8xf32, #tpu.memory_space<vmem>>, vector<1x32x8xf32>
    %233 = vector.shape_cast %232 : vector<1x32x8xf32> to vector<32x8xf32>
    %cst_147 = arith.constant dense<0.000000e+00> : vector<128x8xf32>
    %234 = tpu.matmul %3, %233, %cst_147 {dimension_numbers = #tpu.dot_dimension_numbers<[1], [0], [0], [1], [0, 0, 1, 1], [], []>} : vector<128x32xf32>, vector<32x8xf32>, vector<128x8xf32> -> vector<128x8xf32>
    %235 = vector.shape_cast %234 : vector<128x8xf32> to vector<8x16x8xf32>
    %c2_148 = arith.constant 2 : index
    %c0_149 = arith.constant 0 : index
    %c0_150 = arith.constant 0 : index
    %236 = vector.load %arg11[%c2_148, %c0_149, %c0_150] : memref<4x32x8xf32, #tpu.memory_space<vmem>>, vector<1x32x8xf32>
    %237 = vector.shape_cast %236 : vector<1x32x8xf32> to vector<32x8xf32>
    %cst_151 = arith.constant dense<0.000000e+00> : vector<128x8xf32>
    %238 = tpu.matmul %3, %237, %cst_151 {dimension_numbers = #tpu.dot_dimension_numbers<[1], [0], [0], [1], [0, 0, 1, 1], [], []>} : vector<128x32xf32>, vector<32x8xf32>, vector<128x8xf32> -> vector<128x8xf32>
    %239 = vector.shape_cast %238 : vector<128x8xf32> to vector<8x16x8xf32>
    "tpu.trace_start"() <{level = 10 : i32, message = "bqd,bkd->bqk"}> : () -> ()
    %cst_152 = arith.constant dense<0.000000e+00> : vector<8x8x16xf32>
    %240 = tpu.matmul %231, %235, %cst_152 {dimension_numbers = #tpu.dot_dimension_numbers<[2], [2], [1], [1], [0, 0, 0, 1, 1, 1], [0], [0]>} : vector<8x8x8xf32>, vector<8x16x8xf32>, vector<8x8x16xf32> -> vector<8x8x16xf32>
    "tpu.trace_stop"() : () -> ()
    %cst_153 = arith.constant 0.353553385 : f32
    %241 = vector.broadcast %cst_153 : f32 to vector<8x8x16xf32>
    %242 = arith.mulf %240, %241 : vector<8x8x16xf32>
    %cst_154 = arith.constant -1.000000e+30 : f32
    %243 = vector.shape_cast %156 : vector<1x8x16xi1> to vector<1x8x16xi1>
    %244 = vector.broadcast %243 : vector<1x8x16xi1> to vector<8x8x16xi1>
    %245 = vector.broadcast %cst_154 : f32 to vector<8x8x16xf32>
    %246 = arith.select %244, %242, %245 : vector<8x8x16xi1>, vector<8x8x16xf32>
    %cst_155 = arith.constant dense<0xFF800000> : vector<8x8xf32>
    %247 = vector.multi_reduction <maximumf>, %246, %cst_155 [2] : vector<8x8x16xf32> to vector<8x8xf32>
    %248 = vector.shape_cast %247 : vector<8x8xf32> to vector<8x8x1xf32>
    %249 = vector.broadcast %248 : vector<8x8x1xf32> to vector<8x8x16xf32>
    %250 = arith.subf %246, %249 : vector<8x8x16xf32>
    %251 = math.exp %250 : vector<8x8x16xf32>
    %cst_156 = arith.constant dense<0.000000e+00> : vector<8x8xf32>
    %252 = vector.multi_reduction <add>, %251, %cst_156 [2] : vector<8x8x16xf32> to vector<8x8xf32>
    %253 = vector.shape_cast %252 : vector<8x8xf32> to vector<8x8x1xf32>
    %254 = tpu.reciprocal %253 {approx = true} : vector<8x8x1xf32> -> vector<8x8x1xf32>
    %255 = vector.broadcast %254 : vector<8x8x1xf32> to vector<8x8x16xf32>
    %256 = arith.mulf %251, %255 : vector<8x8x16xf32>
    "tpu.trace_start"() <{level = 10 : i32, message = "bqk,bkd->bqd"}> : () -> ()
    %cst_157 = arith.constant dense<0.000000e+00> : vector<8x8x8xf32>
    %257 = tpu.matmul %256, %239, %cst_157 {dimension_numbers = #tpu.dot_dimension_numbers<[2], [1], [1], [2], [0, 0, 0, 1, 1, 2], [0], [0]>} : vector<8x8x16xf32>, vector<8x16x8xf32>, vector<8x8x8xf32> -> vector<8x8x8xf32>
    "tpu.trace_stop"() : () -> ()
    %258 = vector.shape_cast %257 : vector<8x8x8xf32> to vector<64x8xf32>
    %c2_158 = arith.constant 2 : index
    %c0_159 = arith.constant 0 : index
    %c0_160 = arith.constant 0 : index
    %259 = vector.load %arg12[%c2_158, %c0_159, %c0_160] : memref<4x8x32xf32, #tpu.memory_space<vmem>>, vector<1x8x32xf32>
    %260 = vector.shape_cast %259 : vector<1x8x32xf32> to vector<8x32xf32>
    %cst_161 = arith.constant dense<0.000000e+00> : vector<64x32xf32>
    %261 = tpu.matmul %258, %260, %cst_161 {dimension_numbers = #tpu.dot_dimension_numbers<[1], [0], [0], [1], [0, 0, 1, 1], [], []>} : vector<64x8xf32>, vector<8x32xf32>, vector<64x32xf32> -> vector<64x32xf32>
    %262 = arith.addf %227, %261 : vector<64x32xf32>
    %c3_162 = arith.constant 3 : index
    %c0_163 = arith.constant 0 : index
    %c0_164 = arith.constant 0 : index
    %263 = vector.load %arg9[%c3_162, %c0_163, %c0_164] : memref<4x32x8xf32, #tpu.memory_space<vmem>>, vector<1x32x8xf32>
    %264 = vector.shape_cast %263 : vector<1x32x8xf32> to vector<32x8xf32>
    %cst_165 = arith.constant dense<0.000000e+00> : vector<64x8xf32>
    %265 = tpu.matmul %153, %264, %cst_165 {dimension_numbers = #tpu.dot_dimension_numbers<[1], [0], [0], [1], [0, 0, 1, 1], [], []>} : vector<64x32xf32>, vector<32x8xf32>, vector<64x8xf32> -> vector<64x8xf32>
    %266 = vector.shape_cast %265 : vector<64x8xf32> to vector<8x8x8xf32>
    %c3_166 = arith.constant 3 : index
    %c0_167 = arith.constant 0 : index
    %c0_168 = arith.constant 0 : index
    %267 = vector.load %arg10[%c3_166, %c0_167, %c0_168] : memref<4x32x8xf32, #tpu.memory_space<vmem>>, vector<1x32x8xf32>
    %268 = vector.shape_cast %267 : vector<1x32x8xf32> to vector<32x8xf32>
    %cst_169 = arith.constant dense<0.000000e+00> : vector<128x8xf32>
    %269 = tpu.matmul %3, %268, %cst_169 {dimension_numbers = #tpu.dot_dimension_numbers<[1], [0], [0], [1], [0, 0, 1, 1], [], []>} : vector<128x32xf32>, vector<32x8xf32>, vector<128x8xf32> -> vector<128x8xf32>
    %270 = vector.shape_cast %269 : vector<128x8xf32> to vector<8x16x8xf32>
    %c3_170 = arith.constant 3 : index
    %c0_171 = arith.constant 0 : index
    %c0_172 = arith.constant 0 : index
    %271 = vector.load %arg11[%c3_170, %c0_171, %c0_172] : memref<4x32x8xf32, #tpu.memory_space<vmem>>, vector<1x32x8xf32>
    %272 = vector.shape_cast %271 : vector<1x32x8xf32> to vector<32x8xf32>
    %cst_173 = arith.constant dense<0.000000e+00> : vector<128x8xf32>
    %273 = tpu.matmul %3, %272, %cst_173 {dimension_numbers = #tpu.dot_dimension_numbers<[1], [0], [0], [1], [0, 0, 1, 1], [], []>} : vector<128x32xf32>, vector<32x8xf32>, vector<128x8xf32> -> vector<128x8xf32>
    %274 = vector.shape_cast %273 : vector<128x8xf32> to vector<8x16x8xf32>
    "tpu.trace_start"() <{level = 10 : i32, message = "bqd,bkd->bqk"}> : () -> ()
    %cst_174 = arith.constant dense<0.000000e+00> : vector<8x8x16xf32>
    %275 = tpu.matmul %266, %270, %cst_174 {dimension_numbers = #tpu.dot_dimension_numbers<[2], [2], [1], [1], [0, 0, 0, 1, 1, 1], [0], [0]>} : vector<8x8x8xf32>, vector<8x16x8xf32>, vector<8x8x16xf32> -> vector<8x8x16xf32>
    "tpu.trace_stop"() : () -> ()
    %cst_175 = arith.constant 0.353553385 : f32
    %276 = vector.broadcast %cst_175 : f32 to vector<8x8x16xf32>
    %277 = arith.mulf %275, %276 : vector<8x8x16xf32>
    %cst_176 = arith.constant -1.000000e+30 : f32
    %278 = vector.shape_cast %156 : vector<1x8x16xi1> to vector<1x8x16xi1>
    %279 = vector.broadcast %278 : vector<1x8x16xi1> to vector<8x8x16xi1>
    %280 = vector.broadcast %cst_176 : f32 to vector<8x8x16xf32>
    %281 = arith.select %279, %277, %280 : vector<8x8x16xi1>, vector<8x8x16xf32>
    %cst_177 = arith.constant dense<0xFF800000> : vector<8x8xf32>
    %282 = vector.multi_reduction <maximumf>, %281, %cst_177 [2] : vector<8x8x16xf32> to vector<8x8xf32>
    %283 = vector.shape_cast %282 : vector<8x8xf32> to vector<8x8x1xf32>
    %284 = vector.broadcast %283 : vector<8x8x1xf32> to vector<8x8x16xf32>
    %285 = arith.subf %281, %284 : vector<8x8x16xf32>
    %286 = math.exp %285 : vector<8x8x16xf32>
    %cst_178 = arith.constant dense<0.000000e+00> : vector<8x8xf32>
    %287 = vector.multi_reduction <add>, %286, %cst_178 [2] : vector<8x8x16xf32> to vector<8x8xf32>
    %288 = vector.shape_cast %287 : vector<8x8xf32> to vector<8x8x1xf32>
    %289 = tpu.reciprocal %288 {approx = true} : vector<8x8x1xf32> -> vector<8x8x1xf32>
    %290 = vector.broadcast %289 : vector<8x8x1xf32> to vector<8x8x16xf32>
    %291 = arith.mulf %286, %290 : vector<8x8x16xf32>
    "tpu.trace_start"() <{level = 10 : i32, message = "bqk,bkd->bqd"}> : () -> ()
    %cst_179 = arith.constant dense<0.000000e+00> : vector<8x8x8xf32>
    %292 = tpu.matmul %291, %274, %cst_179 {dimension_numbers = #tpu.dot_dimension_numbers<[2], [1], [1], [2], [0, 0, 0, 1, 1, 2], [0], [0]>} : vector<8x8x16xf32>, vector<8x16x8xf32>, vector<8x8x8xf32> -> vector<8x8x8xf32>
    "tpu.trace_stop"() : () -> ()
    %293 = vector.shape_cast %292 : vector<8x8x8xf32> to vector<64x8xf32>
    %c3_180 = arith.constant 3 : index
    %c0_181 = arith.constant 0 : index
    %c0_182 = arith.constant 0 : index
    %294 = vector.load %arg12[%c3_180, %c0_181, %c0_182] : memref<4x8x32xf32, #tpu.memory_space<vmem>>, vector<1x8x32xf32>
    %295 = vector.shape_cast %294 : vector<1x8x32xf32> to vector<8x32xf32>
    %cst_183 = arith.constant dense<0.000000e+00> : vector<64x32xf32>
    %296 = tpu.matmul %293, %295, %cst_183 {dimension_numbers = #tpu.dot_dimension_numbers<[1], [0], [0], [1], [0, 0, 1, 1], [], []>} : vector<64x8xf32>, vector<8x32xf32>, vector<64x32xf32> -> vector<64x32xf32>
    %297 = arith.addf %262, %296 : vector<64x32xf32>
    %298 = arith.addf %297, %153 : vector<64x32xf32>
    %c0_184 = arith.constant 0 : index
    %c0_185 = arith.constant 0 : index
    %299 = vector.load %arg13[%c0_184, %c0_185] : memref<1x32xf32, #tpu.memory_space<vmem>>, vector<1x32xf32>
    %c0_186 = arith.constant 0 : index
    %c0_187 = arith.constant 0 : index
    %300 = vector.load %arg14[%c0_186, %c0_187] : memref<1x32xf32, #tpu.memory_space<vmem>>, vector<1x32xf32>
    %cst_188 = arith.constant dense<0.000000e+00> : vector<64xf32>
    %301 = vector.multi_reduction <add>, %298, %cst_188 [1] : vector<64x32xf32> to vector<64xf32>
    %302 = vector.shape_cast %301 : vector<64xf32> to vector<64x1xf32>
    %cst_189 = arith.constant 3.200000e+01 : f32
    %303 = vector.broadcast %cst_189 : f32 to vector<64x1xf32>
    %304 = arith.divf %302, %303 : vector<64x1xf32>
    %305 = vector.broadcast %304 : vector<64x1xf32> to vector<64x32xf32>
    %306 = arith.subf %298, %305 : vector<64x32xf32>
    %307 = arith.mulf %306, %306 : vector<64x32xf32>
    %cst_190 = arith.constant dense<0.000000e+00> : vector<64xf32>
    %308 = vector.multi_reduction <add>, %307, %cst_190 [1] : vector<64x32xf32> to vector<64xf32>
    %309 = vector.shape_cast %308 : vector<64xf32> to vector<64x1xf32>
    %cst_191 = arith.constant 3.200000e+01 : f32
    %310 = vector.broadcast %cst_191 : f32 to vector<64x1xf32>
    %311 = arith.divf %309, %310 : vector<64x1xf32>
    %cst_192 = arith.constant 9.99999974E-6 : f32
    %312 = vector.broadcast %cst_192 : f32 to vector<64x1xf32>
    %313 = arith.addf %311, %312 : vector<64x1xf32>
    %314 = math.rsqrt %313 : vector<64x1xf32>
    %315 = vector.broadcast %304 : vector<64x1xf32> to vector<64x32xf32>
    %316 = arith.subf %298, %315 : vector<64x32xf32>
    %317 = vector.broadcast %314 : vector<64x1xf32> to vector<64x32xf32>
    %318 = arith.mulf %316, %317 : vector<64x32xf32>
    %319 = vector.broadcast %299 : vector<1x32xf32> to vector<64x32xf32>
    %320 = arith.mulf %318, %319 : vector<64x32xf32>
    %321 = vector.broadcast %300 : vector<1x32xf32> to vector<64x32xf32>
    %322 = arith.addf %320, %321 : vector<64x32xf32>
    %c0_193 = arith.constant 0 : index
    %c0_194 = arith.constant 0 : index
    %323 = vector.load %arg15[%c0_193, %c0_194] : memref<32x64xf32, #tpu.memory_space<vmem>>, vector<32x64xf32>
    %cst_195 = arith.constant dense<0.000000e+00> : vector<64x64xf32>
    %324 = tpu.matmul %322, %323, %cst_195 {dimension_numbers = #tpu.dot_dimension_numbers<[1], [0], [0], [1], [0, 0, 1, 1], [], []>} : vector<64x32xf32>, vector<32x64xf32>, vector<64x64xf32> -> vector<64x64xf32>
    %c0_196 = arith.constant 0 : index
    %c0_197 = arith.constant 0 : index
    %325 = vector.load %arg16[%c0_196, %c0_197] : memref<1x64xf32, #tpu.memory_space<vmem>>, vector<1x64xf32>
    %326 = vector.broadcast %325 : vector<1x64xf32> to vector<64x64xf32>
    %327 = arith.addf %324, %326 : vector<64x64xf32>
    %cst_198 = arith.constant 0.000000e+00 : f32
    %328 = vector.broadcast %cst_198 : f32 to vector<64x64xf32>
    %329 = arith.maximumf %327, %328 : vector<64x64xf32>
    %c0_199 = arith.constant 0 : index
    %c0_200 = arith.constant 0 : index
    %330 = vector.load %arg17[%c0_199, %c0_200] : memref<64x32xf32, #tpu.memory_space<vmem>>, vector<64x32xf32>
    %cst_201 = arith.constant dense<0.000000e+00> : vector<64x32xf32>
    %331 = tpu.matmul %329, %330, %cst_201 {dimension_numbers = #tpu.dot_dimension_numbers<[1], [0], [0], [1], [0, 0, 1, 1], [], []>} : vector<64x64xf32>, vector<64x32xf32>, vector<64x32xf32> -> vector<64x32xf32>
    %c0_202 = arith.constant 0 : index
    %c0_203 = arith.constant 0 : index
    %332 = vector.load %arg18[%c0_202, %c0_203] : memref<1x32xf32, #tpu.memory_space<vmem>>, vector<1x32xf32>
    %333 = vector.broadcast %332 : vector<1x32xf32> to vector<64x32xf32>
    %334 = arith.addf %331, %333 : vector<64x32xf32>
    %335 = arith.addf %334, %322 : vector<64x32xf32>
    %c0_204 = arith.constant 0 : index
    %c0_205 = arith.constant 0 : index
    %336 = vector.load %arg19[%c0_204, %c0_205] : memref<1x32xf32, #tpu.memory_space<vmem>>, vector<1x32xf32>
    %c0_206 = arith.constant 0 : index
    %c0_207 = arith.constant 0 : index
    %337 = vector.load %arg20[%c0_206, %c0_207] : memref<1x32xf32, #tpu.memory_space<vmem>>, vector<1x32xf32>
    %cst_208 = arith.constant dense<0.000000e+00> : vector<64xf32>
    %338 = vector.multi_reduction <add>, %335, %cst_208 [1] : vector<64x32xf32> to vector<64xf32>
    %339 = vector.shape_cast %338 : vector<64xf32> to vector<64x1xf32>
    %cst_209 = arith.constant 3.200000e+01 : f32
    %340 = vector.broadcast %cst_209 : f32 to vector<64x1xf32>
    %341 = arith.divf %339, %340 : vector<64x1xf32>
    %342 = vector.broadcast %341 : vector<64x1xf32> to vector<64x32xf32>
    %343 = arith.subf %335, %342 : vector<64x32xf32>
    %344 = arith.mulf %343, %343 : vector<64x32xf32>
    %cst_210 = arith.constant dense<0.000000e+00> : vector<64xf32>
    %345 = vector.multi_reduction <add>, %344, %cst_210 [1] : vector<64x32xf32> to vector<64xf32>
    %346 = vector.shape_cast %345 : vector<64xf32> to vector<64x1xf32>
    %cst_211 = arith.constant 3.200000e+01 : f32
    %347 = vector.broadcast %cst_211 : f32 to vector<64x1xf32>
    %348 = arith.divf %346, %347 : vector<64x1xf32>
    %cst_212 = arith.constant 9.99999974E-6 : f32
    %349 = vector.broadcast %cst_212 : f32 to vector<64x1xf32>
    %350 = arith.addf %348, %349 : vector<64x1xf32>
    %351 = math.rsqrt %350 : vector<64x1xf32>
    %352 = vector.broadcast %341 : vector<64x1xf32> to vector<64x32xf32>
    %353 = arith.subf %335, %352 : vector<64x32xf32>
    %354 = vector.broadcast %351 : vector<64x1xf32> to vector<64x32xf32>
    %355 = arith.mulf %353, %354 : vector<64x32xf32>
    %356 = vector.broadcast %336 : vector<1x32xf32> to vector<64x32xf32>
    %357 = arith.mulf %355, %356 : vector<64x32xf32>
    %358 = vector.broadcast %337 : vector<1x32xf32> to vector<64x32xf32>
    %359 = arith.addf %357, %358 : vector<64x32xf32>
    %360 = vector.shape_cast %359 : vector<64x32xf32> to vector<8x8x32xf32>
    %c0_213 = arith.constant 0 : index
    %c0_214 = arith.constant 0 : index
    %c0_215 = arith.constant 0 : index
    %361 = vector.load %arg21[%c0_213, %c0_214, %c0_215] : memref<8x8x32xf32, #tpu.memory_space<vmem>>, vector<8x8x32xf32>
    tpu.vector_store %arg21[%c0_213, %c0_214, %c0_215], %360 {strides = array<i32>} : memref<8x8x32xf32, #tpu.memory_space<vmem>>, vector<8x8x32xf32>,
    return
  }
  func.func @transform_0(%arg0: i32) -> (i32, i32, i32) {
    %c0_i32 = arith.constant 0 : i32
    %c0_i32_0 = arith.constant 0 : i32
    %c0_i32_1 = arith.constant 0 : i32
    return %arg0, %c0_i32, %c0_i32_0 : i32, i32, i32
  }
  func.func @transform_1(%arg0: i32) -> (i32, i32, i32) {
    %c0_i32 = arith.constant 0 : i32
    %c0_i32_0 = arith.constant 0 : i32
    %c0_i32_1 = arith.constant 0 : i32
    return %arg0, %c0_i32, %c0_i32_0 : i32, i32, i32
  }
  func.func @transform_2(%arg0: i32) -> (i32, i32, i32) {
    %c0_i32 = arith.constant 0 : i32
    %c0_i32_0 = arith.constant 0 : i32
    %c0_i32_1 = arith.constant 0 : i32
    %c0_i32_2 = arith.constant 0 : i32
    return %c0_i32, %c0_i32_0, %c0_i32_1 : i32, i32, i32
  }
  func.func @transform_3(%arg0: i32) -> (i32, i32, i32) {
    %c0_i32 = arith.constant 0 : i32
    %c0_i32_0 = arith.constant 0 : i32
    %c0_i32_1 = arith.constant 0 : i32
    %c0_i32_2 = arith.constant 0 : i32
    return %c0_i32, %c0_i32_0, %c0_i32_1 : i32, i32, i32
  }
  func.func @transform_4(%arg0: i32) -> (i32, i32, i32) {
    %c0_i32 = arith.constant 0 : i32
    %c0_i32_0 = arith.constant 0 : i32
    %c0_i32_1 = arith.constant 0 : i32
    %c0_i32_2 = arith.constant 0 : i32
    return %c0_i32, %c0_i32_0, %c0_i32_1 : i32, i32, i32
  }
  func.func @transform_5(%arg0: i32) -> (i32, i32, i32) {
    %c0_i32 = arith.constant 0 : i32
    %c0_i32_0 = arith.constant 0 : i32
    %c0_i32_1 = arith.constant 0 : i32
    %c0_i32_2 = arith.constant 0 : i32
    return %c0_i32, %c0_i32_0, %c0_i32_1 : i32, i32, i32
  }
  func.func @transform_6(%arg0: i32) -> (i32, i32) {
    %c0_i32 = arith.constant 0 : i32
    %c0_i32_0 = arith.constant 0 : i32
    %c0_i32_1 = arith.constant 0 : i32
    return %c0_i32, %c0_i32_0 : i32, i32
  }
  func.func @transform_7(%arg0: i32) -> (i32, i32) {
    %c0_i32 = arith.constant 0 : i32
    %c0_i32_0 = arith.constant 0 : i32
    %c0_i32_1 = arith.constant 0 : i32
    return %c0_i32, %c0_i32_0 : i32, i32
  }
  func.func @transform_8(%arg0: i32) -> (i32, i32, i32) {
    %c0_i32 = arith.constant 0 : i32
    %c0_i32_0 = arith.constant 0 : i32
    %c0_i32_1 = arith.constant 0 : i32
    %c0_i32_2 = arith.constant 0 : i32
    return %c0_i32, %c0_i32_0, %c0_i32_1 : i32, i32, i32
  }
  func.func @transform_9(%arg0: i32) -> (i32, i32, i32) {
    %c0_i32 = arith.constant 0 : i32
    %c0_i32_0 = arith.constant 0 : i32
    %c0_i32_1 = arith.constant 0 : i32
    %c0_i32_2 = arith.constant 0 : i32
    return %c0_i32, %c0_i32_0, %c0_i32_1 : i32, i32, i32
  }
  func.func @transform_10(%arg0: i32) -> (i32, i32, i32) {
    %c0_i32 = arith.constant 0 : i32
    %c0_i32_0 = arith.constant 0 : i32
    %c0_i32_1 = arith.constant 0 : i32
    %c0_i32_2 = arith.constant 0 : i32
    return %c0_i32, %c0_i32_0, %c0_i32_1 : i32, i32, i32
  }
  func.func @transform_11(%arg0: i32) -> (i32, i32, i32) {
    %c0_i32 = arith.constant 0 : i32
    %c0_i32_0 = arith.constant 0 : i32
    %c0_i32_1 = arith.constant 0 : i32
    %c0_i32_2 = arith.constant 0 : i32
    return %c0_i32, %c0_i32_0, %c0_i32_1 : i32, i32, i32
  }
  func.func @transform_12(%arg0: i32) -> (i32, i32) {
    %c0_i32 = arith.constant 0 : i32
    %c0_i32_0 = arith.constant 0 : i32
    %c0_i32_1 = arith.constant 0 : i32
    return %c0_i32, %c0_i32_0 : i32, i32
  }
  func.func @transform_13(%arg0: i32) -> (i32, i32) {
    %c0_i32 = arith.constant 0 : i32
    %c0_i32_0 = arith.constant 0 : i32
    %c0_i32_1 = arith.constant 0 : i32
    return %c0_i32, %c0_i32_0 : i32, i32
  }
  func.func @transform_14(%arg0: i32) -> (i32, i32) {
    %c0_i32 = arith.constant 0 : i32
    %c0_i32_0 = arith.constant 0 : i32
    %c0_i32_1 = arith.constant 0 : i32
    return %c0_i32, %c0_i32_0 : i32, i32
  }
  func.func @transform_15(%arg0: i32) -> (i32, i32) {
    %c0_i32 = arith.constant 0 : i32
    %c0_i32_0 = arith.constant 0 : i32
    %c0_i32_1 = arith.constant 0 : i32
    return %c0_i32, %c0_i32_0 : i32, i32
  }
  func.func @transform_16(%arg0: i32) -> (i32, i32) {
    %c0_i32 = arith.constant 0 : i32
    %c0_i32_0 = arith.constant 0 : i32
    %c0_i32_1 = arith.constant 0 : i32
    return %c0_i32, %c0_i32_0 : i32, i32
  }
  func.func @transform_17(%arg0: i32) -> (i32, i32) {
    %c0_i32 = arith.constant 0 : i32
    %c0_i32_0 = arith.constant 0 : i32
    %c0_i32_1 = arith.constant 0 : i32
    return %c0_i32, %c0_i32_0 : i32, i32
  }
  func.func @transform_18(%arg0: i32) -> (i32, i32) {
    %c0_i32 = arith.constant 0 : i32
    %c0_i32_0 = arith.constant 0 : i32
    %c0_i32_1 = arith.constant 0 : i32
    return %c0_i32, %c0_i32_0 : i32, i32
  }
  func.func @transform_19(%arg0: i32) -> (i32, i32) {
    %c0_i32 = arith.constant 0 : i32
    %c0_i32_0 = arith.constant 0 : i32
    %c0_i32_1 = arith.constant 0 : i32
    return %c0_i32, %c0_i32_0 : i32, i32
  }
  func.func @transform_20(%arg0: i32) -> (i32, i32, i32) {
    %c0_i32 = arith.constant 0 : i32
    %c0_i32_0 = arith.constant 0 : i32
    %c0_i32_1 = arith.constant 0 : i32
    return %arg0, %c0_i32, %c0_i32_0 : i32, i32, i32
  }
}

</mosaic_0001>

<bundles_post_ra>
// kernel: tpu_custom_call.1
= control target key start
LH: loop header
LB: loop body
LE: loop exit
PB: predicated region body
PF: predicated region fallthrough
CT: control target
= control target key end

     0   :  { %s22755_s0 = inlined_call_operand.vmem [shape: f32[16,8,32], index: 0, kind: input, shape index: {}]   ;;  %s22756_s1 = inlined_call_operand.vmem [shape: f32[16,16,32], index: 1, kind: input, shape index: {}]   ;;  %s22757_s2 = inlined_call_operand.vmem [shape: f32[4,32,8], index: 2, kind: input, shape index: {}]   ;;  %s22758_s3 = inlined_call_operand.vmem [shape: f32[4,32,8], index: 3, kind: input, shape index: {}]   ;;  %s22759_s4 = inlined_call_operand.vmem [shape: f32[4,32,8], index: 4, kind: input, shape index: {}]   ;;  %s22760_s5 = inlined_call_operand.vmem [shape: f32[4,8,32], index: 5, kind: input, shape index: {}]   ;;  %s22761_s6 = inlined_call_operand.vmem [shape: f32[1,32], index: 6, kind: input, shape index: {}]   ;;  %s22762_s7 = inlined_call_operand.vmem [shape: f32[1,32], index: 7, kind: input, shape index: {}]   ;;  %s22763_s8 = inlined_call_operand.vmem [shape: f32[4,32,8], index: 8, kind: input, shape index: {}]   ;;  %s22764_s9 = inlined_call_operand.vmem [shape: f32[4,32,8], index: 9, kind: input, shape index: {}]   ;;  %s22765_s10 = inlined_call_operand.vmem [shape: f32[4,32,8], index: 10, kind: input, shape index: {}]   ;;  %s22766_s11 = inlined_call_operand.vmem [shape: f32[4,8,32], index: 11, kind: input, shape index: {}]   ;;  %s22767_s12 = inlined_call_operand.vmem [shape: f32[1,32], index: 12, kind: input, shape index: {}]   ;;  %s22768_s13 = inlined_call_operand.vmem [shape: f32[1,32], index: 13, kind: input, shape index: {}]   ;;  %s22769_s14 = inlined_call_operand.vmem [shape: f32[32,64], index: 14, kind: input, shape index: {}]   ;;  %s22770_s15 = inlined_call_operand.vmem [shape: f32[1,64], index: 15, kind: input, shape index: {}]   ;;  %s22771_s16 = inlined_call_operand.vmem [shape: f32[64,32], index: 16, kind: input, shape index: {}]   ;;  %s22772_s17 = inlined_call_operand.vmem [shape: f32[1,32], index: 17, kind: input, shape index: {}]   ;;  %s22773_s18 = inlined_call_operand.vmem [shape: f32[1,32], index: 18, kind: input, shape index: {}]   ;;  %s22774_s19 = inlined_call_operand.vmem [shape: f32[1,32], index: 19, kind: input, shape index: {}]   ;;  %s22775_s20 = inlined_call_operand.hbm [shape: f32[16,8,32], index: 20, kind: output, shape index: {}]  }
   0x1   :  { %22791 = sst [smem:[#allocation13_spill]] %s22755_s0 }
   0x2   :  { %22792 = sst [smem:[#allocation14_spill]] %s22756_s1 }
   0x3   :  { %22793 = sst [smem:[#allocation15_spill]] %s22757_s2 }
   0x4   :  { %22794 = sst [smem:[#allocation16_spill]] %s22758_s3 }
   0x5   :  { %22795 = sst [smem:[#allocation17_spill]] %s22759_s4 }
   0x6   :  { %22796 = sst [smem:[#allocation18_spill]] %s22775_s20 }
   0x7   :  { %25 = vsyncpa [#allocation3], 0 }
   0x8   :  { %27 = vsyncpa [#allocation3 + $0x1], 0  ;;  %s20046_s1 = smov 0   ;;  %s20048_s22 = smov 0  }
   0x9   :  { %s20050_s23 = smov 0   ;;  %s20052_s24 = smov 0  }
   0xa LB: > { %22797 = sst [smem:[#allocation5_spill]] %s19921_s1  ;;  %s20067_s2 = sadd.s32 4294967295, %s19933_s24   ;;  %s19933_s24 = sphi %s20052_s24, %s22831_s24   ;;  %s19929_s23 = sphi %s20050_s23, %s22833_s23   ;;  %s19925_s22 = sphi %s20048_s22, %s22835_s22   ;;  %s19921_s1 = sphi %s20046_s1, %s22834_s1  }
   0xb   : > { %22798 = sst [smem:[#allocation6_spill]] %s19929_s23  ;;  %s16064_s25 = sadd.s32 4294967294, %s19933_s24  }
   0xc   : > { %22799 = sst [smem:[#allocation7_spill]] %s19933_s24  ;;  %s20071_s3 = sadd.s32 1, %s19933_s24  }
   0xd   : > { %22800 = sst [smem:[#allocation8_spill]] %s20067_s2  ;;  %s470_s26 = sadd.s32 1, %s19929_s23 }
   0xe   : > { %22801 = sst [smem:[#allocation9_spill]] %s20071_s3  ;;  %s467_s27 = ssub.s32 %s19933_s24, %s20071_s3 }
   0xf   : > { %p480_p0 = scmp.ne.s32.totalorder %s19929_s23, %s19925_s22  ;;  %p468_p1 = scmp.eq.s32.totalorder %s467_s27, 0 }
  0x10   : > { %p481_p2 = scmp.eq.s32.totalorder %s20067_s2, 1  ;;  %p486_p3 = scmp.ne.s32.totalorder %s19925_s22, %s19921_s1 }
  0x11   : > { %p487_p4 = scmp.eq.s32.totalorder %s16064_s25, 1  ;;  %p16067_p7 = scmp.ge.s32.totalorder %s19933_s24, 1 }
  0x12   : > { %s20082_s28 = scalar_select %p468_p1, %s19929_s23, %s470_s26  }
  0x13   : > { %p20084_p5 = por %p481_p2, %p480_p0  ;;  %p20088_p6 = por %p487_p4, %p486_p3 }
  0x14   : > { %22802 = sst [smem:[#allocation10_spill]] %s20082_s28  ;;  %p578_p8 = scmp.lt.s32.totalorder %s19933_s24, 3 }
  0x15   : > { %s22803_s4 = scalar_select %p20084_p5, 1, 0 }
  0x16   : > { %s22805_s29 = scalar_select %p20088_p6, 1, 0 }
  0x17   : > { %22804 = sst [smem:[#allocation11_spill]] %s22803_s4  ;;  %p579_p9 = pnand %p16067_p7, %p578_p8 }
  0x18   : > { %22806 = sst [smem:[#allocation12_spill]] %s22805_s29  ;;  %s22807_s21 = sld [smem:[#allocation16_spill]] (!%p579_p9)  ;;  %vm684_vm0 = vcmask (!%p579_p9), 261120   ;;  %v19935_v26 = vmov (!%p579_p9), 0.0   ;;  %vm19936_vm1 = vmmov (!%p579_p9), 0   ;;  %vm1032_vm2 = vcmask (!%p579_p9), 64512  }
  0x19   : > { %582 = sbr.rel (%p579_p9) target bundleno = 8928 (0x22e0), region = 100  ;;  %s22808_s23 = sld [smem:[#allocation15_spill]] (!%p579_p9)  ;;  %vm21263_vm3 = vmpackc.low (!%p579_p9), %vm1032_vm2, %vm1032_vm2  ;;  %vm8989_vm5 = vcmask (!%p579_p9), 130048   ;;  %vm15696_vm6 = vcmask (!%p579_p9), 523264  }
  0x1a   : > { %s16069_s1 = sshll.u32 (!%p579_p9), %s20067_s2, 3  ;;  %s22810_s4 = sld [smem:[#allocation17_spill]] (!%p579_p9) }
  0x1b   : > { %p643_p10 = scmp.lt.s32.totalorder (!%p579_p9), %s16069_s1, 15  ;;  %s22811_s28 = sld [smem:[#allocation13_spill]] (!%p579_p9) }
  0x1c   : > { %s22812_s26 = sld [smem:[#allocation14_spill]] (!%p579_p9)  ;;  %s22827_s0 = sld [smem:[#allocation18_spill]] (!%p579_p9) }
  0x1e   : > { %v814_v0 = vld [vmem:[%s22807_s21] sm:$0xff] (!%p579_p9)  ;;  %v815_v1 = vld [vmem:[%s22807_s21 + $0x8] sm:$0xff] (!%p579_p9)  ;;  %v816_v5 = vld [vmem:[%s22807_s21 + $0x10] sm:$0xff] (!%p579_p9) }
  0x1f   : > { %s22809_s3 = smov (!%p579_p9), %s22808_s23  ;;  %v680_v2 = vld [vmem:[%s22808_s23] sm:$0xff] (!%p579_p9)  ;;  %v19011_v3 = vpack.c.bf16 (!%p579_p9), %v815_v1, %v814_v0  ;;  %v817_v6 = vld [vmem:[%s22807_s21 + $0x18] sm:$0xff] (!%p579_p9) }
  0x20   : > { %v681_v4 = vld [vmem:[%s22809_s3 + $0x8] sm:$0xff]  ;;  %v19015_v8 = vpack.c.bf16 %v817_v6, %v816_v5  ;;  %v682_v9 = vld [vmem:[%s22809_s3 + $0x10] sm:$0xff]  ;;  %v683_v10 = vld [vmem:[%s22809_s3 + $0x18] sm:$0xff]  ;;  %s22837_s1 = smov (!%p643_p10, %s16069_s1), 15 }
  0x21   : > { %v19003_v7 = vpack.c.bf16 %v681_v4, %v680_v2  ;;  %19012 = vmatprep.subr.bf16.mxu1 %v19011_v3  ;;  %v19007_v11 = vpack.c.bf16 %v683_v10, %v682_v9  ;;  %v923_v12 = vld [vmem:[%s22810_s4] sm:$0xff]  ;;  %v924_v13 = vld [vmem:[%s22810_s4 + $0x8] sm:$0xff]  ;;  %s16070_s30 = sshll.u32 %s22837_s1, 3  ;;  %v925_v16 = vld [vmem:[%s22810_s4 + $0x10] sm:$0xff] }
  0x22   : > { %19014 = vmatpush3.bf16.msra.mxu1 %v19011_v3  ;;  %s20131_s23 = scalar_lea.vmem %s22811_s28, %s16070_s30  ;;  %v19019_v14 = vpack.c.bf16 %v924_v13, %v923_v12  ;;  %v926_v17 = vld [vmem:[%s22810_s4 + $0x18] sm:$0xff]  ;;  %s639_s30 = sand.u32 1, %s19925_s22  }
  0x23   : > { %19004 = vmatprep.subr.bf16.mxu0 %v19003_v7  ;;  %19016 = vmatprep.subr.bf16.mxu1 %v19015_v8  ;;  %v20134_v15 = vld [vmem:[%s20131_s23] sm:$0xff]  ;;  %v20145_v18 = vld [vmem:[%s20131_s23 + $0x8] sm:$0xff]  ;;  %v20150_v19 = vld [vmem:[%s20131_s23 + $0x10] sm:$0xff]  ;;  %v19023_v20 = vpack.c.bf16 %v926_v17, %v925_v16  ;;  %s16068_s25 = sshll.u32 %s639_s30, 6 }
  0x24   : > { %19006 = vmatpush3.bf16.msra.mxu0 %v19003_v7  ;;  %17527 = vmatprep.mubr.msk.f32.mxu1 %vm684_vm0, %v20134_v15  ;;  %v20159_v21 = vld [vmem:[%s20131_s23 + $0x18] sm:$0xff]  ;;  %v20164_v22 = vld [vmem:[%s20131_s23 + $0x20] sm:$0xff]  ;;  %v20173_v23 = vld [vmem:[%s20131_s23 + $0x28] sm:$0xff] }
  0x25   : > { %19008 = vmatprep.subr.bf16.mxu0 %v19007_v11  ;;  %17507 = vmatprep.mubr.msk.f32.mxu0 %vm684_vm0, %v20134_v15  ;;  %v20178_v24 = vld [vmem:[%s20131_s23 + $0x30] sm:$0xff]  ;;  %v20187_v25 = vld [vmem:[%s20131_s23 + $0x38] sm:$0xff] }
  0x26   : > { %19018 = vmatpush3.bf16.msra.mxu1 %v19015_v8 }
  0x27   : > { %17564 = vmatprep.subr.mxu1 %v19935_v26 }
  0x28   : > { %19010 = vmatpush3.bf16.msra.mxu0 %v19007_v11 }
  0x29   : > { %19020 = vmatprep.subr.bf16.mxu0 %v19019_v14  ;;  %17528 = vmatmul.mubr.msk.f32.vlgmr.msra.gmra.mrb[0].mxu1 %vm684_vm0, %v20145_v18 }
  0x2a   : > { %17530 = vmatprep.mubr.msk.f32.mxu1 %vm684_vm0, %v20150_v19 }
  0x2b   : > { %17508 = vmatmul.mubr.msk.f32.vlgmr.msra.gmra.mrb[0].mxu0 %vm684_vm0, %v20145_v18 }
  0x2c   : > { %17510 = vmatprep.mubr.msk.f32.mxu0 %vm684_vm0, %v20150_v19  ;;  %19022 = vmatpush3.bf16.msra.mxu0 %v19019_v14 }
  0x2d   : > { %19024 = vmatprep.subr.bf16.mxu0 %v19023_v20  ;;  %17531 = vmatmul.mubr.msk.f32.gmra.mrb[2].mxu1 %vm684_vm0, %v20159_v21 }
  0x2e   : > { %17533 = vmatprep.mubr.msk.f32.mxu1 %vm684_vm0, %v20164_v22 }
  0x2f   : > { %17511 = vmatmul.mubr.msk.f32.gmra.mrb[2].mxu0 %vm684_vm0, %v20159_v21 }
  0x30   : > { %17513 = vmatprep.mubr.msk.f32.mxu0 %vm684_vm0, %v20164_v22  ;;  %19026 = vmatpush3.bf16.msra.mxu0 %v19023_v20 }
  0x31   : > { %17534 = vmatmul.mubr.msk.f32.gmra.mrb[4].mxu1 %vm684_vm0, %v20173_v23  ;;  %17559 = vmatprep.subr.mxu0 %v19935_v26 }
  0x32   : > { %17536 = vmatprep.mubr.msk.f32.mxu1 %vm684_vm0, %v20178_v24 }
  0x33   : > { %17514 = vmatmul.mubr.msk.f32.gmra.mrb[4].mxu0 %vm684_vm0, %v20173_v23 }
  0x34   : > { %17516 = vmatprep.mubr.msk.f32.mxu0 %vm684_vm0, %v20178_v24 }
  0x35   : > { %17537 = vmatmul.mubr.msk.f32.gmra.mrb[6].mxu1 %vm684_vm0, %v20187_v25 }
  0x36   : > { %17566 = vmatprep.mubr.msk.f32.mxu1 %vm19936_vm1, %v19935_v26 }
  0x37   : > { %17517 = vmatmul.mubr.msk.f32.gmra.mrb[6].mxu0 %vm684_vm0, %v20187_v25 }
  0x38   : > { %17547 = vmatprep.mubr.msk.f32.mxu0 %vm684_vm0, %v20134_v15 }
  0x3b   : > { %17548 = vmatmul.mubr.msk.f32.vlgmr.msra.gmra.mrb[8].mxu0 %vm684_vm0, %v20145_v18 }
  0x3c   : > { %17550 = vmatprep.mubr.msk.f32.mxu0 %vm684_vm0, %v20150_v19 }
  0x3f   : > { %17551 = vmatmul.mubr.msk.f32.gmra.mrb[10].mxu0 %vm684_vm0, %v20159_v21 }
  0x40   : > { %17553 = vmatprep.mubr.msk.f32.mxu0 %vm684_vm0, %v20164_v22 }
  0x43   : > { %17554 = vmatmul.mubr.msk.f32.gmra.mrb[12].mxu0 %vm684_vm0, %v20173_v23 }
  0x44   : > { %17556 = vmatprep.mubr.msk.f32.mxu0 %vm684_vm0, %v20178_v24 }
  0x47   : > { %17557 = vmatmul.mubr.msk.f32.gmra.mrb[14].mxu0 %vm684_vm0, %v20187_v25 }
  0x48   : > { %17561 = vmatprep.mubr.msk.f32.mxu0 %vm19936_vm1, %v19935_v26 }
  0xfc   : > { %v17529_v27 = vpop.f32.mrb[0].mxu1 }
  0xfd   : > { %v884_v28 = vpop.f32.mrb[1].mxu1  ;;  %17565 = vmatpush3.xpose.msk.msra.mxu1 %vm1032_vm2, %v17529_v27 }
  0xfe   : > { %v17509_v29 = vpop.f32.mrb[0].mxu0  ;;  %17560 = vmatpush3.xpose.msk.msra.mxu0 %vm1032_vm2, %v884_v28  ;;  %17569 = vmatprep.subr.mxu1 %v19935_v26 }
  0xff   : > { %v775_v30 = vpop.f32.mrb[1].mxu0  ;;  %17579 = vmatprep.subr.mxu0 %v19935_v26 }
 0x100   : > { %v17532_v31 = vpop.f32.mrb[2].mxu1  ;;  %17567 = vmatmul.mubr.msk.f32.vlgmr.msra.gmra.mrb[8].mxu1 %vm1032_vm2, %v17509_v29 }
 0x101   : > { %v894_v32 = vpop.f32.mrb[3].mxu1  ;;  %17562 = vmatmul.mubr.msk.f32.vlgmr.msra.gmra.mrb[16].mxu0 %vm1032_vm2, %v775_v30  ;;  %17571 = vmatprep.mubr.msk.f32.mxu1 %vm19936_vm1, %v19935_v26 }
 0x102   : > { %v17512_v33 = vpop.f32.mrb[2].mxu0  ;;  %17570 = vmatpush3.xpose.msk.msra.mxu1 %vm1032_vm2, %v894_v32  ;;  %17581 = vmatprep.mubr.msk.f32.mxu0 %vm19936_vm1, %v19935_v26 }
 0x103   : > { %v785_v34 = vpop.f32.mrb[3].mxu0  ;;  %17574 = vmatprep.subr.mxu1 %v19935_v26 }
 0x104   : > { %v17535_v35 = vpop.f32.mrb[4].mxu1 }
 0x105   : > { %17572 = vmatmul.mubr.msk.f32.vlgmr.msra.gmra.mrb[10].mxu1 %vm1032_vm2, %v785_v34  ;;  %v904_v36 = vpop.f32.mrb[5].mxu1 }
 0x106   : > { %v17515_v37 = vpop.f32.mrb[4].mxu0  ;;  %17575 = vmatpush3.xpose.msk.msra.mxu1 %vm1032_vm2, %v17532_v31  ;;  %17576 = vmatprep.mubr.msk.f32.mxu1 %vm19936_vm1, %v19935_v26 }
 0x107   : > { %v795_v38 = vpop.f32.mrb[5].mxu0  ;;  %17584 = vmatprep.subr.mxu1 %v19935_v26  ;;  %17580 = vmatpush3.xpose.msk.msra.mxu0 %vm1032_vm2, %v904_v36 }
 0x108   : > { %v17538_v39 = vpop.f32.mrb[6].mxu1  ;;  %17589 = vmatprep.subr.mxu0 %v19935_v26 }
 0x109   : > { %17577 = vmatmul.mubr.msk.f32.vlgmr.msra.gmra.mrb[12].mxu1 %vm1032_vm2, %v17512_v33  ;;  %v914_v40 = vpop.f32.mrb[7].mxu1 }
 0x10a   : > { %v17518_v41 = vpop.f32.mrb[6].mxu0  ;;  %17585 = vmatpush3.xpose.msk.msra.mxu1 %vm1032_vm2, %v17535_v35  ;;  %17586 = vmatprep.mubr.msk.f32.mxu1 %vm19936_vm1, %v19935_v26 }
 0x10b   : > { %v805_v42 = vpop.f32.mrb[7].mxu0  ;;  %17582 = vmatmul.mubr.msk.f32.vlgmr.msra.gmra.mrb[18].mxu0 %vm1032_vm2, %v795_v38  ;;  %17594 = vmatprep.subr.mxu1 %v19935_v26 }
 0x10c   : > { %17590 = vmatpush3.xpose.msk.msra.mxu0 %vm1032_vm2, %v914_v40  ;;  %17591 = vmatprep.mubr.msk.f32.mxu0 %vm19936_vm1, %v19935_v26 }
 0x10d   : > { %17587 = vmatmul.mubr.msk.f32.vlgmr.msra.gmra.mrb[14].mxu1 %vm1032_vm2, %v17515_v37  ;;  %17599 = vmatprep.subr.mxu0 %v19935_v26 }
 0x10e   : > { %v17549_v43 = vpop.f32.mrb[8].mxu0  ;;  %17595 = vmatpush3.xpose.msk.msra.mxu1 %vm1032_vm2, %v17538_v39  ;;  %17596 = vmatprep.mubr.msk.f32.mxu1 %vm19936_vm1, %v19935_v26 }
 0x10f   : > { %v993_v44 = vpop.f32.mrb[9].mxu0  ;;  %17592 = vmatmul.mubr.msk.f32.vlgmr.msra.gmra.mrb[20].mxu0 %vm1032_vm2, %v805_v42  ;;  %17604 = vmatprep.subr.mxu1 %v19935_v26 }
 0x110   : > { %17600 = vmatpush3.msra.mxu0 %v993_v44  ;;  %17601 = vmatprep.mubr.msk.f32.mxu0 %vm19936_vm1, %v19935_v26 }
 0x111   : > { %17597 = vmatmul.mubr.msk.f32.vlgmr.msra.gmra.mrb[16].mxu1 %vm1032_vm2, %v17518_v41  ;;  %17609 = vmatprep.subr.mxu0 %v19935_v26 }
 0x112   : > { %v20255_v45 = vpop.f32.mrb[10].mxu0  ;;  %17605 = vmatpush3.msra.mxu1 %v17549_v43  ;;  %17606 = vmatprep.mubr.msk.f32.mxu1 %vm19936_vm1, %v19935_v26 }
 0x113   : > { %v20258_v46 = vpop.f32.mrb[11].mxu0  ;;  %17614 = vmatprep.subr.mxu1 %v19935_v26 }
 0x116   : > { %v20263_v47 = vpop.f32.mrb[12].mxu0 }
 0x117   : > { %v20265_v48 = vpop.f32.mrb[13].mxu0 }
 0x11a   : > { %v20267_v49 = vpop.f32.mrb[14].mxu0 }
 0x11b   : > { %v20269_v50 = vpop.f32.mrb[15].mxu0 }
 0x1d3   : > { %v1181_v51 = vpop.f32.mrb[8].mxu1 }
 0x1d4   : > { %v1105_v52 = vpop.f32.mrb[16].mxu0  ;;  %v17568_v53 = vpop.f32.mrb[9].mxu1  ;;  %v1642_v54 = vmul.f32 0.35355338, %v1181_v51 }
 0x1d5   : > { %v17563_v55 = vpop.f32.mrb[17].mxu0  ;;  %v1641_v56 = vmul.f32 0.35355338, %v1105_v52 }
 0x1d6   : > { %v1652_v57 = vsel %vm1032_vm2, %v1642_v54, -inf }
 0x1d7   : > { %1653 = vmax.xlane.f32.xlu0 %v1652_v57  ;;  %v1649_v60 = vsel %vm1032_vm2, %v1641_v56, -inf }
 0x1d8   : > { %v1257_v58 = vpop.f32.mrb[10].mxu1 }
 0x1d9   : > { %v17573_v59 = vpop.f32.mrb[11].mxu1  ;;  %v1643_v3 = vmul.f32 0.35355338, %v1257_v58 }
 0x1db   : > { %1650 = vmax.xlane.f32.xlu0 %v1649_v60  ;;  %v1655_v9 = vsel %vm1032_vm2, %v1643_v3, -inf }
 0x1dc   : > { %v1333_v61 = vpop.f32.mrb[12].mxu1 }
 0x1dd   : > { %v17578_v62 = vpop.f32.mrb[13].mxu1  ;;  %v1644_v63 = vmul.f32 0.35355338, %v1333_v61 }
 0x1de   : > { %v1409_v0 = vpop.f32.mrb[18].mxu0 }
 0x1df   : > { %v1658_v1 = vsel %vm1032_vm2, %v1644_v63, -inf  ;;  %v17583_v2 = vpop.f32.mrb[19].mxu0  ;;  %v1645_v8 = vmul.f32 0.35355338, %v1409_v0 }
 0x1e0   : > { %1659 = vmax.xlane.f32.xlu1 %v1658_v1  ;;  %v1485_v4 = vpop.f32.mrb[14].mxu1 }
 0x1e1   : > { %v17588_v5 = vpop.f32.mrb[15].mxu1  ;;  %v1646_v6 = vmul.f32 0.35355338, %v1485_v4  ;;  %v1661_v20 = vsel %vm1032_vm2, %v1645_v8, -inf }
 0x1e2   : > { %v1561_v7 = vpop.f32.mrb[20].mxu0 }
 0x1e3   : > { %v1664_v10 = vsel %vm1032_vm2, %v1646_v6, -inf  ;;  %v17593_v11 = vpop.f32.mrb[21].mxu0  ;;  %v1647_v16 = vmul.f32 0.35355338, %v1561_v7 }
 0x1e4   : > { %1656 = vmax.xlane.f32.xlu1 %v1655_v9  ;;  %v1637_v12 = vpop.f32.mrb[16].mxu1  ;;  %1665 = vmax.xlane.f32.xlu0 %v1664_v10 }
 0x1e5   : > { %v17598_v13 = vpop.f32.mrb[17].mxu1  ;;  %v1648_v14 = vmul.f32 0.35355338, %v1637_v12  ;;  %v1667_v27 = vsel %vm1032_vm2, %v1647_v16, -inf }
 0x1e7   : > { %v1670_v17 = vsel %vm1032_vm2, %v1648_v14, -inf }
 0x1e8   : > { %1671 = vmax.xlane.f32.xlu0 %v1670_v17  ;;  %1662 = vmax.xlane.f32.xlu1 %v1661_v20 }
 0x1ec   : > { %1668 = vmax.xlane.f32.xlu1 %v1667_v27 }
 0x264   : > { %v1654_v28 = vpop.xlane.xlu0 %1653 }
 0x265   : > { %v1674_v29 = vsub.f32 %v1642_v54, %v1654_v28 }
 0x267   : > { %v1683_v30 = vmul.f32 1.442695, %v1674_v29 }
 0x268   : > { %v1651_v31 = vpop.xlane.xlu0 %1650 }
 0x269   : > { %19535 = vpow2.f32 %v1683_v30  ;;  %v1673_v32 = vsub.f32 %v1641_v56, %v1651_v31 }
 0x26b   : > { %v1681_v33 = vmul.f32 1.442695, %v1673_v32 }
 0x26d   : > { %19537 = vpow2.f32 %v1681_v33  ;;  %v1660_v34 = vpop.xlane.xlu1 %1659  ;;  %v16135_v33 = vld [vmem:[%s22807_s21 + $0x28] sm:$0xff] }
 0x26e   : > { %v1676_v35 = vsub.f32 %v1644_v63, %v1660_v34 }
 0x270   : > { %v1687_v36 = vmul.f32 1.442695, %v1676_v35 }
 0x271   : > { %v1657_v37 = vpop.xlane.xlu1 %1656  ;;  %v1666_v38 = vpop.xlane.xlu0 %1665 }
 0x272   : > { %19539 = vpow2.f32 %v1687_v36  ;;  %v1675_v39 = vsub.f32 %v1643_v3, %v1657_v37  ;;  %v1678_v40 = vsub.f32 %v1646_v6, %v1666_v38  ;;  %v16123_v38 = vld [vmem:[%s22809_s3 + $0x28] sm:$0xff] }
 0x273   : > { %v19536_v41 = vpop.eup %19535 }
 0x274   : > { %v1685_v42 = vmul.f32 1.442695, %v1675_v39  ;;  %v1691_v43 = vmul.f32 1.442695, %v1678_v40  ;;  %v1700_v44 = vsel %vm1032_vm2, %v19536_v41, 0.0  ;;  %v16136_v39 = vld [vmem:[%s22807_s21 + $0x30] sm:$0xff] }
 0x275   : > { %1701 = vadd.xlane.f32.xlu0 %v1700_v44  ;;  %v1672_v51 = vpop.xlane.xlu0 %1671  ;;  %v1663_v52 = vpop.xlane.xlu1 %1662  ;;  %v16137_v40 = vld [vmem:[%s22807_s21 + $0x38] sm:$0xff] }
 0x276   : > { %19541 = vpow2.f32 %v1685_v42  ;;  %v1680_v53 = vsub.f32 %v1648_v14, %v1672_v51  ;;  %v1677_v54 = vsub.f32 %v1645_v8, %v1663_v52  ;;  %v19039_v51 = vpack.c.bf16 %v16137_v40, %v16136_v39  ;;  %v16125_v52 = vld [vmem:[%s22809_s3 + $0x38] sm:$0xff] }
 0x277   : > { %v19538_v55 = vpop.eup %19537  ;;  %19543 = vpow2.f32 %v1691_v43 }
 0x278   : > { %v1695_v56 = vmul.f32 1.442695, %v1680_v53  ;;  %v1689_v57 = vmul.f32 1.442695, %v1677_v54  ;;  %v1697_v58 = vsel %vm1032_vm2, %v19538_v55, 0.0 }
 0x279   : > { %1698 = vadd.xlane.f32.xlu1 %v1697_v58  ;;  %v1669_v59 = vpop.xlane.xlu1 %1668  ;;  %v16148_v58 = vld [vmem:[%s22810_s4 + $0x30] sm:$0xff] }
 0x27a   : > { %19545 = vpow2.f32 %v1695_v56  ;;  %v1679_v60 = vsub.f32 %v1647_v16, %v1669_v59  ;;  %v16147_v56 = vld [vmem:[%s22810_s4 + $0x28] sm:$0xff]  ;;  %v16149_v59 = vld [vmem:[%s22810_s4 + $0x38] sm:$0xff] }
 0x27b   : > { %19547 = vpow2.f32 %v1689_v57 }
 0x27c   : > { %v19540_v61 = vpop.eup %19539  ;;  %v1693_v62 = vmul.f32 1.442695, %v1679_v60 }
 0x27d   : > { %v1706_v63 = vsel %vm1032_vm2, %v19540_v61, 0.0 }
 0x27e   : > { %19549 = vpow2.f32 %v1693_v62  ;;  %1707 = vadd.xlane.f32.xlu0 %v1706_v63 }
 0x280   : > { %v19542_v0 = vpop.eup %19541 }
 0x281   : > { %v19544_v1 = vpop.eup %19543  ;;  %v1703_v2 = vsel %vm1032_vm2, %v19542_v0, 0.0 }
 0x282   : > { %v1712_v3 = vsel %vm1032_vm2, %v19544_v1, 0.0  ;;  %1704 = vadd.xlane.f32.xlu1 %v1703_v2 }
 0x283   : > { %1713 = vadd.xlane.f32.xlu0 %v1712_v3 }
 0x284   : > { %v20284_v4 = vpop.eup %19545 }
 0x285   : > { %v20286_v5 = vpop.eup %19547  ;;  %v1718_v6 = vsel %vm1032_vm2, %v20284_v4, 0.0 }
 0x286   : > { %v1709_v7 = vsel %vm1032_vm2, %v20286_v5, 0.0 }
 0x287   : > { %1719 = vadd.xlane.f32.xlu0 %v1718_v6  ;;  %1710 = vadd.xlane.f32.xlu1 %v1709_v7 }
 0x288   : > { %v20292_v8 = vpop.eup %19549 }
 0x289   : > { %v1715_v9 = vsel %vm1032_vm2, %v20292_v8, 0.0 }
 0x28b   : > { %1716 = vadd.xlane.f32.xlu1 %v1715_v9 }
 0x302   : > { %v1702_v10 = vpop.xlane.xlu0 %1701 }
 0x303   : > { %19551 = vrcp.f32 %v1702_v10 }
 0x306   : > { %v1699_v11 = vpop.xlane.xlu1 %1698 }
 0x307   : > { %19553 = vrcp.f32 %v1699_v11 }
 0x30b   : > { %v1708_v12 = vpop.xlane.xlu0 %1707 }
 0x30c   : > { %19555 = vrcp.f32 %v1708_v12 }
 0x30d   : > { %v19552_v13 = vpop.eup %19551 }
 0x30e   : > { %v1730_v14 = vmul.f32 %v19552_v13, %v19536_v41 }
 0x30f   : > { %v1705_v16 = vpop.xlane.xlu1 %1704 }
 0x310   : > { %v1714_v17 = vpop.xlane.xlu0 %1713  ;;  %19557 = vrcp.f32 %v1705_v16  ;;  %17607 = vmatmul.mubr.msk.f32.vlgmr.msra.gmra.mrb[18].mxu1 %vm1032_vm2, %v1730_v14 }
 0x311   : > { %v19554_v20 = vpop.eup %19553  ;;  %19559 = vrcp.f32 %v1714_v17  ;;  %17615 = vmatpush3.msra.mxu1 %v20255_v45  ;;  %17616 = vmatprep.mubr.msk.f32.mxu1 %vm19936_vm1, %v19935_v26 }
 0x312   : > { %v1729_v27 = vmul.f32 %v19554_v20, %v19538_v55  ;;  %17624 = vmatprep.subr.mxu1 %v19935_v26 }
 0x314   : > { %v1720_v28 = vpop.xlane.xlu0 %1719  ;;  %v1711_v29 = vpop.xlane.xlu1 %1710  ;;  %17602 = vmatmul.mubr.msk.f32.vlgmr.msra.gmra.mrb[22].mxu0 %vm1032_vm2, %v1729_v27 }
 0x315   : > { %19561 = vrcp.f32 %v1720_v28  ;;  %17610 = vmatpush3.msra.mxu0 %v20258_v46  ;;  %17611 = vmatprep.mubr.msk.f32.mxu0 %vm19936_vm1, %v19935_v26  ;;  %v16134_v46 = vld [vmem:[%s22807_s21 + $0x20] sm:$0xff] }
 0x316   : > { %v19556_v30 = vpop.eup %19555  ;;  %19563 = vrcp.f32 %v1711_v29  ;;  %17619 = vmatprep.subr.mxu0 %v19935_v26  ;;  %v19035_v37 = vpack.c.bf16 %v16135_v33, %v16134_v46 }
 0x317   : > { %v1732_v45 = vmul.f32 %v19556_v30, %v19540_v61 }
 0x318   : > { %v1717_v31 = vpop.xlane.xlu1 %1716 }
 0x319   : > { %19565 = vrcp.f32 %v1717_v31  ;;  %17617 = vmatmul.mubr.msk.f32.vlgmr.msra.gmra.mrb[20].mxu1 %vm1032_vm2, %v1732_v45 }
 0x31a   : > { %v19558_v32 = vpop.eup %19557  ;;  %17625 = vmatpush3.msra.mxu1 %v20263_v47  ;;  %17626 = vmatprep.mubr.msk.f32.mxu1 %vm19936_vm1, %v19935_v26  ;;  %v16122_v47 = vld [vmem:[%s22809_s3 + $0x20] sm:$0xff] }
 0x31b   : > { %v19560_v34 = vpop.eup %19559  ;;  %17634 = vmatprep.subr.mxu1 %v19935_v26  ;;  %v1731_v35 = vmul.f32 %v19558_v32, %v19542_v0  ;;  %v19027_v44 = vpack.c.bf16 %v16123_v38, %v16122_v47 }
 0x31c   : > { %v1734_v36 = vmul.f32 %v19560_v34, %v19544_v1 }
 0x31d   : > { %17612 = vmatmul.mubr.msk.f32.vlgmr.msra.gmra.mrb[24].mxu0 %vm1032_vm2, %v1731_v35 }
 0x31e   : > { %17620 = vmatpush3.msra.mxu0 %v20265_v48  ;;  %17627 = vmatmul.mubr.msk.f32.vlgmr.msra.gmra.mrb[22].mxu1 %vm1032_vm2, %v1734_v36 }
 0x31f   : > { %v19562_v41 = vpop.eup %19561  ;;  %17635 = vmatpush3.msra.mxu1 %v20267_v49  ;;  %17621 = vmatprep.mubr.msk.f32.mxu0 %vm19936_vm1, %v19935_v26  ;;  %v16124_v49 = vld [vmem:[%s22809_s3 + $0x30] sm:$0xff] }
 0x320   : > { %v19564_v48 = vpop.eup %19563  ;;  %17629 = vmatprep.subr.mxu0 %v19935_v26  ;;  %17636 = vmatprep.mubr.msk.f32.mxu1 %vm19936_vm1, %v19935_v26  ;;  %v1736_v42 = vmul.f32 %v19562_v41, %v20284_v4  ;;  %v19031_v55 = vpack.c.bf16 %v16125_v52, %v16124_v49 }
 0x321   : > { %19036 = vmatprep.subr.bf16.mxu1 %v19035_v37  ;;  %v1733_v43 = vmul.f32 %v19564_v48, %v20286_v5 }
 0x322   : > { %17637 = vmatmul.mubr.msk.f32.vlgmr.msra.gmra.mrb[24].mxu1 %vm1032_vm2, %v1736_v42 }
 0x323   : > { %v19566_v53 = vpop.eup %19565  ;;  %17622 = vmatmul.mubr.msk.f32.vlgmr.msra.gmra.mrb[26].mxu0 %vm1032_vm2, %v1733_v43  ;;  %19038 = vmatpush3.bf16.msra.mxu1 %v19035_v37 }
 0x324   : > { %17630 = vmatpush3.msra.mxu0 %v20269_v50  ;;  %17631 = vmatprep.mubr.msk.f32.mxu0 %vm19936_vm1, %v19935_v26  ;;  %v1735_v54 = vmul.f32 %v19566_v53, %v20292_v8  ;;  %v16146_v50 = vld [vmem:[%s22810_s4 + $0x20] sm:$0xff] }
 0x325   : > { %19028 = vmatprep.subr.bf16.mxu0 %v19027_v44  ;;  %19040 = vmatprep.subr.bf16.mxu1 %v19039_v51  ;;  %v19043_v57 = vpack.c.bf16 %v16147_v56, %v16146_v50 }
 0x326   : > { %17667 = vmatprep.mubr.msk.f32.mxu1 %vm684_vm0, %v20134_v15 }
 0x327   : > { %17632 = vmatmul.mubr.msk.f32.vlgmr.msra.gmra.mrb[28].mxu0 %vm1032_vm2, %v1735_v54  ;;  %19042 = vmatpush3.bf16.msra.mxu1 %v19039_v51 }
 0x328   : > { %19030 = vmatpush3.bf16.msra.mxu0 %v19027_v44  ;;  %17647 = vmatprep.mubr.msk.f32.mxu0 %vm684_vm0, %v20134_v15 }
 0x329   : > { %19032 = vmatprep.subr.bf16.mxu0 %v19031_v55  ;;  %17699 = vmatprep.subr.mxu1 %v19935_v26 }
 0x32a   : > { %17668 = vmatmul.mubr.msk.f32.vlgmr.msra.gmra.mrb[26].mxu1 %vm684_vm0, %v20145_v18 }
 0x32b   : > { %17670 = vmatprep.mubr.msk.f32.mxu1 %vm684_vm0, %v20150_v19 }
 0x32c   : > { %19034 = vmatpush3.bf16.msra.mxu0 %v19031_v55 }
 0x32d   : > { %19044 = vmatprep.subr.bf16.mxu0 %v19043_v57 }
 0x32e   : > { %17671 = vmatmul.mubr.msk.f32.gmra.mrb[28].mxu1 %vm684_vm0, %v20159_v21 }
 0x32f   : > { %17648 = vmatmul.mubr.msk.f32.vlgmr.msra.gmra.mrb[30].mxu0 %vm684_vm0, %v20145_v18  ;;  %17673 = vmatprep.mubr.msk.f32.mxu1 %vm684_vm0, %v20164_v22 }
 0x330   : > { %17650 = vmatprep.mubr.msk.f32.mxu0 %vm684_vm0, %v20150_v19  ;;  %19046 = vmatpush3.bf16.msra.mxu0 %v19043_v57 }
 0x332   : > { %17674 = vmatmul.mubr.msk.f32.gmra.mrb[30].mxu1 %vm684_vm0, %v20173_v23 }
 0x333   : > { %17651 = vmatmul.mubr.msk.f32.gmra.mrb[32].mxu0 %vm684_vm0, %v20159_v21  ;;  %17676 = vmatprep.mubr.msk.f32.mxu1 %vm684_vm0, %v20178_v24 }
 0x334   : > { %17653 = vmatprep.mubr.msk.f32.mxu0 %vm684_vm0, %v20164_v22 }
 0x336   : > { %17677 = vmatmul.mubr.msk.f32.gmra.mrb[32].mxu1 %vm684_vm0, %v20187_v25 }
 0x337   : > { %17654 = vmatmul.mubr.msk.f32.gmra.mrb[34].mxu0 %vm684_vm0, %v20173_v23  ;;  %17701 = vmatprep.mubr.msk.f32.mxu1 %vm19936_vm1, %v19935_v26 }
 0x338   : > { %17656 = vmatprep.mubr.msk.f32.mxu0 %vm684_vm0, %v20178_v24 }
 0x33b   : > { %17657 = vmatmul.mubr.msk.f32.gmra.mrb[36].mxu0 %vm684_vm0, %v20187_v25 }
 0x33c   : > { %17687 = vmatprep.mubr.msk.f32.mxu0 %vm684_vm0, %v20134_v15  ;;  %v19047_v15 = vpack.c.bf16 %v16149_v59, %v16148_v58 }
 0x33e   : > { %19048 = vmatprep.subr.bf16.mxu0 %v19047_v15 }
 0x33f   : > { %19050 = vmatpush3.bf16.msra.mxu0 %v19047_v15 }
 0x340   : > { %17719 = vmatprep.subr.mxu0 %v19935_v26 }
 0x342   : > { %17688 = vmatmul.mubr.msk.f32.vlgmr.msra.gmra.mrb[38].mxu0 %vm684_vm0, %v20145_v18 }
 0x343   : > { %17690 = vmatprep.mubr.msk.f32.mxu0 %vm684_vm0, %v20150_v19 }
 0x346   : > { %17691 = vmatmul.mubr.msk.f32.gmra.mrb[40].mxu0 %vm684_vm0, %v20159_v21 }
 0x347   : > { %17693 = vmatprep.mubr.msk.f32.mxu0 %vm684_vm0, %v20164_v22 }
 0x34a   : > { %17694 = vmatmul.mubr.msk.f32.gmra.mrb[42].mxu0 %vm684_vm0, %v20173_v23 }
 0x34b   : > { %17696 = vmatprep.mubr.msk.f32.mxu0 %vm684_vm0, %v20178_v24 }
 0x34e   : > { %17697 = vmatmul.mubr.msk.f32.gmra.mrb[44].mxu0 %vm684_vm0, %v20187_v25 }
 0x34f   : > { %17721 = vmatprep.mubr.msk.f32.mxu0 %vm19936_vm1, %v19935_v26 }
 0x3e3   : > { %v20419_v18 = vpop.f32.mrb[18].mxu1 }
 0x3e4   : > { %v17608_v19 = vpop.f32.mrb[19].mxu1 }
 0x3e7   : > { %v20421_v60 = vpop.f32.mrb[22].mxu0 }
 0x3e8   : > { %v17603_v21 = vpop.f32.mrb[23].mxu0 }
 0x3ec   : > { %v20423_v61 = vpop.f32.mrb[20].mxu1 }
 0x3ed   : > { %v17618_v22 = vpop.f32.mrb[21].mxu1 }
 0x3f0   : > { %v20425_v62 = vpop.f32.mrb[24].mxu0 }
 0x3f1   : > { %v20427_v23 = vpop.f32.mrb[22].mxu1  ;;  %v17613_v24 = vpop.f32.mrb[25].mxu0 }
 0x3f2   : > { %v17628_v63 = vpop.f32.mrb[23].mxu1 }
 0x3f5   : > { %v20429_v0 = vpop.f32.mrb[24].mxu1 }
 0x3f6   : > { %v20431_v25 = vpop.f32.mrb[26].mxu0  ;;  %v17638_v1 = vpop.f32.mrb[25].mxu1 }
 0x3f7   : > { %v17623_v2 = vpop.f32.mrb[27].mxu0 }
 0x3fa   : > { %v20433_v3 = vpop.f32.mrb[28].mxu0 }
 0x3fb   : > { %v17633_v4 = vpop.f32.mrb[29].mxu0 }
 0x3fd   : > { %v17669_v5 = vpop.f32.mrb[26].mxu1 }
 0x3fe   : > { %v2503_v6 = vpop.f32.mrb[27].mxu1 }
 0x3ff   : > { %17700 = vmatpush3.xpose.msk.msra.mxu1 %vm1032_vm2, %v2503_v6 }
 0x400   : > { %17704 = vmatprep.subr.mxu1 %v19935_v26 }
 0x401   : > { %v17672_v7 = vpop.f32.mrb[28].mxu1 }
 0x402   : > { %v17649_v8 = vpop.f32.mrb[30].mxu0  ;;  %v2513_v9 = vpop.f32.mrb[29].mxu1 }
 0x403   : > { %v2393_v10 = vpop.f32.mrb[31].mxu0 }
 0x404   : > { %17702 = vmatmul.mubr.msk.f32.vlgmr.msra.gmra.mrb[34].mxu1 %vm1032_vm2, %v2393_v10 }
 0x405   : > { %17705 = vmatpush3.xpose.msk.msra.mxu1 %vm1032_vm2, %v17669_v5  ;;  %17706 = vmatprep.mubr.msk.f32.mxu1 %vm19936_vm1, %v19935_v26  ;;  %v17675_v11 = vpop.f32.mrb[30].mxu1 }
 0x406   : > { %17709 = vmatprep.subr.mxu1 %v19935_v26  ;;  %v17652_v12 = vpop.f32.mrb[32].mxu0  ;;  %v2523_v13 = vpop.f32.mrb[31].mxu1 }
 0x407   : > { %v2403_v14 = vpop.f32.mrb[33].mxu0  ;;  %17720 = vmatpush3.xpose.msk.msra.mxu0 %vm1032_vm2, %v2523_v13 }
 0x408   : > { %17707 = vmatmul.mubr.msk.f32.vlgmr.msra.gmra.mrb[36].mxu1 %vm1032_vm2, %v17649_v8  ;;  %17729 = vmatprep.subr.mxu0 %v19935_v26 }
 0x409   : > { %17710 = vmatpush3.xpose.msk.msra.mxu1 %vm1032_vm2, %v2513_v9  ;;  %17711 = vmatprep.mubr.msk.f32.mxu1 %vm19936_vm1, %v19935_v26  ;;  %v17678_v16 = vpop.f32.mrb[32].mxu1 }
 0x40a   : > { %17714 = vmatprep.subr.mxu1 %v19935_v26  ;;  %v17655_v17 = vpop.f32.mrb[34].mxu0  ;;  %v2533_v20 = vpop.f32.mrb[33].mxu1 }
 0x40b   : > { %v2413_v27 = vpop.f32.mrb[35].mxu0 }
 0x40c   : > { %17712 = vmatmul.mubr.msk.f32.vlgmr.msra.gmra.mrb[38].mxu1 %vm1032_vm2, %v2403_v14  ;;  %17722 = vmatmul.mubr.msk.f32.vlgmr.msra.gmra.mrb[46].mxu0 %vm1032_vm2, %v2413_v27 }
 0x40d   : > { %17715 = vmatpush3.xpose.msk.msra.mxu1 %vm1032_vm2, %v17672_v7  ;;  %17716 = vmatprep.mubr.msk.f32.mxu1 %vm19936_vm1, %v19935_v26 }
 0x40e   : > { %17724 = vmatprep.subr.mxu1 %v19935_v26  ;;  %17730 = vmatpush3.xpose.msk.msra.mxu0 %vm1032_vm2, %v2533_v20  ;;  %v17658_v28 = vpop.f32.mrb[36].mxu0 }
 0x40f   : > { %v2423_v29 = vpop.f32.mrb[37].mxu0  ;;  %17731 = vmatprep.mubr.msk.f32.mxu0 %vm19936_vm1, %v19935_v26  ;;  %17739 = vmatprep.subr.mxu0 %v19935_v26 }
 0x410   : > { %17717 = vmatmul.mubr.msk.f32.vlgmr.msra.gmra.mrb[40].mxu1 %vm1032_vm2, %v17652_v12 }
 0x411   : > { %17725 = vmatpush3.xpose.msk.msra.mxu1 %vm1032_vm2, %v17675_v11  ;;  %17726 = vmatprep.mubr.msk.f32.mxu1 %vm19936_vm1, %v19935_v26 }
 0x412   : > { %17734 = vmatprep.subr.mxu1 %v19935_v26  ;;  %17732 = vmatmul.mubr.msk.f32.vlgmr.msra.gmra.mrb[48].mxu0 %vm1032_vm2, %v2423_v29 }
 0x413   : > { %17741 = vmatprep.mubr.msk.f32.mxu0 %vm19936_vm1, %v19935_v26 }
 0x414   : > { %17727 = vmatmul.mubr.msk.f32.vlgmr.msra.gmra.mrb[42].mxu1 %vm1032_vm2, %v17655_v17 }
 0x415   : > { %17735 = vmatpush3.xpose.msk.msra.mxu1 %vm1032_vm2, %v17678_v16  ;;  %17736 = vmatprep.mubr.msk.f32.mxu1 %vm19936_vm1, %v19935_v26  ;;  %v17689_v30 = vpop.f32.mrb[38].mxu0 }
 0x416   : > { %17744 = vmatprep.subr.mxu1 %v19935_v26  ;;  %v2613_v45 = vpop.f32.mrb[39].mxu0 }
 0x417   : > { %17740 = vmatpush3.msra.mxu0 %v2613_v45 }
 0x418   : > { %17737 = vmatmul.mubr.msk.f32.vlgmr.msra.gmra.mrb[44].mxu1 %vm1032_vm2, %v17658_v28  ;;  %17749 = vmatprep.subr.mxu0 %v19935_v26 }
 0x419   : > { %17746 = vmatprep.mubr.msk.f32.mxu1 %vm19936_vm1, %v19935_v26  ;;  %17745 = vmatpush3.msra.mxu1 %v17689_v30  ;;  %v20477_v31 = vpop.f32.mrb[40].mxu0 }
 0x41a   : > { %17754 = vmatprep.subr.mxu1 %v19935_v26  ;;  %v20479_v32 = vpop.f32.mrb[41].mxu0 }
 0x41d   : > { %v20481_v46 = vpop.f32.mrb[42].mxu0 }
 0x41e   : > { %v20483_v33 = vpop.f32.mrb[43].mxu0 }
 0x421   : > { %v20485_v34 = vpop.f32.mrb[44].mxu0 }
 0x422   : > { %v20487_v35 = vpop.f32.mrb[45].mxu0 }
 0x4d7   : > { %v2724_v36 = vpop.f32.mrb[34].mxu1 }
 0x4d8   : > { %v3260_v37 = vmul.f32 0.35355338, %v2724_v36  ;;  %v17703_v47 = vpop.f32.mrb[35].mxu1 }
 0x4da   : > { %v3268_v38 = vsel %vm1032_vm2, %v3260_v37, -inf }
 0x4db   : > { %3269 = vmax.xlane.f32.xlu0 %v3268_v38  ;;  %v2800_v39 = vpop.f32.mrb[36].mxu1 }
 0x4dc   : > { %v3261_v40 = vmul.f32 0.35355338, %v2800_v39  ;;  %v17708_v41 = vpop.f32.mrb[37].mxu1 }
 0x4de   : > { %v3271_v48 = vsel %vm1032_vm2, %v3261_v40, -inf }
 0x4df   : > { %3272 = vmax.xlane.f32.xlu1 %v3271_v48  ;;  %v2876_v42 = vpop.f32.mrb[38].mxu1  ;;  %v3028_v43 = vpop.f32.mrb[46].mxu0 }
 0x4e0   : > { %v3262_v44 = vmul.f32 0.35355338, %v2876_v42  ;;  %v17713_v51 = vpop.f32.mrb[39].mxu1  ;;  %v3264_v49 = vmul.f32 0.35355338, %v3028_v43  ;;  %v17723_v52 = vpop.f32.mrb[47].mxu0 }
 0x4e2   : > { %v3274_v53 = vsel %vm1032_vm2, %v3262_v44, -inf  ;;  %v3280_v56 = vsel %vm1032_vm2, %v3264_v49, -inf }
 0x4e3   : > { %3275 = vmax.xlane.f32.xlu0 %v3274_v53  ;;  %v2952_v54 = vpop.f32.mrb[40].mxu1 }
 0x4e4   : > { %v3263_v55 = vmul.f32 0.35355338, %v2952_v54  ;;  %v17718_v50 = vpop.f32.mrb[41].mxu1 }
 0x4e5   : > { %v3180_v57 = vpop.f32.mrb[48].mxu0 }
 0x4e6   : > { %v3277_v58 = vsel %vm1032_vm2, %v3263_v55, -inf  ;;  %v3266_v59 = vmul.f32 0.35355338, %v3180_v57  ;;  %v17733_v15 = vpop.f32.mrb[49].mxu0 }
 0x4e7   : > { %3278 = vmax.xlane.f32.xlu1 %v3277_v58  ;;  %v3104_v19 = vpop.f32.mrb[42].mxu1  ;;  %3281 = vmax.xlane.f32.xlu0 %v3280_v56 }
 0x4e8   : > { %v3265_v21 = vmul.f32 0.35355338, %v3104_v19  ;;  %v17728_v22 = vpop.f32.mrb[43].mxu1  ;;  %v3286_v24 = vsel %vm1032_vm2, %v3266_v59, -inf }
 0x4ea   : > { %v3283_v63 = vsel %vm1032_vm2, %v3265_v21, -inf }
 0x4eb   : > { %3284 = vmax.xlane.f32.xlu1 %v3283_v63  ;;  %v3256_v1 = vpop.f32.mrb[44].mxu1  ;;  %3287 = vmax.xlane.f32.xlu0 %v3286_v24 }
 0x4ec   : > { %v3267_v2 = vmul.f32 0.35355338, %v3256_v1  ;;  %v17738_v4 = vpop.f32.mrb[45].mxu1 }
 0x4ee   : > { %v3289_v5 = vsel %vm1032_vm2, %v3267_v2, -inf }
 0x4ef   : > { %3290 = vmax.xlane.f32.xlu1 %v3289_v5 }
 0x568   : > { %v3270_v6 = vpop.xlane.xlu0 %3269 }
 0x569   : > { %v3292_v7 = vsub.f32 %v3260_v37, %v3270_v6 }
 0x56b   : > { %v3300_v8 = vmul.f32 1.442695, %v3292_v7 }
 0x56c   : > { %v3273_v9 = vpop.xlane.xlu1 %3272 }
 0x56d   : > { %19567 = vpow2.f32 %v3300_v8  ;;  %v3293_v10 = vsub.f32 %v3261_v40, %v3273_v9 }
 0x56f   : > { %v3302_v11 = vmul.f32 1.442695, %v3293_v10 }
 0x570   : > { %v3276_v12 = vpop.xlane.xlu0 %3275 }
 0x571   : > { %19569 = vpow2.f32 %v3302_v11  ;;  %v3294_v13 = vsub.f32 %v3262_v44, %v3276_v12 }
 0x573   : > { %v3304_v14 = vmul.f32 1.442695, %v3294_v13  ;;  %v16199_v13 = vld [vmem:[%s22809_s3 + $0x40] sm:$0xff] }
 0x574   : > { %v3279_v16 = vpop.xlane.xlu1 %3278  ;;  %v3282_v17 = vpop.xlane.xlu0 %3281 }
 0x575   : > { %19571 = vpow2.f32 %v3304_v14  ;;  %v3295_v20 = vsub.f32 %v3263_v55, %v3279_v16  ;;  %v3296_v27 = vsub.f32 %v3264_v49, %v3282_v17  ;;  %v16200_v14 = vld [vmem:[%s22809_s3 + $0x48] sm:$0xff] }
 0x577   : > { %v19568_v28 = vpop.eup %19567  ;;  %v3306_v29 = vmul.f32 1.442695, %v3295_v20  ;;  %v3308_v30 = vmul.f32 1.442695, %v3296_v27  ;;  %v19051_v20 = vpack.c.bf16 %v16200_v14, %v16199_v13 }
 0x578   : > { %v3285_v45 = vpop.xlane.xlu1 %3284  ;;  %v3288_v36 = vpop.xlane.xlu0 %3287  ;;  %v3316_v37 = vsel %vm1032_vm2, %v19568_v28, 0.0 }
 0x579   : > { %19573 = vpow2.f32 %v3306_v29  ;;  %v3297_v47 = vsub.f32 %v3265_v21, %v3285_v45  ;;  %v3298_v38 = vsub.f32 %v3266_v59, %v3288_v36  ;;  %3317 = vadd.xlane.f32.xlu0 %v3316_v37  ;;  %v16211_v45 = vld [vmem:[%s22807_s21 + $0x40] sm:$0xff]  ;;  %v16212_v36 = vld [vmem:[%s22807_s21 + $0x48] sm:$0xff] }
 0x57a   : > { %19575 = vpow2.f32 %v3308_v30  ;;  %v19059_v37 = vpack.c.bf16 %v16212_v36, %v16211_v45 }
 0x57b   : > { %v19570_v39 = vpop.eup %19569  ;;  %v3310_v40 = vmul.f32 1.442695, %v3297_v47  ;;  %v3312_v41 = vmul.f32 1.442695, %v3298_v38  ;;  %v16213_v47 = vld [vmem:[%s22807_s21 + $0x50] sm:$0xff]  ;;  %v16214_v38 = vld [vmem:[%s22807_s21 + $0x58] sm:$0xff] }
 0x57c   : > { %v3291_v48 = vpop.xlane.xlu1 %3290  ;;  %v3319_v42 = vsel %vm1032_vm2, %v19570_v39, 0.0 }
 0x57d   : > { %19577 = vpow2.f32 %v3310_v40  ;;  %v3299_v43 = vsub.f32 %v3267_v2, %v3291_v48  ;;  %3320 = vadd.xlane.f32.xlu1 %v3319_v42  ;;  %v20569_v40 = vld [vmem:[%s20131_s23 + $0x8] sm:$0xff]  ;;  %v20579_v48 = vld [vmem:[%s20131_s23 + $0x18] sm:$0xff]  ;;  %v20584_v42 = vld [vmem:[%s20131_s23 + $0x20] sm:$0xff] }
 0x57e   : > { %19579 = vpow2.f32 %v3312_v41  ;;  %v20574_v41 = vld [vmem:[%s20131_s23 + $0x10] sm:$0xff] }
 0x57f   : > { %v19572_v44 = vpop.eup %19571  ;;  %v3314_v51 = vmul.f32 1.442695, %v3299_v43  ;;  %v20590_v43 = vld [vmem:[%s20131_s23 + $0x28] sm:$0xff] }
 0x580   : > { %v3322_v49 = vsel %vm1032_vm2, %v19572_v44, 0.0 }
 0x581   : > { %19581 = vpow2.f32 %v3314_v51  ;;  %3323 = vadd.xlane.f32.xlu0 %v3322_v49  ;;  %v20600_v51 = vld [vmem:[%s20131_s23 + $0x38] sm:$0xff]  ;;  %v16182_v49 = vld [vmem:[%s22760_s5 + $0x8] sm:$0xff] }
 0x583   : > { %v19574_v52 = vpop.eup %19573 }
 0x584   : > { %v19576_v53 = vpop.eup %19575  ;;  %v3325_v54 = vsel %vm1032_vm2, %v19574_v52, 0.0 }
 0x585   : > { %3326 = vadd.xlane.f32.xlu1 %v3325_v54  ;;  %v3328_v55 = vsel %vm1032_vm2, %v19576_v53, 0.0  ;;  %v16223_v54 = vld [vmem:[%s22810_s4 + $0x40] sm:$0xff] }
 0x586   : > { %3329 = vadd.xlane.f32.xlu0 %v3328_v55  ;;  %v16224_v55 = vld [vmem:[%s22810_s4 + $0x48] sm:$0xff] }
 0x587   : > { %v19578_v50 = vpop.eup %19577 }
 0x588   : > { %v19580_v56 = vpop.eup %19579  ;;  %v3331_v57 = vsel %vm1032_vm2, %v19578_v50, 0.0 }
 0x589   : > { %3332 = vadd.xlane.f32.xlu1 %v3331_v57  ;;  %v3334_v58 = vsel %vm1032_vm2, %v19580_v56, 0.0 }
 0x58a   : > { %3335 = vadd.xlane.f32.xlu0 %v3334_v58 }
 0x58b   : > { %v20504_v59 = vpop.eup %19581 }
 0x58c   : > { %v3337_v15 = vsel %vm1032_vm2, %v20504_v59, 0.0 }
 0x58d   : > { %3338 = vadd.xlane.f32.xlu1 %v3337_v15 }
 0x606   : > { %v3318_v19 = vpop.xlane.xlu0 %3317 }
 0x607   : > { %19583 = vrcp.f32 %v3318_v19 }
 0x60a   : > { %v3321_v21 = vpop.xlane.xlu1 %3320 }
 0x60b   : > { %19585 = vrcp.f32 %v3321_v21 }
 0x60e   : > { %v3324_v22 = vpop.xlane.xlu0 %3323 }
 0x60f   : > { %19587 = vrcp.f32 %v3324_v22 }
 0x611   : > { %v19584_v24 = vpop.eup %19583 }
 0x612   : > { %v3327_v63 = vpop.xlane.xlu1 %3326  ;;  %v3348_v1 = vmul.f32 %v19584_v24, %v19568_v28  ;;  %v16201_v28 = vld [vmem:[%s22809_s3 + $0x50] sm:$0xff] }
 0x613   : > { %19589 = vrcp.f32 %v3327_v63  ;;  %v3330_v2 = vpop.xlane.xlu0 %3329 }
 0x614   : > { %19591 = vrcp.f32 %v3330_v2  ;;  %17742 = vmatmul.mubr.msk.f32.vlgmr.msra.gmra.mrb[50].mxu0 %vm1032_vm2, %v3348_v1 }
 0x615   : > { %v19586_v4 = vpop.eup %19585  ;;  %17750 = vmatpush3.msra.mxu0 %v20479_v32  ;;  %17751 = vmatprep.mubr.msk.f32.mxu0 %vm19936_vm1, %v19935_v26 }
 0x616   : > { %v3333_v5 = vpop.xlane.xlu1 %3332  ;;  %v3349_v6 = vmul.f32 %v19586_v4, %v19570_v39  ;;  %17759 = vmatprep.subr.mxu0 %v19935_v26  ;;  %v19063_v39 = vpack.c.bf16 %v16214_v38, %v16213_v47 }
 0x617   : > { %19593 = vrcp.f32 %v3333_v5  ;;  %v3336_v7 = vpop.xlane.xlu0 %3335 }
 0x618   : > { %19595 = vrcp.f32 %v3336_v7  ;;  %17747 = vmatmul.mubr.msk.f32.vlgmr.msra.gmra.mrb[46].mxu1 %vm1032_vm2, %v3349_v6  ;;  %v16225_v6 = vld [vmem:[%s22810_s4 + $0x50] sm:$0xff]  ;;  %v16226_v7 = vld [vmem:[%s22810_s4 + $0x58] sm:$0xff] }
 0x619   : > { %v19588_v8 = vpop.eup %19587  ;;  %17755 = vmatpush3.msra.mxu1 %v20477_v31  ;;  %17756 = vmatprep.mubr.msk.f32.mxu1 %vm19936_vm1, %v19935_v26 }
 0x61a   : > { %v3339_v9 = vpop.xlane.xlu1 %3338  ;;  %v3350_v32 = vmul.f32 %v19588_v8, %v19572_v44  ;;  %17764 = vmatprep.subr.mxu1 %v19935_v26  ;;  %v20595_v44 = vld [vmem:[%s20131_s23 + $0x30] sm:$0xff] }
 0x61b   : > { %19597 = vrcp.f32 %v3339_v9  ;;  %v19071_v9 = vpack.c.bf16 %v16226_v7, %v16225_v6 }
 0x61c   : > { %17752 = vmatmul.mubr.msk.f32.vlgmr.msra.gmra.mrb[52].mxu0 %vm1032_vm2, %v3350_v32 }
 0x61d   : > { %v19590_v10 = vpop.eup %19589  ;;  %17760 = vmatpush3.msra.mxu0 %v20483_v33  ;;  %17761 = vmatprep.mubr.msk.f32.mxu0 %vm19936_vm1, %v19935_v26 }
 0x61e   : > { %v19592_v11 = vpop.eup %19591  ;;  %17769 = vmatprep.subr.mxu0 %v19935_v26  ;;  %v3351_v31 = vmul.f32 %v19590_v10, %v19574_v52  ;;  %v2321_v52 = vld [vmem:[%s22760_s5] sm:$0xff] }
 0x61f   : > { %v3352_v12 = vmul.f32 %v19592_v11, %v19576_v53 }
 0x620   : > { %17757 = vmatmul.mubr.msk.f32.vlgmr.msra.gmra.mrb[48].mxu1 %vm1032_vm2, %v3351_v31 }
 0x621   : > { %v19594_v16 = vpop.eup %19593  ;;  %17762 = vmatmul.mubr.msk.f32.vlgmr.msra.gmra.mrb[54].mxu0 %vm1032_vm2, %v3352_v12  ;;  %17765 = vmatpush3.msra.mxu1 %v20481_v46  ;;  %v16202_v46 = vld [vmem:[%s22809_s3 + $0x58] sm:$0xff] }
 0x622   : > { %v19596_v33 = vpop.eup %19595  ;;  %17770 = vmatpush3.msra.mxu0 %v20487_v35  ;;  %17766 = vmatprep.mubr.msk.f32.mxu1 %vm19936_vm1, %v19935_v26  ;;  %v3353_v17 = vmul.f32 %v19594_v16, %v19578_v50  ;;  %v19055_v30 = vpack.c.bf16 %v16202_v46, %v16201_v28 }
 0x623   : > { %17771 = vmatprep.mubr.msk.f32.mxu0 %vm19936_vm1, %v19935_v26  ;;  %17774 = vmatprep.subr.mxu1 %v19935_v26  ;;  %v3354_v27 = vmul.f32 %v19596_v33, %v19580_v56  ;;  %v19067_v56 = vpack.c.bf16 %v16224_v55, %v16223_v54 }
 0x624   : > { %17767 = vmatmul.mubr.msk.f32.vlgmr.msra.gmra.mrb[50].mxu1 %vm1032_vm2, %v3353_v17  ;;  %17779 = vmatprep.subr.mxu0 %v16182_v49 }
 0x625   : > { %v19598_v35 = vpop.eup %19597  ;;  %17772 = vmatmul.mubr.msk.f32.vlgmr.msra.gmra.mrb[56].mxu0 %vm1032_vm2, %v3354_v27  ;;  %17775 = vmatpush3.msra.mxu1 %v20485_v34  ;;  %v20558_v34 = vld [vmem:[%s20131_s23] sm:$0xff] }
 0x626   : > { %17776 = vmatprep.mubr.msk.f32.mxu1 %vm19936_vm1, %v19935_v26  ;;  %19052 = vmatprep.subr.bf16.mxu1 %v19051_v20  ;;  %v3355_v29 = vmul.f32 %v19598_v35, %v20504_v59 }
 0x627   : > { %17780 = vmatpush3.msra.mxu0 %v16182_v49 }
 0x628   : > { %17777 = vmatmul.mubr.msk.f32.vlgmr.msra.gmra.mrb[52].mxu1 %vm1032_vm2, %v3355_v29  ;;  %17793 = vmatprep.subr.mxu0 %v2321_v52 }
 0x629   : > { %19054 = vmatpush3.bf16.msra.mxu1 %v19051_v20  ;;  %17815 = vmatprep.mubr.msk.f32.mxu1 %vm684_vm0, %v20558_v34 }
 0x62a   : > { %19056 = vmatprep.subr.bf16.mxu1 %v19055_v30 }
 0x62d   : > { %19058 = vmatpush3.bf16.msra.mxu1 %v19055_v30 }
 0x62e   : > { %19060 = vmatprep.subr.bf16.mxu1 %v19059_v37 }
 0x630   : > { %17816 = vmatmul.mubr.msk.f32.vlgmr.msra.gmra.mrb[54].mxu1 %vm684_vm0, %v20569_v40 }
 0x631   : > { %17818 = vmatprep.mubr.msk.f32.mxu1 %vm684_vm0, %v20574_v41  ;;  %19062 = vmatpush3.bf16.msra.mxu1 %v19059_v37 }
 0x632   : > { %19064 = vmatprep.subr.bf16.mxu1 %v19063_v39 }
 0x634   : > { %17819 = vmatmul.mubr.msk.f32.gmra.mrb[56].mxu1 %vm684_vm0, %v20579_v48 }
 0x635   : > { %17821 = vmatprep.mubr.msk.f32.mxu1 %vm684_vm0, %v20584_v42  ;;  %19066 = vmatpush3.bf16.msra.mxu1 %v19063_v39 }
 0x636   : > { %17867 = vmatprep.subr.mxu1 %v19935_v26 }
 0x638   : > { %17822 = vmatmul.mubr.msk.f32.gmra.mrb[58].mxu1 %vm684_vm0, %v20590_v43 }
 0x639   : > { %17824 = vmatprep.mubr.msk.f32.mxu1 %vm684_vm0, %v20595_v44 }
 0x63c   : > { %17825 = vmatmul.mubr.msk.f32.gmra.mrb[60].mxu1 %vm684_vm0, %v20600_v51 }
 0x63d   : > { %17835 = vmatprep.mubr.msk.f32.mxu1 %vm684_vm0, %v20558_v34 }
 0x640   : > { %17836 = vmatmul.mubr.msk.f32.vlgmr.msra.gmra.mrb[62].mxu1 %vm684_vm0, %v20569_v40 }
 0x641   : > { %17838 = vmatprep.mubr.msk.f32.mxu1 %vm684_vm0, %v20574_v41 }
 0x644   : > { %17839 = vmatmul.mubr.msk.f32.gmra.mrb[64].mxu1 %vm684_vm0, %v20579_v48 }
 0x645   : > { %17841 = vmatprep.mubr.msk.f32.mxu1 %vm684_vm0, %v20584_v42 }
 0x648   : > { %17842 = vmatmul.mubr.msk.f32.gmra.mrb[66].mxu1 %vm684_vm0, %v20590_v43 }
 0x649   : > { %17844 = vmatprep.mubr.msk.f32.mxu1 %vm684_vm0, %v20595_v44 }
 0x64c   : > { %17845 = vmatmul.mubr.msk.f32.gmra.mrb[68].mxu1 %vm684_vm0, %v20600_v51 }
 0x64d   : > { %17869 = vmatprep.mubr.msk.f32.mxu1 %vm19936_vm1, %v19935_v26 }
 0x6e7   : > { %v3425_v53 = vpop.f32.mrb[50].mxu0 }
 0x6e8   : > { %v17743_v50 = vpop.f32.mrb[51].mxu0  ;;  %17781 = vmatprep.mubr.msk.f32.mxu0 %vm1032_vm2, %v3425_v53 }
 0x6eb   : > { %v3498_v57 = vpop.f32.mrb[46].mxu1 }
 0x6ec   : > { %v17748_v58 = vpop.f32.mrb[47].mxu1  ;;  %17782 = vmatmul.mubr.msk.f32.vlgmr.msra.gmra.mrb[58].mxu0 %vm1032_vm2, %v3498_v57 }
 0x6ed   : > { %17794 = vmatpush3.msra.mxu0 %v2321_v52 }
 0x6ee   : > { %19068 = vmatprep.subr.bf16.mxu0 %v19067_v56 }
 0x6ef   : > { %v3571_v59 = vpop.f32.mrb[52].mxu0 }
 0x6f0   : > { %v17753_v15 = vpop.f32.mrb[53].mxu0  ;;  %17784 = vmatprep.mubr.msk.f32.mxu0 %vm1032_vm2, %v3571_v59 }
 0x6f3   : > { %v3644_v19 = vpop.f32.mrb[48].mxu1 }
 0x6f4   : > { %v3717_v21 = vpop.f32.mrb[54].mxu0  ;;  %v17758_v22 = vpop.f32.mrb[49].mxu1  ;;  %17785 = vmatmul.mubr.msk.f32.gmra.mrb[60].mxu0 %vm1032_vm2, %v3644_v19 }
 0x6f5   : > { %v17763_v24 = vpop.f32.mrb[55].mxu0  ;;  %17787 = vmatprep.mubr.msk.f32.mxu0 %vm1032_vm2, %v3717_v21 }
 0x6f7   : > { %v3790_v63 = vpop.f32.mrb[50].mxu1 }
 0x6f8   : > { %v3863_v1 = vpop.f32.mrb[56].mxu0  ;;  %v17768_v2 = vpop.f32.mrb[51].mxu1  ;;  %17788 = vmatmul.mubr.msk.f32.gmra.mrb[62].mxu0 %vm1032_vm2, %v3790_v63 }
 0x6f9   : > { %v17773_v4 = vpop.f32.mrb[57].mxu0  ;;  %17790 = vmatprep.mubr.msk.f32.mxu0 %vm1032_vm2, %v3863_v1 }
 0x6fb   : > { %v3936_v5 = vpop.f32.mrb[52].mxu1 }
 0x6fc   : > { %v17778_v8 = vpop.f32.mrb[53].mxu1  ;;  %17791 = vmatmul.mubr.msk.f32.gmra.mrb[64].mxu0 %vm1032_vm2, %v3936_v5 }
 0x6fd   : > { %17795 = vmatprep.mubr.msk.f32.mxu0 %vm1032_vm2, %v20421_v60 }
 0x700   : > { %17796 = vmatmul.mubr.msk.f32.vlgmr.msra.gmra.mrb[58].mxu0 %vm1032_vm2, %v20419_v18 }
 0x701   : > { %17798 = vmatprep.mubr.msk.f32.mxu0 %vm1032_vm2, %v20425_v62  ;;  %19070 = vmatpush3.bf16.msra.mxu0 %v19067_v56 }
 0x702   : > { %19072 = vmatprep.subr.bf16.mxu0 %v19071_v9 }
 0x703   : > { %v17817_v32 = vpop.f32.mrb[54].mxu1 }
 0x704   : > { %v4271_v10 = vpop.f32.mrb[55].mxu1  ;;  %17799 = vmatmul.mubr.msk.f32.gmra.mrb[60].mxu0 %vm1032_vm2, %v20423_v61 }
 0x705   : > { %17801 = vmatprep.mubr.msk.f32.mxu0 %vm1032_vm2, %v20431_v25  ;;  %19074 = vmatpush3.bf16.msra.mxu0 %v19071_v9 }
 0x706   : > { %17882 = vmatprep.subr.mxu0 %v19935_v26 }
 0x707   : > { %v17820_v60 = vpop.f32.mrb[56].mxu1 }
 0x708   : > { %v4281_v11 = vpop.f32.mrb[57].mxu1  ;;  %17802 = vmatmul.mubr.msk.f32.gmra.mrb[62].mxu0 %vm1032_vm2, %v20427_v23 }
 0x709   : > { %17804 = vmatprep.mubr.msk.f32.mxu0 %vm1032_vm2, %v20433_v3 }
 0x70b   : > { %v17823_v18 = vpop.f32.mrb[58].mxu1 }
 0x70c   : > { %v4291_v62 = vpop.f32.mrb[59].mxu1  ;;  %17805 = vmatmul.mubr.msk.f32.gmra.mrb[64].mxu0 %vm1032_vm2, %v20429_v0 }
 0x70d   : > { %17855 = vmatprep.mubr.msk.f32.mxu0 %vm684_vm0, %v20558_v34 }
 0x70f   : > { %v17826_v61 = vpop.f32.mrb[60].mxu1 }
 0x710   : > { %v4301_v25 = vpop.f32.mrb[61].mxu1  ;;  %17856 = vmatmul.mubr.msk.f32.vlgmr.msra.gmra.mrb[66].mxu0 %vm684_vm0, %v20569_v40 }
 0x711   : > { %17858 = vmatprep.mubr.msk.f32.mxu0 %vm684_vm0, %v20574_v41 }
 0x713   : > { %v17837_v23 = vpop.f32.mrb[62].mxu1 }
 0x714   : > { %v4381_v31 = vpop.f32.mrb[63].mxu1  ;;  %17859 = vmatmul.mubr.msk.f32.gmra.mrb[68].mxu0 %vm684_vm0, %v20579_v48 }
 0x715   : > { %17868 = vmatpush3.xpose.msk.msra.mxu1 %vm1032_vm2, %v4381_v31  ;;  %17861 = vmatprep.mubr.msk.f32.mxu0 %vm684_vm0, %v20584_v42 }
 0x716   : > { %17872 = vmatprep.subr.mxu1 %v19935_v26 }
 0x717   : > { %v17840_v0 = vpop.f32.mrb[64].mxu1 }
 0x718   : > { %17870 = vmatmul.mubr.msk.f32.vlgmr.msra.gmra.mrb[70].mxu1 %vm1032_vm2, %v4271_v10  ;;  %17862 = vmatmul.mubr.msk.f32.gmra.mrb[70].mxu0 %vm684_vm0, %v20590_v43  ;;  %v4391_v3 = vpop.f32.mrb[65].mxu1 }
 0x719   : > { %17873 = vmatpush3.xpose.msk.msra.mxu1 %vm1032_vm2, %v17837_v23  ;;  %17874 = vmatprep.mubr.msk.f32.mxu1 %vm19936_vm1, %v19935_v26 }
 0x71a   : > { %17864 = vmatprep.mubr.msk.f32.mxu0 %vm684_vm0, %v20595_v44  ;;  %17877 = vmatprep.subr.mxu1 %v19935_v26 }
 0x71b   : > { %17883 = vmatpush3.xpose.msk.msra.mxu0 %vm1032_vm2, %v17840_v0  ;;  %v17843_v12 = vpop.f32.mrb[66].mxu1 }
 0x71c   : > { %17875 = vmatmul.mubr.msk.f32.vlgmr.msra.gmra.mrb[72].mxu1 %vm1032_vm2, %v17817_v32  ;;  %17865 = vmatmul.mubr.msk.f32.gmra.mrb[72].mxu0 %vm684_vm0, %v20600_v51  ;;  %v4401_v13 = vpop.f32.mrb[67].mxu1 }
 0x71d   : > { %17878 = vmatpush3.xpose.msk.msra.mxu1 %vm1032_vm2, %v4391_v3  ;;  %17879 = vmatprep.mubr.msk.f32.mxu1 %vm19936_vm1, %v19935_v26 }
 0x71e   : > { %17884 = vmatprep.mubr.msk.f32.mxu0 %vm19936_vm1, %v19935_v26  ;;  %17887 = vmatprep.subr.mxu1 %v19935_v26 }
 0x71f   : > { %17892 = vmatprep.subr.mxu0 %v19935_v26  ;;  %v17846_v14 = vpop.f32.mrb[68].mxu1 }
 0x720   : > { %17880 = vmatmul.mubr.msk.f32.vlgmr.msra.gmra.mrb[74].mxu1 %vm1032_vm2, %v4281_v11  ;;  %17885 = vmatmul.mubr.msk.f32.vlgmr.msra.gmra.mrb[74].mxu0 %vm1032_vm2, %v17820_v60  ;;  %v4411_v16 = vpop.f32.mrb[69].mxu1 }
 0x721   : > { %17888 = vmatpush3.xpose.msk.msra.mxu1 %vm1032_vm2, %v4401_v13  ;;  %17893 = vmatpush3.xpose.msk.msra.mxu0 %vm1032_vm2, %v17843_v12 }
 0x722   : > { %17889 = vmatprep.mubr.msk.f32.mxu1 %vm19936_vm1, %v19935_v26  ;;  %17894 = vmatprep.mubr.msk.f32.mxu0 %vm19936_vm1, %v19935_v26 }
 0x723   : > { %17897 = vmatprep.subr.mxu1 %v19935_v26  ;;  %17902 = vmatprep.subr.mxu0 %v19935_v26 }
 0x724   : > { %17890 = vmatmul.mubr.msk.f32.vlgmr.msra.gmra.mrb[76].mxu1 %vm1032_vm2, %v4291_v62  ;;  %17895 = vmatmul.mubr.msk.f32.vlgmr.msra.gmra.mrb[76].mxu0 %vm1032_vm2, %v17823_v18 }
 0x725   : > { %17898 = vmatpush3.xpose.msk.msra.mxu1 %vm1032_vm2, %v4411_v16  ;;  %17903 = vmatpush3.xpose.msk.msra.mxu0 %vm1032_vm2, %v17846_v14 }
 0x726   : > { %17899 = vmatprep.mubr.msk.f32.mxu1 %vm19936_vm1, %v19935_v26  ;;  %17904 = vmatprep.mubr.msk.f32.mxu0 %vm19936_vm1, %v19935_v26 }
 0x727   : > { %17912 = vmatprep.subr.mxu0 %v19935_v26  ;;  %17907 = vmatprep.subr.mxu1 %v19935_v26 }
 0x728   : > { %17900 = vmatmul.mubr.msk.f32.vlgmr.msra.gmra.mrb[78].mxu1 %vm1032_vm2, %v4301_v25  ;;  %17905 = vmatmul.mubr.msk.f32.vlgmr.msra.gmra.mrb[78].mxu0 %vm1032_vm2, %v17826_v61 }
 0x729   : > { %17909 = vmatprep.mubr.msk.f32.mxu1 %vm19936_vm1, %v19935_v26  ;;  %17914 = vmatprep.mubr.msk.f32.mxu0 %vm19936_vm1, %v19935_v26 }
 0x7e3   : > { %v17857_v33 = vpop.f32.mrb[66].mxu0 }
 0x7e4   : > { %v4491_v17 = vpop.f32.mrb[67].mxu0  ;;  %17913 = vmatpush3.msra.mxu0 %v17857_v33 }
 0x7e5   : > { %17908 = vmatpush3.msra.mxu1 %v4491_v17  ;;  %17922 = vmatprep.subr.mxu0 %v19935_v26 }
 0x7e6   : > { %17917 = vmatprep.subr.mxu1 %v19935_v26 }
 0x7e7   : > { %v20725_v20 = vpop.f32.mrb[68].mxu0 }
 0x7e8   : > { %v20727_v27 = vpop.f32.mrb[69].mxu0 }
 0x7eb   : > { %v4602_v28 = vpop.f32.mrb[70].mxu1  ;;  %v20729_v46 = vpop.f32.mrb[70].mxu0 }
 0x7ec   : > { %v5138_v35 = vmul.f32 0.35355338, %v4602_v28  ;;  %v17871_v29 = vpop.f32.mrb[71].mxu1  ;;  %v20731_v30 = vpop.f32.mrb[71].mxu0 }
 0x7ee   : > { %v5146_v45 = vsel %vm1032_vm2, %v5138_v35, -inf }
 0x7ef   : > { %v4678_v36 = vpop.f32.mrb[72].mxu1  ;;  %5147 = vmax.xlane.f32.xlu0 %v5146_v45  ;;  %v20734_v37 = vpop.f32.mrb[72].mxu0 }
 0x7f0   : > { %v5139_v47 = vmul.f32 0.35355338, %v4678_v36  ;;  %v17876_v38 = vpop.f32.mrb[73].mxu1  ;;  %v20736_v39 = vpop.f32.mrb[73].mxu0 }
 0x7f2   : > { %v5149_v49 = vsel %vm1032_vm2, %v5139_v47, -inf }
 0x7f3   : > { %5150 = vmax.xlane.f32.xlu1 %v5149_v49  ;;  %v4754_v52 = vpop.f32.mrb[74].mxu1  ;;  %v4830_v53 = vpop.f32.mrb[74].mxu0 }
 0x7f4   : > { %v5140_v54 = vmul.f32 0.35355338, %v4754_v52  ;;  %v17881_v55 = vpop.f32.mrb[75].mxu1  ;;  %v5141_v50 = vmul.f32 0.35355338, %v4830_v53  ;;  %v17886_v56 = vpop.f32.mrb[75].mxu0 }
 0x7f6   : > { %v5152_v57 = vsel %vm1032_vm2, %v5140_v54, -inf  ;;  %v5155_v58 = vsel %vm1032_vm2, %v5141_v50, -inf }
 0x7f7   : > { %v4906_v59 = vpop.f32.mrb[76].mxu1  ;;  %5153 = vmax.xlane.f32.xlu0 %v5152_v57  ;;  %5156 = vmax.xlane.f32.xlu1 %v5155_v58  ;;  %v4982_v15 = vpop.f32.mrb[76].mxu0 }
 0x7f8   : > { %v5142_v19 = vmul.f32 0.35355338, %v4906_v59  ;;  %v17891_v21 = vpop.f32.mrb[77].mxu1  ;;  %v5143_v22 = vmul.f32 0.35355338, %v4982_v15  ;;  %v17896_v24 = vpop.f32.mrb[77].mxu0 }
 0x7fa   : > { %v5158_v63 = vsel %vm1032_vm2, %v5142_v19, -inf  ;;  %v5161_v1 = vsel %vm1032_vm2, %v5143_v22, -inf }
 0x7fb   : > { %v5058_v2 = vpop.f32.mrb[78].mxu1  ;;  %5159 = vmax.xlane.f32.xlu0 %v5158_v63  ;;  %5162 = vmax.xlane.f32.xlu1 %v5161_v1  ;;  %v5134_v4 = vpop.f32.mrb[78].mxu0 }
 0x7fc   : > { %v5144_v5 = vmul.f32 0.35355338, %v5058_v2  ;;  %v17901_v6 = vpop.f32.mrb[79].mxu1  ;;  %v5145_v7 = vmul.f32 0.35355338, %v5134_v4  ;;  %v17906_v8 = vpop.f32.mrb[79].mxu0 }
 0x7fe   : > { %v5164_v9 = vsel %vm1032_vm2, %v5144_v5, -inf  ;;  %v5167_v32 = vsel %vm1032_vm2, %v5145_v7, -inf }
 0x7ff   : > { %5165 = vmax.xlane.f32.xlu0 %v5164_v9  ;;  %5168 = vmax.xlane.f32.xlu1 %v5167_v32 }
 0x87c   : > { %v5148_v10 = vpop.xlane.xlu0 %5147 }
 0x87d   : > { %v5170_v60 = vsub.f32 %v5138_v35, %v5148_v10 }
 0x87f   : > { %v5178_v11 = vmul.f32 1.442695, %v5170_v60 }
 0x880   : > { %v5151_v18 = vpop.xlane.xlu1 %5150 }
 0x881   : > { %19599 = vpow2.f32 %v5178_v11  ;;  %v5171_v62 = vsub.f32 %v5139_v47, %v5151_v18 }
 0x883   : > { %v5180_v61 = vmul.f32 1.442695, %v5171_v62 }
 0x884   : > { %v5154_v25 = vpop.xlane.xlu0 %5153  ;;  %v5157_v23 = vpop.xlane.xlu1 %5156 }
 0x885   : > { %19601 = vpow2.f32 %v5180_v61  ;;  %v5172_v31 = vsub.f32 %v5140_v54, %v5154_v25  ;;  %v5173_v0 = vsub.f32 %v5141_v50, %v5157_v23 }
 0x887   : > { %v5182_v3 = vmul.f32 1.442695, %v5172_v31  ;;  %v5184_v12 = vmul.f32 1.442695, %v5173_v0 }
 0x888   : > { %v5160_v13 = vpop.xlane.xlu0 %5159  ;;  %v5163_v14 = vpop.xlane.xlu1 %5162 }
 0x889   : > { %19603 = vpow2.f32 %v5182_v3  ;;  %v5174_v16 = vsub.f32 %v5142_v19, %v5160_v13  ;;  %v5175_v33 = vsub.f32 %v5143_v22, %v5163_v14  ;;  %v16268_v14 = vld [vmem:[%s22809_s3 + $0x60] sm:$0xff] }
 0x88a   : > { %19605 = vpow2.f32 %v5184_v12  ;;  %v16281_v12 = vld [vmem:[%s22807_s21 + $0x68] sm:$0xff] }
 0x88b   : > { %v19600_v17 = vpop.eup %19599  ;;  %v5186_v28 = vmul.f32 1.442695, %v5174_v16  ;;  %v5188_v35 = vmul.f32 1.442695, %v5175_v33  ;;  %v16269_v16 = vld [vmem:[%s22809_s3 + $0x68] sm:$0xff] }
 0x88c   : > { %v5166_v29 = vpop.xlane.xlu0 %5165  ;;  %v5194_v45 = vsel %vm1032_vm2, %v19600_v17, 0.0  ;;  %v5169_v36 = vpop.xlane.xlu1 %5168  ;;  %v19075_v33 = vpack.c.bf16 %v16269_v16, %v16268_v14 }
 0x88d   : > { %19607 = vpow2.f32 %v5186_v28  ;;  %v5176_v47 = vsub.f32 %v5144_v5, %v5166_v29  ;;  %5195 = vadd.xlane.f32.xlu0 %v5194_v45  ;;  %v5177_v38 = vsub.f32 %v5145_v7, %v5169_v36  ;;  %v16271_v28 = vld [vmem:[%s22809_s3 + $0x78] sm:$0xff]  ;;  %v16292_v29 = vld [vmem:[%s22810_s4 + $0x60] sm:$0xff]  ;;  %v16293_v45 = vld [vmem:[%s22810_s4 + $0x68] sm:$0xff] }
 0x88e   : > { %19609 = vpow2.f32 %v5188_v35  ;;  %v16294_v36 = vld [vmem:[%s22810_s4 + $0x70] sm:$0xff] }
 0x88f   : > { %v19602_v49 = vpop.eup %19601  ;;  %v5190_v52 = vmul.f32 1.442695, %v5176_v47  ;;  %v5192_v53 = vmul.f32 1.442695, %v5177_v38  ;;  %v19091_v47 = vpack.c.bf16 %v16293_v45, %v16292_v29  ;;  %v16295_v38 = vld [vmem:[%s22810_s4 + $0x78] sm:$0xff] }
 0x890   : > { %v5197_v54 = vsel %vm1032_vm2, %v19602_v49, 0.0 }
 0x891   : > { %19611 = vpow2.f32 %v5190_v52  ;;  %5198 = vadd.xlane.f32.xlu1 %v5197_v54  ;;  %v16283_v54 = vld [vmem:[%s22807_s21 + $0x78] sm:$0xff] }
 0x892   : > { %19613 = vpow2.f32 %v5192_v53  ;;  %v16282_v53 = vld [vmem:[%s22807_s21 + $0x70] sm:$0xff] }
 0x893   : > { %v19604_v55 = vpop.eup %19603 }
 0x894   : > { %v19606_v50 = vpop.eup %19605  ;;  %v5200_v56 = vsel %vm1032_vm2, %v19604_v55, 0.0 }
 0x895   : > { %5201 = vadd.xlane.f32.xlu0 %v5200_v56  ;;  %v5203_v57 = vsel %vm1032_vm2, %v19606_v50, 0.0 }
 0x896   : > { %5204 = vadd.xlane.f32.xlu1 %v5203_v57 }
 0x897   : > { %v19608_v58 = vpop.eup %19607 }
 0x898   : > { %v19610_v59 = vpop.eup %19609  ;;  %v5206_v15 = vsel %vm1032_vm2, %v19608_v58, 0.0 }
 0x899   : > { %5207 = vadd.xlane.f32.xlu0 %v5206_v15  ;;  %v5209_v19 = vsel %vm1032_vm2, %v19610_v59, 0.0 }
 0x89a   : > { %5210 = vadd.xlane.f32.xlu1 %v5209_v19 }
 0x89b   : > { %v19612_v21 = vpop.eup %19611 }
 0x89c   : > { %v19614_v22 = vpop.eup %19613  ;;  %v5212_v24 = vsel %vm1032_vm2, %v19612_v21, 0.0 }
 0x89d   : > { %5213 = vadd.xlane.f32.xlu0 %v5212_v24  ;;  %v5215_v63 = vsel %vm1032_vm2, %v19614_v22, 0.0 }
 0x89e   : > { %5216 = vadd.xlane.f32.xlu1 %v5215_v63 }
 0x91a   : > { %v5196_v1 = vpop.xlane.xlu0 %5195 }
 0x91b   : > { %19615 = vrcp.f32 %v5196_v1 }
 0x91e   : > { %v5199_v2 = vpop.xlane.xlu1 %5198 }
 0x91f   : > { %19617 = vrcp.f32 %v5199_v2 }
 0x922   : > { %v5202_v4 = vpop.xlane.xlu0 %5201 }
 0x923   : > { %19619 = vrcp.f32 %v5202_v4  ;;  %v5205_v5 = vpop.xlane.xlu1 %5204 }
 0x924   : > { %19621 = vrcp.f32 %v5205_v5 }
 0x925   : > { %v19616_v6 = vpop.eup %19615 }
 0x926   : > { %v5208_v7 = vpop.xlane.xlu0 %5207  ;;  %v5226_v8 = vmul.f32 %v19616_v6, %v19600_v17  ;;  %v16270_v17 = vld [vmem:[%s22809_s3 + $0x70] sm:$0xff] }
 0x927   : > { %19623 = vrcp.f32 %v5208_v7  ;;  %v5211_v9 = vpop.xlane.xlu1 %5210  ;;  %v19079_v35 = vpack.c.bf16 %v16271_v28, %v16270_v17 }
 0x928   : > { %19625 = vrcp.f32 %v5211_v9  ;;  %17910 = vmatmul.mubr.msk.f32.vlgmr.msra.gmra.mrb[80].mxu1 %vm1032_vm2, %v5226_v8 }
 0x929   : > { %v19618_v32 = vpop.eup %19617  ;;  %17918 = vmatpush3.msra.mxu1 %v20727_v27  ;;  %17919 = vmatprep.mubr.msk.f32.mxu1 %vm19936_vm1, %v19935_v26 }
 0x92a   : > { %v5214_v10 = vpop.xlane.xlu0 %5213  ;;  %v5227_v60 = vmul.f32 %v19618_v32, %v19602_v49  ;;  %17927 = vmatprep.subr.mxu1 %v19935_v26  ;;  %v19095_v49 = vpack.c.bf16 %v16295_v38, %v16294_v36 }
 0x92b   : > { %19627 = vrcp.f32 %v5214_v10  ;;  %v5217_v11 = vpop.xlane.xlu1 %5216 }
 0x92c   : > { %19629 = vrcp.f32 %v5217_v11  ;;  %17915 = vmatmul.mubr.msk.f32.vlgmr.msra.gmra.mrb[80].mxu0 %vm1032_vm2, %v5227_v60 }
 0x92d   : > { %v19620_v18 = vpop.eup %19619  ;;  %17923 = vmatpush3.msra.mxu0 %v20725_v20  ;;  %17924 = vmatprep.mubr.msk.f32.mxu0 %vm19936_vm1, %v19935_v26 }
 0x92e   : > { %v19622_v62 = vpop.eup %19621  ;;  %v5228_v27 = vmul.f32 %v19620_v18, %v19604_v55  ;;  %17932 = vmatprep.subr.mxu0 %v19935_v26 }
 0x92f   : > { %v5229_v61 = vmul.f32 %v19622_v62, %v19606_v50  ;;  %v19087_v50 = vpack.c.bf16 %v16283_v54, %v16282_v53 }
 0x930   : > { %17920 = vmatmul.mubr.msk.f32.vlgmr.msra.gmra.mrb[82].mxu1 %vm1032_vm2, %v5228_v27 }
 0x931   : > { %v19624_v25 = vpop.eup %19623  ;;  %17928 = vmatpush3.msra.mxu1 %v20731_v30  ;;  %17925 = vmatmul.mubr.msk.f32.vlgmr.msra.gmra.mrb[82].mxu0 %vm1032_vm2, %v5229_v61 }
 0x932   : > { %v19626_v23 = vpop.eup %19625  ;;  %17933 = vmatpush3.msra.mxu0 %v20729_v46  ;;  %17929 = vmatprep.mubr.msk.f32.mxu1 %vm19936_vm1, %v19935_v26  ;;  %v5230_v20 = vmul.f32 %v19624_v25, %v19608_v58 }
 0x933   : > { %17937 = vmatprep.subr.mxu1 %v19935_v26  ;;  %17934 = vmatprep.mubr.msk.f32.mxu0 %vm19936_vm1, %v19935_v26  ;;  %v5231_v31 = vmul.f32 %v19626_v23, %v19610_v59 }
 0x934   : > { %17930 = vmatmul.mubr.msk.f32.vlgmr.msra.gmra.mrb[84].mxu1 %vm1032_vm2, %v5230_v20  ;;  %17942 = vmatprep.subr.mxu0 %v19935_v26 }
 0x935   : > { %v19628_v30 = vpop.eup %19627  ;;  %17938 = vmatpush3.msra.mxu1 %v20736_v39  ;;  %17935 = vmatmul.mubr.msk.f32.vlgmr.msra.gmra.mrb[84].mxu0 %vm1032_vm2, %v5231_v31  ;;  %v16259_v39 = vld [vmem:[%s22760_s5 + $0x10] sm:$0xff] }
 0x936   : > { %v19630_v46 = vpop.eup %19629  ;;  %17943 = vmatpush3.msra.mxu0 %v20734_v37  ;;  %17939 = vmatprep.mubr.msk.f32.mxu1 %vm19936_vm1, %v19935_v26  ;;  %v5232_v0 = vmul.f32 %v19628_v30, %v19612_v21  ;;  %v16280_v37 = vld [vmem:[%s22807_s21 + $0x60] sm:$0xff] }
 0x937   : > { %17944 = vmatprep.mubr.msk.f32.mxu0 %vm19936_vm1, %v19935_v26  ;;  %v5233_v3 = vmul.f32 %v19630_v46, %v19614_v22  ;;  %17947 = vmatprep.subr.mxu0 %v16259_v39  ;;  %v19083_v13 = vpack.c.bf16 %v16281_v12, %v16280_v37 }
 0x938   : > { %17940 = vmatmul.mubr.msk.f32.vlgmr.msra.gmra.mrb[86].mxu1 %vm1032_vm2, %v5232_v0  ;;  %19076 = vmatprep.subr.bf16.mxu1 %v19075_v33 }
 0x939   : > { %17945 = vmatmul.mubr.msk.f32.vlgmr.msra.gmra.mrb[86].mxu0 %vm1032_vm2, %v5233_v3  ;;  %17969 = vmatprep.mubr.msk.f32.mxu1 %vm684_vm0, %v20558_v34 }
 0x93a   : > { %17948 = vmatpush3.msra.mxu0 %v16259_v39  ;;  %19078 = vmatpush3.bf16.msra.mxu1 %v19075_v33 }
 0x93b   : > { %19084 = vmatprep.subr.bf16.mxu0 %v19083_v13  ;;  %19080 = vmatprep.subr.bf16.mxu1 %v19079_v35 }
 0x93e   : > { %19082 = vmatpush3.bf16.msra.mxu1 %v19079_v35 }
 0x93f   : > { %19092 = vmatprep.subr.bf16.mxu1 %v19091_v47 }
 0x941   : > { %17970 = vmatmul.mubr.msk.f32.vlgmr.msra.gmra.mrb[88].mxu1 %vm684_vm0, %v20569_v40 }
 0x942   : > { %17972 = vmatprep.mubr.msk.f32.mxu1 %vm684_vm0, %v20574_v41  ;;  %19094 = vmatpush3.bf16.msra.mxu1 %v19091_v47 }
 0x943   : > { %19096 = vmatprep.subr.bf16.mxu1 %v19095_v49 }
 0x945   : > { %17973 = vmatmul.mubr.msk.f32.gmra.mrb[90].mxu1 %vm684_vm0, %v20579_v48 }
 0x946   : > { %17975 = vmatprep.mubr.msk.f32.mxu1 %vm684_vm0, %v20584_v42  ;;  %19098 = vmatpush3.bf16.msra.mxu1 %v19095_v49 }
 0x947   : > { %18026 = vmatprep.subr.mxu1 %v19935_v26 }
 0x949   : > { %17976 = vmatmul.mubr.msk.f32.gmra.mrb[92].mxu1 %vm684_vm0, %v20590_v43 }
 0x94a   : > { %17978 = vmatprep.mubr.msk.f32.mxu1 %vm684_vm0, %v20595_v44 }
 0x94d   : > { %17979 = vmatmul.mubr.msk.f32.gmra.mrb[94].mxu1 %vm684_vm0, %v20600_v51 }
 0x94e   : > { %18009 = vmatprep.mubr.msk.f32.mxu1 %vm684_vm0, %v20558_v34 }
 0x951   : > { %18010 = vmatmul.mubr.msk.f32.vlgmr.msra.gmra.mrb[96].mxu1 %vm684_vm0, %v20569_v40 }
 0x952   : > { %18012 = vmatprep.mubr.msk.f32.mxu1 %vm684_vm0, %v20574_v41 }
 0x955   : > { %18013 = vmatmul.mubr.msk.f32.gmra.mrb[98].mxu1 %vm684_vm0, %v20579_v48 }
 0x956   : > { %18015 = vmatprep.mubr.msk.f32.mxu1 %vm684_vm0, %v20584_v42 }
 0x959   : > { %18016 = vmatmul.mubr.msk.f32.gmra.mrb[100].mxu1 %vm684_vm0, %v20590_v43 }
 0x95a   : > { %18018 = vmatprep.mubr.msk.f32.mxu1 %vm684_vm0, %v20595_v44 }
 0x95d   : > { %18019 = vmatmul.mubr.msk.f32.gmra.mrb[102].mxu1 %vm684_vm0, %v20600_v51 }
 0x95e   : > { %18028 = vmatprep.mubr.msk.f32.mxu1 %vm19936_vm1, %v19935_v26 }
 0x9fb   : > { %v5303_v52 = vpop.f32.mrb[80].mxu1 }
 0x9fc   : > { %v17911_v55 = vpop.f32.mrb[81].mxu1  ;;  %17949 = vmatprep.mubr.msk.f32.mxu0 %vm1032_vm2, %v5303_v52 }
 0x9ff   : > { %v5376_v56 = vpop.f32.mrb[80].mxu0 }
 0xa00   : > { %v17916_v57 = vpop.f32.mrb[81].mxu0  ;;  %17950 = vmatmul.mubr.msk.f32.vlgmr.msra.gmra.mrb[58].mxu0 %vm1032_vm2, %v5376_v56 }
 0xa01   : > { %19086 = vmatpush3.bf16.msra.mxu0 %v19083_v13 }
 0xa02   : > { %19088 = vmatprep.subr.bf16.mxu0 %v19087_v50 }
 0xa03   : > { %v5449_v58 = vpop.f32.mrb[82].mxu1 }
 0xa04   : > { %v17921_v59 = vpop.f32.mrb[83].mxu1  ;;  %v5522_v15 = vpop.f32.mrb[82].mxu0  ;;  %17952 = vmatprep.mubr.msk.f32.mxu0 %vm1032_vm2, %v5449_v58 }
 0xa05   : > { %v17926_v19 = vpop.f32.mrb[83].mxu0  ;;  %17953 = vmatmul.mubr.msk.f32.gmra.mrb[60].mxu0 %vm1032_vm2, %v5522_v15 }
 0xa06   : > { %19090 = vmatpush3.bf16.msra.mxu0 %v19087_v50 }
 0xa07   : > { %v5595_v21 = vpop.f32.mrb[84].mxu1  ;;  %18021 = vmatprep.subr.mxu0 %v19935_v26 }
 0xa08   : > { %v17931_v22 = vpop.f32.mrb[85].mxu1  ;;  %v5668_v24 = vpop.f32.mrb[84].mxu0  ;;  %17955 = vmatprep.mubr.msk.f32.mxu0 %vm1032_vm2, %v5595_v21 }
 0xa09   : > { %v17936_v63 = vpop.f32.mrb[85].mxu0  ;;  %17956 = vmatmul.mubr.msk.f32.gmra.mrb[62].mxu0 %vm1032_vm2, %v5668_v24 }
 0xa0b   : > { %v5741_v1 = vpop.f32.mrb[86].mxu1 }
 0xa0c   : > { %v17941_v2 = vpop.f32.mrb[87].mxu1  ;;  %v5814_v4 = vpop.f32.mrb[86].mxu0  ;;  %17958 = vmatprep.mubr.msk.f32.mxu0 %vm1032_vm2, %v5741_v1 }
 0xa0d   : > { %v17946_v5 = vpop.f32.mrb[87].mxu0  ;;  %17959 = vmatmul.mubr.msk.f32.gmra.mrb[64].mxu0 %vm1032_vm2, %v5814_v4 }
 0xa0e   : > { %17989 = vmatprep.mubr.msk.f32.mxu0 %vm684_vm0, %v20558_v34 }
 0xa11   : > { %17990 = vmatmul.mubr.msk.f32.vlgmr.msra.gmra.mrb[88].mxu0 %vm684_vm0, %v20569_v40 }
 0xa12   : > { %17992 = vmatprep.mubr.msk.f32.mxu0 %vm684_vm0, %v20574_v41 }
 0xa14   : > { %v17971_v34 = vpop.f32.mrb[88].mxu1 }
 0xa15   : > { %17993 = vmatmul.mubr.msk.f32.gmra.mrb[90].mxu0 %vm684_vm0, %v20579_v48  ;;  %v6028_v40 = vpop.f32.mrb[89].mxu1 }
 0xa16   : > { %17995 = vmatprep.mubr.msk.f32.mxu0 %vm684_vm0, %v20584_v42 }
 0xa18   : > { %v17974_v41 = vpop.f32.mrb[90].mxu1 }
 0xa19   : > { %17996 = vmatmul.mubr.msk.f32.gmra.mrb[92].mxu0 %vm684_vm0, %v20590_v43  ;;  %v6038_v6 = vpop.f32.mrb[91].mxu1 }
 0xa1a   : > { %17998 = vmatprep.mubr.msk.f32.mxu0 %vm684_vm0, %v20595_v44 }
 0xa1c   : > { %v17977_v48 = vpop.f32.mrb[92].mxu1 }
 0xa1d   : > { %17999 = vmatmul.mubr.msk.f32.gmra.mrb[94].mxu0 %vm684_vm0, %v20600_v51  ;;  %v6048_v7 = vpop.f32.mrb[93].mxu1 }
 0xa1e   : > { %18023 = vmatprep.mubr.msk.f32.mxu0 %vm19936_vm1, %v19935_v26 }
 0xa20   : > { %v17980_v8 = vpop.f32.mrb[94].mxu1 }
 0xa21   : > { %v6058_v42 = vpop.f32.mrb[95].mxu1 }
 0xa24   : > { %v18011_v9 = vpop.f32.mrb[96].mxu1 }
 0xa25   : > { %v6248_v32 = vpop.f32.mrb[97].mxu1 }
 0xa28   : > { %v20884_v43 = vpop.f32.mrb[98].mxu1 }
 0xa29   : > { %v20886_v10 = vpop.f32.mrb[99].mxu1 }
 0xa2c   : > { %v20888_v44 = vpop.f32.mrb[100].mxu1 }
 0xa2d   : > { %v20890_v51 = vpop.f32.mrb[101].mxu1 }
 0xa30   : > { %v20892_v60 = vpop.f32.mrb[102].mxu1 }
 0xa31   : > { %v20894_v11 = vpop.f32.mrb[103].mxu1 }
 0xae4   : > { %v17991_v18 = vpop.f32.mrb[88].mxu0 }
 0xae5   : > { %v6138_v62 = vpop.f32.mrb[89].mxu0  ;;  %18027 = vmatpush3.xpose.msk.msra.mxu1 %vm1032_vm2, %v17991_v18 }
 0xae6   : > { %18022 = vmatpush3.xpose.msk.msra.mxu0 %vm1032_vm2, %v6138_v62  ;;  %18036 = vmatprep.subr.mxu1 %v19935_v26 }
 0xae7   : > { %18031 = vmatprep.subr.mxu0 %v19935_v26 }
 0xae8   : > { %v17994_v27 = vpop.f32.mrb[90].mxu0  ;;  %18029 = vmatmul.mubr.msk.f32.vlgmr.msra.gmra.mrb[104].mxu1 %vm1032_vm2, %v17971_v34 }
 0xae9   : > { %v6148_v61 = vpop.f32.mrb[91].mxu0  ;;  %18024 = vmatmul.mubr.msk.f32.vlgmr.msra.gmra.mrb[96].mxu0 %vm1032_vm2, %v6028_v40  ;;  %18037 = vmatpush3.xpose.msk.msra.mxu1 %vm1032_vm2, %v17994_v27 }
 0xaea   : > { %18032 = vmatpush3.xpose.msk.msra.mxu0 %vm1032_vm2, %v6148_v61  ;;  %18038 = vmatprep.mubr.msk.f32.mxu1 %vm19936_vm1, %v19935_v26 }
 0xaeb   : > { %18033 = vmatprep.mubr.msk.f32.mxu0 %vm19936_vm1, %v19935_v26  ;;  %18046 = vmatprep.subr.mxu1 %v19935_v26 }
 0xaec   : > { %v17997_v25 = vpop.f32.mrb[92].mxu0  ;;  %18039 = vmatmul.mubr.msk.f32.vlgmr.msra.gmra.mrb[106].mxu1 %vm1032_vm2, %v17974_v41  ;;  %18041 = vmatprep.subr.mxu0 %v19935_v26 }
 0xaed   : > { %v6158_v23 = vpop.f32.mrb[93].mxu0  ;;  %18034 = vmatmul.mubr.msk.f32.vlgmr.msra.gmra.mrb[98].mxu0 %vm1032_vm2, %v6038_v6  ;;  %18047 = vmatpush3.xpose.msk.msra.mxu1 %vm1032_vm2, %v17997_v25 }
 0xaee   : > { %18042 = vmatpush3.xpose.msk.msra.mxu0 %vm1032_vm2, %v6158_v23  ;;  %18048 = vmatprep.mubr.msk.f32.mxu1 %vm19936_vm1, %v19935_v26 }
 0xaef   : > { %18043 = vmatprep.mubr.msk.f32.mxu0 %vm19936_vm1, %v19935_v26  ;;  %18056 = vmatprep.subr.mxu1 %v19935_v26 }
 0xaf0   : > { %v18000_v20 = vpop.f32.mrb[94].mxu0  ;;  %18049 = vmatmul.mubr.msk.f32.vlgmr.msra.gmra.mrb[108].mxu1 %vm1032_vm2, %v17977_v48  ;;  %18051 = vmatprep.subr.mxu0 %v19935_v26 }
 0xaf1   : > { %v6168_v31 = vpop.f32.mrb[95].mxu0  ;;  %18044 = vmatmul.mubr.msk.f32.vlgmr.msra.gmra.mrb[100].mxu0 %vm1032_vm2, %v6048_v7  ;;  %18057 = vmatpush3.xpose.msk.msra.mxu1 %vm1032_vm2, %v18000_v20 }
 0xaf2   : > { %18052 = vmatpush3.xpose.msk.msra.mxu0 %vm1032_vm2, %v6168_v31  ;;  %18058 = vmatprep.mubr.msk.f32.mxu1 %vm19936_vm1, %v19935_v26 }
 0xaf3   : > { %18053 = vmatprep.mubr.msk.f32.mxu0 %vm19936_vm1, %v19935_v26  ;;  %18061 = vmatprep.subr.mxu0 %v19935_v26 }
 0xaf4   : > { %18059 = vmatmul.mubr.msk.f32.vlgmr.msra.gmra.mrb[110].mxu1 %vm1032_vm2, %v17980_v8  ;;  %18066 = vmatprep.subr.mxu1 %v19935_v26 }
 0xaf5   : > { %18054 = vmatmul.mubr.msk.f32.vlgmr.msra.gmra.mrb[102].mxu0 %vm1032_vm2, %v6058_v42  ;;  %18067 = vmatpush3.msra.mxu1 %v18011_v9 }
 0xaf6   : > { %18062 = vmatpush3.msra.mxu0 %v6248_v32  ;;  %18068 = vmatprep.mubr.msk.f32.mxu1 %vm19936_vm1, %v19935_v26 }
 0xaf7   : > { %18076 = vmatprep.subr.mxu1 %v19935_v26  ;;  %18063 = vmatprep.mubr.msk.f32.mxu0 %vm19936_vm1, %v19935_v26 }
 0xaf8   : > { %18071 = vmatprep.subr.mxu0 %v19935_v26 }
 0xbbb   : > { %v6435_v30 = vpop.f32.mrb[104].mxu1 }
 0xbbc   : > { %v6896_v46 = vmul.f32 0.35355338, %v6435_v30  ;;  %v6359_v0 = vpop.f32.mrb[96].mxu0  ;;  %v18030_v3 = vpop.f32.mrb[105].mxu1 }
 0xbbd   : > { %v6895_v39 = vmul.f32 0.35355338, %v6359_v0  ;;  %v18025_v37 = vpop.f32.mrb[97].mxu0 }
 0xbbe   : > { %v6906_v12 = vsel %vm1032_vm2, %v6896_v46, -inf }
 0xbbf   : > { %6907 = vmax.xlane.f32.xlu1 %v6906_v12  ;;  %v6587_v13 = vpop.f32.mrb[106].mxu1  ;;  %v6903_v14 = vsel %vm1032_vm2, %v6895_v39, -inf }
 0xbc0   : > { %v6898_v16 = vmul.f32 0.35355338, %v6587_v13  ;;  %6904 = vmax.xlane.f32.xlu0 %v6903_v14  ;;  %v6511_v33 = vpop.f32.mrb[98].mxu0  ;;  %v18040_v17 = vpop.f32.mrb[107].mxu1 }
 0xbc1   : > { %v6897_v28 = vmul.f32 0.35355338, %v6511_v33  ;;  %v18035_v35 = vpop.f32.mrb[99].mxu0 }
 0xbc2   : > { %v6912_v29 = vsel %vm1032_vm2, %v6898_v16, -inf }
 0xbc3   : > { %6913 = vmax.xlane.f32.xlu1 %v6912_v29  ;;  %v6739_v45 = vpop.f32.mrb[108].mxu1  ;;  %v6909_v36 = vsel %vm1032_vm2, %v6897_v28, -inf }
 0xbc4   : > { %v6900_v47 = vmul.f32 0.35355338, %v6739_v45  ;;  %6910 = vmax.xlane.f32.xlu0 %v6909_v36  ;;  %v6663_v38 = vpop.f32.mrb[100].mxu0  ;;  %v18050_v49 = vpop.f32.mrb[109].mxu1 }
 0xbc5   : > { %v6899_v52 = vmul.f32 0.35355338, %v6663_v38  ;;  %v18045_v53 = vpop.f32.mrb[101].mxu0 }
 0xbc6   : > { %v6918_v54 = vsel %vm1032_vm2, %v6900_v47, -inf }
 0xbc7   : > { %6919 = vmax.xlane.f32.xlu1 %v6918_v54  ;;  %v6891_v55 = vpop.f32.mrb[110].mxu1  ;;  %v6915_v50 = vsel %vm1032_vm2, %v6899_v52, -inf }
 0xbc8   : > { %v6902_v56 = vmul.f32 0.35355338, %v6891_v55  ;;  %6916 = vmax.xlane.f32.xlu0 %v6915_v50  ;;  %v6815_v57 = vpop.f32.mrb[102].mxu0  ;;  %v18060_v58 = vpop.f32.mrb[111].mxu1 }
 0xbc9   : > { %v6901_v59 = vmul.f32 0.35355338, %v6815_v57  ;;  %v18055_v15 = vpop.f32.mrb[103].mxu0 }
 0xbca   : > { %v6924_v19 = vsel %vm1032_vm2, %v6902_v56, -inf }
 0xbcb   : > { %6925 = vmax.xlane.f32.xlu1 %v6924_v19  ;;  %v6921_v21 = vsel %vm1032_vm2, %v6901_v59, -inf }
 0xbcc   : > { %6922 = vmax.xlane.f32.xlu0 %v6921_v21 }
 0xc4c   : > { %v6908_v22 = vpop.xlane.xlu1 %6907 }
 0xc4d   : > { %v6928_v24 = vsub.f32 %v6896_v46, %v6908_v22  ;;  %v6905_v63 = vpop.xlane.xlu0 %6904 }
 0xc4e   : > { %v6927_v1 = vsub.f32 %v6895_v39, %v6905_v63 }
 0xc4f   : > { %v6937_v2 = vmul.f32 1.442695, %v6928_v24 }
 0xc50   : > { %v6935_v4 = vmul.f32 1.442695, %v6927_v1  ;;  %v6914_v5 = vpop.xlane.xlu1 %6913 }
 0xc51   : > { %19631 = vpow2.f32 %v6937_v2  ;;  %v6930_v34 = vsub.f32 %v6898_v16, %v6914_v5  ;;  %v6911_v40 = vpop.xlane.xlu0 %6910 }
 0xc52   : > { %19633 = vpow2.f32 %v6935_v4  ;;  %v6929_v41 = vsub.f32 %v6897_v28, %v6911_v40 }
 0xc53   : > { %v6941_v6 = vmul.f32 1.442695, %v6930_v34 }
 0xc54   : > { %v6939_v48 = vmul.f32 1.442695, %v6929_v41  ;;  %v6920_v7 = vpop.xlane.xlu1 %6919 }
 0xc55   : > { %19635 = vpow2.f32 %v6941_v6  ;;  %v6932_v8 = vsub.f32 %v6900_v47, %v6920_v7  ;;  %v6917_v42 = vpop.xlane.xlu0 %6916 }
 0xc56   : > { %19637 = vpow2.f32 %v6939_v48  ;;  %v6931_v9 = vsub.f32 %v6899_v52, %v6917_v42 }
 0xc57   : > { %v6945_v32 = vmul.f32 1.442695, %v6932_v8 }
 0xc58   : > { %v6943_v18 = vmul.f32 1.442695, %v6931_v9  ;;  %v6926_v62 = vpop.xlane.xlu1 %6925 }
 0xc59   : > { %19639 = vpow2.f32 %v6945_v32  ;;  %v6934_v27 = vsub.f32 %v6902_v56, %v6926_v62  ;;  %v6923_v61 = vpop.xlane.xlu0 %6922 }
 0xc5a   : > { %19641 = vpow2.f32 %v6943_v18  ;;  %v6933_v25 = vsub.f32 %v6901_v59, %v6923_v61 }
 0xc5b   : > { %v19632_v23 = vpop.eup %19631  ;;  %v6949_v20 = vmul.f32 1.442695, %v6934_v27  ;;  %v19847_v27 = vld [vmem:[%s20131_s23 + $0x8] sm:$0xff] }
 0xc5c   : > { %v19634_v31 = vpop.eup %19633  ;;  %v6947_v30 = vmul.f32 1.442695, %v6933_v25  ;;  %v6954_v46 = vsel %vm1032_vm2, %v19632_v23, 0.0 }
 0xc5d   : > { %19643 = vpow2.f32 %v6949_v20  ;;  %6955 = vadd.xlane.f32.xlu1 %v6954_v46  ;;  %v6951_v0 = vsel %vm1032_vm2, %v19634_v31, 0.0 }
 0xc5e   : > { %19645 = vpow2.f32 %v6947_v30  ;;  %6952 = vadd.xlane.f32.xlu0 %v6951_v0  ;;  %v19849_v0 = vld [vmem:[%s20131_s23 + $0x18] sm:$0xff] }
 0xc5f   : > { %v19636_v3 = vpop.eup %19635 }
 0xc60   : > { %v19638_v39 = vpop.eup %19637  ;;  %v6960_v37 = vsel %vm1032_vm2, %v19636_v3, 0.0 }
 0xc61   : > { %6961 = vadd.xlane.f32.xlu1 %v6960_v37  ;;  %v6957_v12 = vsel %vm1032_vm2, %v19638_v39, 0.0  ;;  %v19850_v37 = vld [vmem:[%s20131_s23 + $0x10] sm:$0xff] }
 0xc62   : > { %6958 = vadd.xlane.f32.xlu0 %v6957_v12 }
 0xc63   : > { %v19640_v13 = vpop.eup %19639 }
 0xc64   : > { %v19642_v14 = vpop.eup %19641  ;;  %v6966_v16 = vsel %vm1032_vm2, %v19640_v13, 0.0 }
 0xc65   : > { %6967 = vadd.xlane.f32.xlu1 %v6966_v16  ;;  %v6963_v33 = vsel %vm1032_vm2, %v19642_v14, 0.0 }
 0xc66   : > { %6964 = vadd.xlane.f32.xlu0 %v6963_v33  ;;  %v19851_v33 = vld [vmem:[%s20131_s23 + $0x28] sm:$0xff] }
 0xc67   : > { %v19644_v17 = vpop.eup %19643 }
 0xc68   : > { %v19646_v28 = vpop.eup %19645  ;;  %v6972_v35 = vsel %vm1032_vm2, %v19644_v17, 0.0 }
 0xc69   : > { %6973 = vadd.xlane.f32.xlu1 %v6972_v35  ;;  %v6969_v29 = vsel %vm1032_vm2, %v19646_v28, 0.0  ;;  %v19852_v35 = vld [vmem:[%s20131_s23 + $0x20] sm:$0xff] }
 0xc6a   : > { %6970 = vadd.xlane.f32.xlu0 %v6969_v29 }
 0xcea   : > { %v6956_v45 = vpop.xlane.xlu1 %6955 }
 0xceb   : > { %19647 = vrcp.f32 %v6956_v45  ;;  %v6953_v36 = vpop.xlane.xlu0 %6952 }
 0xcec   : > { %19649 = vrcp.f32 %v6953_v36 }
 0xcee   : > { %v6962_v47 = vpop.xlane.xlu1 %6961 }
 0xcef   : > { %19651 = vrcp.f32 %v6962_v47  ;;  %v6959_v38 = vpop.xlane.xlu0 %6958 }
 0xcf0   : > { %19653 = vrcp.f32 %v6959_v38  ;;  %v19853_v38 = vld [vmem:[%s20131_s23 + $0x38] sm:$0xff] }
 0xcf2   : > { %v6968_v49 = vpop.xlane.xlu1 %6967 }
 0xcf3   : > { %19655 = vrcp.f32 %v6968_v49  ;;  %v6965_v52 = vpop.xlane.xlu0 %6964 }
 0xcf4   : > { %19657 = vrcp.f32 %v6965_v52 }
 0xcf5   : > { %v19648_v53 = vpop.eup %19647 }
 0xcf6   : > { %v19650_v54 = vpop.eup %19649  ;;  %v6974_v55 = vpop.xlane.xlu1 %6973  ;;  %v6984_v50 = vmul.f32 %v19648_v53, %v19632_v23  ;;  %v19848_v23 = vld [vmem:[%s20131_s23] sm:$0xff]  ;;  %v19854_v53 = vld [vmem:[%s20131_s23 + $0x30] sm:$0xff]  ;;  %s16725_s23 = sshll.u32 %s22837_s1, 4  ;;  %s22825_s1 = sld [smem:[#allocation8_spill]] }
 0xcf7   : > { %19659 = vrcp.f32 %v6974_v55  ;;  %v6971_v56 = vpop.xlane.xlu0 %6970  ;;  %v6983_v57 = vmul.f32 %v19650_v54, %v19634_v31  ;;  %s21067_s20 = scalar_lea.vmem %s22812_s26, %s16725_s23  ;;  %s22679_s26 = scalar_lea.vmem [#allocation2], %s16068_s25 }
 0xcf8   : > { %19661 = vrcp.f32 %v6971_v56  ;;  %18069 = vmatmul.mubr.msk.f32.vlgmr.msra.gmra.mrb[112].mxu1 %vm1032_vm2, %v6984_v50  ;;  %v7993_v56 = vld [vmem:[%s22764_s9] sm:$0xff]  ;;  %s15990_s23 = sshll.u32 %s22679_s26, 4  ;;  %s22706_s23 = int_to_ptr.vmem [resolvable:$true] %s15990_s23 }
 0xcf9   : > { %v19652_v58 = vpop.eup %19651  ;;  %18077 = vmatpush3.msra.mxu1 %v20884_v43  ;;  %18064 = vmatmul.mubr.msk.f32.vlgmr.msra.gmra.mrb[104].mxu0 %vm1032_vm2, %v6983_v57  ;;  %v7994_v57 = vld [vmem:[%s22764_s9 + $0x8] sm:$0xff]  ;;  %s19871_s28 = scalar_lea.vmem %s22706_s23, 1024 }
 0xcfa   : > { %v19654_v59 = vpop.eup %19653  ;;  %18072 = vmatpush3.msra.mxu0 %v20886_v10  ;;  %18078 = vmatprep.mubr.msk.f32.mxu1 %vm19936_vm1, %v19935_v26  ;;  %v6986_v15 = vmul.f32 %v19652_v58, %v19636_v3  ;;  %v19107_v58 = vpack.c.bf16 %v7994_v57, %v7993_v56  ;;  %v21137_v56 = vld [vmem:[%s21067_s20 + $0x58] sm:$0xff]  ;;  %v21142_v57 = vld [vmem:[%s21067_s20 + $0x60] sm:$0xff]  ;;  %p19872_p11 = scmp.ne.s32.totalorder %s22706_s23, %s19871_s28 }
 0xcfb   : > { %18086 = vmatprep.subr.mxu1 %v19935_v26  ;;  %18073 = vmatprep.mubr.msk.f32.mxu0 %vm19936_vm1, %v19935_v26  ;;  %v6985_v19 = vmul.f32 %v19654_v59, %v19638_v39 }
 0xcfc   : > { %18079 = vmatmul.mubr.msk.f32.vlgmr.msra.gmra.mrb[114].mxu1 %vm1032_vm2, %v6986_v15  ;;  %18081 = vmatprep.subr.mxu0 %v19935_v26  ;;  %s16726_s29 = sshll.u32 %s22825_s1, 10  ;;  %p19873_p12 = pnand %p19872_p11, %p20084_p5 }
 0xcfd   : > { %v19656_v43 = vpop.eup %19655  ;;  %18087 = vmatpush3.msra.mxu1 %v20888_v44  ;;  %18074 = vmatmul.mubr.msk.f32.vlgmr.msra.gmra.mrb[106].mxu0 %vm1032_vm2, %v6985_v19  ;;  %s22704_s25 = scalar_lea.hbm %s22827_s0, %s16726_s29  ;;  %s19938_s1 = smov [#allocation2]  }
 0xcfe   : > { %v19658_v10 = vpop.eup %19657  ;;  %18082 = vmatpush3.msra.mxu0 %v20890_v51  ;;  %18088 = vmatprep.mubr.msk.f32.mxu1 %vm19936_vm1, %v19935_v26  ;;  %v6988_v21 = vmul.f32 %v19656_v43, %v19640_v13  ;;  %p19874_p13 = pneg %p19873_p12  ;;  %s19875_s29 = sshll.u32 %s19938_s1, 4  ;;  %s19876_s29 = int_to_ptr.vmem [resolvable:$false] %s19875_s29 }
 0xcff   : > { %18096 = vmatprep.subr.mxu1 %v19935_v26  ;;  %18083 = vmatprep.mubr.msk.f32.mxu0 %vm19936_vm1, %v19935_v26  ;;  %v6987_v22 = vmul.f32 %v19658_v10, %v19642_v14  ;;  %s19877_s27 = scalar_lea.vmem %s19876_s29, 2048  ;;  %p19878_p0 = scmp.lt.s32.totalorder %s22706_s23, %s19876_s29 }
 0xd00   : > { %18089 = vmatmul.mubr.msk.f32.vlgmr.msra.gmra.mrb[116].mxu1 %vm1032_vm2, %v6988_v21  ;;  %18091 = vmatprep.subr.mxu0 %v19935_v26  ;;  %p19879_p1 = scmp.lt.s32.totalorder %s19877_s27, %s19871_s28 }
 0xd01   : > { %v19660_v44 = vpop.eup %19659  ;;  %18097 = vmatpush3.msra.mxu1 %v20892_v60  ;;  %18084 = vmatmul.mubr.msk.f32.vlgmr.msra.gmra.mrb[108].mxu0 %vm1032_vm2, %v6987_v22  ;;  %v16328_v60 = vld [vmem:[%s22760_s5 + $0x18] sm:$0xff] }
 0xd02   : > { %v19662_v51 = vpop.eup %19661  ;;  %18092 = vmatpush3.msra.mxu0 %v20894_v11  ;;  %18098 = vmatprep.mubr.msk.f32.mxu1 %vm19936_vm1, %v19935_v26  ;;  %v6990_v24 = vmul.f32 %v19660_v44, %v19644_v17  ;;  %p19880_p2 = por %p19879_p1, %p19878_p0 }
 0xd03   : > { %18093 = vmatprep.mubr.msk.f32.mxu0 %vm19936_vm1, %v19935_v26  ;;  %v6989_v63 = vmul.f32 %v19662_v51, %v19646_v28  ;;  %18101 = vmatprep.subr.mxu0 %v16328_v60 }
 0xd04   : > { %18099 = vmatmul.mubr.msk.f32.vlgmr.msra.gmra.mrb[118].mxu1 %vm1032_vm2, %v6990_v24  ;;  %p19881_p3 = pnand %p19880_p2, %p19874_p13 }
 0xd05   : > { %18094 = vmatmul.mubr.msk.f32.vlgmr.msra.gmra.mrb[110].mxu0 %vm1032_vm2, %v6989_v63 }
 0xd06   : > { %18102 = vmatpush3.msra.mxu0 %v16328_v60 }
 0xd07   : > { %19108 = vmatprep.subr.bf16.mxu0 %v19107_v58 }
 0xdcb   : > { %v7133_v1 = vpop.f32.mrb[112].mxu1 }
 0xdcc   : > { %v7060_v11 = vpop.f32.mrb[104].mxu0  ;;  %v18070_v2 = vpop.f32.mrb[113].mxu1 }
 0xdcd   : > { %v18065_v4 = vpop.f32.mrb[105].mxu0  ;;  %18103 = vmatprep.mubr.msk.f32.mxu0 %vm1032_vm2, %v7060_v11 }
 0xdce   : > { %18104 = vmatmul.mubr.msk.f32.vlgmr.msra.gmra.mrb[58].mxu0 %vm1032_vm2, %v7133_v1 }
 0xdcf   : > { %v7279_v5 = vpop.f32.mrb[114].mxu1  ;;  %19110 = vmatpush3.bf16.msra.mxu0 %v19107_v58  ;;  %v21147_v58 = vld [vmem:[%s21067_s20 + $0x68] sm:$0xff] }
 0xdd0   : > { %v7206_v34 = vpop.f32.mrb[106].mxu0  ;;  %v18080_v40 = vpop.f32.mrb[115].mxu1 }
 0xdd1   : > { %v18075_v41 = vpop.f32.mrb[107].mxu0  ;;  %18106 = vmatprep.mubr.msk.f32.mxu0 %vm1032_vm2, %v7206_v34 }
 0xdd2   : > { %18107 = vmatmul.mubr.msk.f32.gmra.mrb[60].mxu0 %vm1032_vm2, %v7279_v5 }
 0xdd3   : > { %v7425_v6 = vpop.f32.mrb[116].mxu1 }
 0xdd4   : > { %v7352_v48 = vpop.f32.mrb[108].mxu0  ;;  %v18090_v7 = vpop.f32.mrb[117].mxu1 }
 0xdd5   : > { %v18085_v8 = vpop.f32.mrb[109].mxu0  ;;  %18109 = vmatprep.mubr.msk.f32.mxu0 %vm1032_vm2, %v7352_v48 }
 0xdd6   : > { %18110 = vmatmul.mubr.msk.f32.gmra.mrb[62].mxu0 %vm1032_vm2, %v7425_v6 }
 0xdd7   : > { %v7571_v42 = vpop.f32.mrb[118].mxu1 }
 0xdd8   : > { %v7498_v9 = vpop.f32.mrb[110].mxu0  ;;  %v18100_v32 = vpop.f32.mrb[119].mxu1 }
 0xdd9   : > { %v18095_v18 = vpop.f32.mrb[111].mxu0  ;;  %18112 = vmatprep.mubr.msk.f32.mxu0 %vm1032_vm2, %v7498_v9 }
 0xdda   : > { %18113 = vmatmul.mubr.msk.f32.gmra.mrb[64].mxu0 %vm1032_vm2, %v7571_v42 }
 0xea1   : > { %v18105_v62 = vpop.f32.mrb[58].mxu0 }
 0xea2   : > { %v7715_v61 = vadd.f32 %v19847_v27, %v18105_v62  ;;  %v7667_v25 = vpop.f32.mrb[59].mxu0 }
 0xea3   : > { %v7714_v20 = vadd.f32 %v19848_v23, %v7667_v25 }
 0xea4   : > { %v7727_v31 = vsel %vm684_vm0, %v7715_v61, 0.0 }
 0xea5   : > { %7728 = vadd.xlane.f32.xlu1 %v7727_v31  ;;  %v18108_v30 = vpop.f32.mrb[60].mxu0  ;;  %v7724_v46 = vsel %vm684_vm0, %v7714_v20, 0.0 }
 0xea6   : > { %v7717_v3 = vadd.f32 %v19849_v0, %v18108_v30  ;;  %7725 = vadd.xlane.f32.xlu0 %v7724_v46  ;;  %v7677_v39 = vpop.f32.mrb[61].mxu0 }
 0xea7   : > { %v7716_v12 = vadd.f32 %v19850_v37, %v7677_v39  ;;  %v7995_v37 = vld [vmem:[%s22764_s9 + $0x10] sm:$0xff] }
 0xea8   : > { %v7733_v13 = vsel %vm684_vm0, %v7717_v3, 0.0 }
 0xea9   : > { %7734 = vadd.xlane.f32.xlu1 %v7733_v13  ;;  %v18111_v14 = vpop.f32.mrb[62].mxu0  ;;  %v7730_v16 = vsel %vm684_vm0, %v7716_v12, 0.0 }
 0xeaa   : > { %v7719_v17 = vadd.f32 %v19851_v33, %v18111_v14  ;;  %7731 = vadd.xlane.f32.xlu0 %v7730_v16  ;;  %v7687_v28 = vpop.f32.mrb[63].mxu0  ;;  %v21070_v14 = vld [vmem:[%s21067_s20] sm:$0xff]  ;;  %v21075_v16 = vld [vmem:[%s21067_s20 + $0x8] sm:$0xff]  ;;  %v21080_v33 = vld [vmem:[%s21067_s20 + $0x10] sm:$0xff] }
 0xeab   : > { %v7718_v29 = vadd.f32 %v19852_v35, %v7687_v28  ;;  %18143 = vmatprep.mubr.msk.f32.mxu0 %vm684_vm0, %v21070_v14  ;;  %v7860_v28 = vld [vmem:[%s22763_s8] sm:$0xff]  ;;  %v7861_v35 = vld [vmem:[%s22763_s8 + $0x8] sm:$0xff] }
 0xeac   : > { %v7739_v45 = vsel %vm684_vm0, %v7719_v17, 0.0 }
 0xead   : > { %7740 = vadd.xlane.f32.xlu1 %v7739_v45  ;;  %v18114_v36 = vpop.f32.mrb[64].mxu0  ;;  %v7736_v47 = vsel %vm684_vm0, %v7718_v29, 0.0  ;;  %v19099_v45 = vpack.c.bf16 %v7861_v35, %v7860_v28  ;;  %v16338_v28 = vld [vmem:[%s22762_s7] ss:$0 sm:$0xff] }
 0xeae   : > { %v7721_v49 = vadd.f32 %v19853_v38, %v18114_v36  ;;  %7737 = vadd.xlane.f32.xlu0 %v7736_v47  ;;  %v7697_v52 = vpop.f32.mrb[65].mxu0  ;;  %v21101_v36 = vld [vmem:[%s21067_s20 + $0x28] sm:$0xff]  ;;  %v7862_v47 = vld [vmem:[%s22763_s8 + $0x10] sm:$0xff]  ;;  %v7863_v38 = vld [vmem:[%s22763_s8 + $0x18] sm:$0xff] }
 0xeaf   : > { %v7720_v54 = vadd.f32 %v19854_v53, %v7697_v52  ;;  %19100 = vmatprep.subr.bf16.mxu1 %v19099_v45  ;;  %v19103_v52 = vpack.c.bf16 %v7863_v38, %v7862_v47  ;;  %v21117_v53 = vld [vmem:[%s21067_s20 + $0x38] sm:$0xff]  ;;  %v8192_v38 = vld [vmem:[%s22765_s10 + $0x10] sm:$0xff] }
 0xeb0   : > { %v7745_v55 = vsel %vm684_vm0, %v7721_v49, 0.0  ;;  %19102 = vmatpush3.bf16.msra.mxu1 %v19099_v45 }
 0xeb1   : > { %7746 = vadd.xlane.f32.xlu1 %v7745_v55  ;;  %v7742_v50 = vsel %vm684_vm0, %v7720_v54, 0.0  ;;  %19104 = vmatprep.subr.bf16.mxu1 %v19103_v52  ;;  %v21127_v55 = vld [vmem:[%s21067_s20 + $0x48] sm:$0xff] }
 0xeb2   : > { %7743 = vadd.xlane.f32.xlu0 %v7742_v50  ;;  %v21132_v50 = vld [vmem:[%s21067_s20 + $0x50] sm:$0xff] }
 0xeb4   : > { %19106 = vmatpush3.bf16.msra.mxu1 %v19103_v52 }
 0xf32   : > { %v7729_v59 = vpop.xlane.xlu1 %7728 }
 0xf33   : > { %v7750_v15 = vmul.f32 0.03125, %v7729_v59  ;;  %v7726_v19 = vpop.xlane.xlu0 %7725  ;;  %v21152_v59 = vld [vmem:[%s21067_s20 + $0x70] sm:$0xff] }
 0xf34   : > { %v7749_v43 = vmul.f32 0.03125, %v7726_v19  ;;  %v8190_v19 = vld [vmem:[%s22765_s10] sm:$0xff] }
 0xf35   : > { %v21017_v10 = vsub.f32 %v7715_v61, %v7750_v15  ;;  %v21157_v15 = vld [vmem:[%s21067_s20 + $0x78] sm:$0xff] }
 0xf36   : > { %v21019_v21 = vsub.f32 %v7714_v20, %v7749_v43  ;;  %v7735_v22 = vpop.xlane.xlu1 %7734  ;;  %v8191_v43 = vld [vmem:[%s22765_s10 + $0x8] sm:$0xff] }
 0xf37   : > { %v7752_v44 = vmul.f32 0.03125, %v7735_v22  ;;  %v7732_v51 = vpop.xlane.xlu0 %7731  ;;  %v7766_v24 = vmul.f32 %v21017_v10, %v21017_v10  ;;  %v21167_v22 = vpack.c.bf16 %v8191_v43, %v8190_v19 }
 0xf38   : > { %v7751_v63 = vmul.f32 0.03125, %v7732_v51  ;;  %v7765_v60 = vmul.f32 %v21019_v21, %v21019_v21 }
 0xf39   : > { %v21025_v1 = vsub.f32 %v7717_v3, %v7752_v44  ;;  %v7776_v11 = vsel %vm684_vm0, %v7766_v24, 0.0  ;;  %19116 = vmatprep.subr.bf16.mxu1 %v21167_v22  ;;  %v19937_v44 = vmov 0.0|0.0  }
 0xf3a   : > { %v21028_v2 = vsub.f32 %v7716_v12, %v7751_v63  ;;  %v7741_v4 = vpop.xlane.xlu1 %7740  ;;  %7777 = vadd.xlane.f32.xlu1 %v7776_v11  ;;  %v7773_v5 = vsel %vm684_vm0, %v7765_v60, 0.0  ;;  %v7996_v12 = vld [vmem:[%s22764_s9 + $0x18] sm:$0xff] }
 0xf3b   : > { %v7754_v34 = vmul.f32 0.03125, %v7741_v4  ;;  %v7738_v40 = vpop.xlane.xlu0 %7737  ;;  %7774 = vadd.xlane.f32.xlu0 %v7773_v5  ;;  %v7768_v41 = vmul.f32 %v21025_v1, %v21025_v1  ;;  %v19111_v13 = vpack.c.bf16 %v7996_v12, %v7995_v37 }
 0xf3c   : > { %v7753_v6 = vmul.f32 0.03125, %v7738_v40  ;;  %v7767_v48 = vmul.f32 %v21028_v2, %v21028_v2 }
 0xf3d   : > { %v21035_v7 = vsub.f32 %v7719_v17, %v7754_v34  ;;  %v7782_v8 = vsel %vm684_vm0, %v7768_v41, 0.0  ;;  %19112 = vmatprep.subr.bf16.mxu0 %v19111_v13  ;;  %v21085_v17 = vld [vmem:[%s21067_s20 + $0x18] sm:$0xff] }
 0xf3e   : > { %v21038_v42 = vsub.f32 %v7718_v29, %v7753_v6  ;;  %7783 = vadd.xlane.f32.xlu1 %v7782_v8  ;;  %v7747_v9 = vpop.xlane.xlu1 %7746  ;;  %v7779_v32 = vsel %vm684_vm0, %v7767_v48, 0.0  ;;  %19114 = vmatpush3.bf16.msra.mxu0 %v19111_v13  ;;  %v21096_v29 = vld [vmem:[%s21067_s20 + $0x20] sm:$0xff] }
 0xf3f   : > { %v7756_v18 = vmul.f32 0.03125, %v7747_v9  ;;  %7780 = vadd.xlane.f32.xlu0 %v7779_v32  ;;  %v7744_v62 = vpop.xlane.xlu0 %7743  ;;  %v7770_v27 = vmul.f32 %v21035_v7, %v21035_v7  ;;  %19123 = vmatprep.subr.bf16.mxu0 %v19937_v44 }
 0xf40   : > { %v7755_v61 = vmul.f32 0.03125, %v7744_v62  ;;  %v7769_v25 = vmul.f32 %v21038_v42, %v21038_v42 }
 0xf41   : > { %v21045_v23 = vsub.f32 %v7721_v49, %v7756_v18  ;;  %v7788_v20 = vsel %vm684_vm0, %v7770_v27, 0.0  ;;  %18144 = vmatmul.mubr.msk.f32.vlgmr.msra.gmra.mrb[112].mxu0 %vm684_vm0, %v21075_v16  ;;  %v21112_v49 = vld [vmem:[%s21067_s20 + $0x30] sm:$0xff] }
 0xf42   : > { %v21048_v31 = vsub.f32 %v7720_v54, %v7755_v61  ;;  %7789 = vadd.xlane.f32.xlu1 %v7788_v20  ;;  %v7785_v30 = vsel %vm684_vm0, %v7769_v25, 0.0  ;;  %18146 = vmatprep.mubr.msk.f32.mxu0 %vm684_vm0, %v21080_v33  ;;  %v21122_v54 = vld [vmem:[%s21067_s20 + $0x40] sm:$0xff] }
 0xf43   : > { %7786 = vadd.xlane.f32.xlu0 %v7785_v30  ;;  %v7772_v46 = vmul.f32 %v21045_v23, %v21045_v23 }
 0xf44   : > { %v7771_v0 = vmul.f32 %v21048_v31, %v21048_v31 }
 0xf45   : > { %v7794_v3 = vsel %vm684_vm0, %v7772_v46, 0.0  ;;  %18147 = vmatmul.mubr.msk.f32.gmra.mrb[114].mxu0 %vm684_vm0, %v21085_v17 }
 0xf46   : > { %7795 = vadd.xlane.f32.xlu1 %v7794_v3  ;;  %v7791_v39 = vsel %vm684_vm0, %v7771_v0, 0.0  ;;  %18149 = vmatprep.mubr.msk.f32.mxu0 %vm684_vm0, %v21096_v29  ;;  %v16337_v3 = vld [vmem:[%s22761_s6] ss:$0 sm:$0xff] }
 0xf47   : > { %7792 = vadd.xlane.f32.xlu0 %v7791_v39 }
 0xf49   : > { %18150 = vmatmul.mubr.msk.f32.gmra.mrb[116].mxu0 %vm684_vm0, %v21101_v36 }
 0xf4a   : > { %18152 = vmatprep.mubr.msk.f32.mxu0 %vm684_vm0, %v21112_v49 }
 0xf4d   : > { %18153 = vmatmul.mubr.msk.f32.gmra.mrb[118].mxu0 %vm684_vm0, %v21117_v53 }
 0xf4e   : > { %18155 = vmatprep.mubr.msk.f32.mxu0 %vm684_vm0, %v21122_v54 }
 0xf51   : > { %18156 = vmatmul.mubr.msk.f32.gmra.mrb[120].mxu0 %vm684_vm0, %v21127_v55 }
 0xf52   : > { %18158 = vmatprep.mubr.msk.f32.mxu0 %vm684_vm0, %v21132_v50 }
 0xf55   : > { %18159 = vmatmul.mubr.msk.f32.gmra.mrb[122].mxu0 %vm684_vm0, %v21137_v56 }
 0xf56   : > { %18161 = vmatprep.mubr.msk.f32.mxu0 %vm684_vm0, %v21142_v57 }
 0xf59   : > { %18162 = vmatmul.mubr.msk.f32.gmra.mrb[124].mxu0 %vm684_vm0, %v21147_v58 }
 0xf5a   : > { %18164 = vmatprep.mubr.msk.f32.mxu0 %vm684_vm0, %v21152_v59 }
 0xf5d   : > { %18165 = vmatmul.mubr.msk.f32.gmra.mrb[126].mxu0 %vm684_vm0, %v21157_v15 }
 0xf5e   : > { %18203 = vmatprep.mubr.msk.f32.mxu0 %vm19936_vm1, %v19935_v26 }
 0xfc7   : > { %v7778_v51 = vpop.xlane.xlu1 %7777 }
 0xfc8   : > { %v7798_v24 = vmul.f32 0.03125, %v7778_v51  ;;  %v7775_v63 = vpop.xlane.xlu0 %7774 }
 0xfc9   : > { %v7797_v60 = vmul.f32 0.03125, %v7775_v63 }
 0xfca   : > { %v7806_v11 = vadd.f32 1e-05, %v7798_v24 }
 0xfcb   : > { %v7805_v4 = vadd.f32 1e-05, %v7797_v60  ;;  %v7784_v5 = vpop.xlane.xlu1 %7783 }
 0xfcc   : > { %19663 = vrsqrt.f32 %v7806_v11  ;;  %v7800_v34 = vmul.f32 0.03125, %v7784_v5  ;;  %v7781_v40 = vpop.xlane.xlu0 %7780 }
 0xfcd   : > { %19665 = vrsqrt.f32 %v7805_v4  ;;  %v7799_v41 = vmul.f32 0.03125, %v7781_v40 }
 0xfce   : > { %v7808_v6 = vadd.f32 1e-05, %v7800_v34 }
 0xfcf   : > { %v7807_v48 = vadd.f32 1e-05, %v7799_v41  ;;  %v7790_v8 = vpop.xlane.xlu1 %7789 }
 0xfd0   : > { %19667 = vrsqrt.f32 %v7808_v6  ;;  %v7802_v9 = vmul.f32 0.03125, %v7790_v8  ;;  %v7787_v32 = vpop.xlane.xlu0 %7786 }
 0xfd1   : > { %19669 = vrsqrt.f32 %v7807_v48  ;;  %v7801_v18 = vmul.f32 0.03125, %v7787_v32 }
 0xfd2   : > { %v7810_v62 = vadd.f32 1e-05, %v7802_v9 }
 0xfd3   : > { %v7809_v27 = vadd.f32 1e-05, %v7801_v18  ;;  %v7796_v61 = vpop.xlane.xlu1 %7795 }
 0xfd4   : > { %19671 = vrsqrt.f32 %v7810_v62  ;;  %v7804_v25 = vmul.f32 0.03125, %v7796_v61  ;;  %v7793_v20 = vpop.xlane.xlu0 %7792 }
 0xfd5   : > { %19673 = vrsqrt.f32 %v7809_v27  ;;  %v7803_v30 = vmul.f32 0.03125, %v7793_v20 }
 0xfd6   : > { %v19664_v46 = vpop.eup %19663  ;;  %v7812_v0 = vadd.f32 1e-05, %v7804_v25 }
 0xfd7   : > { %v19666_v39 = vpop.eup %19665  ;;  %v7822_v37 = vmul.f32 %v19664_v46, %v21017_v10  ;;  %v7811_v12 = vadd.f32 1e-05, %v7803_v30  ;;  %v8193_v10 = vld [vmem:[%s22765_s10 + $0x18] sm:$0xff] }
 0xfd8   : > { %v7821_v13 = vmul.f32 %v19666_v39, %v21019_v21  ;;  %19675 = vrsqrt.f32 %v7812_v0  ;;  %v19119_v63 = vpack.c.bf16 %v8193_v10, %v8192_v38 }
 0xfd9   : > { %19677 = vrsqrt.f32 %v7811_v12  ;;  %v7836_v35 = vmul.f32 %v16337_v3, %v7822_v37 }
 0xfda   : > { %v19668_v45 = vpop.eup %19667  ;;  %v7835_v47 = vmul.f32 %v16337_v3, %v7821_v13 }
 0xfdb   : > { %v19670_v52 = vpop.eup %19669  ;;  %v7824_v21 = vmul.f32 %v19668_v45, %v21025_v1  ;;  %v21191_v51 = vadd.f32 %v16338_v28, %v7836_v35 }
 0xfdc   : > { %v7823_v19 = vmul.f32 %v19670_v52, %v21028_v2  ;;  %v21189_v43 = vadd.f32 %v16338_v28, %v7835_v47 }
 0xfdd   : > { %v7838_v24 = vmul.f32 %v16337_v3, %v7824_v21 }
 0xfde   : > { %v19672_v60 = vpop.eup %19671  ;;  %18123 = vmatprep.mubr.msk.f32.mxu1 %vm684_vm0, %v21189_v43  ;;  %v7837_v11 = vmul.f32 %v16337_v3, %v7823_v19 }
 0xfdf   : > { %v19674_v4 = vpop.eup %19673  ;;  %v7826_v5 = vmul.f32 %v19672_v60, %v21035_v7  ;;  %18124 = vmatmul.mubr.msk.f32.vlgmr.msra.gmra.mrb[120].mxu1 %vm684_vm0, %v21191_v51  ;;  %v21202_v34 = vadd.f32 %v16338_v28, %v7838_v24 }
 0xfe0   : > { %v7825_v1 = vmul.f32 %v19674_v4, %v21038_v42  ;;  %v21199_v2 = vadd.f32 %v16338_v28, %v7837_v11  ;;  %19118 = vmatpush3.bf16.msra.mxu1 %v21167_v22 }
 0xfe1   : > { %v7840_v40 = vmul.f32 %v16337_v3, %v7826_v5  ;;  %19120 = vmatprep.subr.bf16.mxu1 %v19119_v63 }
 0xfe2   : > { %v19676_v41 = vpop.eup %19675  ;;  %18126 = vmatprep.mubr.msk.f32.mxu1 %vm684_vm0, %v21199_v2  ;;  %v7839_v6 = vmul.f32 %v16337_v3, %v7825_v1 }
 0xfe3   : > { %v19678_v48 = vpop.eup %19677  ;;  %v7828_v7 = vmul.f32 %v19676_v41, %v21045_v23  ;;  %18127 = vmatmul.mubr.msk.f32.gmra.mrb[122].mxu1 %vm684_vm0, %v21202_v34  ;;  %v21212_v22 = vadd.f32 %v16338_v28, %v7840_v40 }
 0xfe4   : > { %v7827_v42 = vmul.f32 %v19678_v48, %v21048_v31  ;;  %v21210_v8 = vadd.f32 %v16338_v28, %v7839_v6  ;;  %19122 = vmatpush3.bf16.msra.mxu1 %v19119_v63 }
 0xfe5   : > { %v7842_v9 = vmul.f32 %v16337_v3, %v7828_v7  ;;  %19127 = vmatprep.subr.bf16.mxu1 %v19937_v44 }
 0xfe6   : > { %18129 = vmatprep.mubr.msk.f32.mxu1 %vm684_vm0, %v21210_v8  ;;  %v7841_v32 = vmul.f32 %v16337_v3, %v7827_v42 }
 0xfe7   : > { %18130 = vmatmul.mubr.msk.f32.gmra.mrb[124].mxu1 %vm684_vm0, %v21212_v22  ;;  %v21221_v18 = vadd.f32 %v16338_v28, %v7842_v9 }
 0xfe8   : > { %v21219_v23 = vadd.f32 %v16338_v28, %v7841_v32 }
 0xfea   : > { %18132 = vmatprep.mubr.msk.f32.mxu1 %vm684_vm0, %v21219_v23 }
 0xfeb   : > { %18133 = vmatmul.mubr.msk.f32.gmra.mrb[126].mxu1 %vm684_vm0, %v21221_v18 }
 0xfec   : > { %18175 = vmatprep.mubr.msk.f32.mxu1 %vm684_vm0, %v21070_v14 }
 0xfef   : > { %18176 = vmatmul.mubr.msk.f32.vlgmr.msra.gmra.mrb[128].mxu1 %vm684_vm0, %v21075_v16 }
 0xff0   : > { %18178 = vmatprep.mubr.msk.f32.mxu1 %vm684_vm0, %v21080_v33 }
 0xff3   : > { %18179 = vmatmul.mubr.msk.f32.gmra.mrb[130].mxu1 %vm684_vm0, %v21085_v17 }
 0xff4   : > { %18181 = vmatprep.mubr.msk.f32.mxu1 %vm684_vm0, %v21096_v29 }
 0xff7   : > { %18182 = vmatmul.mubr.msk.f32.gmra.mrb[132].mxu1 %vm684_vm0, %v21101_v36 }
 0xff8   : > { %18184 = vmatprep.mubr.msk.f32.mxu1 %vm684_vm0, %v21112_v49 }
 0xffb   : > { %18185 = vmatmul.mubr.msk.f32.gmra.mrb[134].mxu1 %vm684_vm0, %v21117_v53 }
 0xffc   : > { %18187 = vmatprep.mubr.msk.f32.mxu1 %vm684_vm0, %v21122_v54 }
 0xfff   : > { %18188 = vmatmul.mubr.msk.f32.gmra.mrb[136].mxu1 %vm684_vm0, %v21127_v55 }
0x1000   : > { %18190 = vmatprep.mubr.msk.f32.mxu1 %vm684_vm0, %v21132_v50 }
0x1003   : > { %18191 = vmatmul.mubr.msk.f32.gmra.mrb[138].mxu1 %vm684_vm0, %v21137_v56 }
0x1004   : > { %18193 = vmatprep.mubr.msk.f32.mxu1 %vm684_vm0, %v21142_v57 }
0x1007   : > { %18194 = vmatmul.mubr.msk.f32.gmra.mrb[140].mxu1 %vm684_vm0, %v21147_v58 }
0x1008   : > { %18196 = vmatprep.mubr.msk.f32.mxu1 %vm684_vm0, %v21152_v59 }
0x100b   : > { %18197 = vmatmul.mubr.msk.f32.gmra.mrb[142].mxu1 %vm684_vm0, %v21157_v15 }
0x100c   : > { %18210 = vmatprep.mubr.msk.f32.mxu1 %vm19936_vm1, %v19935_v26 }
0x1014   : > { %v18145_v31 = vpop.f32.mrb[112].mxu0 }
0x1015   : > { %v8111_v62 = vpop.f32.mrb[113].mxu0 }
0x1016   : > { %v19124_v61 = vpack.c.bf16 %v18145_v31, %v8111_v62 }
0x1018   : > { %v18148_v25 = vpop.f32.mrb[114].mxu0  ;;  %19126 = vmatpush3.bf16.xpose.msk.msra.mxu0 %vm21263_vm3, %v19124_v61 }
0x1019   : > { %v8121_v20 = vpop.f32.mrb[115].mxu0  ;;  %19131 = vmatprep.subr.bf16.mxu0 %v19937_v44 }
0x101a   : > { %v19128_v30 = vpack.c.bf16 %v18148_v25, %v8121_v20 }
0x101c   : > { %v18151_v46 = vpop.f32.mrb[116].mxu0  ;;  %19130 = vmatpush3.bf16.xpose.msk.msra.mxu1 %vm21263_vm3, %v19128_v30 }
0x101d   : > { %v8131_v0 = vpop.f32.mrb[117].mxu0  ;;  %19135 = vmatprep.subr.bf16.mxu1 %v19937_v44 }
0x101e   : > { %v19132_v3 = vpack.c.bf16 %v18151_v46, %v8131_v0 }
0x1020   : > { %v18154_v39 = vpop.f32.mrb[118].mxu0 }
0x1021   : > { %v8141_v37 = vpop.f32.mrb[119].mxu0 }
0x1022   : > { %v19136_v12 = vpack.c.bf16 %v18154_v39, %v8141_v37 }
0x1024   : > { %v18157_v13 = vpop.f32.mrb[120].mxu0 }
0x1025   : > { %v8151_v28 = vpop.f32.mrb[121].mxu0 }
0x1026   : > { %v19140_v35 = vpack.c.bf16 %v18157_v13, %v8151_v28 }
0x1028   : > { %v18160_v45 = vpop.f32.mrb[122].mxu0 }
0x1029   : > { %v8161_v47 = vpop.f32.mrb[123].mxu0 }
0x102a   : > { %v19144_v38 = vpack.c.bf16 %v18160_v45, %v8161_v47 }
0x102c   : > { %v18163_v10 = vpop.f32.mrb[124].mxu0 }
0x102d   : > { %v8171_v52 = vpop.f32.mrb[125].mxu0 }
0x102e   : > { %v19148_v21 = vpack.c.bf16 %v18163_v10, %v8171_v52  ;;  %v7857_v52 = vlaneseq }
0x1030   : > { %v18166_v19 = vpop.f32.mrb[126].mxu0 }
0x1031   : > { %v8181_v24 = vpop.f32.mrb[127].mxu0 }
0x1032   : > { %v19152_v63 = vpack.c.bf16 %v18166_v19, %v8181_v24 }
0x10b2   : > { %v18125_v60 = vpop.f32.mrb[120].mxu1 }
0x10b3   : > { %v7954_v11 = vpop.f32.mrb[121].mxu1  ;;  %18211 = vmatmul.mubr.msk.f32.vlgmr.msra.gmra.mrb[144].mxu1 %vm1032_vm2, %v18125_v60 }
0x10b4   : > { %19138 = vmatpush3.bf16.xpose.msk.msra.mxu1 %vm21263_vm3, %v19136_v12  ;;  %18204 = vmatmul.mubr.msk.f32.vlgmr.msra.gmra.mrb[128].mxu0 %vm1032_vm2, %v7954_v11 }
0x10b5   : > { %19134 = vmatpush3.bf16.xpose.msk.msra.mxu0 %vm21263_vm3, %v19132_v3  ;;  %18224 = vmatprep.mubr.msk.f32.mxu1 %vm19936_vm1, %v19935_v26 }
0x10b6   : > { %v18128_v4 = vpop.f32.mrb[122].mxu1  ;;  %18217 = vmatprep.mubr.msk.f32.mxu0 %vm19936_vm1, %v19935_v26  ;;  %19143 = vmatprep.subr.bf16.mxu1 %v19937_v44 }
0x10b7   : > { %v7964_v5 = vpop.f32.mrb[123].mxu1  ;;  %19139 = vmatprep.subr.bf16.mxu0 %v19937_v44 }
0x10ba   : > { %v18131_v1 = vpop.f32.mrb[124].mxu1 }
0x10bb   : > { %18225 = vmatmul.mubr.msk.f32.vlgmr.msra.gmra.mrb[146].mxu1 %vm1032_vm2, %v18128_v4  ;;  %v7974_v40 = vpop.f32.mrb[125].mxu1 }
0x10bc   : > { %18218 = vmatmul.mubr.msk.f32.vlgmr.msra.gmra.mrb[130].mxu0 %vm1032_vm2, %v7964_v5  ;;  %19146 = vmatpush3.bf16.xpose.msk.msra.mxu1 %vm21263_vm3, %v19144_v38 }
0x10bd   : > { %19142 = vmatpush3.bf16.xpose.msk.msra.mxu0 %vm21263_vm3, %v19140_v35  ;;  %18238 = vmatprep.mubr.msk.f32.mxu1 %vm19936_vm1, %v19935_v26 }
0x10be   : > { %v18134_v41 = vpop.f32.mrb[126].mxu1  ;;  %18231 = vmatprep.mubr.msk.f32.mxu0 %vm19936_vm1, %v19935_v26  ;;  %19151 = vmatprep.subr.bf16.mxu1 %v19937_v44 }
0x10bf   : > { %v7984_v6 = vpop.f32.mrb[127].mxu1  ;;  %19147 = vmatprep.subr.bf16.mxu0 %v19937_v44 }
0x10c2   : > { %v18177_v48 = vpop.f32.mrb[128].mxu1 }
0x10c3   : > { %18239 = vmatmul.mubr.msk.f32.vlgmr.msra.gmra.mrb[148].mxu1 %vm1032_vm2, %v18131_v1  ;;  %v8260_v7 = vpop.f32.mrb[129].mxu1 }
0x10c4   : > { %18232 = vmatmul.mubr.msk.f32.vlgmr.msra.gmra.mrb[132].mxu0 %vm1032_vm2, %v7974_v40  ;;  %19154 = vmatpush3.bf16.xpose.msk.msra.mxu1 %vm21263_vm3, %v19152_v63  ;;  %v19156_v42 = vpack.c.bf16 %v18177_v48, %v8260_v7 }
0x10c5   : > { %19150 = vmatpush3.bf16.xpose.msk.msra.mxu0 %vm21263_vm3, %v19148_v21  ;;  %18252 = vmatprep.mubr.msk.f32.mxu1 %vm19936_vm1, %v19935_v26  ;;  %v21353_v21 = vand.u32 127, %v7857_v52 }
0x10c6   : > { %18245 = vmatprep.mubr.msk.f32.mxu0 %vm19936_vm1, %v19935_v26  ;;  %19155 = vmatprep.subr.bf16.mxu0 %v19937_v44  ;;  %v21308_v9 = vpop.f32.mrb[130].mxu1 }
0x10c7   : > { %v21310_v32 = vpop.f32.mrb[131].mxu1  ;;  %19161 = vmatprep.subr.bf16.mxu1 %v19937_v44  ;;  %vm7859_vm4 = vcmp.lt.s32.totalorder %v21353_v21, 9 }
0x10c8   : > { %v19159_v31 = vpack.c.bf16 %v21308_v9, %v21310_v32 }
0x10ca   : > { %v18183_v62 = vpop.f32.mrb[132].mxu1 }
0x10cb   : > { %18253 = vmatmul.mubr.msk.f32.vlgmr.msra.gmra.mrb[150].mxu1 %vm1032_vm2, %v18134_v41  ;;  %v8280_v61 = vpop.f32.mrb[133].mxu1 }
0x10cc   : > { %18246 = vmatmul.mubr.msk.f32.vlgmr.msra.gmra.mrb[134].mxu0 %vm1032_vm2, %v7984_v6  ;;  %v19162_v25 = vpack.c.bf16 %v18183_v62, %v8280_v61  ;;  %18273 = vmatprep.mubr.msk.f32.mxu1 %vm19936_vm1, %v19935_v26 }
0x10cd   : > { %19157 = vmatpush3.bf16.msra.mxu0 %v19156_v42  ;;  %18259 = vmatprep.mubr.msk.f32.mxu0 %vm19936_vm1, %v19935_v26 }
0x10ce   : > { %v21321_v20 = vpop.f32.mrb[134].mxu1  ;;  %19163 = vmatpush3.bf16.msra.mxu1 %v19162_v25  ;;  %19158 = vmatprep.subr.bf16.mxu0 %v19937_v44 }
0x10cf   : > { %v21324_v30 = vpop.f32.mrb[135].mxu1  ;;  %19167 = vmatprep.subr.bf16.mxu1 %v19937_v44 }
0x10d2   : > { %v21329_v0 = vpop.f32.mrb[136].mxu1 }
0x10d3   : > { %v21331_v3 = vpop.f32.mrb[137].mxu1 }
0x10d6   : > { %v21335_v37 = vpop.f32.mrb[138].mxu1 }
0x10d7   : > { %v21337_v12 = vpop.f32.mrb[139].mxu1 }
0x10d8   : > { %v22816_v32 = vpack.c.bf16 %v21335_v37, %v21337_v12 }
0x10da   : > { %v21341_v28 = vpop.f32.mrb[140].mxu1 }
0x10db   : > { %v21343_v35 = vpop.f32.mrb[141].mxu1 }
0x10de   : > { %v21347_v47 = vpop.f32.mrb[142].mxu1 }
0x10df   : > { %v21349_v38 = vpop.f32.mrb[143].mxu1 }
0x1186   : > { %v8493_v19 = vpop.f32.mrb[144].mxu1 }
0x1187   : > { %v8972_v24 = vmul.f32 0.35355338, %v8493_v19  ;;  %v8414_v63 = vpop.f32.mrb[128].mxu0  ;;  %v18212_v60 = vpop.f32.mrb[145].mxu1 }
0x1188   : > { %v8971_v11 = vmul.f32 0.35355338, %v8414_v63  ;;  %v18205_v4 = vpop.f32.mrb[129].mxu0 }
0x1189   : > { %v8982_v5 = vsel %vm7859_vm4, %v8972_v24, -1e+30 }
0x118a   : > { %v8993_v1 = vsel %vm8989_vm5, %v8982_v5, -inf  ;;  %v8981_v40 = vsel %vm7859_vm4, %v8971_v11, -1e+30 }
0x118b   : > { %8994 = vmax.xlane.f32.xlu1 %v8993_v1  ;;  %v8990_v41 = vsel %vm8989_vm5, %v8981_v40, -inf }
0x118c   : > { %8991 = vmax.xlane.f32.xlu0 %v8990_v41 }
0x118e   : > { %v8651_v6 = vpop.f32.mrb[146].mxu1 }
0x118f   : > { %v8974_v48 = vmul.f32 0.35355338, %v8651_v6  ;;  %v8572_v7 = vpop.f32.mrb[130].mxu0  ;;  %v18226_v42 = vpop.f32.mrb[147].mxu1 }
0x1190   : > { %v18219_v62 = vpop.f32.mrb[131].mxu0  ;;  %v8973_v19 = vmul.f32 0.35355338, %v8572_v7 }
0x1191   : > { %v8984_v61 = vsel %vm7859_vm4, %v8974_v48, -1e+30 }
0x1192   : > { %v8999_v25 = vsel %vm8989_vm5, %v8984_v61, -inf  ;;  %v8983_v41 = vsel %vm7859_vm4, %v8973_v19, -1e+30 }
0x1193   : > { %9000 = vmax.xlane.f32.xlu0 %v8999_v25  ;;  %v8996_v48 = vsel %vm8989_vm5, %v8983_v41, -inf }
0x1196   : > { %v8809_v52 = vpop.f32.mrb[148].mxu1 }
0x1197   : > { %v8976_v24 = vmul.f32 0.35355338, %v8809_v52  ;;  %v8730_v63 = vpop.f32.mrb[132].mxu0  ;;  %v18240_v60 = vpop.f32.mrb[149].mxu1 }
0x1198   : > { %v18233_v11 = vpop.f32.mrb[133].mxu0  ;;  %v8975_v42 = vmul.f32 0.35355338, %v8730_v63 }
0x1199   : > { %v8986_v4 = vsel %vm7859_vm4, %v8976_v24, -1e+30 }
0x119a   : > { %v9005_v1 = vsel %vm8989_vm5, %v8986_v4, -inf  ;;  %v8985_v63 = vsel %vm7859_vm4, %v8975_v42, -1e+30 }
0x119b   : > { %9006 = vmax.xlane.f32.xlu1 %v9005_v1 }
0x119e   : > { %v8967_v6 = vpop.f32.mrb[150].mxu1 }
0x119f   : > { %v8978_v62 = vmul.f32 0.35355338, %v8967_v6  ;;  %v8888_v25 = vpop.f32.mrb[134].mxu0  ;;  %8997 = vmax.xlane.f32.xlu1 %v8996_v48  ;;  %v18254_v7 = vpop.f32.mrb[151].mxu1  ;;  %v9002_v6 = vsel %vm8989_vm5, %v8985_v63, -inf }
0x11a0   : > { %v8977_v52 = vmul.f32 0.35355338, %v8888_v25  ;;  %v18247_v60 = vpop.f32.mrb[135].mxu0 }
0x11a1   : > { %v8988_v11 = vsel %vm7859_vm4, %v8978_v62, -1e+30 }
0x11a2   : > { %v9011_v24 = vsel %vm8989_vm5, %v8988_v11, -inf  ;;  %v8987_v1 = vsel %vm7859_vm4, %v8977_v52, -1e+30 }
0x11a3   : > { %9012 = vmax.xlane.f32.xlu0 %v9011_v24  ;;  %v9008_v19 = vsel %vm8989_vm5, %v8987_v1, -inf }
0x11a4   : > { %9009 = vmax.xlane.f32.xlu1 %v9008_v19 }
0x11a7   : > { %9003 = vmax.xlane.f32.xlu0 %v9002_v6 }
0x1218   : > { %v8995_v48 = vpop.xlane.xlu1 %8994 }
0x1219   : > { %v9015_v25 = vsub.f32 %v8982_v5, %v8995_v48  ;;  %v8992_v7 = vpop.xlane.xlu0 %8991 }
0x121a   : > { %v9014_v60 = vsub.f32 %v8981_v40, %v8992_v7 }
0x121b   : > { %v9024_v62 = vmul.f32 1.442695, %v9015_v25 }
0x121c   : > { %v9022_v45 = vmul.f32 1.442695, %v9014_v60 }
0x121d   : > { %19679 = vpow2.f32 %v9024_v62 }
0x121e   : > { %19681 = vpow2.f32 %v9022_v45 }
0x1220   : > { %v9001_v39 = vpop.xlane.xlu0 %9000 }
0x1221   : > { %v9017_v52 = vsub.f32 %v8984_v61, %v9001_v39 }
0x1223   : > { %v9028_v24 = vmul.f32 1.442695, %v9017_v52 }
0x1225   : > { %19683 = vpow2.f32 %v9028_v24 }
0x1227   : > { %v19680_v10 = vpop.eup %19679 }
0x1228   : > { %v19682_v13 = vpop.eup %19681  ;;  %v9007_v46 = vpop.xlane.xlu1 %9006  ;;  %v9041_v42 = vsel %vm8989_vm5, %v19680_v10, 0.0 }
0x1229   : > { %v9019_v19 = vsub.f32 %v8986_v4, %v9007_v46  ;;  %9042 = vadd.xlane.f32.xlu1 %v9041_v42  ;;  %v9038_v6 = vsel %vm8989_vm5, %v19682_v13, 0.0 }
0x122a   : > { %9039 = vadd.xlane.f32.xlu0 %v9038_v6 }
0x122b   : > { %v9032_v5 = vmul.f32 1.442695, %v9019_v19 }
0x122c   : > { %v8998_v40 = vpop.xlane.xlu1 %8997 }
0x122d   : > { %19685 = vpow2.f32 %v9032_v5  ;;  %v9016_v48 = vsub.f32 %v8983_v41, %v8998_v40 }
0x122f   : > { %v19684_v25 = vpop.eup %19683  ;;  %v9026_v45 = vmul.f32 1.442695, %v9016_v48 }
0x1230   : > { %v9013_v7 = vpop.xlane.xlu0 %9012  ;;  %v9047_v39 = vsel %vm8989_vm5, %v19684_v25, 0.0 }
0x1231   : > { %19687 = vpow2.f32 %v9026_v45  ;;  %v9021_v61 = vsub.f32 %v8988_v11, %v9013_v7  ;;  %v9010_v60 = vpop.xlane.xlu1 %9009  ;;  %9048 = vadd.xlane.f32.xlu0 %v9047_v39 }
0x1232   : > { %v9020_v62 = vsub.f32 %v8987_v1, %v9010_v60 }
0x1233   : > { %v9036_v52 = vmul.f32 1.442695, %v9021_v61 }
0x1234   : > { %v9034_v46 = vmul.f32 1.442695, %v9020_v62  ;;  %v9004_v4 = vpop.xlane.xlu0 %9003 }
0x1235   : > { %19689 = vpow2.f32 %v9036_v52  ;;  %v9018_v24 = vsub.f32 %v8985_v63, %v9004_v4 }
0x1236   : > { %19691 = vpow2.f32 %v9034_v46 }
0x1237   : > { %v19686_v42 = vpop.eup %19685  ;;  %v9030_v19 = vmul.f32 1.442695, %v9018_v24 }
0x1238   : > { %v9053_v41 = vsel %vm8989_vm5, %v19686_v42, 0.0 }
0x1239   : > { %19693 = vpow2.f32 %v9030_v19  ;;  %9054 = vadd.xlane.f32.xlu1 %v9053_v41 }
0x123b   : > { %v19688_v6 = vpop.eup %19687 }
0x123c   : > { %v9044_v5 = vsel %vm8989_vm5, %v19688_v6, 0.0 }
0x123d   : > { %9045 = vadd.xlane.f32.xlu1 %v9044_v5 }
0x123f   : > { %v19690_v11 = vpop.eup %19689 }
0x1240   : > { %v21385_v40 = vpop.eup %19691  ;;  %v9059_v1 = vsel %vm8989_vm5, %v19690_v11, 0.0 }
0x1241   : > { %9060 = vadd.xlane.f32.xlu0 %v9059_v1  ;;  %v9056_v63 = vsel %vm8989_vm5, %v21385_v40, 0.0  ;;  %v22817_v1 = vpack.c.bf16 %v21347_v47, %v21349_v38  ;;  %v22818_v47 = vpack.c.bf16 %v21329_v0, %v21331_v3 }
0x1242   : > { %9057 = vadd.xlane.f32.xlu1 %v9056_v63 }
0x1243   : > { %v21390_v48 = vpop.eup %19693 }
0x1244   : > { %v9050_v45 = vsel %vm8989_vm5, %v21390_v48, 0.0 }
0x1245   : > { %9051 = vadd.xlane.f32.xlu0 %v9050_v45  ;;  %v16426_v45 = vld [vmem:[%s22764_s9 + $0x38] sm:$0xff] }
0x12b6   : > { %v9043_v7 = vpop.xlane.xlu1 %9042 }
0x12b7   : > { %v9040_v39 = vpop.xlane.xlu0 %9039 }
0x12b8   : > { %19695 = vrcp.f32 %v9040_v39  ;;  %v16411_v39 = vld [vmem:[%s22763_s8 + $0x20] sm:$0xff] }
0x12b9   : > { %19697 = vrcp.f32 %v9043_v7 }
0x12be   : > { %v9049_v61 = vpop.xlane.xlu0 %9048 }
0x12bf   : > { %19699 = vrcp.f32 %v9049_v61  ;;  %v16412_v61 = vld [vmem:[%s22763_s8 + $0x28] sm:$0xff] }
0x12c0   : > { %v19179_v3 = vpack.c.bf16 %v16412_v61, %v16411_v39 }
0x12c2   : > { %v19696_v60 = vpop.eup %19695 }
0x12c3   : > { %v9070_v62 = vmul.f32 %v19696_v60, %v19682_v13  ;;  %v19698_v52 = vpop.eup %19697  ;;  %v22815_v13 = vpack.c.bf16 %v21321_v20, %v21324_v30  ;;  %v16423_v20 = vld [vmem:[%s22764_s9 + $0x20] sm:$0xff]  ;;  %v16424_v30 = vld [vmem:[%s22764_s9 + $0x28] sm:$0xff] }
0x12c4   : > { %v9071_v4 = vmul.f32 %v19698_v52, %v19680_v10  ;;  %v19187_v12 = vpack.c.bf16 %v16424_v30, %v16423_v20  ;;  %v16414_v52 = vld [vmem:[%s22763_s8 + $0x38] sm:$0xff] }
0x12c5   : > { %18260 = vmatmul.mubr.msk.f32.vlgmr.msra.gmra.mrb[136].mxu0 %vm8989_vm5, %v9070_v62  ;;  %v16413_v62 = vld [vmem:[%s22763_s8 + $0x30] sm:$0xff] }
0x12c6   : > { %v9055_v46 = vpop.xlane.xlu1 %9054  ;;  %19160 = vmatpush3.bf16.msra.mxu0 %v19159_v31  ;;  %18266 = vmatprep.mubr.msk.f32.mxu0 %vm19936_vm1, %v19935_v26 }
0x12c7   : > { %19701 = vrcp.f32 %v9055_v46  ;;  %19164 = vmatprep.subr.bf16.mxu0 %v19937_v44  ;;  %v22819_v46 = vpack.c.bf16 %v21341_v28, %v21343_v35  ;;  %v16443_v28 = vld [vmem:[%s22765_s10 + $0x20] sm:$0xff] }
0x12c9   : > { %v19700_v24 = vpop.eup %19699  ;;  %18267 = vmatmul.mubr.msk.f32.vlgmr.msra.gmra.mrb[138].mxu0 %vm8989_vm5, %v9071_v4  ;;  %v19183_v4 = vpack.c.bf16 %v16414_v52, %v16413_v62 }
0x12ca   : > { %v9046_v19 = vpop.xlane.xlu1 %9045  ;;  %19166 = vmatpush3.bf16.msra.mxu0 %v22815_v13  ;;  %18280 = vmatprep.mubr.msk.f32.mxu0 %vm19936_vm1, %v19935_v26  ;;  %v9073_v9 = vmul.f32 %v19700_v24, %v19684_v25  ;;  %v16446_v24 = vld [vmem:[%s22765_s10 + $0x38] sm:$0xff] }
0x12cb   : > { %19703 = vrcp.f32 %v9046_v19  ;;  %19170 = vmatprep.subr.bf16.mxu0 %v19937_v44 }
0x12cd   : > { %18281 = vmatmul.mubr.msk.f32.vlgmr.msra.gmra.mrb[140].mxu0 %vm8989_vm5, %v9073_v9 }
0x12ce   : > { %19172 = vmatpush3.bf16.msra.mxu0 %v22816_v32  ;;  %v9061_v31 = vpop.xlane.xlu0 %9060  ;;  %18294 = vmatprep.mubr.msk.f32.mxu0 %vm19936_vm1, %v19935_v26 }
0x12cf   : > { %19705 = vrcp.f32 %v9061_v31  ;;  %19176 = vmatprep.subr.bf16.mxu0 %v19937_v44  ;;  %v9058_v41 = vpop.xlane.xlu1 %9057 }
0x12d1   : > { %v19702_v10 = vpop.eup %19701 }
0x12d2   : > { %v9075_v25 = vmul.f32 %v19702_v10, %v19686_v42  ;;  %v9052_v37 = vpop.xlane.xlu0 %9051  ;;  %v16425_v42 = vld [vmem:[%s22764_s9 + $0x30] sm:$0xff] }
0x12d3   : > { %19707 = vrcp.f32 %v9052_v37 }
0x12d4   : > { %18295 = vmatmul.mubr.msk.f32.vlgmr.msra.gmra.mrb[142].mxu0 %vm8989_vm5, %v9075_v25  ;;  %19709 = vrcp.f32 %v9058_v41 }
0x12d5   : > { %v19704_v5 = vpop.eup %19703  ;;  %19178 = vmatpush3.bf16.msra.mxu0 %v22817_v1  ;;  %18308 = vmatprep.mubr.msk.f32.mxu0 %vm19936_vm1, %v19935_v26 }
0x12d6   : > { %v9072_v63 = vmul.f32 %v19704_v5, %v19688_v6  ;;  %19188 = vmatprep.subr.bf16.mxu0 %v19187_v12  ;;  %v19191_v6 = vpack.c.bf16 %v16426_v45, %v16425_v42 }
0x12d8   : > { %18274 = vmatmul.mubr.msk.f32.vlgmr.msra.gmra.mrb[152].mxu1 %vm8989_vm5, %v9072_v63 }
0x12d9   : > { %v19706_v7 = vpop.eup %19705  ;;  %19169 = vmatpush3.bf16.msra.mxu1 %v22818_v47  ;;  %18287 = vmatprep.mubr.msk.f32.mxu1 %vm19936_vm1, %v19935_v26 }
0x12da   : > { %v9077_v38 = vmul.f32 %v19706_v7, %v19690_v11  ;;  %19173 = vmatprep.subr.bf16.mxu1 %v19937_v44 }
0x12dc   : > { %18309 = vmatmul.mubr.msk.f32.vlgmr.msra.gmra.mrb[144].mxu0 %vm8989_vm5, %v9077_v38 }
0x12dd   : > { %v19708_v60 = vpop.eup %19707  ;;  %19190 = vmatpush3.bf16.msra.mxu0 %v19187_v12  ;;  %18339 = vmatprep.mubr.msk.f32.mxu0 %vm684_vm0, %v21070_v14 }
0x12de   : > { %v9074_v0 = vmul.f32 %v19708_v60, %v21390_v48  ;;  %19192 = vmatprep.subr.bf16.mxu0 %v19191_v6  ;;  %v19710_v11 = vpop.eup %19709 }
0x12df   : > { %v9076_v48 = vmul.f32 %v19710_v11, %v21385_v40  ;;  %v16445_v40 = vld [vmem:[%s22765_s10 + $0x30] sm:$0xff] }
0x12e0   : > { %18288 = vmatmul.mubr.msk.f32.vlgmr.msra.gmra.mrb[154].mxu1 %vm8989_vm5, %v9074_v0  ;;  %v19199_v19 = vpack.c.bf16 %v16446_v24, %v16445_v40 }
0x12e1   : > { %19175 = vmatpush3.bf16.msra.mxu1 %v22819_v46  ;;  %19194 = vmatpush3.bf16.msra.mxu0 %v19191_v6 }
0x12e2   : > { %18301 = vmatprep.mubr.msk.f32.mxu1 %vm19936_vm1, %v19935_v26  ;;  %19180 = vmatprep.subr.bf16.mxu1 %v19179_v3 }
0x12e3   : > { %19203 = vmatprep.subr.bf16.mxu0 %v19937_v44 }
0x12e4   : > { %18340 = vmatmul.mubr.msk.f32.vlgmr.msra.gmra.mrb[146].mxu0 %vm684_vm0, %v21075_v16  ;;  %18302 = vmatmul.mubr.msk.f32.vlgmr.msra.gmra.mrb[156].mxu1 %vm8989_vm5, %v9076_v48 }
0x12e5   : > { %19182 = vmatpush3.bf16.msra.mxu1 %v19179_v3  ;;  %18319 = vmatprep.mubr.msk.f32.mxu1 %vm684_vm0, %v21189_v43 }
0x12e6   : > { %18342 = vmatprep.mubr.msk.f32.mxu0 %vm684_vm0, %v21080_v33  ;;  %19184 = vmatprep.subr.bf16.mxu1 %v19183_v4 }
0x12e8   : > { %18343 = vmatmul.mubr.msk.f32.gmra.mrb[148].mxu0 %vm684_vm0, %v21085_v17 }
0x12e9   : > { %19186 = vmatpush3.bf16.msra.mxu1 %v19183_v4  ;;  %18345 = vmatprep.mubr.msk.f32.mxu0 %vm684_vm0, %v21096_v29 }
0x12ec   : > { %18320 = vmatmul.mubr.msk.f32.vlgmr.msra.gmra.mrb[158].mxu1 %vm684_vm0, %v21191_v51  ;;  %18346 = vmatmul.mubr.msk.f32.gmra.mrb[150].mxu0 %vm684_vm0, %v21101_v36 }
0x12ed   : > { %18322 = vmatprep.mubr.msk.f32.mxu1 %vm684_vm0, %v21199_v2  ;;  %18348 = vmatprep.mubr.msk.f32.mxu0 %vm684_vm0, %v21112_v49 }
0x12f0   : > { %18323 = vmatmul.mubr.msk.f32.gmra.mrb[160].mxu1 %vm684_vm0, %v21202_v34  ;;  %18349 = vmatmul.mubr.msk.f32.gmra.mrb[152].mxu0 %vm684_vm0, %v21117_v53 }
0x12f1   : > { %18325 = vmatprep.mubr.msk.f32.mxu1 %vm684_vm0, %v21210_v8  ;;  %18351 = vmatprep.mubr.msk.f32.mxu0 %vm684_vm0, %v21122_v54 }
0x12f4   : > { %18326 = vmatmul.mubr.msk.f32.gmra.mrb[162].mxu1 %vm684_vm0, %v21212_v22  ;;  %18352 = vmatmul.mubr.msk.f32.gmra.mrb[154].mxu0 %vm684_vm0, %v21127_v55 }
0x12f5   : > { %18328 = vmatprep.mubr.msk.f32.mxu1 %vm684_vm0, %v21219_v23  ;;  %18354 = vmatprep.mubr.msk.f32.mxu0 %vm684_vm0, %v21132_v50 }
0x12f8   : > { %18329 = vmatmul.mubr.msk.f32.gmra.mrb[164].mxu1 %vm684_vm0, %v21221_v18  ;;  %18355 = vmatmul.mubr.msk.f32.gmra.mrb[156].mxu0 %vm684_vm0, %v21137_v56 }
0x12f9   : > { %18357 = vmatprep.mubr.msk.f32.mxu0 %vm684_vm0, %v21142_v57  ;;  %18371 = vmatprep.mubr.msk.f32.mxu1 %vm684_vm0, %v21070_v14  ;;  %v16444_v14 = vld [vmem:[%s22765_s10 + $0x28] sm:$0xff] }
0x12fa   : > { %v19195_v35 = vpack.c.bf16 %v16444_v14, %v16443_v28 }
0x12fc   : > { %18358 = vmatmul.mubr.msk.f32.gmra.mrb[158].mxu0 %vm684_vm0, %v21147_v58  ;;  %19196 = vmatprep.subr.bf16.mxu1 %v19195_v35 }
0x12fd   : > { %18360 = vmatprep.mubr.msk.f32.mxu0 %vm684_vm0, %v21152_v59  ;;  %19198 = vmatpush3.bf16.msra.mxu1 %v19195_v35 }
0x12fe   : > { %19200 = vmatprep.subr.bf16.mxu1 %v19199_v19 }
0x1300   : > { %18361 = vmatmul.mubr.msk.f32.gmra.mrb[160].mxu0 %vm684_vm0, %v21157_v15 }
0x1301   : > { %18399 = vmatprep.mubr.msk.f32.mxu0 %vm19936_vm1, %v19935_v26  ;;  %19202 = vmatpush3.bf16.msra.mxu1 %v19199_v19 }
0x1302   : > { %19211 = vmatprep.subr.bf16.mxu1 %v19937_v44 }
0x1304   : > { %18372 = vmatmul.mubr.msk.f32.vlgmr.msra.gmra.mrb[166].mxu1 %vm684_vm0, %v21075_v16 }
0x1305   : > { %18374 = vmatprep.mubr.msk.f32.mxu1 %vm684_vm0, %v21080_v33 }
0x1308   : > { %18375 = vmatmul.mubr.msk.f32.gmra.mrb[168].mxu1 %vm684_vm0, %v21085_v17 }
0x1309   : > { %18377 = vmatprep.mubr.msk.f32.mxu1 %vm684_vm0, %v21096_v29 }
0x130c   : > { %18378 = vmatmul.mubr.msk.f32.gmra.mrb[170].mxu1 %vm684_vm0, %v21101_v36 }
0x130d   : > { %18380 = vmatprep.mubr.msk.f32.mxu1 %vm684_vm0, %v21112_v49 }
0x1310   : > { %18381 = vmatmul.mubr.msk.f32.gmra.mrb[172].mxu1 %vm684_vm0, %v21117_v53 }
0x1311   : > { %18383 = vmatprep.mubr.msk.f32.mxu1 %vm684_vm0, %v21122_v54 }
0x1314   : > { %18384 = vmatmul.mubr.msk.f32.gmra.mrb[174].mxu1 %vm684_vm0, %v21127_v55 }
0x1315   : > { %18386 = vmatprep.mubr.msk.f32.mxu1 %vm684_vm0, %v21132_v50 }
0x1318   : > { %18387 = vmatmul.mubr.msk.f32.gmra.mrb[176].mxu1 %vm684_vm0, %v21137_v56 }
0x1319   : > { %18389 = vmatprep.mubr.msk.f32.mxu1 %vm684_vm0, %v21142_v57 }
0x131c   : > { %18390 = vmatmul.mubr.msk.f32.gmra.mrb[178].mxu1 %vm684_vm0, %v21147_v58 }
0x131d   : > { %18392 = vmatprep.mubr.msk.f32.mxu1 %vm684_vm0, %v21152_v59 }
0x1320   : > { %18393 = vmatmul.mubr.msk.f32.gmra.mrb[180].mxu1 %vm684_vm0, %v21157_v15 }
0x1321   : > { %18413 = vmatprep.mubr.msk.f32.mxu1 %vm19936_vm1, %v19935_v26 }
0x1398   : > { %v21560_v16 = vpop.f32.mrb[136].mxu0 }
0x1399   : > { %v18261_v33 = vpop.f32.mrb[137].mxu0 }
0x139c   : > { %v21562_v17 = vpop.f32.mrb[138].mxu0 }
0x139d   : > { %v18268_v29 = vpop.f32.mrb[139].mxu0 }
0x13a0   : > { %v21564_v36 = vpop.f32.mrb[140].mxu0 }
0x13a1   : > { %v18282_v49 = vpop.f32.mrb[141].mxu0 }
0x13a7   : > { %v21566_v53 = vpop.f32.mrb[142].mxu0 }
0x13a8   : > { %v18296_v54 = vpop.f32.mrb[143].mxu0 }
0x13ab   : > { %v21568_v55 = vpop.f32.mrb[152].mxu1 }
0x13ac   : > { %v18275_v50 = vpop.f32.mrb[153].mxu1 }
0x13af   : > { %v21570_v56 = vpop.f32.mrb[144].mxu0 }
0x13b0   : > { %v18310_v57 = vpop.f32.mrb[145].mxu0 }
0x13b3   : > { %v21572_v58 = vpop.f32.mrb[154].mxu1 }
0x13b4   : > { %v18289_v59 = vpop.f32.mrb[155].mxu1 }
0x13b7   : > { %v18341_v15 = vpop.f32.mrb[146].mxu0  ;;  %v21574_v13 = vpop.f32.mrb[156].mxu1 }
0x13b8   : > { %v9844_v9 = vpop.f32.mrb[147].mxu0  ;;  %v18303_v32 = vpop.f32.mrb[157].mxu1 }
0x13b9   : > { %v19204_v31 = vpack.c.bf16 %v18341_v15, %v9844_v9 }
0x13bb   : > { %19206 = vmatpush3.bf16.xpose.msk.msra.mxu0 %vm21263_vm3, %v19204_v31  ;;  %v18344_v20 = vpop.f32.mrb[148].mxu0 }
0x13bc   : > { %v9854_v30 = vpop.f32.mrb[149].mxu0  ;;  %19207 = vmatprep.subr.bf16.mxu0 %v19937_v44 }
0x13bd   : > { %v19208_v10 = vpack.c.bf16 %v18344_v20, %v9854_v30 }
0x13bf   : > { %v18321_v25 = vpop.f32.mrb[158].mxu1  ;;  %v18347_v41 = vpop.f32.mrb[150].mxu0 }
0x13c0   : > { %v9734_v37 = vpop.f32.mrb[159].mxu1  ;;  %v9864_v12 = vpop.f32.mrb[151].mxu0 }
0x13c1   : > { %v19212_v5 = vpack.c.bf16 %v18347_v41, %v9864_v12 }
0x13c2   : > { %18400 = vmatmul.mubr.msk.f32.vlgmr.msra.gmra.mrb[162].mxu0 %vm1032_vm2, %v9734_v37 }
0x13c3   : > { %v18324_v1 = vpop.f32.mrb[160].mxu1  ;;  %19210 = vmatpush3.bf16.xpose.msk.msra.mxu0 %vm21263_vm3, %v19208_v10  ;;  %19214 = vmatpush3.bf16.xpose.msk.msra.mxu1 %vm21263_vm3, %v19212_v5  ;;  %v18350_v63 = vpop.f32.mrb[152].mxu0 }
0x13c4   : > { %v9744_v42 = vpop.f32.mrb[161].mxu1  ;;  %v9874_v45 = vpop.f32.mrb[153].mxu0  ;;  %18406 = vmatprep.mubr.msk.f32.mxu0 %vm19936_vm1, %v19935_v26  ;;  %19215 = vmatprep.subr.bf16.mxu0 %v19937_v44 }
0x13c5   : > { %v19216_v7 = vpack.c.bf16 %v18350_v63, %v9874_v45  ;;  %19219 = vmatprep.subr.bf16.mxu1 %v19937_v44 }
0x13c7   : > { %v18327_v47 = vpop.f32.mrb[162].mxu1  ;;  %v18353_v38 = vpop.f32.mrb[154].mxu0 }
0x13c8   : > { %v9754_v6 = vpop.f32.mrb[163].mxu1  ;;  %v9884_v39 = vpop.f32.mrb[155].mxu0 }
0x13c9   : > { %v19220_v61 = vpack.c.bf16 %v18353_v38, %v9884_v39 }
0x13ca   : > { %18407 = vmatmul.mubr.msk.f32.vlgmr.msra.gmra.mrb[164].mxu0 %vm1032_vm2, %v18321_v25  ;;  %18414 = vmatmul.mubr.msk.f32.vlgmr.msra.gmra.mrb[182].mxu1 %vm1032_vm2, %v9744_v42 }
0x13cb   : > { %v18330_v60 = vpop.f32.mrb[164].mxu1  ;;  %19218 = vmatpush3.bf16.xpose.msk.msra.mxu0 %vm21263_vm3, %v19216_v7  ;;  %19222 = vmatpush3.bf16.xpose.msk.msra.mxu1 %vm21263_vm3, %v19220_v61  ;;  %v18356_v0 = vpop.f32.mrb[156].mxu0 }
0x13cc   : > { %v9764_v3 = vpop.f32.mrb[165].mxu1  ;;  %v9894_v11 = vpop.f32.mrb[157].mxu0  ;;  %18420 = vmatprep.mubr.msk.f32.mxu0 %vm19936_vm1, %v19935_v26  ;;  %18427 = vmatprep.mubr.msk.f32.mxu1 %vm19936_vm1, %v19935_v26 }
0x13cd   : > { %v19224_v62 = vpack.c.bf16 %v18356_v0, %v9894_v11  ;;  %19223 = vmatprep.subr.bf16.mxu0 %v19937_v44  ;;  %19227 = vmatprep.subr.bf16.mxu1 %v19937_v44 }
0x13cf   : > { %v18359_v52 = vpop.f32.mrb[158].mxu0 }
0x13d0   : > { %v9904_v46 = vpop.f32.mrb[159].mxu0 }
0x13d1   : > { %v19228_v48 = vpack.c.bf16 %v18359_v52, %v9904_v46 }
0x13d2   : > { %18421 = vmatmul.mubr.msk.f32.vlgmr.msra.gmra.mrb[166].mxu0 %vm1032_vm2, %v18324_v1  ;;  %18428 = vmatmul.mubr.msk.f32.vlgmr.msra.gmra.mrb[184].mxu1 %vm1032_vm2, %v9754_v6 }
0x13d3   : > { %19226 = vmatpush3.bf16.xpose.msk.msra.mxu0 %vm21263_vm3, %v19224_v62  ;;  %19230 = vmatpush3.bf16.xpose.msk.msra.mxu1 %vm21263_vm3, %v19228_v48  ;;  %v18362_v4 = vpop.f32.mrb[160].mxu0 }
0x13d4   : > { %v9914_v28 = vpop.f32.mrb[161].mxu0  ;;  %18434 = vmatprep.mubr.msk.f32.mxu0 %vm19936_vm1, %v19935_v26  ;;  %18441 = vmatprep.mubr.msk.f32.mxu1 %vm19936_vm1, %v19935_v26 }
0x13d5   : > { %v19232_v14 = vpack.c.bf16 %v18362_v4, %v9914_v28  ;;  %19231 = vmatprep.subr.bf16.mxu0 %v19937_v44  ;;  %19235 = vmatprep.subr.bf16.mxu1 %v19937_v44 }
0x13d7   : > { %v18373_v35 = vpop.f32.mrb[166].mxu1 }
0x13d8   : > { %v9994_v40 = vpop.f32.mrb[167].mxu1 }
0x13d9   : > { %v19236_v24 = vpack.c.bf16 %v18373_v35, %v9994_v40 }
0x13da   : > { %18435 = vmatmul.mubr.msk.f32.vlgmr.msra.gmra.mrb[168].mxu0 %vm1032_vm2, %v18327_v47  ;;  %18442 = vmatmul.mubr.msk.f32.vlgmr.msra.gmra.mrb[186].mxu1 %vm1032_vm2, %v9764_v3 }
0x13db   : > { %19234 = vmatpush3.bf16.xpose.msk.msra.mxu0 %vm21263_vm3, %v19232_v14  ;;  %18448 = vmatprep.mubr.msk.f32.mxu0 %vm19936_vm1, %v19935_v26  ;;  %v18376_v19 = vpop.f32.mrb[168].mxu1 }
0x13dc   : > { %19238 = vmatprep.subr.bf16.mxu0 %v19937_v44  ;;  %18455 = vmatprep.mubr.msk.f32.mxu1 %vm19936_vm1, %v19935_v26  ;;  %v10004_v33 = vpop.f32.mrb[169].mxu1 }
0x13dd   : > { %19237 = vmatpush3.bf16.msra.mxu1 %v19236_v24  ;;  %v19239_v29 = vpack.c.bf16 %v18376_v19, %v10004_v33 }
0x13de   : > { %19241 = vmatprep.subr.bf16.mxu1 %v19937_v44 }
0x13df   : > { %v21625_v49 = vpop.f32.mrb[170].mxu1 }
0x13e0   : > { %v21627_v54 = vpop.f32.mrb[171].mxu1 }
0x13e1   : > { %v19242_v50 = vpack.c.bf16 %v21625_v49, %v21627_v54 }
0x13e2   : > { %18449 = vmatmul.mubr.msk.f32.vlgmr.msra.gmra.mrb[170].mxu0 %vm1032_vm2, %v18330_v60 }
0x13e3   : > { %18462 = vmatprep.mubr.msk.f32.mxu0 %vm19936_vm1, %v19935_v26  ;;  %19240 = vmatpush3.bf16.msra.mxu0 %v19239_v29  ;;  %v21632_v57 = vpop.f32.mrb[172].mxu1 }
0x13e4   : > { %19244 = vmatprep.subr.bf16.mxu0 %v19937_v44  ;;  %v21634_v59 = vpop.f32.mrb[173].mxu1 }
0x13e5   : > { %v19245_v15 = vpack.c.bf16 %v21632_v57, %v21634_v59 }
0x13e7   : > { %v21638_v9 = vpop.f32.mrb[174].mxu1 }
0x13e8   : > { %v21640_v32 = vpop.f32.mrb[175].mxu1 }
0x13e9   : > { %v19248_v31 = vpack.c.bf16 %v21638_v9, %v21640_v32  ;;  %v16512_v32 = vld [vmem:[%s22763_s8 + $0x40] sm:$0xff] }
0x13eb   : > { %v21644_v20 = vpop.f32.mrb[176].mxu1 }
0x13ec   : > { %v21646_v30 = vpop.f32.mrb[177].mxu1 }
0x13ed   : > { %v19251_v10 = vpack.c.bf16 %v21644_v20, %v21646_v30 }
0x13ef   : > { %v21650_v25 = vpop.f32.mrb[178].mxu1 }
0x13f0   : > { %v21652_v41 = vpop.f32.mrb[179].mxu1 }
0x13f1   : > { %v19254_v37 = vpack.c.bf16 %v21650_v25, %v21652_v41 }
0x13f3   : > { %v21656_v12 = vpop.f32.mrb[180].mxu1 }
0x13f4   : > { %v21658_v5 = vpop.f32.mrb[181].mxu1 }
0x13f5   : > { %v19257_v1 = vpack.c.bf16 %v21656_v12, %v21658_v5  ;;  %v16524_v12 = vld [vmem:[%s22764_s9 + $0x40] sm:$0xff]  ;;  %v16525_v5 = vld [vmem:[%s22764_s9 + $0x48] sm:$0xff] }
0x1495   : > { %v10148_v63 = vpop.f32.mrb[162].mxu0 }
0x1496   : > { %v10705_v42 = vmul.f32 0.35355338, %v10148_v63  ;;  %v18401_v45 = vpop.f32.mrb[163].mxu0 }
0x1498   : > { %v10713_v7 = vsel %vm7859_vm4, %v10705_v42, -1e+30 }
0x1499   : > { %v10721_v47 = vsel %vm8989_vm5, %v10713_v7, -inf }
0x149a   : > { %10722 = vmax.xlane.f32.xlu0 %v10721_v47 }
0x149d   : > { %v10227_v38 = vpop.f32.mrb[164].mxu0  ;;  %v10306_v6 = vpop.f32.mrb[182].mxu1 }
0x149e   : > { %v10706_v39 = vmul.f32 0.35355338, %v10227_v38  ;;  %v10707_v61 = vmul.f32 0.35355338, %v10306_v6  ;;  %v18408_v60 = vpop.f32.mrb[165].mxu0  ;;  %v18415_v0 = vpop.f32.mrb[183].mxu1 }
0x14a0   : > { %v10715_v3 = vsel %vm7859_vm4, %v10707_v61, -1e+30  ;;  %v10714_v11 = vsel %vm7859_vm4, %v10706_v39, -1e+30 }
0x14a1   : > { %v10724_v62 = vsel %vm8989_vm5, %v10714_v11, -inf  ;;  %v10727_v52 = vsel %vm8989_vm5, %v10715_v3, -inf }
0x14a2   : > { %10725 = vmax.xlane.f32.xlu1 %v10724_v62  ;;  %10728 = vmax.xlane.f32.xlu0 %v10727_v52 }
0x14a5   : > { %v10385_v46 = vpop.f32.mrb[166].mxu0  ;;  %v10464_v48 = vpop.f32.mrb[184].mxu1 }
0x14a6   : > { %v10708_v4 = vmul.f32 0.35355338, %v10385_v46  ;;  %v10709_v28 = vmul.f32 0.35355338, %v10464_v48  ;;  %v18422_v14 = vpop.f32.mrb[167].mxu0  ;;  %v18429_v35 = vpop.f32.mrb[185].mxu1 }
0x14a8   : > { %v10716_v40 = vsel %vm7859_vm4, %v10708_v4, -1e+30  ;;  %v10717_v24 = vsel %vm7859_vm4, %v10709_v28, -1e+30 }
0x14a9   : > { %v10730_v19 = vsel %vm8989_vm5, %v10716_v40, -inf  ;;  %v10733_v33 = vsel %vm8989_vm5, %v10717_v24, -inf }
0x14aa   : > { %10731 = vmax.xlane.f32.xlu1 %v10730_v19  ;;  %10734 = vmax.xlane.f32.xlu0 %v10733_v33 }
0x14ad   : > { %v10543_v29 = vpop.f32.mrb[168].mxu0  ;;  %v10622_v63 = vpop.f32.mrb[186].mxu1 }
0x14ae   : > { %v10710_v42 = vmul.f32 0.35355338, %v10543_v29  ;;  %v10711_v45 = vmul.f32 0.35355338, %v10622_v63  ;;  %v18436_v47 = vpop.f32.mrb[169].mxu0  ;;  %v18443_v38 = vpop.f32.mrb[187].mxu1 }
0x14b0   : > { %v10718_v6 = vsel %vm7859_vm4, %v10710_v42, -1e+30  ;;  %v10719_v39 = vsel %vm7859_vm4, %v10711_v45, -1e+30 }
0x14b1   : > { %v10736_v61 = vsel %vm8989_vm5, %v10718_v6, -inf  ;;  %v10739_v60 = vsel %vm8989_vm5, %v10719_v39, -inf }
0x14b2   : > { %10737 = vmax.xlane.f32.xlu1 %v10736_v61  ;;  %10740 = vmax.xlane.f32.xlu0 %v10739_v60 }
0x14b5   : > { %v10701_v0 = vpop.f32.mrb[170].mxu0 }
0x14b6   : > { %v10712_v62 = vmul.f32 0.35355338, %v10701_v0  ;;  %v18450_v52 = vpop.f32.mrb[171].mxu0 }
0x14b8   : > { %v10720_v46 = vsel %vm7859_vm4, %v10712_v62, -1e+30 }
0x14b9   : > { %v10742_v48 = vsel %vm8989_vm5, %v10720_v46, -inf }
0x14ba   : > { %10743 = vmax.xlane.f32.xlu1 %v10742_v48 }
0x1527   : > { %v10723_v4 = vpop.xlane.xlu0 %10722 }
0x1528   : > { %v10745_v28 = vsub.f32 %v10713_v7, %v10723_v4 }
0x152a   : > { %v10753_v14 = vmul.f32 1.442695, %v10745_v28 }
0x152c   : > { %19711 = vpow2.f32 %v10753_v14 }
0x152f   : > { %v10726_v35 = vpop.xlane.xlu1 %10725  ;;  %v10729_v19 = vpop.xlane.xlu0 %10728 }
0x1530   : > { %v10746_v33 = vsub.f32 %v10714_v11, %v10726_v35  ;;  %v10747_v29 = vsub.f32 %v10715_v3, %v10729_v19 }
0x1532   : > { %v10755_v63 = vmul.f32 1.442695, %v10746_v33  ;;  %v10757_v42 = vmul.f32 1.442695, %v10747_v29 }
0x1534   : > { %19713 = vpow2.f32 %v10755_v63 }
0x1535   : > { %19715 = vpow2.f32 %v10757_v42 }
0x1536   : > { %v19712_v45 = vpop.eup %19711 }
0x1537   : > { %v10732_v47 = vpop.xlane.xlu1 %10731  ;;  %v10735_v38 = vpop.xlane.xlu0 %10734  ;;  %v10769_v61 = vsel %vm8989_vm5, %v19712_v45, 0.0 }
0x1538   : > { %v10748_v60 = vsub.f32 %v10716_v40, %v10732_v47  ;;  %v10749_v0 = vsub.f32 %v10717_v24, %v10735_v38  ;;  %10770 = vadd.xlane.f32.xlu0 %v10769_v61 }
0x153a   : > { %v10759_v62 = vmul.f32 1.442695, %v10748_v60  ;;  %v10761_v7 = vmul.f32 1.442695, %v10749_v0 }
0x153c   : > { %19717 = vpow2.f32 %v10759_v62 }
0x153d   : > { %19719 = vpow2.f32 %v10761_v7 }
0x153e   : > { %v19714_v52 = vpop.eup %19713 }
0x153f   : > { %v19716_v48 = vpop.eup %19715  ;;  %v10738_v11 = vpop.xlane.xlu1 %10737  ;;  %v10772_v4 = vsel %vm8989_vm5, %v19714_v52, 0.0 }
0x1540   : > { %v10741_v3 = vpop.xlane.xlu0 %10740  ;;  %v10750_v28 = vsub.f32 %v10718_v6, %v10738_v11  ;;  %10773 = vadd.xlane.f32.xlu1 %v10772_v4  ;;  %v10775_v35 = vsel %vm8989_vm5, %v19716_v48, 0.0 }
0x1541   : > { %v10751_v14 = vsub.f32 %v10719_v39, %v10741_v3  ;;  %10776 = vadd.xlane.f32.xlu0 %v10775_v35 }
0x1542   : > { %v10763_v19 = vmul.f32 1.442695, %v10750_v28 }
0x1543   : > { %v10765_v40 = vmul.f32 1.442695, %v10751_v14 }
0x1544   : > { %19721 = vpow2.f32 %v10763_v19 }
0x1545   : > { %19723 = vpow2.f32 %v10765_v40 }
0x1546   : > { %v19718_v24 = vpop.eup %19717 }
0x1547   : > { %v19720_v33 = vpop.eup %19719  ;;  %v10744_v29 = vpop.xlane.xlu1 %10743  ;;  %v10778_v63 = vsel %vm8989_vm5, %v19718_v24, 0.0 }
0x1548   : > { %v10752_v42 = vsub.f32 %v10720_v46, %v10744_v29  ;;  %10779 = vadd.xlane.f32.xlu1 %v10778_v63  ;;  %v10781_v47 = vsel %vm8989_vm5, %v19720_v33, 0.0  ;;  %v16527_v63 = vld [vmem:[%s22764_s9 + $0x58] sm:$0xff] }
0x1549   : > { %10782 = vadd.xlane.f32.xlu0 %v10781_v47  ;;  %v21782_v47 = vld [vmem:[%s21067_s20] sm:$0xff] }
0x154a   : > { %v10767_v6 = vmul.f32 1.442695, %v10752_v42 }
0x154c   : > { %19725 = vpow2.f32 %v10767_v6  ;;  %v21787_v6 = vld [vmem:[%s21067_s20 + $0x8] sm:$0xff] }
0x154e   : > { %v19722_v39 = vpop.eup %19721 }
0x154f   : > { %v19724_v38 = vpop.eup %19723  ;;  %v10784_v61 = vsel %vm8989_vm5, %v19722_v39, 0.0 }
0x1550   : > { %10785 = vadd.xlane.f32.xlu1 %v10784_v61  ;;  %v10787_v60 = vsel %vm8989_vm5, %v19724_v38, 0.0  ;;  %v21802_v61 = vld [vmem:[%s21067_s20 + $0x20] sm:$0xff] }
0x1551   : > { %10788 = vadd.xlane.f32.xlu0 %v10787_v60  ;;  %v21807_v60 = vld [vmem:[%s21067_s20 + $0x28] sm:$0xff] }
0x1556   : > { %v21693_v0 = vpop.eup %19725 }
0x1557   : > { %v10790_v62 = vsel %vm8989_vm5, %v21693_v0, 0.0 }
0x1558   : > { %10791 = vadd.xlane.f32.xlu1 %v10790_v62  ;;  %v21817_v62 = vld [vmem:[%s21067_s20 + $0x38] sm:$0xff] }
0x15c5   : > { %v10771_v46 = vpop.xlane.xlu0 %10770 }
0x15c6   : > { %19727 = vrcp.f32 %v10771_v46  ;;  %v21822_v46 = vld [vmem:[%s21067_s20 + $0x40] sm:$0xff] }
0x15cd   : > { %v10774_v7 = vpop.xlane.xlu1 %10773 }
0x15ce   : > { %19729 = vrcp.f32 %v10774_v7  ;;  %v10777_v11 = vpop.xlane.xlu0 %10776  ;;  %v21827_v7 = vld [vmem:[%s21067_s20 + $0x48] sm:$0xff] }
0x15cf   : > { %19731 = vrcp.f32 %v10777_v11  ;;  %v21832_v11 = vld [vmem:[%s21067_s20 + $0x50] sm:$0xff] }
0x15d0   : > { %v19728_v3 = vpop.eup %19727 }
0x15d1   : > { %v10801_v4 = vmul.f32 %v19728_v3, %v19712_v45  ;;  %v16515_v45 = vld [vmem:[%s22763_s8 + $0x58] sm:$0xff] }
0x15d2   : > { %v21837_v3 = vld [vmem:[%s21067_s20 + $0x58] sm:$0xff] }
0x15d3   : > { %18456 = vmatmul.mubr.msk.f32.vlgmr.msra.gmra.mrb[188].mxu1 %vm8989_vm5, %v10801_v4  ;;  %v21842_v4 = vld [vmem:[%s21067_s20 + $0x60] sm:$0xff] }
0x15d4   : > { %19243 = vmatpush3.bf16.msra.mxu1 %v19242_v50  ;;  %18469 = vmatprep.mubr.msk.f32.mxu1 %vm19936_vm1, %v19935_v26 }
0x15d5   : > { %v10780_v28 = vpop.xlane.xlu1 %10779  ;;  %19247 = vmatprep.subr.bf16.mxu1 %v19937_v44 }
0x15d6   : > { %19733 = vrcp.f32 %v10780_v28  ;;  %v10783_v14 = vpop.xlane.xlu0 %10782  ;;  %v21847_v28 = vld [vmem:[%s21067_s20 + $0x68] sm:$0xff] }
0x15d7   : > { %19735 = vrcp.f32 %v10783_v14  ;;  %v21852_v14 = vld [vmem:[%s21067_s20 + $0x70] sm:$0xff] }
0x15d8   : > { %v19730_v35 = vpop.eup %19729 }
0x15d9   : > { %v19732_v19 = vpop.eup %19731  ;;  %v10802_v40 = vmul.f32 %v19730_v35, %v19714_v52  ;;  %v21857_v35 = vld [vmem:[%s21067_s20 + $0x78] sm:$0xff] }
0x15da   : > { %v10803_v29 = vmul.f32 %v19732_v19, %v19716_v48  ;;  %v16495_v19 = vld [vmem:[%s22766_s11 + $0x8] sm:$0xff] }
0x15db   : > { %18463 = vmatmul.mubr.msk.f32.vlgmr.msra.gmra.mrb[172].mxu0 %vm8989_vm5, %v10802_v40  ;;  %v9662_v40 = vld [vmem:[%s22766_s11] sm:$0xff] }
0x15dc   : > { %18470 = vmatmul.mubr.msk.f32.vlgmr.msra.gmra.mrb[190].mxu1 %vm8989_vm5, %v10803_v29  ;;  %19246 = vmatpush3.bf16.msra.mxu0 %v19245_v15 }
0x15dd   : > { %19249 = vmatpush3.bf16.msra.mxu1 %v19248_v31  ;;  %v10786_v49 = vpop.xlane.xlu1 %10785  ;;  %18476 = vmatprep.mubr.msk.f32.mxu0 %vm19936_vm1, %v19935_v26  ;;  %v16513_v31 = vld [vmem:[%s22763_s8 + $0x48] sm:$0xff] }
0x15de   : > { %19737 = vrcp.f32 %v10786_v49  ;;  %v10789_v54 = vpop.xlane.xlu0 %10788  ;;  %18483 = vmatprep.mubr.msk.f32.mxu1 %vm19936_vm1, %v19935_v26  ;;  %19250 = vmatprep.subr.bf16.mxu0 %v19937_v44  ;;  %v19259_v25 = vpack.c.bf16 %v16513_v31, %v16512_v32 }
0x15df   : > { %19739 = vrcp.f32 %v10789_v54  ;;  %19253 = vmatprep.subr.bf16.mxu1 %v19937_v44  ;;  %v16544_v54 = vld [vmem:[%s22765_s10 + $0x40] sm:$0xff] }
0x15e0   : > { %v19734_v50 = vpop.eup %19733 }
0x15e1   : > { %v19736_v57 = vpop.eup %19735  ;;  %v10804_v59 = vmul.f32 %v19734_v50, %v19718_v24  ;;  %v16545_v50 = vld [vmem:[%s22765_s10 + $0x48] sm:$0xff] }
0x15e2   : > { %v10805_v15 = vmul.f32 %v19736_v57, %v19720_v33  ;;  %v16526_v33 = vld [vmem:[%s22764_s9 + $0x50] sm:$0xff]  ;;  %v19275_v57 = vpack.c.bf16 %v16545_v50, %v16544_v54 }
0x15e3   : > { %18477 = vmatmul.mubr.msk.f32.vlgmr.msra.gmra.mrb[174].mxu0 %vm8989_vm5, %v10804_v59  ;;  %v19271_v42 = vpack.c.bf16 %v16527_v63, %v16526_v33 }
0x15e4   : > { %18484 = vmatmul.mubr.msk.f32.vlgmr.msra.gmra.mrb[192].mxu1 %vm8989_vm5, %v10805_v15  ;;  %19252 = vmatpush3.bf16.msra.mxu0 %v19251_v10 }
0x15e5   : > { %19255 = vmatpush3.bf16.msra.mxu1 %v19254_v37  ;;  %v10792_v9 = vpop.xlane.xlu1 %10791  ;;  %18490 = vmatprep.mubr.msk.f32.mxu0 %vm19936_vm1, %v19935_v26  ;;  %v16514_v37 = vld [vmem:[%s22763_s8 + $0x50] sm:$0xff] }
0x15e6   : > { %19741 = vrcp.f32 %v10792_v9  ;;  %18497 = vmatprep.mubr.msk.f32.mxu1 %vm19936_vm1, %v19935_v26  ;;  %19256 = vmatprep.subr.bf16.mxu0 %v19937_v44  ;;  %v19263_v24 = vpack.c.bf16 %v16515_v45, %v16514_v37 }
0x15e7   : > { %18507 = vmatprep.subr.mxu1 %v16495_v19 }
0x15e8   : > { %v19738_v20 = vpop.eup %19737 }
0x15e9   : > { %v19740_v30 = vpop.eup %19739  ;;  %v10806_v10 = vmul.f32 %v19738_v20, %v19722_v39  ;;  %v21792_v39 = vld [vmem:[%s21067_s20 + $0x10] sm:$0xff] }
0x15ea   : > { %v10807_v41 = vmul.f32 %v19740_v30, %v19724_v38  ;;  %v21797_v38 = vld [vmem:[%s21067_s20 + $0x18] sm:$0xff] }
0x15eb   : > { %18491 = vmatmul.mubr.msk.f32.vlgmr.msra.gmra.mrb[176].mxu0 %vm8989_vm5, %v10806_v10 }
0x15ec   : > { %18498 = vmatmul.mubr.msk.f32.vlgmr.msra.gmra.mrb[194].mxu1 %vm8989_vm5, %v10807_v41  ;;  %19258 = vmatpush3.bf16.msra.mxu0 %v19257_v1  ;;  %v19267_v1 = vpack.c.bf16 %v16525_v5, %v16524_v12 }
0x15ed   : > { %18504 = vmatprep.mubr.msk.f32.mxu0 %vm19936_vm1, %v19935_v26  ;;  %19260 = vmatprep.subr.bf16.mxu0 %v19259_v25 }
0x15ee   : > { %18508 = vmatpush3.msra.mxu1 %v16495_v19 }
0x15ef   : > { %18521 = vmatprep.subr.mxu1 %v9662_v40 }
0x15f0   : > { %v19742_v52 = vpop.eup %19741 }
0x15f1   : > { %v10808_v48 = vmul.f32 %v19742_v52, %v21693_v0  ;;  %v21812_v0 = vld [vmem:[%s21067_s20 + $0x30] sm:$0xff]  ;;  %s22714_s20 = scalar_lea.sflag [#allocation3], %s639_s30 }
0x15f3   : > { %18505 = vmatmul.mubr.msk.f32.vlgmr.msra.gmra.mrb[178].mxu0 %vm8989_vm5, %v10808_v48  ;;  %v16546_v48 = vld [vmem:[%s22765_s10 + $0x50] sm:$0xff] }
0x15f4   : > { %19262 = vmatpush3.bf16.msra.mxu0 %v19259_v25  ;;  %18543 = vmatprep.mubr.msk.f32.mxu0 %vm684_vm0, %v21189_v43 }
0x15f5   : > { %19264 = vmatprep.subr.bf16.mxu0 %v19263_v24 }
0x15f8   : > { %19266 = vmatpush3.bf16.msra.mxu0 %v19263_v24  ;;  %v16547_v24 = vld [vmem:[%s22765_s10 + $0x58] sm:$0xff] }
0x15f9   : > { %19268 = vmatprep.subr.bf16.mxu0 %v19267_v1  ;;  %v19279_v5 = vpack.c.bf16 %v16547_v24, %v16546_v48 }
0x15fb   : > { %18544 = vmatmul.mubr.msk.f32.vlgmr.msra.gmra.mrb[180].mxu0 %vm684_vm0, %v21191_v51 }
0x15fc   : > { %18546 = vmatprep.mubr.msk.f32.mxu0 %vm684_vm0, %v21199_v2  ;;  %19270 = vmatpush3.bf16.msra.mxu0 %v19267_v1 }
0x15fd   : > { %19272 = vmatprep.subr.bf16.mxu0 %v19271_v42 }
0x15ff   : > { %18547 = vmatmul.mubr.msk.f32.gmra.mrb[182].mxu0 %vm684_vm0, %v21202_v34 }
0x1600   : > { %18549 = vmatprep.mubr.msk.f32.mxu0 %vm684_vm0, %v21210_v8  ;;  %19274 = vmatpush3.bf16.msra.mxu0 %v19271_v42 }
0x1601   : > { %19283 = vmatprep.subr.bf16.mxu0 %v19937_v44 }
0x1603   : > { %18550 = vmatmul.mubr.msk.f32.gmra.mrb[184].mxu0 %vm684_vm0, %v21212_v22 }
0x1604   : > { %18552 = vmatprep.mubr.msk.f32.mxu0 %vm684_vm0, %v21219_v23 }
0x1607   : > { %18553 = vmatmul.mubr.msk.f32.gmra.mrb[186].mxu0 %vm684_vm0, %v21221_v18 }
0x1608   : > { %18563 = vmatprep.mubr.msk.f32.mxu0 %vm684_vm0, %v21782_v47 }
0x160b   : > { %18564 = vmatmul.mubr.msk.f32.vlgmr.msra.gmra.mrb[188].mxu0 %vm684_vm0, %v21787_v6 }
0x160c   : > { %18566 = vmatprep.mubr.msk.f32.mxu0 %vm684_vm0, %v21792_v39 }
0x160f   : > { %18567 = vmatmul.mubr.msk.f32.gmra.mrb[190].mxu0 %vm684_vm0, %v21797_v38 }
0x1610   : > { %18569 = vmatprep.mubr.msk.f32.mxu0 %vm684_vm0, %v21802_v61 }
0x1613   : > { %18570 = vmatmul.mubr.msk.f32.gmra.mrb[192].mxu0 %vm684_vm0, %v21807_v60 }
0x1614   : > { %18572 = vmatprep.mubr.msk.f32.mxu0 %vm684_vm0, %v21812_v0 }
0x1617   : > { %18573 = vmatmul.mubr.msk.f32.gmra.mrb[194].mxu0 %vm684_vm0, %v21817_v62 }
0x1618   : > { %18575 = vmatprep.mubr.msk.f32.mxu0 %vm684_vm0, %v21822_v46 }
0x161b   : > { %18576 = vmatmul.mubr.msk.f32.gmra.mrb[196].mxu0 %vm684_vm0, %v21827_v7 }
0x161c   : > { %18578 = vmatprep.mubr.msk.f32.mxu0 %vm684_vm0, %v21832_v11 }
0x161f   : > { %18579 = vmatmul.mubr.msk.f32.gmra.mrb[198].mxu0 %vm684_vm0, %v21837_v3 }
0x1620   : > { %18581 = vmatprep.mubr.msk.f32.mxu0 %vm684_vm0, %v21842_v4 }
0x1623   : > { %18582 = vmatmul.mubr.msk.f32.gmra.mrb[200].mxu0 %vm684_vm0, %v21847_v28 }
0x1624   : > { %18584 = vmatprep.mubr.msk.f32.mxu0 %vm684_vm0, %v21852_v14 }
0x1627   : > { %18585 = vmatmul.mubr.msk.f32.gmra.mrb[202].mxu0 %vm684_vm0, %v21857_v35 }
0x1628   : > { %18623 = vmatprep.mubr.msk.f32.mxu0 %vm19936_vm1, %v19935_v26 }
0x16a6   : > { %v10878_v29 = vpop.f32.mrb[188].mxu1 }
0x16a7   : > { %v18457_v49 = vpop.f32.mrb[189].mxu1  ;;  %18509 = vmatprep.mubr.msk.f32.mxu1 %vm1032_vm2, %v10878_v29 }
0x16ae   : > { %v10951_v59 = vpop.f32.mrb[172].mxu0 }
0x16af   : > { %v11024_v15 = vpop.f32.mrb[190].mxu1  ;;  %v18464_v9 = vpop.f32.mrb[173].mxu0  ;;  %18510 = vmatmul.mubr.msk.f32.vlgmr.msra.gmra.mrb[196].mxu1 %vm1032_vm2, %v10951_v59 }
0x16b0   : > { %v18471_v32 = vpop.f32.mrb[191].mxu1  ;;  %18512 = vmatprep.mubr.msk.f32.mxu1 %vm1032_vm2, %v11024_v15  ;;  %18522 = vmatpush3.msra.mxu1 %v9662_v40 }
0x16b1   : > { %19276 = vmatprep.subr.bf16.mxu1 %v19275_v57 }
0x16b6   : > { %v11097_v31 = vpop.f32.mrb[174].mxu0 }
0x16b7   : > { %v11170_v20 = vpop.f32.mrb[192].mxu1  ;;  %v18478_v30 = vpop.f32.mrb[175].mxu0  ;;  %18513 = vmatmul.mubr.msk.f32.gmra.mrb[198].mxu1 %vm1032_vm2, %v11097_v31 }
0x16b8   : > { %v18485_v10 = vpop.f32.mrb[193].mxu1  ;;  %18515 = vmatprep.mubr.msk.f32.mxu1 %vm1032_vm2, %v11170_v20 }
0x16be   : > { %v11243_v25 = vpop.f32.mrb[176].mxu0 }
0x16bf   : > { %v11316_v41 = vpop.f32.mrb[194].mxu1  ;;  %v18492_v37 = vpop.f32.mrb[177].mxu0  ;;  %18516 = vmatmul.mubr.msk.f32.gmra.mrb[200].mxu1 %vm1032_vm2, %v11243_v25 }
0x16c0   : > { %v18499_v45 = vpop.f32.mrb[195].mxu1  ;;  %18518 = vmatprep.mubr.msk.f32.mxu1 %vm1032_vm2, %v11316_v41 }
0x16c6   : > { %v11389_v52 = vpop.f32.mrb[178].mxu0 }
0x16c7   : > { %v18506_v12 = vpop.f32.mrb[179].mxu0  ;;  %18519 = vmatmul.mubr.msk.f32.gmra.mrb[202].mxu1 %vm1032_vm2, %v11389_v52 }
0x16c8   : > { %18523 = vmatprep.mubr.msk.f32.mxu1 %vm1032_vm2, %v21560_v16 }
0x16cb   : > { %18524 = vmatmul.mubr.msk.f32.vlgmr.msra.gmra.mrb[196].mxu1 %vm1032_vm2, %v21562_v17 }
0x16cc   : > { %18526 = vmatprep.mubr.msk.f32.mxu1 %vm1032_vm2, %v21568_v55  ;;  %19278 = vmatpush3.bf16.msra.mxu1 %v19275_v57 }
0x16cd   : > { %19280 = vmatprep.subr.bf16.mxu1 %v19279_v5 }
0x16ce   : > { %v18545_v1 = vpop.f32.mrb[180].mxu0 }
0x16cf   : > { %v11724_v33 = vpop.f32.mrb[181].mxu0  ;;  %18527 = vmatmul.mubr.msk.f32.gmra.mrb[198].mxu1 %vm1032_vm2, %v21564_v36 }
0x16d0   : > { %18529 = vmatprep.mubr.msk.f32.mxu1 %vm1032_vm2, %v21572_v58  ;;  %19282 = vmatpush3.bf16.msra.mxu1 %v19279_v5 }
0x16d1   : > { %19291 = vmatprep.subr.bf16.mxu1 %v19937_v44 }
0x16d2   : > { %v18548_v16 = vpop.f32.mrb[182].mxu0 }
0x16d3   : > { %v11734_v63 = vpop.f32.mrb[183].mxu0  ;;  %18530 = vmatmul.mubr.msk.f32.gmra.mrb[200].mxu1 %vm1032_vm2, %v21566_v53 }
0x16d4   : > { %18532 = vmatprep.mubr.msk.f32.mxu1 %vm1032_vm2, %v21574_v13 }
0x16d6   : > { %v21904_v17 = vpop.f32.mrb[184].mxu0 }
0x16d7   : > { %v21906_v55 = vpop.f32.mrb[185].mxu0  ;;  %18533 = vmatmul.mubr.msk.f32.gmra.mrb[202].mxu1 %vm1032_vm2, %v21570_v56 }
0x16d8   : > { %18595 = vmatprep.mubr.msk.f32.mxu1 %vm684_vm0, %v21782_v47 }
0x16da   : > { %v21912_v36 = vpop.f32.mrb[186].mxu0 }
0x16db   : > { %v21914_v58 = vpop.f32.mrb[187].mxu0  ;;  %18596 = vmatmul.mubr.msk.f32.vlgmr.msra.gmra.mrb[204].mxu1 %vm684_vm0, %v21787_v6 }
0x16dc   : > { %18598 = vmatprep.mubr.msk.f32.mxu1 %vm684_vm0, %v21792_v39 }
0x16de   : > { %v18565_v53 = vpop.f32.mrb[188].mxu0 }
0x16df   : > { %v11834_v13 = vpop.f32.mrb[189].mxu0  ;;  %18599 = vmatmul.mubr.msk.f32.gmra.mrb[206].mxu1 %vm684_vm0, %v21797_v38 }
0x16e0   : > { %v19284_v42 = vpack.c.bf16 %v18565_v53, %v11834_v13  ;;  %18601 = vmatprep.mubr.msk.f32.mxu1 %vm684_vm0, %v21802_v61 }
0x16e2   : > { %19286 = vmatpush3.bf16.xpose.msk.msra.mxu0 %vm21263_vm3, %v19284_v42  ;;  %v18568_v56 = vpop.f32.mrb[190].mxu0 }
0x16e3   : > { %18602 = vmatmul.mubr.msk.f32.gmra.mrb[208].mxu1 %vm684_vm0, %v21807_v60  ;;  %v11844_v19 = vpop.f32.mrb[191].mxu0  ;;  %19287 = vmatprep.subr.bf16.mxu0 %v19937_v44 }
0x16e4   : > { %v19288_v40 = vpack.c.bf16 %v18568_v56, %v11844_v19  ;;  %18604 = vmatprep.mubr.msk.f32.mxu1 %vm684_vm0, %v21812_v0 }
0x16e6   : > { %v18571_v29 = vpop.f32.mrb[192].mxu0 }
0x16e7   : > { %18605 = vmatmul.mubr.msk.f32.gmra.mrb[210].mxu1 %vm684_vm0, %v21817_v62  ;;  %v11854_v49 = vpop.f32.mrb[193].mxu0 }
0x16e8   : > { %18607 = vmatprep.mubr.msk.f32.mxu1 %vm684_vm0, %v21822_v46  ;;  %v19292_v54 = vpack.c.bf16 %v18571_v29, %v11854_v49 }
0x16e9   : > { %18624 = vmatmul.mubr.msk.f32.vlgmr.msra.gmra.mrb[204].mxu0 %vm1032_vm2, %v11724_v33 }
0x16ea   : > { %19290 = vmatpush3.bf16.xpose.msk.msra.mxu0 %vm21263_vm3, %v19288_v40  ;;  %v18574_v50 = vpop.f32.mrb[194].mxu0  ;;  %18630 = vmatprep.mubr.msk.f32.mxu0 %vm19936_vm1, %v19935_v26 }
0x16eb   : > { %18608 = vmatmul.mubr.msk.f32.gmra.mrb[212].mxu1 %vm684_vm0, %v21827_v7  ;;  %v11864_v57 = vpop.f32.mrb[195].mxu0  ;;  %19295 = vmatprep.subr.bf16.mxu0 %v19937_v44 }
0x16ec   : > { %v19296_v59 = vpack.c.bf16 %v18574_v50, %v11864_v57  ;;  %18610 = vmatprep.mubr.msk.f32.mxu1 %vm684_vm0, %v21832_v11  ;;  %19294 = vmatpush3.bf16.xpose.msk.msra.mxu1 %vm21263_vm3, %v19292_v54 }
0x16ed   : > { %19299 = vmatprep.subr.bf16.mxu1 %v19937_v44 }
0x16ee   : > { %v18577_v15 = vpop.f32.mrb[196].mxu0 }
0x16ef   : > { %18611 = vmatmul.mubr.msk.f32.gmra.mrb[214].mxu1 %vm684_vm0, %v21837_v3  ;;  %v11874_v9 = vpop.f32.mrb[197].mxu0 }
0x16f0   : > { %18613 = vmatprep.mubr.msk.f32.mxu1 %vm684_vm0, %v21842_v4  ;;  %v19300_v32 = vpack.c.bf16 %v18577_v15, %v11874_v9 }
0x16f1   : > { %18631 = vmatmul.mubr.msk.f32.vlgmr.msra.gmra.mrb[206].mxu0 %vm1032_vm2, %v18545_v1 }
0x16f2   : > { %19298 = vmatpush3.bf16.xpose.msk.msra.mxu0 %vm21263_vm3, %v19296_v59  ;;  %v18580_v31 = vpop.f32.mrb[198].mxu0  ;;  %18644 = vmatprep.mubr.msk.f32.mxu0 %vm19936_vm1, %v19935_v26 }
0x16f3   : > { %18614 = vmatmul.mubr.msk.f32.gmra.mrb[216].mxu1 %vm684_vm0, %v21847_v28  ;;  %v11884_v20 = vpop.f32.mrb[199].mxu0  ;;  %19303 = vmatprep.subr.bf16.mxu0 %v19937_v44 }
0x16f4   : > { %v19304_v30 = vpack.c.bf16 %v18580_v31, %v11884_v20  ;;  %18616 = vmatprep.mubr.msk.f32.mxu1 %vm684_vm0, %v21852_v14 }
0x16f6   : > { %v18583_v10 = vpop.f32.mrb[200].mxu0 }
0x16f7   : > { %18617 = vmatmul.mubr.msk.f32.gmra.mrb[218].mxu1 %vm684_vm0, %v21857_v35  ;;  %v11894_v25 = vpop.f32.mrb[201].mxu0 }
0x16f8   : > { %18637 = vmatprep.mubr.msk.f32.mxu1 %vm19936_vm1, %v19935_v26  ;;  %v19308_v41 = vpack.c.bf16 %v18583_v10, %v11894_v25 }
0x16f9   : > { %18645 = vmatmul.mubr.msk.f32.vlgmr.msra.gmra.mrb[208].mxu0 %vm1032_vm2, %v18548_v16 }
0x16fa   : > { %19306 = vmatpush3.bf16.xpose.msk.msra.mxu0 %vm21263_vm3, %v19304_v30  ;;  %v18586_v37 = vpop.f32.mrb[202].mxu0  ;;  %18658 = vmatprep.mubr.msk.f32.mxu0 %vm19936_vm1, %v19935_v26 }
0x16fb   : > { %18638 = vmatmul.mubr.msk.f32.vlgmr.msra.gmra.mrb[220].mxu1 %vm1032_vm2, %v11734_v63  ;;  %v11904_v45 = vpop.f32.mrb[203].mxu0  ;;  %19311 = vmatprep.subr.bf16.mxu0 %v19937_v44 }
0x16fc   : > { %19302 = vmatpush3.bf16.xpose.msk.msra.mxu1 %vm21263_vm3, %v19300_v32  ;;  %v19312_v52 = vpack.c.bf16 %v18586_v37, %v11904_v45  ;;  %18651 = vmatprep.mubr.msk.f32.mxu1 %vm19936_vm1, %v19935_v26 }
0x16fd   : > { %19307 = vmatprep.subr.bf16.mxu1 %v19937_v44 }
0x1701   : > { %18659 = vmatmul.mubr.msk.f32.vlgmr.msra.gmra.mrb[210].mxu0 %vm1032_vm2, %v21904_v17 }
0x1702   : > { %19314 = vmatpush3.bf16.xpose.msk.msra.mxu0 %vm21263_vm3, %v19312_v52  ;;  %18672 = vmatprep.mubr.msk.f32.mxu0 %vm19936_vm1, %v19935_v26 }
0x1703   : > { %18652 = vmatmul.mubr.msk.f32.vlgmr.msra.gmra.mrb[222].mxu1 %vm1032_vm2, %v21906_v55  ;;  %19321 = vmatprep.subr.bf16.mxu0 %v19937_v44 }
0x1704   : > { %19310 = vmatpush3.bf16.xpose.msk.msra.mxu1 %vm21263_vm3, %v19308_v41  ;;  %18665 = vmatprep.mubr.msk.f32.mxu1 %vm19936_vm1, %v19935_v26 }
0x1705   : > { %19315 = vmatprep.subr.bf16.mxu1 %v19937_v44 }
0x1709   : > { %18673 = vmatmul.mubr.msk.f32.vlgmr.msra.gmra.mrb[212].mxu0 %vm1032_vm2, %v21912_v36 }
0x170a   : > { %18693 = vmatprep.mubr.msk.f32.mxu0 %vm19936_vm1, %v19935_v26 }
0x170b   : > { %18666 = vmatmul.mubr.msk.f32.vlgmr.msra.gmra.mrb[224].mxu1 %vm1032_vm2, %v21914_v58 }
0x170c   : > { %18679 = vmatprep.mubr.msk.f32.mxu1 %vm19936_vm1, %v19935_v26 }
0x17ae   : > { %v18597_v48 = vpop.f32.mrb[204].mxu1 }
0x17af   : > { %v11984_v24 = vpop.f32.mrb[205].mxu1 }
0x17b0   : > { %v19316_v12 = vpack.c.bf16 %v18597_v48, %v11984_v24 }
0x17b2   : > { %v22000_v5 = vpop.f32.mrb[206].mxu1  ;;  %19317 = vmatpush3.bf16.msra.mxu1 %v19316_v12 }
0x17b3   : > { %v22002_v1 = vpop.f32.mrb[207].mxu1  ;;  %19318 = vmatprep.subr.bf16.mxu1 %v19937_v44 }
0x17b4   : > { %v19319_v33 = vpack.c.bf16 %v22000_v5, %v22002_v1 }
0x17b6   : > { %v18603_v16 = vpop.f32.mrb[208].mxu1 }
0x17b7   : > { %v12004_v63 = vpop.f32.mrb[209].mxu1 }
0x17b8   : > { %v19322_v17 = vpack.c.bf16 %v18603_v16, %v12004_v63 }
0x17ba   : > { %v22007_v55 = vpop.f32.mrb[210].mxu1  ;;  %19323 = vmatpush3.bf16.msra.mxu0 %v19322_v17 }
0x17bb   : > { %v22009_v36 = vpop.f32.mrb[211].mxu1  ;;  %19327 = vmatprep.subr.bf16.mxu0 %v19937_v44 }
0x17bc   : > { %v12138_v53 = vpop.f32.mrb[204].mxu0 }
0x17bd   : > { %v12695_v13 = vmul.f32 0.35355338, %v12138_v53  ;;  %v18625_v42 = vpop.f32.mrb[205].mxu0 }
0x17be   : > { %v22014_v56 = vpop.f32.mrb[212].mxu1 }
0x17bf   : > { %v12703_v19 = vsel %vm7859_vm4, %v12695_v13, -1e+30  ;;  %v22018_v40 = vpop.f32.mrb[213].mxu1 }
0x17c0   : > { %v12711_v49 = vsel %vm8989_vm5, %v12703_v19, -inf }
0x17c1   : > { %12712 = vmax.xlane.f32.xlu0 %v12711_v49 }
0x17c2   : > { %v22023_v54 = vpop.f32.mrb[214].mxu1 }
0x17c3   : > { %v22025_v50 = vpop.f32.mrb[215].mxu1 }
0x17c4   : > { %v12217_v59 = vpop.f32.mrb[206].mxu0 }
0x17c5   : > { %v12696_v15 = vmul.f32 0.35355338, %v12217_v59  ;;  %v18632_v9 = vpop.f32.mrb[207].mxu0 }
0x17c6   : > { %v22029_v32 = vpop.f32.mrb[216].mxu1 }
0x17c7   : > { %v12704_v31 = vsel %vm7859_vm4, %v12696_v15, -1e+30  ;;  %v22033_v20 = vpop.f32.mrb[217].mxu1 }
0x17c8   : > { %v12714_v10 = vsel %vm8989_vm5, %v12704_v31, -inf }
0x17c9   : > { %12715 = vmax.xlane.f32.xlu1 %v12714_v10 }
0x17ca   : > { %v22038_v25 = vpop.f32.mrb[218].mxu1 }
0x17cb   : > { %v22040_v41 = vpop.f32.mrb[219].mxu1 }
0x17cc   : > { %v12375_v45 = vpop.f32.mrb[208].mxu0 }
0x17cd   : > { %v12698_v52 = vmul.f32 0.35355338, %v12375_v45  ;;  %v18646_v48 = vpop.f32.mrb[209].mxu0 }
0x17ce   : > { %v12296_v24 = vpop.f32.mrb[220].mxu1 }
0x17cf   : > { %v12706_v12 = vsel %vm7859_vm4, %v12698_v52, -1e+30  ;;  %v12697_v16 = vmul.f32 0.35355338, %v12296_v24  ;;  %v18639_v63 = vpop.f32.mrb[221].mxu1 }
0x17d0   : > { %v12720_v17 = vsel %vm8989_vm5, %v12706_v12, -inf }
0x17d1   : > { %v12705_v53 = vsel %vm7859_vm4, %v12697_v16, -1e+30  ;;  %12721 = vmax.xlane.f32.xlu1 %v12720_v17 }
0x17d2   : > { %v12717_v13 = vsel %vm8989_vm5, %v12705_v53, -inf }
0x17d3   : > { %12718 = vmax.xlane.f32.xlu0 %v12717_v13 }
0x17d4   : > { %v12533_v42 = vpop.f32.mrb[210].mxu0 }
0x17d5   : > { %v12700_v49 = vmul.f32 0.35355338, %v12533_v42  ;;  %v18660_v59 = vpop.f32.mrb[211].mxu0 }
0x17d6   : > { %v12454_v15 = vpop.f32.mrb[222].mxu1 }
0x17d7   : > { %v12708_v9 = vsel %vm7859_vm4, %v12700_v49, -1e+30  ;;  %v12699_v10 = vmul.f32 0.35355338, %v12454_v15  ;;  %v18653_v45 = vpop.f32.mrb[223].mxu1 }
0x17d8   : > { %v12726_v52 = vsel %vm8989_vm5, %v12708_v9, -inf }
0x17d9   : > { %v12707_v48 = vsel %vm7859_vm4, %v12699_v10, -1e+30  ;;  %12727 = vmax.xlane.f32.xlu1 %v12726_v52 }
0x17da   : > { %v12723_v24 = vsel %vm8989_vm5, %v12707_v48, -inf }
0x17db   : > { %12724 = vmax.xlane.f32.xlu0 %v12723_v24 }
0x17dc   : > { %v12691_v16 = vpop.f32.mrb[212].mxu0 }
0x17dd   : > { %v12702_v63 = vmul.f32 0.35355338, %v12691_v16  ;;  %v18674_v17 = vpop.f32.mrb[213].mxu0 }
0x17de   : > { %v12612_v13 = vpop.f32.mrb[224].mxu1 }
0x17df   : > { %v12710_v42 = vsel %vm7859_vm4, %v12702_v63, -1e+30  ;;  %v12701_v59 = vmul.f32 0.35355338, %v12612_v13  ;;  %v18667_v49 = vpop.f32.mrb[225].mxu1 }
0x17e0   : > { %v12732_v15 = vsel %vm8989_vm5, %v12710_v42, -inf }
0x17e1   : > { %v12709_v45 = vsel %vm7859_vm4, %v12701_v59, -1e+30  ;;  %12733 = vmax.xlane.f32.xlu1 %v12732_v15 }
0x17e2   : > { %v12729_v10 = vsel %vm8989_vm5, %v12709_v45, -inf }
0x17e3   : > { %12730 = vmax.xlane.f32.xlu0 %v12729_v10 }
0x184e   : > { %v12713_v52 = vpop.xlane.xlu0 %12712 }
0x184f   : > { %v12735_v24 = vsub.f32 %v12703_v19, %v12713_v52 }
0x1851   : > { %v12743_v30 = vmul.f32 1.442695, %v12735_v24 }
0x1853   : > { %19743 = vpow2.f32 %v12743_v30 }
0x1856   : > { %v12716_v16 = vpop.xlane.xlu1 %12715 }
0x1857   : > { %v12736_v17 = vsub.f32 %v12704_v31, %v12716_v16 }
0x1859   : > { %v12745_v37 = vmul.f32 1.442695, %v12736_v17 }
0x185b   : > { %19745 = vpow2.f32 %v12745_v37 }
0x185d   : > { %v19744_v63 = vpop.eup %19743 }
0x185e   : > { %v12722_v13 = vpop.xlane.xlu1 %12721  ;;  %v12759_v49 = vsel %vm8989_vm5, %v19744_v63, 0.0 }
0x185f   : > { %v12738_v29 = vsub.f32 %v12706_v12, %v12722_v13  ;;  %12760 = vadd.xlane.f32.xlu0 %v12759_v49 }
0x1860   : > { %v12719_v57 = vpop.xlane.xlu0 %12718 }
0x1861   : > { %v12749_v59 = vmul.f32 1.442695, %v12738_v29  ;;  %v12737_v15 = vsub.f32 %v12705_v53, %v12719_v57 }
0x1863   : > { %19747 = vpow2.f32 %v12749_v59  ;;  %v12747_v58 = vmul.f32 1.442695, %v12737_v15 }
0x1865   : > { %v19746_v10 = vpop.eup %19745  ;;  %19749 = vpow2.f32 %v12747_v58 }
0x1866   : > { %v12728_v19 = vpop.xlane.xlu1 %12727  ;;  %v12762_v30 = vsel %vm8989_vm5, %v19746_v10, 0.0 }
0x1867   : > { %v12740_v52 = vsub.f32 %v12708_v9, %v12728_v19  ;;  %12763 = vadd.xlane.f32.xlu1 %v12762_v30 }
0x1868   : > { %v12725_v31 = vpop.xlane.xlu0 %12724 }
0x1869   : > { %v12753_v37 = vmul.f32 1.442695, %v12740_v52  ;;  %v12739_v24 = vsub.f32 %v12707_v48, %v12725_v31 }
0x186b   : > { %19751 = vpow2.f32 %v12753_v37  ;;  %v12751_v16 = vmul.f32 1.442695, %v12739_v24 }
0x186d   : > { %v19748_v17 = vpop.eup %19747  ;;  %19753 = vpow2.f32 %v12751_v16 }
0x186e   : > { %v12734_v12 = vpop.xlane.xlu1 %12733  ;;  %v12768_v29 = vsel %vm8989_vm5, %v19748_v17, 0.0 }
0x186f   : > { %v19750_v57 = vpop.eup %19749  ;;  %v12742_v53 = vsub.f32 %v12710_v42, %v12734_v12  ;;  %12769 = vadd.xlane.f32.xlu1 %v12768_v29 }
0x1870   : > { %v12731_v13 = vpop.xlane.xlu0 %12730  ;;  %v12765_v58 = vsel %vm8989_vm5, %v19750_v57, 0.0 }
0x1871   : > { %v12757_v49 = vmul.f32 1.442695, %v12742_v53  ;;  %v12741_v59 = vsub.f32 %v12709_v45, %v12731_v13  ;;  %12766 = vadd.xlane.f32.xlu0 %v12765_v58 }
0x1873   : > { %19755 = vpow2.f32 %v12757_v49  ;;  %v12755_v9 = vmul.f32 1.442695, %v12741_v59 }
0x1875   : > { %v19752_v15 = vpop.eup %19751  ;;  %19757 = vpow2.f32 %v12755_v9 }
0x1876   : > { %v12774_v48 = vsel %vm8989_vm5, %v19752_v15, 0.0 }
0x1877   : > { %v19754_v19 = vpop.eup %19753  ;;  %12775 = vadd.xlane.f32.xlu1 %v12774_v48 }
0x1878   : > { %v12771_v30 = vsel %vm8989_vm5, %v19754_v19, 0.0 }
0x1879   : > { %12772 = vadd.xlane.f32.xlu0 %v12771_v30 }
0x187d   : > { %v22068_v52 = vpop.eup %19755 }
0x187e   : > { %v12780_v42 = vsel %vm8989_vm5, %v22068_v52, 0.0 }
0x187f   : > { %v22072_v31 = vpop.eup %19757  ;;  %12781 = vadd.xlane.f32.xlu1 %v12780_v42  ;;  %v22823_v42 = vpack.c.bf16 %v22038_v25, %v22040_v41  ;;  %v16608_v25 = vld [vmem:[%s22763_s8 + $0x78] sm:$0xff] }
0x1880   : > { %v12777_v45 = vsel %vm8989_vm5, %v22072_v31, 0.0 }
0x1881   : > { %12778 = vadd.xlane.f32.xlu0 %v12777_v45  ;;  %v22824_v45 = vpack.c.bf16 %v22029_v32, %v22033_v20  ;;  %v16596_v20 = vld [vmem:[%s22766_s11 + $0x10] sm:$0xff] }
0x18ec   : > { %v12761_v37 = vpop.xlane.xlu0 %12760 }
0x18ed   : > { %19759 = vrcp.f32 %v12761_v37 }
0x18f4   : > { %v12764_v24 = vpop.xlane.xlu1 %12763 }
0x18f5   : > { %19761 = vrcp.f32 %v12764_v24 }
0x18f7   : > { %v19760_v16 = vpop.eup %19759 }
0x18f8   : > { %v12791_v12 = vmul.f32 %v19760_v16, %v19744_v63  ;;  %v22820_v63 = vpack.c.bf16 %v22007_v55, %v22009_v36  ;;  %v22822_v36 = vpack.c.bf16 %v22014_v56, %v22018_v40 }
0x18fa   : > { %18680 = vmatmul.mubr.msk.f32.vlgmr.msra.gmra.mrb[226].mxu1 %vm8989_vm5, %v12791_v12  ;;  %v16637_v12 = vld [vmem:[%s22765_s10 + $0x60] sm:$0xff] }
0x18fb   : > { %19320 = vmatpush3.bf16.msra.mxu1 %v19319_v33  ;;  %18686 = vmatprep.mubr.msk.f32.mxu1 %vm19936_vm1, %v19935_v26 }
0x18fc   : > { %v12770_v29 = vpop.xlane.xlu1 %12769  ;;  %19324 = vmatprep.subr.bf16.mxu1 %v19937_v44 }
0x18fd   : > { %19763 = vrcp.f32 %v12770_v29  ;;  %v16638_v29 = vld [vmem:[%s22765_s10 + $0x68] sm:$0xff] }
0x18fe   : > { %v12767_v53 = vpop.xlane.xlu0 %12766 }
0x18ff   : > { %v19762_v13 = vpop.eup %19761  ;;  %19765 = vrcp.f32 %v12767_v53  ;;  %v16639_v53 = vld [vmem:[%s22765_s10 + $0x70] sm:$0xff] }
0x1900   : > { %v12792_v58 = vmul.f32 %v19762_v13, %v19746_v10  ;;  %v22821_v10 = vpack.c.bf16 %v22023_v54, %v22025_v50  ;;  %v16605_v50 = vld [vmem:[%s22763_s8 + $0x60] sm:$0xff]  ;;  %v19355_v13 = vpack.c.bf16 %v16638_v29, %v16637_v12 }
0x1902   : > { %18687 = vmatmul.mubr.msk.f32.vlgmr.msra.gmra.mrb[228].mxu1 %vm8989_vm5, %v12792_v58  ;;  %v16640_v58 = vld [vmem:[%s22765_s10 + $0x78] sm:$0xff] }
0x1903   : > { %19326 = vmatpush3.bf16.msra.mxu1 %v22820_v63  ;;  %18700 = vmatprep.mubr.msk.f32.mxu1 %vm19936_vm1, %v19935_v26  ;;  %v19359_v63 = vpack.c.bf16 %v16640_v58, %v16639_v53 }
0x1904   : > { %v12776_v5 = vpop.xlane.xlu1 %12775  ;;  %19330 = vmatprep.subr.bf16.mxu1 %v19937_v44 }
0x1905   : > { %19767 = vrcp.f32 %v12776_v5 }
0x1906   : > { %v12773_v1 = vpop.xlane.xlu0 %12772 }
0x1907   : > { %v19764_v33 = vpop.eup %19763  ;;  %19769 = vrcp.f32 %v12773_v1 }
0x1908   : > { %v12794_v49 = vmul.f32 %v19764_v33, %v19748_v17  ;;  %v16619_v33 = vld [vmem:[%s22764_s9 + $0x70] sm:$0xff] }
0x1909   : > { %v19766_v59 = vpop.eup %19765 }
0x190a   : > { %v12793_v9 = vmul.f32 %v19766_v59, %v19750_v57  ;;  %18701 = vmatmul.mubr.msk.f32.vlgmr.msra.gmra.mrb[230].mxu1 %vm8989_vm5, %v12794_v49  ;;  %v16606_v57 = vld [vmem:[%s22763_s8 + $0x68] sm:$0xff]  ;;  %v16620_v49 = vld [vmem:[%s22764_s9 + $0x78] sm:$0xff] }
0x190b   : > { %19332 = vmatpush3.bf16.msra.mxu1 %v22821_v10  ;;  %18714 = vmatprep.mubr.msk.f32.mxu1 %vm19936_vm1, %v19935_v26  ;;  %v19339_v40 = vpack.c.bf16 %v16606_v57, %v16605_v50  ;;  %v19351_v59 = vpack.c.bf16 %v16620_v49, %v16619_v33 }
0x190c   : > { %v12782_v55 = vpop.xlane.xlu1 %12781  ;;  %18694 = vmatmul.mubr.msk.f32.vlgmr.msra.gmra.mrb[214].mxu0 %vm8989_vm5, %v12793_v9  ;;  %19336 = vmatprep.subr.bf16.mxu1 %v19937_v44 }
0x190d   : > { %19771 = vrcp.f32 %v12782_v55  ;;  %19329 = vmatpush3.bf16.msra.mxu0 %v22822_v36  ;;  %18707 = vmatprep.mubr.msk.f32.mxu0 %vm19936_vm1, %v19935_v26 }
0x190e   : > { %v12779_v17 = vpop.xlane.xlu0 %12778  ;;  %19333 = vmatprep.subr.bf16.mxu0 %v19937_v44 }
0x190f   : > { %v19768_v54 = vpop.eup %19767  ;;  %19773 = vrcp.f32 %v12779_v17 }
0x1910   : > { %v12796_v48 = vmul.f32 %v19768_v54, %v19752_v15 }
0x1911   : > { %v19770_v30 = vpop.eup %19769 }
0x1912   : > { %v12795_v56 = vmul.f32 %v19770_v30, %v19754_v19  ;;  %18715 = vmatmul.mubr.msk.f32.vlgmr.msra.gmra.mrb[232].mxu1 %vm8989_vm5, %v12796_v48  ;;  %v16607_v19 = vld [vmem:[%s22763_s8 + $0x70] sm:$0xff] }
0x1913   : > { %19338 = vmatpush3.bf16.msra.mxu1 %v22823_v42  ;;  %18728 = vmatprep.mubr.msk.f32.mxu1 %vm19936_vm1, %v19935_v26  ;;  %v19343_v32 = vpack.c.bf16 %v16608_v25, %v16607_v19 }
0x1914   : > { %18708 = vmatmul.mubr.msk.f32.vlgmr.msra.gmra.mrb[216].mxu0 %vm8989_vm5, %v12795_v56  ;;  %18731 = vmatprep.subr.mxu1 %v16596_v20 }
0x1915   : > { %19335 = vmatpush3.bf16.msra.mxu0 %v22824_v45  ;;  %18721 = vmatprep.mubr.msk.f32.mxu0 %vm19936_vm1, %v19935_v26 }
0x1916   : > { %19340 = vmatprep.subr.bf16.mxu0 %v19339_v40 }
0x1917   : > { %v19772_v15 = vpop.eup %19771 }
0x1918   : > { %v12798_v41 = vmul.f32 %v19772_v15, %v22068_v52  ;;  %v16617_v52 = vld [vmem:[%s22764_s9 + $0x60] sm:$0xff] }
0x1919   : > { %v19774_v37 = vpop.eup %19773 }
0x191a   : > { %v12797_v24 = vmul.f32 %v19774_v37, %v22072_v31  ;;  %18729 = vmatmul.mubr.msk.f32.vlgmr.msra.gmra.mrb[234].mxu1 %vm8989_vm5, %v12798_v41  ;;  %v16618_v31 = vld [vmem:[%s22764_s9 + $0x68] sm:$0xff] }
0x191b   : > { %18732 = vmatpush3.msra.mxu1 %v16596_v20  ;;  %v19347_v16 = vpack.c.bf16 %v16618_v31, %v16617_v52 }
0x191c   : > { %18722 = vmatmul.mubr.msk.f32.vlgmr.msra.gmra.mrb[218].mxu0 %vm8989_vm5, %v12797_v24 }
0x191d   : > { %19342 = vmatpush3.bf16.msra.mxu0 %v19339_v40  ;;  %18753 = vmatprep.mubr.msk.f32.mxu0 %vm684_vm0, %v21189_v43 }
0x191e   : > { %19344 = vmatprep.subr.bf16.mxu0 %v19343_v32  ;;  %19348 = vmatprep.subr.bf16.mxu1 %v19347_v16 }
0x1921   : > { %19346 = vmatpush3.bf16.msra.mxu0 %v19343_v32 }
0x1922   : > { %19356 = vmatprep.subr.bf16.mxu0 %v19355_v13 }
0x1924   : > { %18754 = vmatmul.mubr.msk.f32.vlgmr.msra.gmra.mrb[220].mxu0 %vm684_vm0, %v21191_v51 }
0x1925   : > { %18756 = vmatprep.mubr.msk.f32.mxu0 %vm684_vm0, %v21199_v2  ;;  %19358 = vmatpush3.bf16.msra.mxu0 %v19355_v13 }
0x1926   : > { %19360 = vmatprep.subr.bf16.mxu0 %v19359_v63 }
0x1928   : > { %18757 = vmatmul.mubr.msk.f32.gmra.mrb[222].mxu0 %vm684_vm0, %v21202_v34 }
0x1929   : > { %18759 = vmatprep.mubr.msk.f32.mxu0 %vm684_vm0, %v21210_v8  ;;  %19362 = vmatpush3.bf16.msra.mxu0 %v19359_v63 }
0x192a   : > { %19367 = vmatprep.subr.bf16.mxu0 %v19937_v44 }
0x192c   : > { %18760 = vmatmul.mubr.msk.f32.gmra.mrb[224].mxu0 %vm684_vm0, %v21212_v22 }
0x192d   : > { %18762 = vmatprep.mubr.msk.f32.mxu0 %vm684_vm0, %v21219_v23 }
0x1930   : > { %18763 = vmatmul.mubr.msk.f32.gmra.mrb[226].mxu0 %vm684_vm0, %v21221_v18 }
0x1931   : > { %18805 = vmatprep.mubr.msk.f32.mxu0 %vm684_vm0, %v21782_v47 }
0x1934   : > { %18806 = vmatmul.mubr.msk.f32.vlgmr.msra.gmra.mrb[228].mxu0 %vm684_vm0, %v21787_v6 }
0x1935   : > { %18808 = vmatprep.mubr.msk.f32.mxu0 %vm684_vm0, %v21792_v39 }
0x1938   : > { %18809 = vmatmul.mubr.msk.f32.gmra.mrb[230].mxu0 %vm684_vm0, %v21797_v38 }
0x1939   : > { %18811 = vmatprep.mubr.msk.f32.mxu0 %vm684_vm0, %v21802_v61 }
0x193c   : > { %18812 = vmatmul.mubr.msk.f32.gmra.mrb[232].mxu0 %vm684_vm0, %v21807_v60 }
0x193d   : > { %18814 = vmatprep.mubr.msk.f32.mxu0 %vm684_vm0, %v21812_v0 }
0x1940   : > { %18815 = vmatmul.mubr.msk.f32.gmra.mrb[234].mxu0 %vm684_vm0, %v21817_v62 }
0x1941   : > { %18817 = vmatprep.mubr.msk.f32.mxu0 %vm684_vm0, %v21822_v46 }
0x1944   : > { %18818 = vmatmul.mubr.msk.f32.gmra.mrb[236].mxu0 %vm684_vm0, %v21827_v7 }
0x1945   : > { %18820 = vmatprep.mubr.msk.f32.mxu0 %vm684_vm0, %v21832_v11 }
0x1948   : > { %18821 = vmatmul.mubr.msk.f32.gmra.mrb[238].mxu0 %vm684_vm0, %v21837_v3 }
0x1949   : > { %18823 = vmatprep.mubr.msk.f32.mxu0 %vm684_vm0, %v21842_v4 }
0x194c   : > { %18824 = vmatmul.mubr.msk.f32.gmra.mrb[240].mxu0 %vm684_vm0, %v21847_v28 }
0x194d   : > { %18826 = vmatprep.mubr.msk.f32.mxu0 %vm684_vm0, %v21852_v14 }
0x1950   : > { %18827 = vmatmul.mubr.msk.f32.gmra.mrb[242].mxu0 %vm684_vm0, %v21857_v35 }
0x1951   : > { %18840 = vmatprep.mubr.msk.f32.mxu0 %vm19936_vm1, %v19935_v26 }
0x19cd   : > { %v12868_v5 = vpop.f32.mrb[226].mxu1 }
0x19ce   : > { %v18681_v1 = vpop.f32.mrb[227].mxu1  ;;  %18733 = vmatprep.mubr.msk.f32.mxu1 %vm1032_vm2, %v12868_v5 }
0x19d5   : > { %v12941_v9 = vpop.f32.mrb[228].mxu1 }
0x19d6   : > { %v18688_v10 = vpop.f32.mrb[229].mxu1  ;;  %18734 = vmatmul.mubr.msk.f32.vlgmr.msra.gmra.mrb[196].mxu1 %vm1032_vm2, %v12941_v9 }
0x19d7   : > { %19350 = vmatpush3.bf16.msra.mxu1 %v19347_v16 }
0x19d8   : > { %19352 = vmatprep.subr.bf16.mxu1 %v19351_v59 }
0x19db   : > { %19354 = vmatpush3.bf16.msra.mxu1 %v19351_v59 }
0x19dc   : > { %19363 = vmatprep.subr.bf16.mxu1 %v19937_v44 }
0x19dd   : > { %v13087_v55 = vpop.f32.mrb[230].mxu1 }
0x19de   : > { %v18702_v36 = vpop.f32.mrb[231].mxu1 }
0x19df   : > { %v13014_v17 = vpop.f32.mrb[214].mxu0 }
0x19e0   : > { %v18695_v54 = vpop.f32.mrb[215].mxu0  ;;  %18736 = vmatprep.mubr.msk.f32.mxu1 %vm1032_vm2, %v13014_v17 }
0x19e1   : > { %18737 = vmatmul.mubr.msk.f32.gmra.mrb[198].mxu1 %vm1032_vm2, %v13087_v55 }
0x19e5   : > { %v13233_v50 = vpop.f32.mrb[232].mxu1 }
0x19e6   : > { %v18716_v57 = vpop.f32.mrb[233].mxu1 }
0x19e7   : > { %v13160_v48 = vpop.f32.mrb[216].mxu0 }
0x19e8   : > { %v18709_v30 = vpop.f32.mrb[217].mxu0  ;;  %18739 = vmatprep.mubr.msk.f32.mxu1 %vm1032_vm2, %v13160_v48 }
0x19e9   : > { %18740 = vmatmul.mubr.msk.f32.gmra.mrb[200].mxu1 %vm1032_vm2, %v13233_v50 }
0x19ed   : > { %v13379_v56 = vpop.f32.mrb[234].mxu1 }
0x19ee   : > { %v18730_v40 = vpop.f32.mrb[235].mxu1 }
0x19ef   : > { %v13306_v42 = vpop.f32.mrb[218].mxu0 }
0x19f0   : > { %v18723_v45 = vpop.f32.mrb[219].mxu0  ;;  %18742 = vmatprep.mubr.msk.f32.mxu1 %vm1032_vm2, %v13306_v42 }
0x19f1   : > { %18743 = vmatmul.mubr.msk.f32.gmra.mrb[202].mxu1 %vm1032_vm2, %v13379_v56 }
0x19f2   : > { %18773 = vmatprep.mubr.msk.f32.mxu1 %vm684_vm0, %v21782_v47 }
0x19f5   : > { %18774 = vmatmul.mubr.msk.f32.vlgmr.msra.gmra.mrb[236].mxu1 %vm684_vm0, %v21787_v6 }
0x19f6   : > { %18776 = vmatprep.mubr.msk.f32.mxu1 %vm684_vm0, %v21792_v39 }
0x19f7   : > { %v18755_v15 = vpop.f32.mrb[220].mxu0 }
0x19f8   : > { %v13593_v19 = vpop.f32.mrb[221].mxu0 }
0x19f9   : > { %18777 = vmatmul.mubr.msk.f32.gmra.mrb[238].mxu1 %vm684_vm0, %v21797_v38 }
0x19fa   : > { %18779 = vmatprep.mubr.msk.f32.mxu1 %vm684_vm0, %v21802_v61 }
0x19fb   : > { %v22229_v25 = vpop.f32.mrb[222].mxu0 }
0x19fc   : > { %v22231_v41 = vpop.f32.mrb[223].mxu0 }
0x19fd   : > { %18780 = vmatmul.mubr.msk.f32.gmra.mrb[240].mxu1 %vm684_vm0, %v21807_v60 }
0x19fe   : > { %18782 = vmatprep.mubr.msk.f32.mxu1 %vm684_vm0, %v21812_v0 }
0x19ff   : > { %v22237_v47 = vpop.f32.mrb[224].mxu0 }
0x1a00   : > { %v22239_v6 = vpop.f32.mrb[225].mxu0 }
0x1a01   : > { %18783 = vmatmul.mubr.msk.f32.gmra.mrb[242].mxu1 %vm684_vm0, %v21817_v62 }
0x1a02   : > { %18785 = vmatprep.mubr.msk.f32.mxu1 %vm684_vm0, %v21822_v46 }
0x1a03   : > { %v22245_v39 = vpop.f32.mrb[226].mxu0 }
0x1a04   : > { %v22247_v38 = vpop.f32.mrb[227].mxu0 }
0x1a05   : > { %18786 = vmatmul.mubr.msk.f32.gmra.mrb[244].mxu1 %vm684_vm0, %v21827_v7 }
0x1a06   : > { %18788 = vmatprep.mubr.msk.f32.mxu1 %vm684_vm0, %v21832_v11 }
0x1a07   : > { %v22265_v61 = vpop.f32.mrb[228].mxu0 }
0x1a08   : > { %v22267_v60 = vpop.f32.mrb[229].mxu0 }
0x1a09   : > { %18789 = vmatmul.mubr.msk.f32.gmra.mrb[246].mxu1 %vm684_vm0, %v21837_v3  ;;  %v19396_v0 = vpack.c.bf16 %v22265_v61, %v22267_v60 }
0x1a0a   : > { %18791 = vmatprep.mubr.msk.f32.mxu1 %vm684_vm0, %v21842_v4 }
0x1a0b   : > { %v22271_v62 = vpop.f32.mrb[230].mxu0 }
0x1a0c   : > { %v22273_v46 = vpop.f32.mrb[231].mxu0 }
0x1a0d   : > { %18792 = vmatmul.mubr.msk.f32.gmra.mrb[248].mxu1 %vm684_vm0, %v21847_v28  ;;  %v19399_v7 = vpack.c.bf16 %v22271_v62, %v22273_v46 }
0x1a0e   : > { %18794 = vmatprep.mubr.msk.f32.mxu1 %vm684_vm0, %v21852_v14 }
0x1a0f   : > { %v22277_v11 = vpop.f32.mrb[232].mxu0 }
0x1a10   : > { %v22279_v3 = vpop.f32.mrb[233].mxu0 }
0x1a11   : > { %18795 = vmatmul.mubr.msk.f32.gmra.mrb[250].mxu1 %vm684_vm0, %v21857_v35  ;;  %v19402_v4 = vpack.c.bf16 %v22277_v11, %v22279_v3 }
0x1a12   : > { %18833 = vmatprep.mubr.msk.f32.mxu1 %vm19936_vm1, %v19935_v26 }
0x1a13   : > { %v22283_v28 = vpop.f32.mrb[234].mxu0 }
0x1a14   : > { %v22285_v14 = vpop.f32.mrb[235].mxu0 }
0x1a15   : > { %v19405_v35 = vpack.c.bf16 %v22283_v28, %v22285_v14 }
0x1a17   : > { %v22289_v37 = vpop.f32.mrb[236].mxu0 }
0x1a18   : > { %v22291_v24 = vpop.f32.mrb[237].mxu0 }
0x1a19   : > { %v19408_v32 = vpack.c.bf16 %v22289_v37, %v22291_v24 }
0x1a1b   : > { %v22295_v20 = vpop.f32.mrb[238].mxu0 }
0x1a1c   : > { %v22297_v52 = vpop.f32.mrb[239].mxu0 }
0x1a1d   : > { %v19411_v31 = vpack.c.bf16 %v22295_v20, %v22297_v52 }
0x1a1f   : > { %v22301_v16 = vpop.f32.mrb[240].mxu0 }
0x1a20   : > { %v22365_v27 = vpop.f32.mrb[241].mxu0 }
0x1a21   : > { %v19414_v45 = vpack.c.bf16 %v22301_v16, %v22365_v27  ;;  %v16689_v27 = vld [vmem:[%s22766_s11 + $0x18] sm:$0xff] }
0x1ac8   : > { %v18775_v12 = vpop.f32.mrb[236].mxu1 }
0x1ac9   : > { %v13703_v29 = vpop.f32.mrb[237].mxu1 }
0x1aca   : > { %v19364_v53 = vpack.c.bf16 %v18775_v12, %v13703_v29 }
0x1acc   : > { %v18778_v13 = vpop.f32.mrb[238].mxu1  ;;  %19366 = vmatpush3.bf16.xpose.msk.msra.mxu1 %vm21263_vm3, %v19364_v53 }
0x1acd   : > { %v13713_v58 = vpop.f32.mrb[239].mxu1  ;;  %19371 = vmatprep.subr.bf16.mxu1 %v19937_v44 }
0x1ace   : > { %v19368_v63 = vpack.c.bf16 %v18778_v13, %v13713_v58 }
0x1ad0   : > { %v18781_v5 = vpop.f32.mrb[240].mxu1  ;;  %19370 = vmatpush3.bf16.xpose.msk.msra.mxu0 %vm21263_vm3, %v19368_v63 }
0x1ad1   : > { %v13723_v1 = vpop.f32.mrb[241].mxu1  ;;  %19375 = vmatprep.subr.bf16.mxu0 %v19937_v44 }
0x1ad2   : > { %v19372_v33 = vpack.c.bf16 %v18781_v5, %v13723_v1 }
0x1ad3   : > { %18834 = vmatmul.mubr.msk.f32.vlgmr.msra.gmra.mrb[252].mxu1 %vm1032_vm2, %v13593_v19 }
0x1ad4   : > { %v18784_v49 = vpop.f32.mrb[242].mxu1  ;;  %19374 = vmatpush3.bf16.xpose.msk.msra.mxu1 %vm21263_vm3, %v19372_v33  ;;  %18847 = vmatprep.mubr.msk.f32.mxu1 %vm19936_vm1, %v19935_v26 }
0x1ad5   : > { %v13733_v59 = vpop.f32.mrb[243].mxu1  ;;  %19379 = vmatprep.subr.bf16.mxu1 %v19937_v44 }
0x1ad6   : > { %v19376_v9 = vpack.c.bf16 %v18784_v49, %v13733_v59 }
0x1ad7   : > { %18841 = vmatmul.mubr.msk.f32.vlgmr.msra.gmra.mrb[244].mxu0 %vm1032_vm2, %v18755_v15  ;;  %v22369_v15 = vpop.f32.mrb[242].mxu0 }
0x1ad8   : > { %v18787_v10 = vpop.f32.mrb[244].mxu1  ;;  %19378 = vmatpush3.bf16.xpose.msk.msra.mxu0 %vm21263_vm3, %v19376_v9  ;;  %18854 = vmatprep.mubr.msk.f32.mxu0 %vm19936_vm1, %v19935_v26  ;;  %v22371_v19 = vpop.f32.mrb[243].mxu0 }
0x1ad9   : > { %v13743_v55 = vpop.f32.mrb[245].mxu1  ;;  %19383 = vmatprep.subr.bf16.mxu0 %v19937_v44 }
0x1ada   : > { %v19380_v36 = vpack.c.bf16 %v18787_v10, %v13743_v55 }
0x1adb   : > { %18848 = vmatmul.mubr.msk.f32.vlgmr.msra.gmra.mrb[254].mxu1 %vm1032_vm2, %v22231_v41 }
0x1adc   : > { %v18790_v17 = vpop.f32.mrb[246].mxu1  ;;  %19382 = vmatpush3.bf16.xpose.msk.msra.mxu1 %vm21263_vm3, %v19380_v36  ;;  %18861 = vmatprep.mubr.msk.f32.mxu1 %vm19936_vm1, %v19935_v26 }
0x1add   : > { %v13753_v54 = vpop.f32.mrb[247].mxu1  ;;  %19387 = vmatprep.subr.bf16.mxu1 %v19937_v44 }
0x1ade   : > { %v19384_v50 = vpack.c.bf16 %v18790_v17, %v13753_v54 }
0x1adf   : > { %18855 = vmatmul.mubr.msk.f32.vlgmr.msra.gmra.mrb[246].mxu0 %vm1032_vm2, %v22229_v25  ;;  %v19417_v25 = vpack.c.bf16 %v22369_v15, %v22371_v19 }
0x1ae0   : > { %v18793_v57 = vpop.f32.mrb[248].mxu1  ;;  %19386 = vmatpush3.bf16.xpose.msk.msra.mxu0 %vm21263_vm3, %v19384_v50  ;;  %18868 = vmatprep.mubr.msk.f32.mxu0 %vm19936_vm1, %v19935_v26 }
0x1ae1   : > { %v13763_v48 = vpop.f32.mrb[249].mxu1  ;;  %19391 = vmatprep.subr.bf16.mxu0 %v19937_v44 }
0x1ae2   : > { %v19388_v30 = vpack.c.bf16 %v18793_v57, %v13763_v48 }
0x1ae3   : > { %18862 = vmatmul.mubr.msk.f32.vlgmr.msra.gmra.mrb[0].mxu1 %vm1032_vm2, %v22239_v6 }
0x1ae4   : > { %v18796_v56 = vpop.f32.mrb[250].mxu1  ;;  %19390 = vmatpush3.bf16.xpose.msk.msra.mxu1 %vm21263_vm3, %v19388_v30  ;;  %18875 = vmatprep.mubr.msk.f32.mxu1 %vm19936_vm1, %v19935_v26 }
0x1ae5   : > { %v13773_v40 = vpop.f32.mrb[251].mxu1  ;;  %19395 = vmatprep.subr.bf16.mxu1 %v19937_v44 }
0x1ae6   : > { %v19392_v42 = vpack.c.bf16 %v18796_v56, %v13773_v40 }
0x1ae7   : > { %18869 = vmatmul.mubr.msk.f32.vlgmr.msra.gmra.mrb[248].mxu0 %vm1032_vm2, %v22237_v47 }
0x1ae8   : > { %19394 = vmatpush3.bf16.xpose.msk.msra.mxu0 %vm21263_vm3, %v19392_v42  ;;  %18882 = vmatprep.mubr.msk.f32.mxu0 %vm19936_vm1, %v19935_v26 }
0x1ae9   : > { %19398 = vmatprep.subr.bf16.mxu0 %v19937_v44 }
0x1aeb   : > { %18876 = vmatmul.mubr.msk.f32.vlgmr.msra.gmra.mrb[2].mxu1 %vm1032_vm2, %v22247_v38 }
0x1aec   : > { %19397 = vmatpush3.bf16.msra.mxu1 %v19396_v0  ;;  %18889 = vmatprep.mubr.msk.f32.mxu1 %vm19936_vm1, %v19935_v26 }
0x1aed   : > { %19401 = vmatprep.subr.bf16.mxu1 %v19937_v44 }
0x1aef   : > { %18883 = vmatmul.mubr.msk.f32.vlgmr.msra.gmra.mrb[250].mxu0 %vm1032_vm2, %v22245_v39 }
0x1af0   : > { %19400 = vmatpush3.bf16.msra.mxu0 %v19399_v7  ;;  %18896 = vmatprep.mubr.msk.f32.mxu0 %vm19936_vm1, %v19935_v26 }
0x1af1   : > { %19404 = vmatprep.subr.bf16.mxu0 %v19937_v44 }
0x1ba6   : > { %v14007_v41 = vpop.f32.mrb[252].mxu1 }
0x1ba7   : > { %v14564_v47 = vmul.f32 0.35355338, %v14007_v41  ;;  %v18835_v6 = vpop.f32.mrb[253].mxu1 }
0x1ba9   : > { %v14572_v39 = vsel %vm7859_vm4, %v14564_v47, -1e+30 }
0x1baa   : > { %v14086_v38 = vpop.f32.mrb[244].mxu0  ;;  %v14580_v61 = vsel %vm8989_vm5, %v14572_v39, -inf }
0x1bab   : > { %v14565_v60 = vmul.f32 0.35355338, %v14086_v38  ;;  %v18842_v0 = vpop.f32.mrb[245].mxu0  ;;  %14581 = vmax.xlane.f32.xlu0 %v14580_v61 }
0x1bad   : > { %v14573_v62 = vsel %vm7859_vm4, %v14565_v60, -1e+30 }
0x1bae   : > { %v14165_v46 = vpop.f32.mrb[254].mxu1  ;;  %v14583_v7 = vsel %vm8989_vm5, %v14573_v62, -inf }
0x1baf   : > { %v14566_v12 = vmul.f32 0.35355338, %v14165_v46  ;;  %14584 = vmax.xlane.f32.xlu1 %v14583_v7  ;;  %v18849_v29 = vpop.f32.mrb[255].mxu1 }
0x1bb1   : > { %v14574_v53 = vsel %vm7859_vm4, %v14566_v12, -1e+30 }
0x1bb2   : > { %v14244_v13 = vpop.f32.mrb[246].mxu0  ;;  %v14586_v58 = vsel %vm8989_vm5, %v14574_v53, -inf }
0x1bb3   : > { %v14567_v63 = vmul.f32 0.35355338, %v14244_v13  ;;  %v18856_v5 = vpop.f32.mrb[247].mxu0  ;;  %14587 = vmax.xlane.f32.xlu0 %v14586_v58 }
0x1bb5   : > { %v14575_v1 = vsel %vm7859_vm4, %v14567_v63, -1e+30 }
0x1bb6   : > { %v14323_v33 = vpop.f32.mrb[0].mxu1  ;;  %v14589_v49 = vsel %vm8989_vm5, %v14575_v1, -inf }
0x1bb7   : > { %v14568_v59 = vmul.f32 0.35355338, %v14323_v33  ;;  %14590 = vmax.xlane.f32.xlu1 %v14589_v49  ;;  %v18863_v9 = vpop.f32.mrb[1].mxu1 }
0x1bb9   : > { %v14576_v10 = vsel %vm7859_vm4, %v14568_v59, -1e+30 }
0x1bba   : > { %v14402_v55 = vpop.f32.mrb[248].mxu0  ;;  %v14592_v36 = vsel %vm8989_vm5, %v14576_v10, -inf }
0x1bbb   : > { %v14569_v17 = vmul.f32 0.35355338, %v14402_v55  ;;  %v18870_v54 = vpop.f32.mrb[249].mxu0  ;;  %14593 = vmax.xlane.f32.xlu0 %v14592_v36 }
0x1bbd   : > { %v14577_v50 = vsel %vm7859_vm4, %v14569_v17, -1e+30 }
0x1bbe   : > { %v14481_v57 = vpop.f32.mrb[2].mxu1  ;;  %v14595_v48 = vsel %vm8989_vm5, %v14577_v50, -inf }
0x1bbf   : > { %v14570_v30 = vmul.f32 0.35355338, %v14481_v57  ;;  %14596 = vmax.xlane.f32.xlu1 %v14595_v48  ;;  %v18877_v56 = vpop.f32.mrb[3].mxu1 }
0x1bc1   : > { %v14578_v40 = vsel %vm7859_vm4, %v14570_v30, -1e+30 }
0x1bc2   : > { %v14560_v42 = vpop.f32.mrb[250].mxu0  ;;  %v14598_v41 = vsel %vm8989_vm5, %v14578_v40, -inf }
0x1bc3   : > { %v14571_v47 = vmul.f32 0.35355338, %v14560_v42  ;;  %v18884_v6 = vpop.f32.mrb[251].mxu0  ;;  %14599 = vmax.xlane.f32.xlu0 %v14598_v41 }
0x1bc5   : > { %v14579_v38 = vsel %vm7859_vm4, %v14571_v47, -1e+30 }
0x1bc6   : > { %v14601_v61 = vsel %vm8989_vm5, %v14579_v38, -inf }
0x1bc7   : > { %14602 = vmax.xlane.f32.xlu1 %v14601_v61 }
0x1c38   : > { %v14582_v60 = vpop.xlane.xlu0 %14581 }
0x1c39   : > { %v14604_v0 = vsub.f32 %v14572_v39, %v14582_v60 }
0x1c3b   : > { %v14612_v46 = vmul.f32 1.442695, %v14604_v0 }
0x1c3c   : > { %v14585_v7 = vpop.xlane.xlu1 %14584 }
0x1c3d   : > { %19775 = vpow2.f32 %v14612_v46  ;;  %v14605_v12 = vsub.f32 %v14573_v62, %v14585_v7 }
0x1c3f   : > { %v14614_v29 = vmul.f32 1.442695, %v14605_v12 }
0x1c40   : > { %v14588_v13 = vpop.xlane.xlu0 %14587 }
0x1c41   : > { %19777 = vpow2.f32 %v14614_v29  ;;  %v14606_v58 = vsub.f32 %v14574_v53, %v14588_v13 }
0x1c43   : > { %v14616_v63 = vmul.f32 1.442695, %v14606_v58 }
0x1c44   : > { %v14591_v5 = vpop.xlane.xlu1 %14590 }
0x1c45   : > { %19779 = vpow2.f32 %v14616_v63  ;;  %v14607_v33 = vsub.f32 %v14575_v1, %v14591_v5 }
0x1c47   : > { %v19776_v49 = vpop.eup %19775  ;;  %v14618_v21 = vmul.f32 1.442695, %v14607_v33 }
0x1c48   : > { %v14594_v59 = vpop.xlane.xlu0 %14593  ;;  %v14628_v9 = vsel %vm8989_vm5, %v19776_v49, 0.0 }
0x1c49   : > { %19781 = vpow2.f32 %v14618_v21  ;;  %v14608_v55 = vsub.f32 %v14576_v10, %v14594_v59  ;;  %14629 = vadd.xlane.f32.xlu0 %v14628_v9 }
0x1c4b   : > { %v19778_v39 = vpop.eup %19777  ;;  %v14620_v36 = vmul.f32 1.442695, %v14608_v55 }
0x1c4c   : > { %v14597_v17 = vpop.xlane.xlu1 %14596  ;;  %v14631_v62 = vsel %vm8989_vm5, %v19778_v39, 0.0 }
0x1c4d   : > { %19783 = vpow2.f32 %v14620_v36  ;;  %v14609_v54 = vsub.f32 %v14577_v50, %v14597_v17  ;;  %14632 = vadd.xlane.f32.xlu1 %v14631_v62 }
0x1c4f   : > { %v19780_v53 = vpop.eup %19779  ;;  %v14622_v57 = vmul.f32 1.442695, %v14609_v54 }
0x1c50   : > { %v14600_v48 = vpop.xlane.xlu0 %14599  ;;  %v14634_v1 = vsel %vm8989_vm5, %v19780_v53, 0.0 }
0x1c51   : > { %19785 = vpow2.f32 %v14622_v57  ;;  %v14610_v30 = vsub.f32 %v14578_v40, %v14600_v48  ;;  %14635 = vadd.xlane.f32.xlu0 %v14634_v1 }
0x1c53   : > { %v19782_v56 = vpop.eup %19781  ;;  %v14624_v42 = vmul.f32 1.442695, %v14610_v30 }
0x1c54   : > { %v14603_v10 = vpop.xlane.xlu1 %14602  ;;  %v14637_v41 = vsel %vm8989_vm5, %v19782_v56, 0.0 }
0x1c55   : > { %19787 = vpow2.f32 %v14624_v42  ;;  %v14611_v47 = vsub.f32 %v14579_v38, %v14603_v10  ;;  %14638 = vadd.xlane.f32.xlu1 %v14637_v41 }
0x1c57   : > { %v19784_v6 = vpop.eup %19783  ;;  %v14626_v61 = vmul.f32 1.442695, %v14611_v47 }
0x1c58   : > { %v14640_v50 = vsel %vm8989_vm5, %v19784_v6, 0.0 }
0x1c59   : > { %19789 = vpow2.f32 %v14626_v61  ;;  %14641 = vadd.xlane.f32.xlu0 %v14640_v50 }
0x1c5b   : > { %v19786_v60 = vpop.eup %19785 }
0x1c5c   : > { %v14643_v0 = vsel %vm8989_vm5, %v19786_v60, 0.0 }
0x1c5d   : > { %14644 = vadd.xlane.f32.xlu1 %v14643_v0 }
0x1c5f   : > { %v19788_v40 = vpop.eup %19787 }
0x1c60   : > { %v14646_v46 = vsel %vm8989_vm5, %v19788_v40, 0.0 }
0x1c61   : > { %14647 = vadd.xlane.f32.xlu0 %v14646_v46 }
0x1c63   : > { %v19790_v7 = vpop.eup %19789 }
0x1c64   : > { %v14649_v12 = vsel %vm8989_vm5, %v19790_v7, 0.0 }
0x1c65   : > { %14650 = vadd.xlane.f32.xlu1 %v14649_v12 }
0x1cd6   : > { %v14630_v38 = vpop.xlane.xlu0 %14629 }
0x1cd7   : > { %19791 = vrcp.f32 %v14630_v38 }
0x1cda   : > { %v14633_v29 = vpop.xlane.xlu1 %14632 }
0x1cdb   : > { %19793 = vrcp.f32 %v14633_v29 }
0x1cde   : > { %v14636_v13 = vpop.xlane.xlu0 %14635 }
0x1cdf   : > { %19795 = vrcp.f32 %v14636_v13 }
0x1ce1   : > { %v19792_v58 = vpop.eup %19791 }
0x1ce2   : > { %v14660_v63 = vmul.f32 %v19792_v58, %v19776_v49  ;;  %v14639_v5 = vpop.xlane.xlu1 %14638 }
0x1ce3   : > { %19797 = vrcp.f32 %v14639_v5 }
0x1ce4   : > { %18890 = vmatmul.mubr.msk.f32.vlgmr.msra.gmra.mrb[4].mxu1 %vm8989_vm5, %v14660_v63 }
0x1ce5   : > { %v19794_v33 = vpop.eup %19793  ;;  %19403 = vmatpush3.bf16.msra.mxu1 %v19402_v4  ;;  %18903 = vmatprep.mubr.msk.f32.mxu1 %vm19936_vm1, %v19935_v26 }
0x1ce6   : > { %v14661_v21 = vmul.f32 %v19794_v33, %v19778_v39  ;;  %v14642_v59 = vpop.xlane.xlu0 %14641  ;;  %19407 = vmatprep.subr.bf16.mxu1 %v19937_v44 }
0x1ce7   : > { %19799 = vrcp.f32 %v14642_v59 }
0x1ce8   : > { %18897 = vmatmul.mubr.msk.f32.vlgmr.msra.gmra.mrb[252].mxu0 %vm8989_vm5, %v14661_v21 }
0x1ce9   : > { %v19796_v49 = vpop.eup %19795  ;;  %19406 = vmatpush3.bf16.msra.mxu0 %v19405_v35  ;;  %18910 = vmatprep.mubr.msk.f32.mxu0 %vm19936_vm1, %v19935_v26 }
0x1cea   : > { %v14662_v11 = vmul.f32 %v19796_v49, %v19780_v53  ;;  %v14645_v3 = vpop.xlane.xlu1 %14644  ;;  %19410 = vmatprep.subr.bf16.mxu0 %v19937_v44 }
0x1ceb   : > { %19801 = vrcp.f32 %v14645_v3 }
0x1cec   : > { %18904 = vmatmul.mubr.msk.f32.vlgmr.msra.gmra.mrb[6].mxu1 %vm8989_vm5, %v14662_v11 }
0x1ced   : > { %v19798_v4 = vpop.eup %19797  ;;  %19409 = vmatpush3.bf16.msra.mxu1 %v19408_v32  ;;  %18917 = vmatprep.mubr.msk.f32.mxu1 %vm19936_vm1, %v19935_v26 }
0x1cee   : > { %v14663_v28 = vmul.f32 %v19798_v4, %v19782_v56  ;;  %v14648_v14 = vpop.xlane.xlu0 %14647  ;;  %19413 = vmatprep.subr.bf16.mxu1 %v19937_v44 }
0x1cef   : > { %19803 = vrcp.f32 %v14648_v14 }
0x1cf0   : > { %18911 = vmatmul.mubr.msk.f32.vlgmr.msra.gmra.mrb[254].mxu0 %vm8989_vm5, %v14663_v28 }
0x1cf1   : > { %v19800_v35 = vpop.eup %19799  ;;  %19412 = vmatpush3.bf16.msra.mxu0 %v19411_v31  ;;  %18924 = vmatprep.mubr.msk.f32.mxu0 %vm19936_vm1, %v19935_v26 }
0x1cf2   : > { %v14664_v37 = vmul.f32 %v19800_v35, %v19784_v6  ;;  %v14651_v24 = vpop.xlane.xlu1 %14650  ;;  %19416 = vmatprep.subr.bf16.mxu0 %v19937_v44 }
0x1cf3   : > { %19805 = vrcp.f32 %v14651_v24 }
0x1cf4   : > { %18918 = vmatmul.mubr.msk.f32.vlgmr.msra.gmra.mrb[8].mxu1 %vm8989_vm5, %v14664_v37 }
0x1cf5   : > { %v19802_v32 = vpop.eup %19801  ;;  %19415 = vmatpush3.bf16.msra.mxu1 %v19414_v45  ;;  %18931 = vmatprep.mubr.msk.f32.mxu1 %vm19936_vm1, %v19935_v26 }
0x1cf6   : > { %v14665_v20 = vmul.f32 %v19802_v32, %v19786_v60  ;;  %18941 = vmatprep.subr.mxu1 %v16689_v27 }
0x1cf8   : > { %18925 = vmatmul.mubr.msk.f32.vlgmr.msra.gmra.mrb[0].mxu0 %vm8989_vm5, %v14665_v20 }
0x1cf9   : > { %v19804_v52 = vpop.eup %19803  ;;  %19418 = vmatpush3.bf16.msra.mxu0 %v19417_v25  ;;  %18938 = vmatprep.mubr.msk.f32.mxu0 %vm19936_vm1, %v19935_v26 }
0x1cfa   : > { %v14666_v44 = vmul.f32 %v19804_v52, %v19788_v40 }
0x1cfc   : > { %18932 = vmatmul.mubr.msk.f32.vlgmr.msra.gmra.mrb[10].mxu1 %vm8989_vm5, %v14666_v44 }
0x1cfd   : > { %v19806_v31 = vpop.eup %19805  ;;  %18942 = vmatpush3.msra.mxu1 %v16689_v27 }
0x1cfe   : > { %v14667_v16 = vmul.f32 %v19806_v31, %v19790_v7 }
0x1d00   : > { %18939 = vmatmul.mubr.msk.f32.vlgmr.msra.gmra.mrb[2].mxu0 %vm8989_vm5, %v14667_v16 }
0x1db7   : > { %v14737_v45 = vpop.f32.mrb[4].mxu1 }
0x1db8   : > { %v18891_v9 = vpop.f32.mrb[5].mxu1  ;;  %18943 = vmatprep.mubr.msk.f32.mxu1 %vm1032_vm2, %v14737_v45 }
0x1dbb   : > { %v14810_v15 = vpop.f32.mrb[252].mxu0 }
0x1dbc   : > { %v18898_v19 = vpop.f32.mrb[253].mxu0  ;;  %18944 = vmatmul.mubr.msk.f32.vlgmr.msra.gmra.mrb[196].mxu1 %vm1032_vm2, %v14810_v15 }
0x1dbf   : > { %v14883_v26 = vpop.f32.mrb[6].mxu1 }
0x1dc0   : > { %v18905_v25 = vpop.f32.mrb[7].mxu1  ;;  %18946 = vmatprep.mubr.msk.f32.mxu1 %vm1032_vm2, %v14883_v26 }
0x1dc3   : > { %v14956_v55 = vpop.f32.mrb[254].mxu0 }
0x1dc4   : > { %v18912_v39 = vpop.f32.mrb[255].mxu0  ;;  %18947 = vmatmul.mubr.msk.f32.gmra.mrb[198].mxu1 %vm1032_vm2, %v14956_v55 }
0x1dc7   : > { %v15029_v36 = vpop.f32.mrb[8].mxu1 }
0x1dc8   : > { %v18919_v17 = vpop.f32.mrb[9].mxu1  ;;  %18949 = vmatprep.mubr.msk.f32.mxu1 %vm1032_vm2, %v15029_v36 }
0x1dcb   : > { %v15102_v62 = vpop.f32.mrb[0].mxu0 }
0x1dcc   : > { %v18926_v54 = vpop.f32.mrb[1].mxu0  ;;  %18950 = vmatmul.mubr.msk.f32.gmra.mrb[200].mxu1 %vm1032_vm2, %v15102_v62 }
0x1dcf   : > { %v15175_v53 = vpop.f32.mrb[10].mxu1 }
0x1dd0   : > { %v18933_v57 = vpop.f32.mrb[11].mxu1  ;;  %18952 = vmatprep.mubr.msk.f32.mxu1 %vm1032_vm2, %v15175_v53 }
0x1dd3   : > { %v15248_v48 = vpop.f32.mrb[2].mxu0 }
0x1dd4   : > { %v18940_v1 = vpop.f32.mrb[3].mxu0  ;;  %18953 = vmatmul.mubr.msk.f32.gmra.mrb[202].mxu1 %vm1032_vm2, %v15248_v48 }
0x1e8f   : > { %v18945_v30 = vpop.f32.mrb[196].mxu1 }
0x1e90   : > { %v15392_v56 = vadd.f32 %v18945_v30, %v21191_v51  ;;  %v15344_v42 = vpop.f32.mrb[197].mxu1  ;;  %v15533_v30 = vld [vmem:[%s22769_s14] sm:$0xff] }
0x1e91   : > { %v15391_v10 = vadd.f32 %v15344_v42, %v21189_v43 }
0x1e92   : > { %v15404_v41 = vsel %vm684_vm0, %v15392_v56, 0.0 }
0x1e93   : > { %15405 = vadd.xlane.f32.xlu1 %v15404_v41  ;;  %v15401_v47 = vsel %vm684_vm0, %v15391_v10, 0.0  ;;  %v15536_v41 = vld [vmem:[%s22769_s14 + $0x18] sm:$0xff] }
0x1e94   : > { %15402 = vadd.xlane.f32.xlu0 %v15401_v47 }
0x1e97   : > { %v18948_v6 = vpop.f32.mrb[198].mxu1 }
0x1e98   : > { %v15394_v61 = vadd.f32 %v18948_v6, %v21202_v34  ;;  %v15354_v50 = vpop.f32.mrb[199].mxu1  ;;  %v15681_v6 = vld [vmem:[%s22771_s16] sm:$0xff] }
0x1e99   : > { %v15393_v60 = vadd.f32 %v15354_v50, %v21199_v2  ;;  %v15683_v50 = vld [vmem:[%s22771_s16 + $0x10] sm:$0xff] }
0x1e9a   : > { %v15410_v0 = vsel %vm684_vm0, %v15394_v61, 0.0 }
0x1e9b   : > { %15411 = vadd.xlane.f32.xlu1 %v15410_v0  ;;  %v15407_v51 = vsel %vm684_vm0, %v15393_v60, 0.0  ;;  %v15684_v0 = vld [vmem:[%s22771_s16 + $0x18] sm:$0xff] }
0x1e9c   : > { %15408 = vadd.xlane.f32.xlu0 %v15407_v51  ;;  %v19431_v51 = vpack.c.bf16 %v15684_v0, %v15683_v50 }
0x1e9f   : > { %v18951_v40 = vpop.f32.mrb[200].mxu1 }
0x1ea0   : > { %v15396_v43 = vadd.f32 %v18951_v40, %v21212_v22  ;;  %v15364_v46 = vpop.f32.mrb[201].mxu1  ;;  %v15685_v40 = vld [vmem:[%s22771_s16 + $0x20] sm:$0xff] }
0x1ea1   : > { %v15395_v7 = vadd.f32 %v15364_v46, %v21210_v8 }
0x1ea2   : > { %v15416_v12 = vsel %vm684_vm0, %v15396_v43, 0.0 }
0x1ea3   : > { %15417 = vadd.xlane.f32.xlu1 %v15416_v12  ;;  %v15413_v34 = vsel %vm684_vm0, %v15395_v7, 0.0 }
0x1ea4   : > { %15414 = vadd.xlane.f32.xlu0 %v15413_v34 }
0x1ea7   : > { %v18954_v38 = vpop.f32.mrb[202].mxu1 }
0x1ea8   : > { %v15398_v2 = vadd.f32 %v18954_v38, %v21221_v18  ;;  %v15374_v29 = vpop.f32.mrb[203].mxu1 }
0x1ea9   : > { %v15397_v13 = vadd.f32 %v15374_v29, %v21219_v23 }
0x1eaa   : > { %v15422_v58 = vsel %vm684_vm0, %v15398_v2, 0.0 }
0x1eab   : > { %15423 = vadd.xlane.f32.xlu1 %v15422_v58  ;;  %v15419_v22 = vsel %vm684_vm0, %v15397_v13, 0.0 }
0x1eac   : > { %15420 = vadd.xlane.f32.xlu0 %v15419_v22 }
0x1f20   : > { %v15406_v63 = vpop.xlane.xlu1 %15405 }
0x1f21   : > { %v15426_v8 = vmul.f32 0.03125, %v15406_v63  ;;  %v15403_v5 = vpop.xlane.xlu0 %15402 }
0x1f22   : > { %v15425_v33 = vmul.f32 0.03125, %v15403_v5 }
0x1f23   : > { %v22476_v21 = vsub.f32 %v15392_v56, %v15426_v8  ;;  %v15534_v56 = vld [vmem:[%s22769_s14 + $0x8] sm:$0xff] }
0x1f24   : > { %v22478_v59 = vsub.f32 %v15391_v10, %v15425_v33  ;;  %v19419_v42 = vpack.c.bf16 %v15534_v56, %v15533_v30  ;;  %v15535_v10 = vld [vmem:[%s22769_s14 + $0x10] sm:$0xff] }
0x1f25   : > { %v15442_v18 = vmul.f32 %v22476_v21, %v22476_v21  ;;  %v19423_v47 = vpack.c.bf16 %v15536_v41, %v15535_v10 }
0x1f26   : > { %v15441_v23 = vmul.f32 %v22478_v59, %v22478_v59  ;;  %19420 = vmatprep.subr.bf16.mxu0 %v19419_v42 }
0x1f27   : > { %v15452_v49 = vsel %vm684_vm0, %v15442_v18, 0.0  ;;  %19422 = vmatpush3.bf16.msra.mxu0 %v19419_v42  ;;  %v16698_v18 = vld [vmem:[%s22767_s12] ss:$0 sm:$0xff] }
0x1f28   : > { %v15412_v11 = vpop.xlane.xlu1 %15411  ;;  %15453 = vadd.xlane.f32.xlu1 %v15452_v49  ;;  %v15449_v3 = vsel %vm684_vm0, %v15441_v23, 0.0  ;;  %19424 = vmatprep.subr.bf16.mxu0 %v19423_v47 }
0x1f29   : > { %v15428_v4 = vmul.f32 0.03125, %v15412_v11  ;;  %v15409_v28 = vpop.xlane.xlu0 %15408  ;;  %15450 = vadd.xlane.f32.xlu0 %v15449_v3 }
0x1f2a   : > { %v15427_v14 = vmul.f32 0.03125, %v15409_v28 }
0x1f2b   : > { %v22486_v35 = vsub.f32 %v15394_v61, %v15428_v4  ;;  %19426 = vmatpush3.bf16.msra.mxu0 %v19423_v47  ;;  %v15682_v61 = vld [vmem:[%s22771_s16 + $0x8] sm:$0xff] }
0x1f2c   : > { %v22488_v37 = vsub.f32 %v15393_v60, %v15427_v14  ;;  %v19427_v60 = vpack.c.bf16 %v15682_v61, %v15681_v6  ;;  %v16699_v14 = vld [vmem:[%s22768_s13] ss:$0 sm:$0xff] }
0x1f2d   : > { %v15444_v24 = vmul.f32 %v22486_v35, %v22486_v35 }
0x1f2e   : > { %v15443_v32 = vmul.f32 %v22488_v37, %v22488_v37  ;;  %19428 = vmatprep.subr.bf16.mxu1 %v19427_v60 }
0x1f2f   : > { %v15458_v20 = vsel %vm684_vm0, %v15444_v24, 0.0  ;;  %19430 = vmatpush3.bf16.msra.mxu1 %v19427_v60 }
0x1f30   : > { %v15418_v52 = vpop.xlane.xlu1 %15417  ;;  %15459 = vadd.xlane.f32.xlu1 %v15458_v20  ;;  %v15455_v44 = vsel %vm684_vm0, %v15443_v32, 0.0  ;;  %19432 = vmatprep.subr.bf16.mxu1 %v19431_v51 }
0x1f31   : > { %v15430_v31 = vmul.f32 0.03125, %v15418_v52  ;;  %v15415_v16 = vpop.xlane.xlu0 %15414  ;;  %15456 = vadd.xlane.f32.xlu0 %v15455_v44 }
0x1f32   : > { %v15429_v27 = vmul.f32 0.03125, %v15415_v16 }
0x1f33   : > { %v22496_v45 = vsub.f32 %v15396_v43, %v15430_v31  ;;  %v15686_v43 = vld [vmem:[%s22771_s16 + $0x28] sm:$0xff]  ;;  %19434 = vmatpush3.bf16.msra.mxu1 %v19431_v51 }
0x1f34   : > { %v22498_v9 = vsub.f32 %v15395_v7, %v15429_v27  ;;  %v19435_v46 = vpack.c.bf16 %v15686_v43, %v15685_v40  ;;  %v16700_v40 = vld [vmem:[%s22770_s15] ss:$0 sm:$0xff] }
0x1f35   : > { %v15446_v15 = vmul.f32 %v22496_v45, %v22496_v45 }
0x1f36   : > { %v15445_v19 = vmul.f32 %v22498_v9, %v22498_v9  ;;  %19436 = vmatprep.subr.bf16.mxu1 %v19435_v46 }
0x1f37   : > { %v15464_v26 = vsel %vm684_vm0, %v15446_v15, 0.0  ;;  %19438 = vmatpush3.bf16.msra.mxu1 %v19435_v46 }
0x1f38   : > { %15465 = vadd.xlane.f32.xlu1 %v15464_v26  ;;  %v15424_v25 = vpop.xlane.xlu1 %15423  ;;  %v15461_v55 = vsel %vm684_vm0, %v15445_v19, 0.0 }
0x1f39   : > { %v15432_v39 = vmul.f32 0.03125, %v15424_v25  ;;  %15462 = vadd.xlane.f32.xlu0 %v15461_v55  ;;  %v15421_v36 = vpop.xlane.xlu0 %15420 }
0x1f3a   : > { %v15431_v17 = vmul.f32 0.03125, %v15421_v36 }
0x1f3b   : > { %v22506_v62 = vsub.f32 %v15398_v2, %v15432_v39 }
0x1f3c   : > { %v22508_v54 = vsub.f32 %v15397_v13, %v15431_v17 }
0x1f3d   : > { %v15448_v53 = vmul.f32 %v22506_v62, %v22506_v62 }
0x1f3e   : > { %v15447_v57 = vmul.f32 %v22508_v54, %v22508_v54 }
0x1f3f   : > { %v15470_v48 = vsel %vm684_vm0, %v15448_v53, 0.0 }
0x1f40   : > { %15471 = vadd.xlane.f32.xlu1 %v15470_v48  ;;  %v15467_v1 = vsel %vm684_vm0, %v15447_v57, 0.0 }
0x1f41   : > { %15468 = vadd.xlane.f32.xlu0 %v15467_v1 }
0x1fb5   : > { %v15454_v7 = vpop.xlane.xlu1 %15453 }
0x1fb6   : > { %v15474_v12 = vmul.f32 0.03125, %v15454_v7  ;;  %v15451_v34 = vpop.xlane.xlu0 %15450 }
0x1fb7   : > { %v15473_v38 = vmul.f32 0.03125, %v15451_v34 }
0x1fb8   : > { %v15482_v2 = vadd.f32 1e-05, %v15474_v12 }
0x1fb9   : > { %v15481_v29 = vadd.f32 1e-05, %v15473_v38 }
0x1fba   : > { %19807 = vrsqrt.f32 %v15482_v2 }
0x1fbb   : > { %19809 = vrsqrt.f32 %v15481_v29 }
0x1fbd   : > { %v15460_v13 = vpop.xlane.xlu1 %15459 }
0x1fbe   : > { %v15476_v58 = vmul.f32 0.03125, %v15460_v13  ;;  %v15457_v22 = vpop.xlane.xlu0 %15456 }
0x1fbf   : > { %v15475_v63 = vmul.f32 0.03125, %v15457_v22 }
0x1fc0   : > { %v15484_v8 = vadd.f32 1e-05, %v15476_v58 }
0x1fc1   : > { %v15483_v5 = vadd.f32 1e-05, %v15475_v63 }
0x1fc2   : > { %19811 = vrsqrt.f32 %v15484_v8 }
0x1fc3   : > { %19813 = vrsqrt.f32 %v15483_v5 }
0x1fc4   : > { %v19808_v33 = vpop.eup %19807 }
0x1fc5   : > { %v19810_v23 = vpop.eup %19809  ;;  %v15498_v49 = vmul.f32 %v19808_v33, %v22476_v21  ;;  %v15466_v11 = vpop.xlane.xlu1 %15465 }
0x1fc6   : > { %v15478_v3 = vmul.f32 0.03125, %v15466_v11  ;;  %v15463_v4 = vpop.xlane.xlu0 %15462  ;;  %v15497_v28 = vmul.f32 %v19810_v23, %v22478_v59 }
0x1fc7   : > { %v15512_v24 = vmul.f32 %v16698_v18, %v15498_v49  ;;  %v15477_v32 = vmul.f32 0.03125, %v15463_v4 }
0x1fc8   : > { %v15486_v20 = vadd.f32 1e-05, %v15478_v3  ;;  %v15511_v52 = vmul.f32 %v16698_v18, %v15497_v28 }
0x1fc9   : > { %v15485_v44 = vadd.f32 1e-05, %v15477_v32  ;;  %v22556_v16 = vadd.f32 %v16699_v14, %v15512_v24  ;;  %v16709_v32 = vld [vmem:[%s22772_s17] ss:$0 sm:$0xff] }
0x1fca   : > { %19815 = vrsqrt.f32 %v15486_v20  ;;  %v22554_v31 = vadd.f32 %v16699_v14, %v15511_v52 }
0x1fcb   : > { %19817 = vrsqrt.f32 %v15485_v44 }
0x1fcc   : > { %v19812_v21 = vpop.eup %19811  ;;  %18963 = vmatprep.mubr.msk.f32.mxu0 %vm684_vm0, %v22554_v31 }
0x1fcd   : > { %v19814_v59 = vpop.eup %19813  ;;  %v15500_v27 = vmul.f32 %v19812_v21, %v22486_v35  ;;  %v15472_v15 = vpop.xlane.xlu1 %15471  ;;  %18964 = vmatmul.mubr.msk.f32.vlgmr.msra.gmra.mrb[4].mxu0 %vm684_vm0, %v22556_v16 }
0x1fce   : > { %v15480_v19 = vmul.f32 0.03125, %v15472_v15  ;;  %v15469_v26 = vpop.xlane.xlu0 %15468  ;;  %v15499_v25 = vmul.f32 %v19814_v59, %v22488_v37 }
0x1fcf   : > { %v15514_v55 = vmul.f32 %v16698_v18, %v15500_v27  ;;  %v15479_v39 = vmul.f32 0.03125, %v15469_v26 }
0x1fd0   : > { %v15488_v36 = vadd.f32 1e-05, %v15480_v19  ;;  %v15513_v17 = vmul.f32 %v16698_v18, %v15499_v25 }
0x1fd1   : > { %v15487_v53 = vadd.f32 1e-05, %v15479_v39  ;;  %v22566_v48 = vadd.f32 %v16699_v14, %v15514_v55 }
0x1fd2   : > { %19819 = vrsqrt.f32 %v15488_v36  ;;  %v22564_v57 = vadd.f32 %v16699_v14, %v15513_v17 }
0x1fd3   : > { %19821 = vrsqrt.f32 %v15487_v53 }
0x1fd4   : > { %v19816_v35 = vpop.eup %19815  ;;  %18966 = vmatprep.mubr.msk.f32.mxu0 %vm684_vm0, %v22564_v57 }
0x1fd5   : > { %v19818_v1 = vpop.eup %19817  ;;  %v15502_v30 = vmul.f32 %v19816_v35, %v22496_v45  ;;  %18967 = vmatmul.mubr.msk.f32.gmra.mrb[6].mxu0 %vm684_vm0, %v22566_v48 }
0x1fd6   : > { %v15501_v37 = vmul.f32 %v19818_v1, %v22498_v9 }
0x1fd7   : > { %v15516_v56 = vmul.f32 %v16698_v18, %v15502_v30 }
0x1fd8   : > { %v15515_v42 = vmul.f32 %v16698_v18, %v15501_v37 }
0x1fd9   : > { %v22576_v41 = vadd.f32 %v16699_v14, %v15516_v56 }
0x1fda   : > { %v22574_v10 = vadd.f32 %v16699_v14, %v15515_v42 }
0x1fdc   : > { %v19820_v47 = vpop.eup %19819  ;;  %18969 = vmatprep.mubr.msk.f32.mxu0 %vm684_vm0, %v22574_v10 }
0x1fdd   : > { %v19822_v6 = vpop.eup %19821  ;;  %v15504_v61 = vmul.f32 %v19820_v47, %v22506_v62  ;;  %18970 = vmatmul.mubr.msk.f32.gmra.mrb[8].mxu0 %vm684_vm0, %v22576_v41  ;;  %v15687_v62 = vld [vmem:[%s22771_s16 + $0x30] sm:$0xff] }
0x1fde   : > { %v15503_v45 = vmul.f32 %v19822_v6, %v22508_v54  ;;  %v15688_v54 = vld [vmem:[%s22771_s16 + $0x38] sm:$0xff] }
0x1fdf   : > { %v15518_v50 = vmul.f32 %v16698_v18, %v15504_v61  ;;  %v19439_v51 = vpack.c.bf16 %v15688_v54, %v15687_v62 }
0x1fe0   : > { %v15517_v9 = vmul.f32 %v16698_v18, %v15503_v45 }
0x1fe1   : > { %v22586_v0 = vadd.f32 %v16699_v14, %v15518_v50  ;;  %19440 = vmatprep.subr.bf16.mxu1 %v19439_v51 }
0x1fe2   : > { %v22584_v60 = vadd.f32 %v16699_v14, %v15517_v9  ;;  %19442 = vmatpush3.bf16.msra.mxu1 %v19439_v51 }
0x1fe4   : > { %18972 = vmatprep.mubr.msk.f32.mxu0 %vm684_vm0, %v22584_v60 }
0x1fe5   : > { %18973 = vmatmul.mubr.msk.f32.gmra.mrb[10].mxu0 %vm684_vm0, %v22586_v0 }
0x20a0   : > { %v18965_v43 = vpop.f32.mrb[4].mxu0 }
0x20a1   : > { %v15640_v46 = vadd.f32 %v18965_v43, %v16700_v40  ;;  %v15634_v7 = vpop.f32.mrb[5].mxu0 }
0x20a2   : > { %v15635_v12 = vadd.f32 %v16700_v40, %v15634_v7 }
0x20a3   : > { %v15674_v38 = vmax.f32 %v15640_v46, 0.0 }
0x20a4   : > { %v15673_v34 = vmax.f32 %v15635_v12, 0.0 }
0x20a6   : > { %18991 = vmatprep.mubr.msk.f32.mxu1 %vm15696_vm6, %v15673_v34 }
0x20a7   : > { %18992 = vmatmul.mubr.msk.f32.vlgmr.msra.gmra.mrb[12].mxu1 %vm15696_vm6, %v15674_v38 }
0x20a8   : > { %v18968_v2 = vpop.f32.mrb[6].mxu0 }
0x20a9   : > { %v15650_v29 = vadd.f32 %v18968_v2, %v16700_v40  ;;  %v15644_v13 = vpop.f32.mrb[7].mxu0 }
0x20aa   : > { %v15645_v58 = vadd.f32 %v16700_v40, %v15644_v13 }
0x20ab   : > { %v15676_v63 = vmax.f32 %v15650_v29, 0.0 }
0x20ac   : > { %v15675_v22 = vmax.f32 %v15645_v58, 0.0 }
0x20ae   : > { %18994 = vmatprep.mubr.msk.f32.mxu1 %vm15696_vm6, %v15675_v22 }
0x20af   : > { %18995 = vmatmul.mubr.msk.f32.gmra.mrb[14].mxu1 %vm15696_vm6, %v15676_v63 }
0x20b0   : > { %v18971_v8 = vpop.f32.mrb[8].mxu0 }
0x20b1   : > { %v15660_v5 = vadd.f32 %v18971_v8, %v16700_v40  ;;  %v15654_v33 = vpop.f32.mrb[9].mxu0 }
0x20b2   : > { %v15655_v18 = vadd.f32 %v16700_v40, %v15654_v33 }
0x20b3   : > { %v15678_v49 = vmax.f32 %v15660_v5, 0.0 }
0x20b4   : > { %v15677_v23 = vmax.f32 %v15655_v18, 0.0 }
0x20b6   : > { %18997 = vmatprep.mubr.msk.f32.mxu1 %vm15696_vm6, %v15677_v23 }
0x20b7   : > { %18998 = vmatmul.mubr.msk.f32.gmra.mrb[16].mxu1 %vm15696_vm6, %v15678_v49 }
0x20b8   : > { %v18974_v11 = vpop.f32.mrb[10].mxu0 }
0x20b9   : > { %v15670_v3 = vadd.f32 %v18974_v11, %v16700_v40  ;;  %v15664_v4 = vpop.f32.mrb[11].mxu0 }
0x20ba   : > { %v15665_v28 = vadd.f32 %v16700_v40, %v15664_v4 }
0x20bb   : > { %v15680_v24 = vmax.f32 %v15670_v3, 0.0 }
0x20bc   : > { %v15679_v14 = vmax.f32 %v15665_v28, 0.0 }
0x20be   : > { %19000 = vmatprep.mubr.msk.f32.mxu1 %vm15696_vm6, %v15679_v14 }
0x20bf   : > { %19001 = vmatmul.mubr.msk.f32.gmra.mrb[18].mxu1 %vm15696_vm6, %v15680_v24 }
0x217a   : > { %v18993_v20 = vpop.f32.mrb[12].mxu1 }
0x217b   : > { %v15793_v52 = vadd.f32 %v18993_v20, %v16709_v32  ;;  %v15787_v44 = vpop.f32.mrb[13].mxu1 }
0x217c   : > { %v15788_v21 = vadd.f32 %v16709_v32, %v15787_v44 }
0x217d   : > { %v15827_v59 = vadd.f32 %v15793_v52, %v22556_v16 }
0x217e   : > { %v15826_v27 = vadd.f32 %v15788_v21, %v22554_v31 }
0x217f   : > { %v15839_v15 = vsel %vm684_vm0, %v15827_v59, 0.0 }
0x2180   : > { %15840 = vadd.xlane.f32.xlu1 %v15839_v15  ;;  %v15836_v19 = vsel %vm684_vm0, %v15826_v27, 0.0 }
0x2181   : > { %15837 = vadd.xlane.f32.xlu0 %v15836_v19 }
0x2182   : > { %v18996_v26 = vpop.f32.mrb[14].mxu1 }
0x2183   : > { %v15803_v25 = vadd.f32 %v18996_v26, %v16709_v32  ;;  %v15797_v55 = vpop.f32.mrb[15].mxu1 }
0x2184   : > { %v15798_v39 = vadd.f32 %v16709_v32, %v15797_v55 }
0x2185   : > { %v15829_v36 = vadd.f32 %v15803_v25, %v22566_v48 }
0x2186   : > { %v15828_v17 = vadd.f32 %v15798_v39, %v22564_v57 }
0x2187   : > { %v15845_v53 = vsel %vm684_vm0, %v15829_v36, 0.0 }
0x2188   : > { %15846 = vadd.xlane.f32.xlu1 %v15845_v53  ;;  %v15842_v16 = vsel %vm684_vm0, %v15828_v17, 0.0 }
0x2189   : > { %15843 = vadd.xlane.f32.xlu0 %v15842_v16 }
0x218a   : > { %v18999_v31 = vpop.f32.mrb[16].mxu1 }
0x218b   : > { %v15813_v35 = vadd.f32 %v18999_v31, %v16709_v32  ;;  %v15807_v1 = vpop.f32.mrb[17].mxu1 }
0x218c   : > { %v15808_v30 = vadd.f32 %v16709_v32, %v15807_v1 }
0x218d   : > { %v15831_v37 = vadd.f32 %v15813_v35, %v22576_v41 }
0x218e   : > { %v15830_v56 = vadd.f32 %v15808_v30, %v22574_v10 }
0x218f   : > { %v15851_v42 = vsel %vm684_vm0, %v15831_v37, 0.0 }
0x2190   : > { %15852 = vadd.xlane.f32.xlu1 %v15851_v42  ;;  %v15848_v48 = vsel %vm684_vm0, %v15830_v56, 0.0 }
0x2191   : > { %15849 = vadd.xlane.f32.xlu0 %v15848_v48 }
0x2192   : > { %v19002_v57 = vpop.f32.mrb[18].mxu1 }
0x2193   : > { %v15823_v47 = vadd.f32 %v19002_v57, %v16709_v32  ;;  %v15817_v6 = vpop.f32.mrb[19].mxu1 }
0x2194   : > { %v15818_v61 = vadd.f32 %v16709_v32, %v15817_v6 }
0x2195   : > { %v15833_v45 = vadd.f32 %v15823_v47, %v22586_v0  ;;  %v16719_v47 = vld [vmem:[%s22774_s19] ss:$0 sm:$0xff] }
0x2196   : > { %v15832_v50 = vadd.f32 %v15818_v61, %v22584_v60 }
0x2197   : > { %v15857_v9 = vsel %vm684_vm0, %v15833_v45, 0.0 }
0x2198   : > { %15858 = vadd.xlane.f32.xlu1 %v15857_v9  ;;  %v15854_v41 = vsel %vm684_vm0, %v15832_v50, 0.0 }
0x2199   : > { %15855 = vadd.xlane.f32.xlu0 %v15854_v41 }
0x220d   : > { %v15841_v10 = vpop.xlane.xlu1 %15840 }
0x220e   : > { %v15861_v62 = vmul.f32 0.03125, %v15841_v10  ;;  %v15838_v54 = vpop.xlane.xlu0 %15837 }
0x220f   : > { %v15860_v51 = vmul.f32 0.03125, %v15838_v54 }
0x2210   : > { %v22628_v40 = vsub.f32 %v15827_v59, %v15861_v62 }
0x2211   : > { %v22630_v43 = vsub.f32 %v15826_v27, %v15860_v51 }
0x2212   : > { %v15877_v46 = vmul.f32 %v22628_v40, %v22628_v40 }
0x2213   : > { %v15876_v60 = vmul.f32 %v22630_v43, %v22630_v43 }
0x2214   : > { %v15887_v0 = vsel %vm684_vm0, %v15877_v46, 0.0 }
0x2215   : > { %v15847_v7 = vpop.xlane.xlu1 %15846  ;;  %15888 = vadd.xlane.f32.xlu1 %v15887_v0  ;;  %v15884_v12 = vsel %vm684_vm0, %v15876_v60, 0.0 }
0x2216   : > { %v15863_v34 = vmul.f32 0.03125, %v15847_v7  ;;  %15885 = vadd.xlane.f32.xlu0 %v15884_v12  ;;  %v15844_v38 = vpop.xlane.xlu0 %15843 }
0x2217   : > { %v15862_v2 = vmul.f32 0.03125, %v15844_v38 }
0x2218   : > { %v22638_v29 = vsub.f32 %v15829_v36, %v15863_v34 }
0x2219   : > { %v22640_v13 = vsub.f32 %v15828_v17, %v15862_v2 }
0x221a   : > { %v15879_v58 = vmul.f32 %v22638_v29, %v22638_v29 }
0x221b   : > { %v15878_v22 = vmul.f32 %v22640_v13, %v22640_v13 }
0x221c   : > { %v15893_v63 = vsel %vm684_vm0, %v15879_v58, 0.0 }
0x221d   : > { %v15853_v8 = vpop.xlane.xlu1 %15852  ;;  %15894 = vadd.xlane.f32.xlu1 %v15893_v63  ;;  %v15890_v5 = vsel %vm684_vm0, %v15878_v22, 0.0 }
0x221e   : > { %v15865_v33 = vmul.f32 0.03125, %v15853_v8  ;;  %15891 = vadd.xlane.f32.xlu0 %v15890_v5  ;;  %v15850_v18 = vpop.xlane.xlu0 %15849 }
0x221f   : > { %v15864_v23 = vmul.f32 0.03125, %v15850_v18 }
0x2220   : > { %v22648_v49 = vsub.f32 %v15831_v37, %v15865_v33 }
0x2221   : > { %v22650_v11 = vsub.f32 %v15830_v56, %v15864_v23  ;;  %v16718_v56 = vld [vmem:[%s22773_s18] ss:$0 sm:$0xff] }
0x2222   : > { %v15881_v3 = vmul.f32 %v22648_v49, %v22648_v49 }
0x2223   : > { %v15880_v4 = vmul.f32 %v22650_v11, %v22650_v11 }
0x2224   : > { %v15899_v28 = vsel %vm684_vm0, %v15881_v3, 0.0 }
0x2225   : > { %15900 = vadd.xlane.f32.xlu1 %v15899_v28  ;;  %v15859_v14 = vpop.xlane.xlu1 %15858  ;;  %v15896_v24 = vsel %vm684_vm0, %v15880_v4, 0.0 }
0x2226   : > { %v15867_v32 = vmul.f32 0.03125, %v15859_v14  ;;  %15897 = vadd.xlane.f32.xlu0 %v15896_v24  ;;  %v15856_v20 = vpop.xlane.xlu0 %15855 }
0x2227   : > { %v15866_v52 = vmul.f32 0.03125, %v15856_v20 }
0x2228   : > { %v22658_v44 = vsub.f32 %v15833_v45, %v15867_v32 }
0x2229   : > { %v22660_v21 = vsub.f32 %v15832_v50, %v15866_v52 }
0x222a   : > { %v15883_v59 = vmul.f32 %v22658_v44, %v22658_v44 }
0x222b   : > { %v15882_v27 = vmul.f32 %v22660_v21, %v22660_v21 }
0x222c   : > { %v15905_v15 = vsel %vm684_vm0, %v15883_v59, 0.0 }
0x222d   : > { %15906 = vadd.xlane.f32.xlu1 %v15905_v15  ;;  %v15902_v19 = vsel %vm684_vm0, %v15882_v27, 0.0 }
0x222e   : > { %15903 = vadd.xlane.f32.xlu0 %v15902_v19 }
0x22a2   : > { %v15889_v26 = vpop.xlane.xlu1 %15888 }
0x22a3   : > { %v15909_v25 = vmul.f32 0.03125, %v15889_v26  ;;  %v15886_v55 = vpop.xlane.xlu0 %15885 }
0x22a4   : > { %v15908_v39 = vmul.f32 0.03125, %v15886_v55 }
0x22a5   : > { %v15917_v36 = vadd.f32 1e-05, %v15909_v25 }
0x22a6   : > { %v15916_v17 = vadd.f32 1e-05, %v15908_v39 }
0x22a7   : > { %19823 = vrsqrt.f32 %v15917_v36 }
0x22a8   : > { %19825 = vrsqrt.f32 %v15916_v17 }
0x22aa   : > { %v15895_v53 = vpop.xlane.xlu1 %15894 }
0x22ab   : > { %v15911_v16 = vmul.f32 0.03125, %v15895_v53  ;;  %v15892_v31 = vpop.xlane.xlu0 %15891 }
0x22ac   : > { %v15910_v35 = vmul.f32 0.03125, %v15892_v31 }
0x22ad   : > { %v15919_v1 = vadd.f32 1e-05, %v15911_v16 }
0x22ae   : > { %v15918_v30 = vadd.f32 1e-05, %v15910_v35 }
0x22af   : > { %19827 = vrsqrt.f32 %v15919_v1 }
0x22b0   : > { %19829 = vrsqrt.f32 %v15918_v30 }
0x22b1   : > { %v19824_v37 = vpop.eup %19823 }
0x22b2   : > { %v19826_v42 = vpop.eup %19825  ;;  %v15933_v48 = vmul.f32 %v19824_v37, %v22628_v40  ;;  %v15901_v57 = vpop.xlane.xlu1 %15900 }
0x22b3   : > { %v15932_v6 = vmul.f32 %v19826_v42, %v22630_v43  ;;  %v15913_v61 = vmul.f32 0.03125, %v15901_v57  ;;  %v15898_v45 = vpop.xlane.xlu0 %15897 }
0x22b4   : > { %v15947_v50 = vmul.f32 %v16718_v56, %v15933_v48  ;;  %v15912_v9 = vmul.f32 0.03125, %v15898_v45 }
0x22b5   : > { %v15946_v41 = vmul.f32 %v16718_v56, %v15932_v6  ;;  %v15921_v10 = vadd.f32 1e-05, %v15913_v61 }
0x22b6   : > { %v15961_v62 = vadd.f32 %v16719_v47, %v15947_v50  ;;  %v15920_v54 = vadd.f32 1e-05, %v15912_v9 }
0x22b7   : > { %v15960_v51 = vadd.f32 %v16719_v47, %v15946_v41  ;;  %19831 = vrsqrt.f32 %v15921_v10 }
0x22b8   : > { %15969 = vst.msk [vmem:[%s22679_s26 + $0x8] sm:$0xff] %vm684_vm0, %v15961_v62  ;;  %19833 = vrsqrt.f32 %v15920_v54 }
0x22b9   : > { %v19828_v40 = vpop.eup %19827  ;;  %15968 = vst.msk [vmem:[%s22679_s26] sm:$0xff] %vm684_vm0, %v15960_v51 }
0x22ba   : > { %v19830_v43 = vpop.eup %19829  ;;  %v15935_v46 = vmul.f32 %v19828_v40, %v22638_v29  ;;  %v15907_v60 = vpop.xlane.xlu1 %15906 }
0x22bb   : > { %v15934_v0 = vmul.f32 %v19830_v43, %v22640_v13  ;;  %v15915_v7 = vmul.f32 0.03125, %v15907_v60  ;;  %v15904_v12 = vpop.xlane.xlu0 %15903 }
0x22bc   : > { %v15949_v34 = vmul.f32 %v16718_v56, %v15935_v46  ;;  %v15914_v38 = vmul.f32 0.03125, %v15904_v12 }
0x22bd   : > { %v15948_v2 = vmul.f32 %v16718_v56, %v15934_v0  ;;  %v15923_v58 = vadd.f32 1e-05, %v15915_v7 }
0x22be   : > { %v15963_v22 = vadd.f32 %v16719_v47, %v15949_v34  ;;  %v15922_v63 = vadd.f32 1e-05, %v15914_v38 }
0x22bf   : > { %v15962_v8 = vadd.f32 %v16719_v47, %v15948_v2  ;;  %19835 = vrsqrt.f32 %v15923_v58 }
0x22c0   : > { %15971 = vst.msk [vmem:[%s22679_s26 + $0x18] sm:$0xff] %vm684_vm0, %v15963_v22  ;;  %19837 = vrsqrt.f32 %v15922_v63 }
0x22c1   : > { %v19832_v29 = vpop.eup %19831  ;;  %15970 = vst.msk [vmem:[%s22679_s26 + $0x10] sm:$0xff] %vm684_vm0, %v15962_v8 }
0x22c2   : > { %v19834_v13 = vpop.eup %19833  ;;  %v15937_v5 = vmul.f32 %v19832_v29, %v22648_v49 }
0x22c3   : > { %v15936_v33 = vmul.f32 %v19834_v13, %v22650_v11 }
0x22c4   : > { %v15951_v18 = vmul.f32 %v16718_v56, %v15937_v5 }
0x22c5   : > { %v15950_v23 = vmul.f32 %v16718_v56, %v15936_v33 }
0x22c6   : > { %v15965_v3 = vadd.f32 %v16719_v47, %v15951_v18 }
0x22c7   : > { %v15964_v4 = vadd.f32 %v16719_v47, %v15950_v23 }
0x22c8   : > { %15973 = vst.msk [vmem:[%s22679_s26 + $0x28] sm:$0xff] %vm684_vm0, %v15965_v3 }
0x22c9   : > { %v19836_v28 = vpop.eup %19835  ;;  %15972 = vst.msk [vmem:[%s22679_s26 + $0x20] sm:$0xff] %vm684_vm0, %v15964_v4 }
0x22ca   : > { %v19838_v14 = vpop.eup %19837  ;;  %v15939_v24 = vmul.f32 %v19836_v28, %v22658_v44 }
0x22cb   : > { %v15938_v49 = vmul.f32 %v19838_v14, %v22660_v21 }
0x22cc   : > { %v15953_v11 = vmul.f32 %v16718_v56, %v15939_v24 }
0x22cd   : > { %v15952_v32 = vmul.f32 %v16718_v56, %v15938_v49 }
0x22ce   : > { %v15967_v20 = vadd.f32 %v16719_v47, %v15953_v11 }
0x22cf   : > { %v15966_v52 = vadd.f32 %v16719_v47, %v15952_v32 }
0x22d0   : > { %15975 = vst.msk [vmem:[%s22679_s26 + $0x38] sm:$0xff] %vm684_vm0, %v15967_v20 }
0x22d1   : > { %15974 = vst.msk [vmem:[%s22679_s26 + $0x30] sm:$0xff] %vm684_vm0, %v15966_v52 }
0x22d2   : > { %19884 = shalt.err (!%p19881_p3)
}
0x22d3   : > { %s19885_s30 = scalar_lea.hbm %s22704_s25, 1024  ;;  %s19889_s1 = scalar_lea.hbm %s22827_s0, 2048 }
0x22d4   : > { %p19886_p4 = scmp.ne.s32.totalorder %s22704_s25, %s19885_s30  ;;  %p19890_p9 = scmp.lt.u32.totalorder %s22704_s25, %s22827_s0 }
0x22d5   : > { %p19891_p10 = scmp.lt.u32.totalorder %s19889_s1, %s19885_s30  ;;  %p19893_p12 = scmp.lt.u32.totalorder %s19885_s30, %s22704_s25 }
0x22d6   : > { %p19887_p7 = pnand %p19886_p4, %p20084_p5 }
0x22d7   : > { %p19892_p11 = por %p19891_p10, %p19890_p9 }
0x22d8   : > { %p19888_p8 = pneg %p19887_p7 }
0x22d9   : > { %p19894_p13 = por %p19893_p12, %p19892_p11 }
0x22db   : > { %p19895_p0 = pnand %p19894_p13, %p19888_p8 }
0x22dd   : > { %19898 = shalt.err (!%p19895_p0)
}
0x22de   : > { %s19939_s28 = smov 128   ;;  %s19940_s27 = smov 8  }
0x22df   : > { %19491 = dma.vmem_to_hbm [thread:$0]  (%p20084_p5), %s22706_s23, 1024, %s22704_s25, %s22714_s20, %s19939_s28, %s19939_s28, %s19940_s27  }
0x22e0 PF: > { %s22828_s26 = sld [smem:[#allocation7_spill]]  ;;  %s22829_s2 = sld [smem:[#allocation5_spill]] }
0x22e6   : > { %p19497_p1 = scmp.ge.s32.totalorder %s22828_s26, 2  ;;  %s16005_s3 = sand.u32 1, %s22829_s2  }
0x22e7   : > { %s16006_s30 = scalar_lea.sflag [#allocation3], %s16005_s3 }
0x22e8   : > { %p19494_p2 = pnand %p19497_p1, %p20088_p6 }
0x22ea   : > { %19916 = dma.done.wait (!%p19494_p2), %s16006_s30, 1024  }
0x22eb   : > { %19918 = vsyncadd (!%p19494_p2), %s16006_s30, 4294966272  ;;  %s22831_s24 = sld [smem:[#allocation9_spill]]  ;;  %s22832_s29 = sld [smem:[#allocation6_spill]] }
0x22ec   : > { %s22833_s23 = sld [smem:[#allocation10_spill]]  ;;  %s22834_s1 = smov %s19925_s22 }
0x22f1   : > { %p30_p3 = scmp.ge.s32.totalorder %s22831_s24, 4   ;;  %s22835_s22 = smov %s22832_s29 }
0x22f3   :  { %32 = sbr.rel (!%p30_p3) target bundleno = 10 (0xa), region = 162 }
0x22fa   :  { %16011 = vsyncpa [#allocation3], 1 }
0x22fb   :  { %16013 = vsyncpa [#allocation3 + $0x1], 1 }

</bundles_post_ra>
